<compile_context>
chip_gen: v6e
topology: v6e:2x2x1
jax: 0.10.0
libtpu: 0.0.40
codegen_flags: <defaults>
</compile_context>

<pallas_src>
import jax
import jax.numpy as jnp
from jax import lax
from jax.experimental import pallas as pl
from jax.experimental.pallas import tpu as pltpu

EPS = 1e-5
_INV_SQRT2 = 0.7071067811865476


def ln_linear_gelu_kernel(x_ref, gamma_ref, beta_ref, w_ref, b_ref, o_ref):
    # x_ref:     (M, K)   full input rows, f32 (resident across all grid steps)
    # gamma_ref: (1, K)   f32
    # beta_ref:  (1, K)   f32
    # w_ref:     (K, TN)  bf16 column tile of the (K, N) weight
    # b_ref:     (1, TN)  f32
    # o_ref:     (M, TN)
    x = x_ref[...].astype(jnp.float32)

    # LayerNorm over the feature dim (biased variance, like torch.nn.LayerNorm).
    mean = jnp.mean(x, axis=-1, keepdims=True)
    centered = x - mean
    var = jnp.mean(centered * centered, axis=-1, keepdims=True)
    xn = centered * lax.rsqrt(var + EPS)
    xn = xn * gamma_ref[...] + beta_ref[...]

    # Linear: bf16 x bf16 on the MXU with f32 accumulation; f32 bias afterwards.
    y = jnp.dot(xn.astype(jnp.bfloat16), w_ref[...],
                preferred_element_type=jnp.float32)
    y = y + b_ref[...]

    # Exact GELU (approximate='none'): 0.5 * y * (1 + erf(y / sqrt(2)))
    out = 0.5 * y * (1.0 + lax.erf(y * _INV_SQRT2))

    # Dropout(p=0.0) is the identity.
    o_ref[...] = out.astype(o_ref.dtype)


def prepare_weight(w, *, tn=2048):
    """One-time parameter prep (call outside jit, once per model): cast the
    (K, N) weight to bf16 and pre-tile to (N//tn, K, tn) so every grid step's
    weight DMA is a single fully contiguous transfer."""
    K, N = w.shape
    assert N % tn == 0, (N, tn)
    return jnp.asarray(w, jnp.bfloat16).reshape(K, N // tn, tn).transpose(1, 0, 2)


@jax.jit
def layernorm_linear_gelu(x, gamma, beta, w_tiled, b):
    """x: (..., K); w_tiled: (N//tn, K, tn) bf16 from prepare_weight().
    Returns (..., N) in x.dtype."""
    orig_shape = x.shape
    K = orig_shape[-1]
    nt, Kw, tn = w_tiled.shape
    assert Kw == K, (Kw, K)
    N = nt * tn
    M = 1
    for d in orig_shape[:-1]:
        M *= d

    x2 = x.reshape(M, K)
    gamma2 = gamma.reshape(1, K).astype(jnp.float32)
    beta2 = beta.reshape(1, K).astype(jnp.float32)
    b2 = b.reshape(1, N).astype(jnp.float32)

    cost = pl.CostEstimate(
        flops=2 * M * K * N,
        transcendentals=M * N,
        bytes_accessed=K * N * 2 + M * K * 4 + M * N * 4 + 2 * K * 4 + N * 4,
    )

    out = pl.pallas_call(
        ln_linear_gelu_kernel,
        out_shape=jax.ShapeDtypeStruct((M, N), x.dtype),
        grid_spec=pltpu.PrefetchScalarGridSpec(
            num_scalar_prefetch=0,
            grid=(nt,),
            in_specs=[
                pl.BlockSpec((M, K), lambda j: (0, 0)),            # x (full rows)
                pl.BlockSpec((1, K), lambda j: (0, 0)),            # gamma
                pl.BlockSpec((1, K), lambda j: (0, 0)),            # beta
                pl.BlockSpec((None, K, tn), lambda j: (j, 0, 0)),  # bf16 W tile
                pl.BlockSpec((1, tn), lambda j: (0, j)),           # bias tile
            ],
            out_specs=pl.BlockSpec((M, tn), lambda j: (0, j)),
        ),
        compiler_params=pltpu.CompilerParams(
            dimension_semantics=("parallel",),
        ),
        cost_estimate=cost,
    )(x2, gamma2, beta2, w_tiled, b2)

    return out.reshape(*orig_shape[:-1], N)


def reference(x, gamma, beta, w, b):
    xf = x.astype(jnp.float32)
    mean = jnp.mean(xf, axis=-1, keepdims=True)
    var = jnp.mean((xf - mean) ** 2, axis=-1, keepdims=True)
    xn = (xf - mean) * lax.rsqrt(var + EPS) * gamma + beta
    y = xn @ w + b
    return 0.5 * y * (1.0 + lax.erf(y / jnp.sqrt(2.0)))


if __name__ == "__main__":
    key = jax.random.PRNGKey(0)
    k_x, k_w, k_b, k_g, k_be = jax.random.split(key, 5)

    B, H, W_, C = 1, 7, 7, 1024
    N = 4096

    x = jax.random.normal(k_x, (B, H, W_, C), dtype=jnp.float32)

    # PyTorch Linear weight is (out_features, in_features) = (4096, 1024);
    # we store its transpose (1024, 4096) for the row-major matmul.
    w = jax.random.normal(k_w, (C, N), dtype=jnp.float32) * 0.02
    b = jax.random.normal(k_b, (N,), dtype=jnp.float32) * 0.02
    gamma = 1.0 + 0.1 * jax.random.normal(k_g, (C,), dtype=jnp.float32)
    beta = 0.1 * jax.random.normal(k_be, (C,), dtype=jnp.float32)

    # One-time parameter prep (bf16 cast + contiguous tiling), outside jit.
    w_tiled = prepare_weight(w, tn=2048)

    out = layernorm_linear_gelu(x, gamma, beta, w_tiled, b)
    out = jax.block_until_ready(out)

    ref = reference(x, gamma, beta, w, b)
    assert out.shape == (B, H, W_, N), out.shape
    # bf16 weight/activation streaming (the main perf lever) loosens tolerance
    # vs. the full-f32 reference; f32 MXU accumulation keeps the error ~1e-2.
    max_err = float(jnp.max(jnp.abs(out - ref)))
    assert jnp.allclose(out, ref, atol=2e-2, rtol=2e-2), max_err

    print("KERNEL_OK")
</pallas_src>

<mosaic_0001>
module attributes {stable_mosaic.version = 11 : i64} {
  func.func @ln_linear_gelu_kernel(%arg0: i32, %arg1: memref<49x1024xf32, #tpu.memory_space<vmem>>, %arg2: memref<1x1024xf32, #tpu.memory_space<vmem>>, %arg3: memref<1x1024xf32, #tpu.memory_space<vmem>>, %arg4: memref<1x1024x2048xbf16, #tpu.memory_space<vmem>>, %arg5: memref<1x2048xf32, #tpu.memory_space<vmem>>, %arg6: memref<49x2048xf32, #tpu.memory_space<vmem>>) attributes {dimension_semantics = [#tpu.dimension_semantics<parallel>], iteration_bounds = array<i64: 2>, scalar_prefetch = 0 : i64, scratch_operands = 0 : i64, tpu.core_type = #tpu.core_type<tc>, window_params = [{pipeline_mode = #tpu.pipeline_mode<synchronous>, transform_indices = @transform_0, window_bounds = array<i64: 49, 1024>}, {pipeline_mode = #tpu.pipeline_mode<synchronous>, transform_indices = @transform_1, window_bounds = array<i64: 1, 1024>}, {pipeline_mode = #tpu.pipeline_mode<synchronous>, transform_indices = @transform_2, window_bounds = array<i64: 1, 1024>}, {transform_indices = @transform_3, window_bounds = array<i64: 1, 1024, 2048>}, {transform_indices = @transform_4, window_bounds = array<i64: 1, 2048>}, {transform_indices = @transform_5, window_bounds = array<i64: 49, 2048>}]} {
    %c0 = arith.constant 0 : index
    %c0_0 = arith.constant 0 : index
    %0 = vector.load %arg1[%c0, %c0_0] : memref<49x1024xf32, #tpu.memory_space<vmem>>, vector<49x1024xf32>
    %cst = arith.constant dense<0.000000e+00> : vector<49xf32>
    %1 = vector.multi_reduction <add>, %0, %cst [1] : vector<49x1024xf32> to vector<49xf32>
    %2 = vector.shape_cast %1 : vector<49xf32> to vector<49x1xf32>
    %cst_1 = arith.constant 1.024000e+03 : f32
    %3 = vector.broadcast %cst_1 : f32 to vector<49x1xf32>
    %4 = arith.divf %2, %3 : vector<49x1xf32>
    %5 = vector.broadcast %4 : vector<49x1xf32> to vector<49x1024xf32>
    %6 = arith.subf %0, %5 : vector<49x1024xf32>
    %7 = arith.mulf %6, %6 : vector<49x1024xf32>
    %cst_2 = arith.constant dense<0.000000e+00> : vector<49xf32>
    %8 = vector.multi_reduction <add>, %7, %cst_2 [1] : vector<49x1024xf32> to vector<49xf32>
    %9 = vector.shape_cast %8 : vector<49xf32> to vector<49x1xf32>
    %cst_3 = arith.constant 1.024000e+03 : f32
    %10 = vector.broadcast %cst_3 : f32 to vector<49x1xf32>
    %11 = arith.divf %9, %10 : vector<49x1xf32>
    %cst_4 = arith.constant 9.99999974E-6 : f32
    %12 = vector.broadcast %cst_4 : f32 to vector<49x1xf32>
    %13 = arith.addf %11, %12 : vector<49x1xf32>
    %14 = math.rsqrt %13 : vector<49x1xf32>
    %15 = vector.broadcast %14 : vector<49x1xf32> to vector<49x1024xf32>
    %16 = arith.mulf %6, %15 : vector<49x1024xf32>
    %c0_5 = arith.constant 0 : index
    %c0_6 = arith.constant 0 : index
    %17 = vector.load %arg2[%c0_5, %c0_6] : memref<1x1024xf32, #tpu.memory_space<vmem>>, vector<1x1024xf32>
    %18 = vector.broadcast %17 : vector<1x1024xf32> to vector<49x1024xf32>
    %19 = arith.mulf %16, %18 : vector<49x1024xf32>
    %c0_7 = arith.constant 0 : index
    %c0_8 = arith.constant 0 : index
    %20 = vector.load %arg3[%c0_7, %c0_8] : memref<1x1024xf32, #tpu.memory_space<vmem>>, vector<1x1024xf32>
    %21 = vector.broadcast %20 : vector<1x1024xf32> to vector<49x1024xf32>
    %22 = arith.addf %19, %21 : vector<49x1024xf32>
    %23 = arith.truncf %22 : vector<49x1024xf32> to vector<49x1024xbf16>
    %c0_9 = arith.constant 0 : index
    %c0_10 = arith.constant 0 : index
    %c0_11 = arith.constant 0 : index
    %24 = vector.load %arg4[%c0_9, %c0_10, %c0_11] : memref<1x1024x2048xbf16, #tpu.memory_space<vmem>>, vector<1x1024x2048xbf16>
    %25 = vector.shape_cast %24 : vector<1x1024x2048xbf16> to vector<1024x2048xbf16>
    %cst_12 = arith.constant dense<0.000000e+00> : vector<49x2048xf32>
    %26 = tpu.matmul %23, %25, %cst_12 {dimension_numbers = #tpu.dot_dimension_numbers<[1], [0], [0], [1], [0, 0, 1, 1], [], []>} : vector<49x1024xbf16>, vector<1024x2048xbf16>, vector<49x2048xf32> -> vector<49x2048xf32>
    %c0_13 = arith.constant 0 : index
    %c0_14 = arith.constant 0 : index
    %27 = vector.load %arg5[%c0_13, %c0_14] : memref<1x2048xf32, #tpu.memory_space<vmem>>, vector<1x2048xf32>
    %28 = vector.broadcast %27 : vector<1x2048xf32> to vector<49x2048xf32>
    %29 = arith.addf %26, %28 : vector<49x2048xf32>
    %cst_15 = arith.constant 5.000000e-01 : f32
    %30 = vector.broadcast %cst_15 : f32 to vector<49x2048xf32>
    %31 = arith.mulf %30, %29 : vector<49x2048xf32>
    %cst_16 = arith.constant 0.707106769 : f32
    %32 = vector.broadcast %cst_16 : f32 to vector<49x2048xf32>
    %33 = arith.mulf %29, %32 : vector<49x2048xf32>
    %34 = math.erf %33 : vector<49x2048xf32>
    %cst_17 = arith.constant 1.000000e+00 : f32
    %35 = vector.broadcast %cst_17 : f32 to vector<49x2048xf32>
    %36 = arith.addf %35, %34 : vector<49x2048xf32>
    %37 = arith.mulf %31, %36 : vector<49x2048xf32>
    %c0_18 = arith.constant 0 : index
    %c0_19 = arith.constant 0 : index
    %38 = vector.load %arg6[%c0_18, %c0_19] : memref<49x2048xf32, #tpu.memory_space<vmem>>, vector<49x2048xf32>
    tpu.vector_store %arg6[%c0_18, %c0_19], %37 {strides = array<i32>} : memref<49x2048xf32, #tpu.memory_space<vmem>>, vector<49x2048xf32>,
    return
  }
  func.func @transform_0(%arg0: i32) -> (i32, i32) {
    %c0_i32 = arith.constant 0 : i32
    %c0_i32_0 = arith.constant 0 : i32
    %c0_i32_1 = arith.constant 0 : i32
    return %c0_i32, %c0_i32_0 : i32, i32
  }
  func.func @transform_1(%arg0: i32) -> (i32, i32) {
    %c0_i32 = arith.constant 0 : i32
    %c0_i32_0 = arith.constant 0 : i32
    %c0_i32_1 = arith.constant 0 : i32
    return %c0_i32, %c0_i32_0 : i32, i32
  }
  func.func @transform_2(%arg0: i32) -> (i32, i32) {
    %c0_i32 = arith.constant 0 : i32
    %c0_i32_0 = arith.constant 0 : i32
    %c0_i32_1 = arith.constant 0 : i32
    return %c0_i32, %c0_i32_0 : i32, i32
  }
  func.func @transform_3(%arg0: i32) -> (i32, i32, i32) {
    %c0_i32 = arith.constant 0 : i32
    %c0_i32_0 = arith.constant 0 : i32
    %c0_i32_1 = arith.constant 0 : i32
    return %arg0, %c0_i32, %c0_i32_0 : i32, i32, i32
  }
  func.func @transform_4(%arg0: i32) -> (i32, i32) {
    %c0_i32 = arith.constant 0 : i32
    %c0_i32_0 = arith.constant 0 : i32
    return %c0_i32, %arg0 : i32, i32
  }
  func.func @transform_5(%arg0: i32) -> (i32, i32) {
    %c0_i32 = arith.constant 0 : i32
    %c0_i32_0 = arith.constant 0 : i32
    return %c0_i32, %arg0 : i32, i32
  }
}

</mosaic_0001>

<bundles_post_ra>
// kernel: layernorm_linear_gelu.1
= control target key start
LH: loop header
LB: loop body
LE: loop exit
PB: predicated region body
PF: predicated region fallthrough
CT: control target
= control target key end

     0   :  { %10 = vsyncpa [#allocation3], 0  ;;  %s17626_s0 = inlined_call_operand.vmem [shape: f32[49,1024], index: 0, kind: input, shape index: {}]   ;;  %s17627_s1 = inlined_call_operand.hbm [shape: f32[1,1024], index: 1, kind: input, shape index: {}]   ;;  %s17628_s2 = inlined_call_operand.hbm [shape: f32[1,1024], index: 2, kind: input, shape index: {}]   ;;  %s17629_s3 = inlined_call_operand.hbm [shape: bf16[2,1024,2048], index: 3, kind: input, shape index: {}]   ;;  %s17630_s4 = inlined_call_operand.hbm [shape: f32[1,4096], index: 4, kind: input, shape index: {}]   ;;  %s17631_s5 = inlined_call_operand.vmem [shape: f32[49,4096], index: 5, kind: output, shape index: {}]  }
   0x1   :  { %11 = vsyncpa [#allocation5], 0  ;;  %s11991_s18 = smov 0   ;;  %s11993_s19 = smov 0  }
   0x2   :  { %s11995_s20 = smov 0   ;;  %s11997_s21 = smov 0  }
   0x3 LB: > { %s12010_s22 = sadd.s32 4294967295, %s11953_s21   ;;  %s12013_s23 = sadd.s32 1, %s11953_s21   ;;  %s11953_s21 = sphi %s11997_s21, %s18353_s21   ;;  %s11949_s20 = sphi %s11995_s20, %s18352_s20   ;;  %s11945_s19 = sphi %s11993_s19, %s18351_s19   ;;  %s11941_s18 = sphi %s11991_s18, %s18350_s18  }
   0x4   : > { %s84_s24 = ssub.s32 %s11953_s21, %s12013_s23  ;;  %s87_s25 = sadd.s32 1, %s11949_s20 }
   0x5   : > { %p85_p0 = scmp.eq.s32.totalorder %s84_s24, 0  ;;  %p94_p1 = scmp.ne.s32.totalorder %s11949_s20, %s11945_s19 }
   0x6   : > { %p95_p2 = scmp.eq.s32.totalorder %s11953_s21, 0  ;;  %p100_p3 = scmp.ne.s32.totalorder %s11945_s19, %s11941_s18 }
   0x7   : > { %s12023_s26 = scalar_select %p85_p0, %s11949_s20, %s87_s25  }
   0x8   : > { %p12025_p4 = por %p95_p2, %p94_p1  ;;  %p17632_p5 = scmp.eq.s32.totalorder %s12010_s22, 0 }
   0x9   : > { %p150_p6 = scmp.eq.s32.totalorder %s12010_s22, 1  ;;  %p10446_p7 = scmp.ge.s32.totalorder %s11953_s21, 1 }
   0xa   : > { %p12034_p8 = por %p17632_p5, %p100_p3  ;;  %p163_p9 = scmp.lt.s32.totalorder %s11953_s21, 3 }
   0xb   : > { %p12039_p10 = por %p150_p6, %p94_p1  ;;  %s11955_s6 = smov [#allocation2]  }
   0xc   : > { %s17817_s28 = scalar_select %p12034_p8, 1, 0 }
   0xd   : > { %s17818_s29 = scalar_select %p12039_p10, 1, 0 }
   0xe   : > { %p12043_p11 = pnand %p10446_p7, %p163_p9  ;;  %s179_s7 = sshll.u32 %s11955_s6, 4  ;;  %s180_s7 = int_to_ptr.vmem [resolvable:$true] %s179_s7 }
   0xf   : > { %p11521_p13 = scmp.lt.s32.totalorder %s11953_s21, 2  ;;  %s201_s8 = sand.u32 1, %s11953_s21  }
  0x10   : > { %s17819_s30 = scalar_select %p12043_p11, 1, 0 }
  0x11   : > { %p11505_p12 = pneg %p12043_p11  ;;  %p12059_p1 = pnand %p11521_p13, %p12025_p4 }
  0x12   : > { %s203_s11 = sand.u32 1, %s11949_s20   ;;  %s11814_s13 = scalar_lea.vmem %s180_s7, 128 }
  0x13   : > { %p12053_p0 = pnand %p11505_p12, %p17632_p5  ;;  %s10450_s12 = sshll.u32 %s203_s11, 13 }
  0x14   : > { %p11815_p3 = scmp.ne.s32.totalorder %s180_s7, %s11814_s13  ;;  %p11822_p9 = scmp.lt.s32.totalorder %s180_s7, %s180_s7 }
  0x15   : > { %p17633_p2 = pneg %p12053_p0  ;;  %p11823_p12 = scmp.lt.s32.totalorder %s11814_s13, %s11814_s13 }
  0x17   : > { %p11817_p6 = pnand %p11815_p3, %p17633_p2  ;;  %p11824_p5 = por %p11823_p12, %p11822_p9 }
  0x19   : > { %p11818_p7 = pneg %p11817_p6 }
  0x1b   : > { %p11825_p10 = pnand %p11824_p5, %p11818_p7 }
  0x1d   : > { %11828 = shalt.err (!%p11825_p10)
}
  0x1e   : > { %11508 = dma.hbm_to_vmem [thread:$0]  (!%p12053_p0), %s17627_s1, 128, %s180_s7, [#allocation3]  }
  0x1f   : > { %s11489_s16 = sshll.u32 %s11953_s21, 17  ;;  %s205_s17 = scalar_lea.vmem [#allocation6], %s10450_s12 }
  0x20   : > { %s212_s18 = sshll.u32 %s205_s17, 4  ;;  %s12080_s27 = scalar_lea.hbm %s17629_s3, %s11489_s16  ;;  %s12082_s18 = int_to_ptr.vmem [resolvable:$true] %s212_s18 }
  0x21   : > { %s12084_s6 = scalar_lea.sflag [#allocation3], %s201_s8  ;;  %s11829_s13 = scalar_lea.hbm %s12080_s27, 131072 }
  0x22   : > { %p11830_p4 = scmp.ne.s32.totalorder %s12080_s27, %s11829_s13  ;;  %p11831_p5 = pneg %p12059_p1 }
  0x23   : > { %s11834_s14 = scalar_lea.hbm %s17629_s3, 262144  ;;  %p11835_p3 = scmp.lt.s32.totalorder %s12080_s27, %s17629_s3 }
  0x24   : > { %p11832_p10 = pnand %p11831_p5, %p11830_p4  ;;  %p11836_p6 = scmp.lt.s32.totalorder %s11834_s14, %s11829_s13 }
  0x26   : > { %p11833_p13 = pneg %p11832_p10  ;;  %p11837_p7 = por %p11836_p6, %p11835_p3 }
  0x28   : > { %p11838_p9 = pnand %p11837_p7, %p11833_p13 }
  0x2a   : > { %11841 = shalt.err (!%p11838_p9)
}
  0x2b   : > { %s11842_s8 = scalar_lea.vmem %s12082_s18, 131072  ;;  %s11956_s17 = smov [#allocation6]  }
  0x2c   : > { %p11843_p12 = scmp.ne.s32.totalorder %s12082_s18, %s11842_s8  ;;  %s11847_s24 = sshll.u32 %s11956_s17, 4  ;;  %s11848_s24 = int_to_ptr.vmem [resolvable:$false] %s11847_s24 }
  0x2d   : > { %s11849_s25 = scalar_lea.vmem %s11848_s24, 262144  ;;  %p11850_p2 = scmp.lt.s32.totalorder %s12082_s18, %s11848_s24 }
  0x2e   : > { %p11845_p4 = pnand %p11843_p12, %p11831_p5  ;;  %p11851_p8 = scmp.lt.s32.totalorder %s11849_s25, %s11842_s8 }
  0x30   : > { %p11846_p10 = pneg %p11845_p4  ;;  %p11852_p11 = por %p11851_p8, %p11850_p2 }
  0x32   : > { %p11853_p3 = pnand %p11852_p11, %p11846_p10 }
  0x34   : > { %11856 = shalt.err (!%p11853_p3)
}
  0x35   : > { %s11957_s13 = smov 1024   ;;  %s11958_s7 = smov 64  }
  0x36   : > { %11515 = dma.hbm_to_vmem [thread:$0]  (!%p12059_p1), %s12080_s27, 131072, %s12082_s18, %s12084_s6, %s11957_s13, %s11957_s13, %s11958_s7  }
  0x37   : > { %s10453_s12 = sshll.u32 %s203_s11, 4  ;;  %s11959_s14 = smov [#allocation4]  }
  0x38   : > { %s190_s15 = sshll.u32 %s11959_s14, 4  ;;  %s11490_s16 = sshll.u32 %s11953_s21, 8  ;;  %s191_s15 = int_to_ptr.vmem [resolvable:$true] %s190_s15 }
  0x39   : > { %s11868_s8 = scalar_lea.vmem %s191_s15, 128  ;;  %p17822_p11 = pneg %p12053_p0 }
  0x3a   : > { %p11869_p8 = scmp.ne.s32.totalorder %s191_s15, %s11868_s8  ;;  %p11876_p6 = scmp.lt.s32.totalorder %s191_s15, %s191_s15 }
  0x3b   : > { %p11877_p7 = scmp.lt.s32.totalorder %s11868_s8, %s11868_s8 }
  0x3c   : > { %p11871_p2 = pnand %p11869_p8, %p17822_p11 }
  0x3d   : > { %p11878_p9 = por %p11877_p7, %p11876_p6 }
  0x3e   : > { %p11872_p13 = pneg %p11871_p2 }
  0x40   : > { %p11879_p12 = pnand %p11878_p9, %p11872_p13 }
  0x42   : > { %11882 = shalt.err (!%p11879_p12)
}
  0x43   : > { %11511 = dma.hbm_to_vmem [thread:$0]  (!%p12053_p0), %s17628_s2, 128, %s191_s15, [#allocation5]  }
  0x44   : > { %s232_s17 = scalar_lea.hbm %s17630_s4, %s11490_s16  ;;  %s226_s24 = scalar_lea.vmem [#allocation7], %s10453_s12 }
  0x45   : > { %s234_s25 = sshll.u32 %s226_s24, 4  ;;  %s11883_s13 = scalar_lea.hbm %s232_s17, 256  ;;  %s235_s25 = int_to_ptr.vmem [resolvable:$true] %s234_s25 }
  0x46   : > { %p11884_p4 = scmp.ne.s32.totalorder %s232_s17, %s11883_s13  ;;  %s11888_s14 = scalar_lea.hbm %s17630_s4, 512 }
  0x47   : > { %p11889_p0 = scmp.lt.s32.totalorder %s232_s17, %s17630_s4  ;;  %p11890_p8 = scmp.lt.s32.totalorder %s11888_s14, %s11883_s13 }
  0x48   : > { %p11886_p10 = pnand %p11884_p4, %p11831_p5 }
  0x49   : > { %p11891_p11 = por %p11890_p8, %p11889_p0 }
  0x4a   : > { %p11887_p3 = pneg %p11886_p10 }
  0x4c   : > { %p11892_p2 = pnand %p11891_p11, %p11887_p3 }
  0x4e   : > { %11895 = shalt.err (!%p11892_p2)
}
  0x4f   : > { %s11896_s12 = scalar_lea.vmem %s235_s25, 256  ;;  %s11960_s15 = smov [#allocation7]  }
  0x50   : > { %p11897_p13 = scmp.ne.s32.totalorder %s235_s25, %s11896_s12  ;;  %s11901_s16 = sshll.u32 %s11960_s15, 4  ;;  %s11902_s16 = int_to_ptr.vmem [resolvable:$false] %s11901_s16 }
  0x51   : > { %s11903_s27 = scalar_lea.vmem %s11902_s16, 512  ;;  %p11904_p9 = scmp.lt.s32.totalorder %s235_s25, %s11902_s16 }
  0x52   : > { %p11899_p6 = pnand %p11897_p13, %p11831_p5  ;;  %p11905_p12 = scmp.lt.s32.totalorder %s11903_s27, %s11896_s12 }
  0x54   : > { %p11900_p7 = pneg %p11899_p6  ;;  %p11906_p4 = por %p11905_p12, %p11904_p9 }
  0x56   : > { %p11907_p10 = pnand %p11906_p4, %p11900_p7 }
  0x58   : > { %11910 = shalt.err (!%p11907_p10)
}
  0x59   : > { %11518 = dma.hbm_to_vmem [thread:$0]  (!%p12059_p1), %s232_s17, 256, %s235_s25, %s12084_s6  }
  0x5a   : > { %p17823_p3 = scmp.ne.s32.totalorder %s17819_s30, 0 }
  0x5c   : > { %243 = sbr.rel (%p17823_p3) target bundleno = 1744 (0x6d0), region = 40 }
  0x61   : > { %p17824_p0 = scmp.eq.s32.totalorder %s12010_s22, 0 }
  0x63   : > { %11928 = dma.done.wait (%p17824_p0), [#allocation3], 128   ;;  %p17825_p5 = pmov %p17824_p0 }
  0x64   : > { %p17826_p8 = pmov %p17824_p0 }
  0x65   : > { %11930 = vsyncadd (%p17825_p5), [#allocation3], 4294967168 }
  0x66   : > { %11932 = dma.done.wait (%p17826_p8), [#allocation5], 128   ;;  %p17827_p11 = pmov %p17824_p0 }
  0x67   : > { %s253_s10 = sand.u32 1, %s12010_s22   ;;  %s12152_s6 = sand.u32 1, %s11945_s19  }
  0x68   : > { %11934 = vsyncadd (%p17827_p11), [#allocation5], 4294967168  ;;  %s10459_s30 = sshll.u32 %s12152_s6, 13  ;;  %s254_s11 = scalar_lea.sflag [#allocation3], %s253_s10 }
  0x69   : > { %s12155_s21 = scalar_lea.vmem [#allocation6], %s10459_s30  ;;  %p17828_p1 = scmp.ne.s32.totalorder %s17817_s28, 0 }
  0x6b   : > { %11936 = dma.done.wait (%p17828_p1), %s254_s11, 131328  }
  0x6c   : > { %11938 = vsyncadd (%p17828_p1), %s254_s11, 4294835968  ;;  %v12164_v0 = vld [vmem:[%s17626_s0] sm:$0xff]  ;;  %v12169_v1 = vld [vmem:[%s17626_s0 + $0x8] sm:$0xff]  ;;  %vm409_vm0 = vcmask 1040384   ;;  %s10460_s12 = sshll.u32 %s12152_s6, 4  ;;  %s11492_s16 = smul.u32 896, %s12152_s6 }
  0x6d   : > { %v12174_v2 = vld [vmem:[%s17626_s0 + $0x10] sm:$0xff]  ;;  %v355_v3 = vadd.f32 %v12169_v1, %v12164_v0  ;;  %v12181_v4 = vld [vmem:[%s17626_s0 + $0x18] sm:$0xff]  ;;  %v12186_v5 = vld [vmem:[%s17626_s0 + $0x80] sm:$0xff]  ;;  %s13921_s15 = scalar_lea.vmem [#allocation7], %s10460_s12  ;;  %p18349_p2 = scmp.ne.s32.totalorder %s17818_s29, 0 }
  0x6e   : > { %v12192_v7 = vld [vmem:[%s17626_s0 + $0x88] sm:$0xff]  ;;  %v12197_v8 = vld [vmem:[%s17626_s0 + $0x90] sm:$0xff]  ;;  %v12202_v9 = vld [vmem:[%s17626_s0 + $0x20] sm:$0xff]  ;;  %s14231_s27 = scalar_lea.vmem [#allocation8], %s11492_s16  ;;  %s11491_s6 = sshll.u32 (%p18349_p2), %s12010_s22, 7 }
  0x6f   : > { %v356_v6 = vadd.f32 %v355_v3, %v12174_v2  ;;  %v373_v10 = vadd.f32 %v12192_v7, %v12186_v5  ;;  %v12210_v12 = vld [vmem:[%s17626_s0 + $0x98] sm:$0xff]  ;;  %v12215_v13 = vld [vmem:[%s17626_s0 + $0x40] sm:$0xff]  ;;  %v12220_v14 = vld [vmem:[%s17626_s0 + $0x48] sm:$0xff]  ;;  %s17390_s30 = scalar_lea.vmem (%p18349_p2), %s17631_s5, %s11491_s6 }
  0x70   : > { %v12225_v15 = vld [vmem:[%s17626_s0 + $0x28] sm:$0xff]  ;;  %v12231_v17 = vld [vmem:[%s17626_s0 + $0x50] sm:$0xff]  ;;  %v364_v18 = vadd.f32 %v12220_v14, %v12215_v13  ;;  %v12244_v21 = vld [vmem:[%s17626_s0 + $0xa0] sm:$0xff] }
  0x71   : > { %v357_v11 = vadd.f32 %v356_v6, %v12181_v4  ;;  %v374_v16 = vadd.f32 %v373_v10, %v12197_v8  ;;  %v12238_v19 = vld [vmem:[%s17626_s0 + $0x30] sm:$0xff]  ;;  %v12249_v22 = vld [vmem:[%s17626_s0 + $0x58] sm:$0xff]  ;;  %v12256_v25 = vld [vmem:[%s17626_s0 + $0xc0] sm:$0xff] }
  0x72   : > { %v365_v24 = vadd.f32 %v364_v18, %v12231_v17  ;;  %v12261_v26 = vld [vmem:[%s17626_s0 + $0xc8] sm:$0xff]  ;;  %v12266_v27 = vld [vmem:[%s17626_s0 + $0xd0] sm:$0xff]  ;;  %v12271_v28 = vld [vmem:[%s17626_s0 + $0x38] sm:$0xff] }
  0x73   : > { %v358_v20 = vadd.f32 %v357_v11, %v12202_v9  ;;  %v375_v23 = vadd.f32 %v374_v16, %v12210_v12  ;;  %v12277_v30 = vld [vmem:[%s17626_s0 + $0xa8] sm:$0xff]  ;;  %v12282_v31 = vld [vmem:[%s17626_s0 + $0x60] sm:$0xff]  ;;  %v382_v32 = vadd.f32 %v12261_v26, %v12256_v25  ;;  %v12289_v33 = vld [vmem:[%s17626_s0 + $0xb0] sm:$0xff] }
  0x74   : > { %v366_v35 = vadd.f32 %v365_v24, %v12249_v22  ;;  %v12296_v36 = vld [vmem:[%s17626_s0 + $0xd8] sm:$0xff]  ;;  %v12301_v37 = vld [vmem:[%s17626_s0 + $0x100] sm:$0xff]  ;;  %v12307_v39 = vld [vmem:[%s17626_s0 + $0x68] sm:$0xff] }
  0x75   : > { %v359_v29 = vadd.f32 %v358_v20, %v12225_v15  ;;  %v376_v34 = vadd.f32 %v375_v23, %v12244_v21  ;;  %v383_v40 = vadd.f32 %v382_v32, %v12266_v27  ;;  %v12313_v41 = vld [vmem:[%s17626_s0 + $0x108] sm:$0xff]  ;;  %v12318_v42 = vld [vmem:[%s17626_s0 + $0x110] sm:$0xff]  ;;  %v12323_v43 = vld [vmem:[%s17626_s0 + $0xb8] sm:$0xff] }
  0x76   : > { %v12329_v45 = vld [vmem:[%s17626_s0 + $0x70] sm:$0xff]  ;;  %v367_v46 = vadd.f32 %v366_v35, %v12282_v31  ;;  %v12335_v47 = vld [vmem:[%s17626_s0 + $0xe0] sm:$0xff]  ;;  %v391_v48 = vadd.f32 %v12313_v41, %v12301_v37  ;;  %v12344_v51 = vld [vmem:[%s17626_s0 + $0x118] sm:$0xff] }
  0x77   : > { %v360_v38 = vadd.f32 %v359_v29, %v12238_v19  ;;  %v377_v44 = vadd.f32 %v376_v34, %v12277_v30  ;;  %v384_v50 = vadd.f32 %v383_v40, %v12296_v36  ;;  %v12349_v52 = vld [vmem:[%s17626_s0 + $0x140] sm:$0xff]  ;;  %v12354_v53 = vld [vmem:[%s17626_s0 + $0x148] sm:$0xff]  ;;  %v12360_v55 = vld [vmem:[%s17626_s0 + $0x78] sm:$0xff] }
  0x78   : > { %17829 = vst [vmem:[#allocation12_spill] sm:$0xff] %v12349_v52  ;;  %17830 = vst [vmem:[#allocation13_spill] sm:$0xff] %v12354_v53  ;;  %v368_v56 = vadd.f32 %v367_v46, %v12307_v39  ;;  %v12366_v57 = vld [vmem:[%s17626_s0 + $0xe8] sm:$0xff]  ;;  %v392_v58 = vadd.f32 %v391_v48, %v12318_v42  ;;  %v12372_v59 = vld [vmem:[%s17626_s0 + $0x150] sm:$0xff]  ;;  %v400_v60 = vadd.f32 %v12354_v53, %v12349_v52 }
  0x79   : > { %v361_v49 = vadd.f32 %v360_v38, %v12271_v28  ;;  %v378_v54 = vadd.f32 %v377_v44, %v12289_v33  ;;  %17831 = vst [vmem:[#allocation14_spill] sm:$0xff] %v12372_v59  ;;  %v12379_v61 = vld [vmem:[%s17626_s0 + $0xf0] sm:$0xff]  ;;  %v385_v62 = vadd.f32 %v384_v50, %v12335_v47  ;;  %v12385_v63 = vld [vmem:[%s17626_s0 + $0x120] sm:$0xff]  ;;  %v12390_v3 = vld [vmem:[%s17626_s0 + $0x158] sm:$0xff] }
  0x7a   : > { %17832 = vst [vmem:[#allocation15_spill] sm:$0xff] %v12390_v3  ;;  %v369_v10 = vadd.f32 %v368_v56, %v12329_v45  ;;  %v393_v11 = vadd.f32 %v392_v58, %v12344_v51  ;;  %v401_v16 = vadd.f32 %v400_v60, %v12372_v59  ;;  %v12399_v18 = vld [vmem:[%s17626_s0 + $0x180] sm:$0x1]  ;;  %v12404_v20 = vld [vmem:[%s17626_s0 + $0x188] sm:$0x1]  ;;  %v12426_v35 = vld [vmem:[%s17626_s0 + $0xf8] sm:$0xff] }
  0x7b   : > { %362 = vadd.xlane.f32.xlu0 %v361_v49  ;;  %v379_v6 = vadd.f32 %v378_v54, %v12323_v43  ;;  %17833 = vst [vmem:[#allocation16_spill] sm:$0xff] %v12399_v18  ;;  %17834 = vst [vmem:[#allocation17_spill] sm:$0xff] %v12404_v20  ;;  %v12409_v23 = vld [vmem:[%s17626_s0 + $0x190] sm:$0x1]  ;;  %v386_v24 = vadd.f32 %v385_v62, %v12366_v57  ;;  %v12415_v29 = vld [vmem:[%s17626_s0 + $0x128] sm:$0xff]  ;;  %v410_v46 = vsel %vm409_vm0, %v12399_v18, 0.0 }
  0x7c   : > { %17835 = vst [vmem:[#allocation18_spill] sm:$0xff] %v12409_v23  ;;  %v12420_v32 = vld [vmem:[%s17626_s0 + $0x160] sm:$0xff]  ;;  %v370_v34 = vadd.f32 %v369_v10, %v12360_v55  ;;  %v394_v38 = vadd.f32 %v393_v11, %v12385_v63  ;;  %v402_v40 = vadd.f32 %v401_v16, %v12390_v3  ;;  %v12433_v44 = vld [vmem:[%s17626_s0 + $0x198] sm:$0x1]  ;;  %v12441_v49 = vld [vmem:[%s17626_s0 + $0x130] sm:$0xff]  ;;  %v411_v54 = vsel %vm409_vm0, %v12404_v20, 0.0 }
  0x7d   : > { %17836 = vst [vmem:[#allocation19_spill] sm:$0xff] %v12420_v32  ;;  %380 = vadd.xlane.f32.xlu1 %v379_v6  ;;  %17837 = vst [vmem:[#allocation20_spill] sm:$0xff] %v12433_v44  ;;  %v387_v48 = vadd.f32 %v386_v24, %v12379_v61  ;;  %v12446_v50 = vld [vmem:[%s17626_s0 + $0x168] sm:$0xff]  ;;  %v413_v56 = vsel %vm409_vm0, %v12409_v23, 0.0  ;;  %v12457_v62 = vld [vmem:[%s17626_s0 + $0x1a0] sm:$0x1]  ;;  %v412_v6 = vadd.f32 %v411_v54, %v410_v46 }
  0x7e   : > { %17838 = vst [vmem:[#allocation21_spill] sm:$0xff] %v12446_v50  ;;  %v395_v58 = vadd.f32 %v394_v38, %v12415_v29  ;;  %v403_v60 = vadd.f32 %v402_v40, %v12420_v32  ;;  %17839 = vst [vmem:[#allocation22_spill] sm:$0xff] %v12457_v62  ;;  %v12463_v11 = vld [vmem:[%s17626_s0 + $0x138] sm:$0xff]  ;;  %v12468_v16 = vld [vmem:[%s17626_s0 + $0x170] sm:$0xff]  ;;  %v415_v24 = vsel %vm409_vm0, %v12433_v44, 0.0  ;;  %v417_v54 = vsel %vm409_vm0, %v12457_v62, 0.0 }
  0x7f   : > { %371 = vadd.xlane.f32.xlu0 %v370_v34  ;;  %v388_v10 = vadd.f32 %v387_v48, %v12426_v35  ;;  %17840 = vst [vmem:[#allocation23_spill] sm:$0xff] %v12468_v16  ;;  %v12477_v40 = vld [vmem:[%s17626_s0 + $0x1a8] sm:$0x1]  ;;  %v414_v46 = vadd.f32 %v413_v56, %v412_v6  ;;  %v12482_v48 = vld [vmem:[%s17626_s0 + $0x178] sm:$0xff]  ;;  %v1043_v23 = vld [vmem:[%s12155_s21 + $0x3c0] sm:$0xff] }
  0x80   : > { %v396_v34 = vadd.f32 %v395_v58, %v12441_v49  ;;  %v404_v38 = vadd.f32 %v403_v60, %v12446_v50  ;;  %17841 = vst [vmem:[#allocation24_spill] sm:$0xff] %v12477_v40  ;;  %17842 = vst [vmem:[#allocation25_spill] sm:$0xff] %v12482_v48  ;;  %v12491_v60 = vld [vmem:[%s17626_s0 + $0x1b0] sm:$0x1]  ;;  %v419_v6 = vsel %vm409_vm0, %v12477_v40, 0.0 }
  0x81   : > { %389 = vadd.xlane.f32.xlu1 %v388_v10  ;;  %17843 = vst [vmem:[#allocation26_spill] sm:$0xff] %v12491_v60  ;;  %v416_v56 = vadd.f32 %v415_v24, %v414_v46  ;;  %v421_v62 = vsel %vm409_vm0, %v12491_v60, 0.0  ;;  %v1035_v40 = vld [vmem:[%s12155_s21 + $0x380] sm:$0xff] }
  0x82   : > { %v397_v44 = vadd.f32 %v396_v34, %v12463_v11  ;;  %v405_v58 = vadd.f32 %v404_v38, %v12468_v16  ;;  %v12499_v34 = vld [vmem:[%s17626_s0 + $0x1b8] sm:$0x1]  ;;  %v1291_v20 = vld [vmem:[%s12155_s21 + $0xb80] sm:$0xff]  ;;  %v10573_v60 = vcombine.low %v1035_v40, %v1043_v23 }
  0x83   : > { %17844 = vst [vmem:[#allocation27_spill] sm:$0xff] %v12499_v34  ;;  %v418_v38 = vadd.f32 %v417_v54, %v416_v56  ;;  %v423_v46 = vsel %vm409_vm0, %v12499_v34, 0.0  ;;  %v10574_v54 = vcombine.high %v1035_v40, %v1043_v23  ;;  %v1299_v56 = vld [vmem:[%s12155_s21 + $0xbc0] sm:$0xff] }
  0x84   : > { %398 = vadd.xlane.f32.xlu0 %v397_v44  ;;  %v406_v10 = vadd.f32 %v405_v58, %v12482_v48  ;;  %v10829_v18 = vcombine.low %v1291_v20, %v1299_v56  ;;  %v1275_v34 = vld [vmem:[%s12155_s21 + $0xb00] sm:$0xff] }
  0x85   : > { %v420_v24 = vadd.f32 %v419_v6, %v418_v38  ;;  %v1027_v6 = vld [vmem:[%s12155_s21 + $0x340] sm:$0xff]  ;;  %v10830_v38 = vcombine.high %v1291_v20, %v1299_v56  ;;  %7151 = vmatprep.subr.bf16.mxu0 %v10574_v54 }
  0x86   : > { %407 = vadd.xlane.f32.xlu1 %v406_v10  ;;  %v1019_v10 = vld [vmem:[%s12155_s21 + $0x300] sm:$0xff]  ;;  %7152 = vmatpush1.bf16.msra.mxu0 %v10573_v60 }
  0x87   : > { %v422_v44 = vadd.f32 %v421_v62, %v420_v24  ;;  %v10558_v48 = vcombine.high %v1019_v10, %v1027_v6  ;;  %v1283_v16 = vld [vmem:[%s12155_s21 + $0xb40] sm:$0xff]  ;;  %7222 = vmatprep.subr.bf16.mxu1 %v10830_v38  ;;  %v10557_v23 = vcombine.low %v1019_v10, %v1027_v6 }
  0x88   : > { %v1003_v62 = vld [vmem:[%s12155_s21 + $0x280] sm:$0xff]  ;;  %v10814_v24 = vcombine.high %v1275_v34, %v1283_v16  ;;  %7223 = vmatpush1.bf16.msra.mxu1 %v10829_v18  ;;  %v10813_v40 = vcombine.low %v1275_v34, %v1283_v16 }
  0x89   : > { %v424_v58 = vadd.f32 %v423_v46, %v422_v44  ;;  %v1011_v46 = vld [vmem:[%s12155_s21 + $0x2c0] sm:$0xff]  ;;  %7153 = vmatprep.subr.bf16.mxu0 %v10558_v48 }
  0x8a   : > { %v1259_v44 = vld [vmem:[%s12155_s21 + $0xa80] sm:$0xff]  ;;  %v10542_v20 = vcombine.high %v1003_v62, %v1011_v46  ;;  %7224 = vmatprep.subr.bf16.mxu1 %v10814_v24  ;;  %7154 = vmatpush1.bf16.msra.mxu0 %v10557_v23  ;;  %v10541_v59 = vcombine.low %v1003_v62, %v1011_v46 }
  0x8b   : > { %425 = vadd.xlane.f32.xlu0 %v424_v58  ;;  %v1267_v58 = vld [vmem:[%s12155_s21 + $0xac0] sm:$0xff] }
  0x8c   : > { %v10798_v56 = vcombine.high %v1259_v44, %v1267_v58  ;;  %v987_v54 = vld [vmem:[%s12155_s21 + $0x200] sm:$0xff]  ;;  %7225 = vmatpush1.bf16.msra.mxu1 %v10813_v40  ;;  %7155 = vmatprep.subr.bf16.mxu0 %v10542_v20  ;;  %v10797_v60 = vcombine.low %v1259_v44, %v1267_v58 }
  0x8d   : > { %v995_v50 = vld [vmem:[%s12155_s21 + $0x240] sm:$0xff] }
  0x8e   : > { %v1243_v32 = vld [vmem:[%s12155_s21 + $0xa00] sm:$0xff]  ;;  %v10526_v18 = vcombine.high %v987_v54, %v995_v50  ;;  %7226 = vmatprep.subr.bf16.mxu1 %v10798_v56  ;;  %7156 = vmatpush1.bf16.msra.mxu0 %v10541_v59  ;;  %v10525_v38 = vcombine.low %v987_v54, %v995_v50 }
  0x8f   : > { %v1251_v3 = vld [vmem:[%s12155_s21 + $0xa40] sm:$0xff] }
  0x90   : > { %v10782_v16 = vcombine.high %v1243_v32, %v1251_v3  ;;  %v971_v48 = vld [vmem:[%s12155_s21 + $0x180] sm:$0xff]  ;;  %7227 = vmatpush1.bf16.msra.mxu1 %v10797_v60  ;;  %7157 = vmatprep.subr.bf16.mxu0 %v10526_v18  ;;  %v10781_v24 = vcombine.low %v1243_v32, %v1251_v3 }
  0x91   : > { %v979_v34 = vld [vmem:[%s12155_s21 + $0x1c0] sm:$0xff] }
  0x92   : > { %v1227_v10 = vld [vmem:[%s12155_s21 + $0x980] sm:$0xff]  ;;  %v10510_v62 = vcombine.high %v971_v48, %v979_v34  ;;  %7228 = vmatprep.subr.bf16.mxu1 %v10782_v16  ;;  %7158 = vmatpush1.bf16.msra.mxu0 %v10525_v38  ;;  %v10509_v20 = vcombine.low %v971_v48, %v979_v34 }
  0x93   : > { %v1235_v6 = vld [vmem:[%s12155_s21 + $0x9c0] sm:$0xff] }
  0x94   : > { %v10766_v46 = vcombine.high %v1227_v10, %v1235_v6  ;;  %v955_v44 = vld [vmem:[%s12155_s21 + $0x100] sm:$0xff]  ;;  %7229 = vmatpush1.bf16.msra.mxu1 %v10781_v24  ;;  %7159 = vmatprep.subr.bf16.mxu0 %v10510_v62  ;;  %v10765_v59 = vcombine.low %v1227_v10, %v1235_v6 }
  0x95   : > { %v963_v58 = vld [vmem:[%s12155_s21 + $0x140] sm:$0xff] }
  0x96   : > { %v1211_v23 = vld [vmem:[%s12155_s21 + $0x900] sm:$0xff]  ;;  %v10494_v50 = vcombine.high %v955_v44, %v963_v58  ;;  %7230 = vmatprep.subr.bf16.mxu1 %v10766_v46  ;;  %7160 = vmatpush1.bf16.msra.mxu0 %v10509_v20  ;;  %v10493_v18 = vcombine.low %v955_v44, %v963_v58 }
  0x97   : > { %v1219_v40 = vld [vmem:[%s12155_s21 + $0x940] sm:$0xff] }
  0x98   : > { %v10750_v3 = vcombine.high %v1211_v23, %v1219_v40  ;;  %v939_v32 = vld [vmem:[%s12155_s21 + $0x80] sm:$0xff]  ;;  %7231 = vmatpush1.bf16.msra.mxu1 %v10765_v59  ;;  %7161 = vmatprep.subr.bf16.mxu0 %v10494_v50  ;;  %v10749_v16 = vcombine.low %v1211_v23, %v1219_v40 }
  0x99   : > { %v947_v56 = vld [vmem:[%s12155_s21 + $0xc0] sm:$0xff] }
  0x9a   : > { %v1195_v54 = vld [vmem:[%s12155_s21 + $0x880] sm:$0xff]  ;;  %v10478_v48 = vcombine.high %v939_v32, %v947_v56  ;;  %7232 = vmatprep.subr.bf16.mxu1 %v10750_v3  ;;  %7162 = vmatpush1.bf16.msra.mxu0 %v10493_v18  ;;  %v10477_v62 = vcombine.low %v939_v32, %v947_v56 }
  0x9b   : > { %v1203_v60 = vld [vmem:[%s12155_s21 + $0x8c0] sm:$0xff] }
  0x9c   : > { %v10734_v34 = vcombine.high %v1195_v54, %v1203_v60  ;;  %v923_v10 = vld [vmem:[%s12155_s21] sm:$0xff]  ;;  %7233 = vmatpush1.bf16.msra.mxu1 %v10749_v16  ;;  %7163 = vmatprep.subr.bf16.mxu0 %v10478_v48  ;;  %v10733_v46 = vcombine.low %v1195_v54, %v1203_v60 }
  0x9d   : > { %v931_v6 = vld [vmem:[%s12155_s21 + $0x40] sm:$0xff] }
  0x9e   : > { %v1179_v38 = vld [vmem:[%s12155_s21 + $0x800] sm:$0xff]  ;;  %v10462_v44 = vcombine.high %v923_v10, %v931_v6  ;;  %7234 = vmatprep.subr.bf16.mxu1 %v10734_v34  ;;  %7164 = vmatpush1.bf16.msra.mxu0 %v10477_v62  ;;  %v10461_v50 = vcombine.low %v923_v10, %v931_v6 }
  0x9f   : > { %v1187_v24 = vld [vmem:[%s12155_s21 + $0x840] sm:$0xff] }
  0xa0   : > { %v10718_v58 = vcombine.high %v1179_v38, %v1187_v24  ;;  %v1163_v23 = vld [vmem:[%s12155_s21 + $0x780] sm:$0xff]  ;;  %7235 = vmatpush1.bf16.msra.mxu1 %v10733_v46  ;;  %7165 = vmatprep.subr.bf16.mxu0 %v10462_v44  ;;  %v10717_v3 = vcombine.low %v1179_v38, %v1187_v24 }
  0xa1   : > { %v1171_v40 = vld [vmem:[%s12155_s21 + $0x7c0] sm:$0xff] }
  0xa2   : > { %v1419_v20 = vld [vmem:[%s12155_s21 + $0xf80] sm:$0xff]  ;;  %v10702_v53 = vcombine.high %v1163_v23, %v1171_v40  ;;  %7236 = vmatprep.subr.bf16.mxu1 %v10718_v58  ;;  %7166 = vmatpush1.bf16.msra.mxu0 %v10461_v50  ;;  %v10701_v32 = vcombine.low %v1163_v23, %v1171_v40 }
  0xa3   : > { %v1427_v59 = vld [vmem:[%s12155_s21 + $0xfc0] sm:$0xff] }
  0xa4   : > { %v10958_v52 = vcombine.high %v1419_v20, %v1427_v59  ;;  %7237 = vmatpush1.bf16.msra.mxu1 %v10717_v3  ;;  %7167 = vmatprep.subr.bf16.mxu0 %v10702_v53  ;;  %v10957_v56 = vcombine.low %v1419_v20, %v1427_v59 }
  0xa6   : > { %7238 = vmatprep.subr.bf16.mxu1 %v10958_v52  ;;  %7168 = vmatpush2.bf16.msra.mxu0 %v10701_v32 }
  0xa8   : > { %7239 = vmatpush2.bf16.msra.mxu1 %v10957_v56 }
 0x104   : > { %v363_v54 = vpop.xlane.xlu0 %362 }
 0x105   : > { %v428_v60 = vmul.f32 0.0009765625, %v363_v54 }
 0x106   : > { %v381_v18 = vpop.xlane.xlu1 %380 }
 0x107   : > { %v12542_v16 = vsub.f32 %v12164_v0, %v428_v60  ;;  %v12545_v48 = vsub.f32 %v12169_v1, %v428_v60  ;;  %v12548_v34 = vsub.f32 %v12174_v2, %v428_v60  ;;  %v12551_v10 = vsub.f32 %v12181_v4, %v428_v60 }
 0x108   : > { %v430_v53 = vmul.f32 0.0009765625, %v381_v18  ;;  %v372_v6 = vpop.xlane.xlu0 %371  ;;  %v12554_v52 = vsub.f32 %v12202_v9, %v428_v60  ;;  %v12557_v38 = vsub.f32 %v12225_v15, %v428_v60  ;;  %v12564_v2 = vsub.f32 %v12238_v19, %v428_v60 }
 0x109   : > { %v491_v0 = vmul.f32 %v12542_v16, %v12542_v16  ;;  %v492_v1 = vmul.f32 %v12545_v48, %v12545_v48  ;;  %v12567_v4 = vsub.f32 %v12271_v28, %v428_v60  ;;  %v493_v24 = vmul.f32 %v12548_v34, %v12548_v34 }
 0x10a   : > { %v429_v9 = vmul.f32 0.0009765625, %v372_v6  ;;  %v494_v15 = vmul.f32 %v12551_v10, %v12551_v10  ;;  %v12574_v46 = vsub.f32 %v12186_v5, %v430_v53  ;;  %v390_v44 = vpop.xlane.xlu1 %389  ;;  %v12577_v58 = vsub.f32 %v12192_v7, %v430_v53 }
 0x10b   : > { %v547_v62 = vadd.f32 %v492_v1, %v491_v0  ;;  %v12580_v19 = vsub.f32 %v12197_v8, %v430_v53  ;;  %v12583_v28 = vsub.f32 %v12210_v12, %v430_v53  ;;  %v12586_v23 = vsub.f32 %v12244_v21, %v430_v53 }
 0x10c   : > { %v495_v40 = vmul.f32 %v12554_v52, %v12554_v52  ;;  %v496_v5 = vmul.f32 %v12557_v38, %v12557_v38  ;;  %v12593_v59 = vsub.f32 %v12277_v30, %v430_v53  ;;  %v497_v7 = vmul.f32 %v12564_v2, %v12564_v2 }
 0x10d   : > { %17845 = vst [vmem:[#allocation28_spill] sm:$0xff] %v12586_v23  ;;  %v548_v20 = vadd.f32 %v547_v62, %v493_v24  ;;  %v507_v8 = vmul.f32 %v12574_v46, %v12574_v46  ;;  %v508_v12 = vmul.f32 %v12577_v58, %v12577_v58  ;;  %v509_v21 = vmul.f32 %v12580_v19, %v12580_v19  ;;  %v399_v50 = vpop.xlane.xlu0 %398 }
 0x10e   : > { %v498_v3 = vmul.f32 %v12567_v4, %v12567_v4  ;;  %v12606_v30 = vsub.f32 %v12289_v33, %v430_v53  ;;  %v12609_v56 = vsub.f32 %v12323_v43, %v430_v53  ;;  %v431_v54 = vmul.f32 0.0009765625, %v390_v44 }
 0x10f   : > { %v549_v32 = vadd.f32 %v548_v20, %v494_v15  ;;  %v510_v60 = vmul.f32 %v12583_v28, %v12583_v28  ;;  %v511_v18 = vmul.f32 %v12586_v23, %v12586_v23  ;;  %v565_v6 = vadd.f32 %v508_v12, %v507_v8  ;;  %v408_v0 = vpop.xlane.xlu1 %407 }
 0x110   : > { %17846 = vst [vmem:[#allocation29_spill] sm:$0xff] %v12606_v30  ;;  %v512_v24 = vmul.f32 %v12593_v59, %v12593_v59  ;;  %v12618_v15 = vsub.f32 %v12215_v13, %v429_v9  ;;  %v12621_v33 = vsub.f32 %v12220_v14, %v429_v9  ;;  %v12623_v43 = vmul.f32 0.0009765625, %v399_v50 }
 0x111   : > { %v550_v1 = vadd.f32 %v549_v32, %v495_v40  ;;  %v566_v53 = vadd.f32 %v565_v6, %v509_v21  ;;  %v12626_v62 = vsub.f32 %v12231_v17, %v429_v9  ;;  %v12629_v44 = vsub.f32 %v12249_v22, %v429_v9 }
 0x112   : > { %v12631_v20 = vmul.f32 0.0009765625, %v408_v0  ;;  %v513_v8 = vmul.f32 %v12606_v30, %v12606_v30  ;;  %v514_v13 = vmul.f32 %v12609_v56, %v12609_v56  ;;  %v12638_v12 = vsub.f32 %v12282_v31, %v429_v9  ;;  %v17881_v30 = vld [vmem:[#allocation17_spill] sm:$0xff] }
 0x113   : > { %v551_v40 = vadd.f32 %v550_v1, %v496_v5  ;;  %v567_v14 = vadd.f32 %v566_v53, %v510_v60  ;;  %v499_v17 = vmul.f32 %v12618_v15, %v12618_v15  ;;  %v500_v22 = vmul.f32 %v12621_v33, %v12621_v33 }
 0x114   : > { %v12645_v50 = vsub.f32 %v12307_v39, %v429_v9  ;;  %v12648_v5 = vsub.f32 %v12329_v45, %v429_v9  ;;  %v12651_v32 = vsub.f32 %v12360_v55, %v429_v9  ;;  %v501_v31 = vmul.f32 %v12626_v62, %v12626_v62  ;;  %v426_v55 = vpop.xlane.xlu0 %425 }
 0x115   : > { %v552_v21 = vadd.f32 %v551_v40, %v497_v7  ;;  %v568_v60 = vadd.f32 %v567_v14, %v511_v18  ;;  %v502_v6 = vmul.f32 %v12629_v44, %v12629_v44  ;;  %v556_v0 = vadd.f32 %v500_v22, %v499_v17 }
 0x116   : > { %v12658_v7 = vsub.f32 %v12256_v25, %v431_v54  ;;  %v12661_v39 = vsub.f32 %v12261_v26, %v431_v54  ;;  %v12664_v45 = vsub.f32 %v12266_v27, %v431_v54  ;;  %v503_v18 = vmul.f32 %v12638_v12, %v12638_v12 }
 0x117   : > { %v553_v1 = vadd.f32 %v552_v21, %v498_v3  ;;  %v569_v9 = vadd.f32 %v568_v60, %v512_v24  ;;  %v557_v53 = vadd.f32 %v556_v0, %v501_v31  ;;  %v12669_v40 = vsub.f32 %v12296_v36, %v431_v54 }
 0x118   : > { %17847 = vst [vmem:[#allocation30_spill] sm:$0xff] %v12658_v7  ;;  %17848 = vst [vmem:[#allocation31_spill] sm:$0xff] %v12661_v39  ;;  %v504_v25 = vmul.f32 %v12645_v50, %v12645_v50  ;;  %v505_v26 = vmul.f32 %v12648_v5, %v12648_v5  ;;  %v12676_v3 = vsub.f32 %v12335_v47, %v431_v54  ;;  %v12685_v22 = vmul.f32 0.0009765625, %v426_v55 }
 0x119   : > { %17849 = vst [vmem:[#allocation32_spill] sm:$0xff] %v12664_v45  ;;  %17850 = vst [vmem:[#allocation33_spill] sm:$0xff] %v12669_v40  ;;  %554 = vadd.xlane.f32.xlu1 %v553_v1  ;;  %v12679_v27 = vsub.f32 %v12366_v57, %v431_v54  ;;  %v570_v24 = vadd.f32 %v569_v9, %v513_v8  ;;  %v558_v14 = vadd.f32 %v557_v53, %v502_v6 }
 0x11a   : > { %17851 = vst [vmem:[#allocation34_spill] sm:$0xff] %v12676_v3  ;;  %v515_v17 = vmul.f32 %v12658_v7, %v12658_v7  ;;  %v516_v36 = vmul.f32 %v12661_v39, %v12661_v39  ;;  %v506_v21 = vmul.f32 %v12651_v32, %v12651_v32  ;;  %v12690_v60 = vsub.f32 %v12379_v61, %v431_v54  ;;  %v13084_v39 = vld [vmem:[%s12155_s21 + $0x1800] sm:$0xff] }
 0x11b   : > { %17852 = vst [vmem:[#allocation35_spill] sm:$0xff] %v12679_v27  ;;  %v517_v47 = vmul.f32 %v12664_v45, %v12664_v45  ;;  %v571_v57 = vadd.f32 %v570_v24, %v514_v13  ;;  %v559_v8 = vadd.f32 %v558_v14, %v503_v18  ;;  %v12695_v31 = vsub.f32 %v12426_v35, %v431_v54  ;;  %v13095_v45 = vld [vmem:[%s12155_s21 + $0x1840] sm:$0xff] }
 0x11c   : > { %17853 = vst [vmem:[#allocation36_spill] sm:$0xff] %v12690_v60  ;;  %v518_v6 = vmul.f32 %v12669_v40, %v12669_v40  ;;  %v574_v0 = vadd.f32 %v516_v36, %v515_v17  ;;  %v12701_v1 = vsub.f32 %v12301_v37, %v12623_v43  ;;  %v12705_v61 = vsub.f32 %v12313_v41, %v12623_v43  ;;  %v13078_v40 = vld [vmem:[%s12155_s21 + $0x1000] sm:$0xff] }
 0x11d   : > { %17854 = vst [vmem:[#allocation37_spill] sm:$0xff] %v12695_v31  ;;  %v12709_v55 = vsub.f32 %v12318_v42, %v12623_v43  ;;  %572 = vadd.xlane.f32.xlu1 %v571_v57  ;;  %v560_v13 = vadd.f32 %v559_v8, %v504_v25  ;;  %v519_v35 = vmul.f32 %v12676_v3, %v12676_v3  ;;  %17925 = vst [vmem:[#allocation76_spill] sm:$0xff] %v13084_v39  ;;  %v13130_v7 = vld [vmem:[%s12155_s21 + $0x1f00] sm:$0xff] }
 0x11e   : > { %17855 = vst [vmem:[#allocation38_spill] sm:$0xff] %v12701_v1  ;;  %17856 = vst [vmem:[#allocation39_spill] sm:$0xff] %v12705_v61  ;;  %v520_v54 = vmul.f32 %v12679_v27, %v12679_v27  ;;  %v12717_v37 = vsub.f32 %v12344_v51, %v12623_v43  ;;  %v575_v9 = vadd.f32 %v574_v0, %v517_v47  ;;  %v17863_v47 = vld [vmem:[#allocation12_spill] sm:$0xff]  ;;  %v17865_v0 = vld [vmem:[#allocation13_spill] sm:$0xff] }
 0x11f   : > { %17857 = vst [vmem:[#allocation40_spill] sm:$0xff] %v12709_v55  ;;  %v12721_v41 = vsub.f32 %v12385_v63, %v12623_v43  ;;  %v12725_v42 = vsub.f32 %v12415_v29, %v12623_v43  ;;  %v523_v18 = vmul.f32 %v12701_v1, %v12701_v1  ;;  %v561_v53 = vadd.f32 %v560_v13, %v505_v26  ;;  %v12975_v27 = vld [vmem:[%s12155_s21 + $0x1200] sm:$0xff] }
 0x120   : > { %17858 = vst [vmem:[#allocation41_spill] sm:$0xff] %v12717_v37  ;;  %v12731_v25 = vsub.f32 %v12441_v49, %v12623_v43  ;;  %v524_v51 = vmul.f32 %v12705_v61, %v12705_v61  ;;  %v525_v24 = vmul.f32 %v12709_v55, %v12709_v55  ;;  %v521_v63 = vmul.f32 %v12690_v60, %v12690_v60  ;;  %v12993_v55 = vld [vmem:[%s12155_s21 + $0x1a40] sm:$0xff] }
 0x121   : > { %17859 = vst [vmem:[#allocation42_spill] sm:$0xff] %v12721_v41  ;;  %17860 = vst [vmem:[#allocation43_spill] sm:$0xff] %v12725_v42  ;;  %v522_v29 = vmul.f32 %v12695_v31, %v12695_v31  ;;  %v576_v14 = vadd.f32 %v575_v9, %v518_v6  ;;  %v12743_v26 = vsub.f32 %v12463_v11, %v12623_v43  ;;  %v17867_v6 = vld [vmem:[#allocation14_spill] sm:$0xff]  ;;  %v17869_v11 = vld [vmem:[#allocation15_spill] sm:$0xff] }
 0x122   : > { %17861 = vst [vmem:[#allocation44_spill] sm:$0xff] %v12731_v25  ;;  %v562_v17 = vadd.f32 %v561_v53, %v506_v21  ;;  %v526_v49 = vmul.f32 %v12717_v37, %v12717_v37  ;;  %v583_v36 = vadd.f32 %v524_v51, %v523_v18  ;;  %v12749_v57 = vsub.f32 %v17863_v47, %v12631_v20  ;;  %v12972_v31 = vld [vmem:[%s12155_s21 + $0x1ac0] sm:$0xff] }
 0x123   : > { %17862 = vst [vmem:[#allocation45_spill] sm:$0xff] %v12743_v26  ;;  %v577_v8 = vadd.f32 %v576_v14, %v519_v35  ;;  %v12753_v13 = vsub.f32 %v17865_v0, %v12631_v20  ;;  %v12757_v9 = vsub.f32 %v17867_v6, %v12631_v20  ;;  %v12761_v43 = vsub.f32 %v17869_v11, %v12631_v20  ;;  %v17871_v6 = vld [vmem:[#allocation19_spill] sm:$0xff]  ;;  %v13005_v37 = vld [vmem:[%s12155_s21 + $0x11c0] sm:$0xff] }
 0x124   : > { %17864 = vst [vmem:[#allocation12_spill] sm:$0xff] %v12749_v57  ;;  %563 = vadd.xlane.f32.xlu0 %v562_v17  ;;  %v527_v21 = vmul.f32 %v12721_v41, %v12721_v41  ;;  %v528_v18 = vmul.f32 %v12725_v42, %v12725_v42  ;;  %v529_v35 = vmul.f32 %v12731_v25, %v12731_v25  ;;  %v17873_v41 = vld [vmem:[#allocation21_spill] sm:$0xff]  ;;  %17914 = vst [vmem:[#allocation65_spill] sm:$0xff] %v12972_v31  ;;  %v13008_v61 = vld [vmem:[%s12155_s21 + $0x1980] sm:$0xff] }
 0x125   : > { %17866 = vst [vmem:[#allocation13_spill] sm:$0xff] %v12753_v13  ;;  %17868 = vst [vmem:[#allocation14_spill] sm:$0xff] %v12757_v9  ;;  %v584_v53 = vadd.f32 %v583_v36, %v525_v24  ;;  %v578_v51 = vadd.f32 %v577_v8, %v520_v54  ;;  %v530_v14 = vmul.f32 %v12743_v26, %v12743_v26  ;;  %v17875_v36 = vld [vmem:[#allocation23_spill] sm:$0xff]  ;;  %v17877_v25 = vld [vmem:[#allocation25_spill] sm:$0xff] }
 0x126   : > { %17870 = vst [vmem:[#allocation15_spill] sm:$0xff] %v12761_v43  ;;  %v531_v47 = vmul.f32 %v12749_v57, %v12749_v57  ;;  %v532_v17 = vmul.f32 %v12753_v13, %v12753_v13  ;;  %v12777_v11 = vsub.f32 %v17871_v6, %v12631_v20  ;;  %v12781_v42 = vsub.f32 %v17873_v41, %v12631_v20  ;;  %v17879_v41 = vld [vmem:[#allocation16_spill] sm:$0xff] }
 0x127   : > { %v585_v0 = vadd.f32 %v584_v53, %v526_v49  ;;  %v533_v54 = vmul.f32 %v12757_v9, %v12757_v9  ;;  %v579_v24 = vadd.f32 %v578_v51, %v521_v63  ;;  %v12787_v8 = vsub.f32 %v17875_v36, %v12631_v20  ;;  %v17883_v36 = vld [vmem:[#allocation18_spill] sm:$0xff]  ;;  %v12990_v13 = vld [vmem:[%s12155_s21 + $0x1a00] sm:$0xff]  ;;  %17916 = vst [vmem:[#allocation67_spill] sm:$0xff] %v12993_v55 }
 0x128   : > { %17872 = vst [vmem:[#allocation19_spill] sm:$0xff] %v12777_v11  ;;  %17874 = vst [vmem:[#allocation21_spill] sm:$0xff] %v12781_v42  ;;  %v12791_v26 = vsub.f32 %v17877_v25, %v12631_v20  ;;  %v534_v49 = vmul.f32 %v12761_v43, %v12761_v43  ;;  %v592_v6 = vadd.f32 %v532_v17, %v531_v47  ;;  %v17885_v20 = vld [vmem:[#allocation20_spill] sm:$0xff] }
 0x129   : > { %17876 = vst [vmem:[#allocation23_spill] sm:$0xff] %v12787_v8  ;;  %v586_v53 = vadd.f32 %v585_v0, %v527_v21  ;;  %v12797_v60 = vsub.f32 %v17879_v41, %v12685_v22  ;;  %v12801_v63 = vsub.f32 %v17881_v30, %v12685_v22  ;;  %v580_v51 = vadd.f32 %v579_v24, %v522_v29  ;;  %v17887_v21 = vld [vmem:[#allocation22_spill] sm:$0xff]  ;;  %v12987_v43 = vld [vmem:[%s12155_s21 + $0x1240] sm:$0xff] }
 0x12a   : > { %17878 = vst [vmem:[#allocation25_spill] sm:$0xff] %v12791_v26  ;;  %v12805_v3 = vsub.f32 %v17883_v36, %v12685_v22  ;;  %v12809_v25 = vsub.f32 %v17885_v20, %v12685_v22  ;;  %v12813_v47 = vsub.f32 %v17887_v21, %v12685_v22  ;;  %v535_v0 = vmul.f32 %v12777_v11, %v12777_v11  ;;  %v17889_v21 = vld [vmem:[#allocation24_spill] sm:$0xff]  ;;  %v17893_v11 = vld [vmem:[#allocation27_spill] sm:$0xff] }
 0x12b   : > { %17880 = vst [vmem:[#allocation16_spill] sm:$0xff] %v12797_v60  ;;  %17882 = vst [vmem:[#allocation17_spill] sm:$0xff] %v12801_v63  ;;  %v587_v17 = vadd.f32 %v586_v53, %v528_v18  ;;  %v536_v30 = vmul.f32 %v12781_v42, %v12781_v42  ;;  %v593_v29 = vadd.f32 %v592_v6, %v533_v54  ;;  %581 = vadd.xlane.f32.xlu0 %v580_v51  ;;  %v17891_v51 = vld [vmem:[#allocation26_spill] sm:$0xff]  ;;  %v13002_v57 = vld [vmem:[%s12155_s21 + $0x1180] sm:$0xff] }
 0x12c   : > { %17884 = vst [vmem:[#allocation18_spill] sm:$0xff] %v12805_v3  ;;  %17886 = vst [vmem:[#allocation20_spill] sm:$0xff] %v12809_v25  ;;  %v537_v24 = vmul.f32 %v12787_v8, %v12787_v8  ;;  %v539_v41 = vmul.f32 %v12797_v60, %v12797_v60  ;;  %v540_v36 = vmul.f32 %v12801_v63, %v12801_v63  ;;  %v13018_v9 = vld [vmem:[%s12155_s21 + $0x1100] sm:$0xff] }
 0x12d   : > { %17888 = vst [vmem:[#allocation22_spill] sm:$0xff] %v12813_v47  ;;  %v541_v18 = vmul.f32 %v12805_v3, %v12805_v3  ;;  %v588_v53 = vadd.f32 %v587_v17, %v529_v35  ;;  %v594_v20 = vadd.f32 %v593_v29, %v534_v49  ;;  %v12829_v54 = vsub.f32 %v17889_v21, %v12685_v22  ;;  %v1147_v49 = vld [vmem:[%s12155_s21 + $0x700] sm:$0xff] }
 0x12e   : > { %v542_v6 = vmul.f32 %v12809_v25, %v12809_v25  ;;  %v12835_v8 = vsub.f32 %v17891_v51, %v12685_v22  ;;  %v12839_v42 = vsub.f32 %v17893_v11, %v12685_v22  ;;  %v543_v23 = vmul.f32 %v12813_v47, %v12813_v47  ;;  %v1155_v17 = vld [vmem:[%s12155_s21 + $0x740] sm:$0xff]  ;;  %17915 = vst [vmem:[#allocation66_spill] sm:$0xff] %v12990_v13 }
 0x12f   : > { %17890 = vst [vmem:[#allocation24_spill] sm:$0xff] %v12829_v54  ;;  %v601_v35 = vsel %vm409_vm0, %v539_v41, 0.0  ;;  %v589_v29 = vadd.f32 %v588_v53, %v530_v14  ;;  %v595_v21 = vadd.f32 %v594_v20, %v535_v0  ;;  %v602_v3 = vsel %vm409_vm0, %v540_v36, 0.0  ;;  %v1403_v25 = vld [vmem:[%s12155_s21 + $0xf00] sm:$0xff]  ;;  %17917 = vst [vmem:[#allocation68_spill] sm:$0xff] %v13002_v57 }
 0x130   : > { %17892 = vst [vmem:[#allocation26_spill] sm:$0xff] %v12835_v8  ;;  %17894 = vst [vmem:[#allocation27_spill] sm:$0xff] %v12839_v42  ;;  %v604_v60 = vsel %vm409_vm0, %v541_v18, 0.0  ;;  %v1411_v51 = vld [vmem:[%s12155_s21 + $0xf40] sm:$0xff]  ;;  %v538_v63 = vmul.f32 %v12791_v26, %v12791_v26  ;;  %v603_v22 = vadd.f32 %v602_v3, %v601_v35  ;;  %v544_v41 = vmul.f32 %v12829_v54, %v12829_v54 }
 0x131   : > { %590 = vadd.xlane.f32.xlu1 %v589_v29  ;;  %v596_v11 = vadd.f32 %v595_v21, %v536_v30  ;;  %v606_v14 = vsel %vm409_vm0, %v542_v6, 0.0  ;;  %v10686_v0 = vcombine.high %v1147_v49, %v1155_v17  ;;  %v10942_v18 = vcombine.high %v1403_v25, %v1411_v51  ;;  %v1131_v35 = vld [vmem:[%s12155_s21 + $0x680] sm:$0xff]  ;;  %17918 = vst [vmem:[#allocation69_spill] sm:$0xff] %v13005_v37 }
 0x132   : > { %v605_v36 = vadd.f32 %v604_v60, %v603_v22  ;;  %v10685_v53 = vcombine.low %v1147_v49, %v1155_v17  ;;  %v10941_v20 = vcombine.low %v1403_v25, %v1411_v51  ;;  %v545_v26 = vmul.f32 %v12835_v8, %v12835_v8  ;;  %v1139_v29 = vld [vmem:[%s12155_s21 + $0x6c0] sm:$0xff]  ;;  %17919 = vst [vmem:[#allocation70_spill] sm:$0xff] %v13008_v61 }
 0x133   : > { %v597_v47 = vadd.f32 %v596_v11, %v537_v24  ;;  %v546_v3 = vmul.f32 %v12839_v42, %v12839_v42  ;;  %v608_v30 = vsel %vm409_vm0, %v543_v23, 0.0  ;;  %7169 = vmatprep.subr.bf16.mxu0 %v10686_v0  ;;  %v1387_v21 = vld [vmem:[%s12155_s21 + $0xe80] sm:$0xff]  ;;  %7240 = vmatprep.subr.bf16.mxu1 %v10942_v18  ;;  %v10670_v60 = vcombine.high %v1131_v35, %v1139_v29 }
 0x134   : > { %v607_v6 = vadd.f32 %v606_v14, %v605_v36  ;;  %7170 = vmatpush2.bf16.msra.mxu0 %v10685_v53  ;;  %v1395_v22 = vld [vmem:[%s12155_s21 + $0xec0] sm:$0xff]  ;;  %v10669_v49 = vcombine.low %v1131_v35, %v1139_v29  ;;  %v610_v24 = vsel %vm409_vm0, %v544_v41, 0.0  ;;  %7241 = vmatpush2.bf16.msra.mxu1 %v10941_v20  ;;  %v612_v11 = vsel %vm409_vm0, %v545_v26, 0.0  ;;  %17921 = vst [vmem:[#allocation72_spill] sm:$0xff] %v13018_v9 }
 0x135   : > { %v598_v25 = vadd.f32 %v597_v47, %v538_v63  ;;  %v10926_v17 = vcombine.high %v1387_v21, %v1395_v22  ;;  %v10925_v51 = vcombine.low %v1387_v21, %v1395_v22  ;;  %7171 = vmatprep.subr.bf16.mxu0 %v10670_v60  ;;  %v614_v0 = vsel %vm409_vm0, %v546_v3, 0.0  ;;  %v1115_v41 = vld [vmem:[%s12155_s21 + $0x600] sm:$0xff]  ;;  %17926 = vst [vmem:[#allocation77_spill] sm:$0xff] %v13095_v45 }
 0x136   : > { %v609_v23 = vadd.f32 %v608_v30, %v607_v6  ;;  %v1123_v36 = vld [vmem:[%s12155_s21 + $0x640] sm:$0xff]  ;;  %17930 = vst [vmem:[#allocation81_spill] sm:$0xff] %v13130_v7 }
 0x137   : > { %599 = vadd.xlane.f32.xlu0 %v598_v25  ;;  %7242 = vmatprep.subr.bf16.mxu1 %v10926_v17  ;;  %v1371_v18 = vld [vmem:[%s12155_s21 + $0xe00] sm:$0xff]  ;;  %v10654_v53 = vcombine.high %v1115_v41, %v1123_v36  ;;  %v10653_v30 = vcombine.low %v1115_v41, %v1123_v36 }
 0x138   : > { %v611_v14 = vadd.f32 %v610_v24, %v609_v23  ;;  %7172 = vmatpush2.bf16.msra.mxu0 %v10669_v49  ;;  %7243 = vmatpush2.bf16.msra.mxu1 %v10925_v51  ;;  %v1379_v20 = vld [vmem:[%s12155_s21 + $0xe40] sm:$0xff] }
 0x139   : > { %v10910_v26 = vcombine.high %v1371_v18, %v1379_v20  ;;  %v10909_v35 = vcombine.low %v1371_v18, %v1379_v20  ;;  %7173 = vmatprep.subr.bf16.mxu0 %v10654_v53  ;;  %v1099_v3 = vld [vmem:[%s12155_s21 + $0x580] sm:$0xff] }
 0x13a   : > { %v613_v63 = vadd.f32 %v612_v11, %v611_v14  ;;  %v1107_v29 = vld [vmem:[%s12155_s21 + $0x5c0] sm:$0xff] }
 0x13b   : > { %7244 = vmatprep.subr.bf16.mxu1 %v10910_v26  ;;  %v1355_v21 = vld [vmem:[%s12155_s21 + $0xd80] sm:$0xff]  ;;  %v10638_v6 = vcombine.high %v1099_v3, %v1107_v29  ;;  %v10637_v49 = vcombine.low %v1099_v3, %v1107_v29 }
 0x13c   : > { %v615_v47 = vadd.f32 %v614_v0, %v613_v63  ;;  %7174 = vmatpush2.bf16.msra.mxu0 %v10653_v30  ;;  %7245 = vmatpush2.bf16.msra.mxu1 %v10909_v35  ;;  %v1363_v60 = vld [vmem:[%s12155_s21 + $0xdc0] sm:$0xff] }
 0x13d   : > { %v10894_v22 = vcombine.high %v1355_v21, %v1363_v60  ;;  %v10893_v25 = vcombine.low %v1355_v21, %v1363_v60  ;;  %7175 = vmatprep.subr.bf16.mxu0 %v10638_v6  ;;  %v1083_v24 = vld [vmem:[%s12155_s21 + $0x500] sm:$0xff] }
 0x13e   : > { %616 = vadd.xlane.f32.xlu1 %v615_v47  ;;  %v1091_v17 = vld [vmem:[%s12155_s21 + $0x540] sm:$0xff] }
 0x13f   : > { %7246 = vmatprep.subr.bf16.mxu1 %v10894_v22  ;;  %v1339_v51 = vld [vmem:[%s12155_s21 + $0xd00] sm:$0xff]  ;;  %v10622_v23 = vcombine.high %v1083_v24, %v1091_v17  ;;  %v10621_v0 = vcombine.low %v1083_v24, %v1091_v17 }
 0x140   : > { %7176 = vmatpush2.bf16.msra.mxu0 %v10637_v49  ;;  %7247 = vmatpush2.bf16.msra.mxu1 %v10893_v25  ;;  %v1347_v11 = vld [vmem:[%s12155_s21 + $0xd40] sm:$0xff] }
 0x141   : > { %v10878_v14 = vcombine.high %v1339_v51, %v1347_v11  ;;  %v10877_v63 = vcombine.low %v1339_v51, %v1347_v11  ;;  %v1067_v47 = vld [vmem:[%s12155_s21 + $0x480] sm:$0xff]  ;;  %7177 = vmatprep.subr.bf16.mxu0 %v10622_v23 }
 0x142   : > { %v1075_v41 = vld [vmem:[%s12155_s21 + $0x4c0] sm:$0xff] }
 0x143   : > { %v1323_v36 = vld [vmem:[%s12155_s21 + $0xc80] sm:$0xff]  ;;  %v10606_v18 = vcombine.high %v1067_v47, %v1075_v41  ;;  %7248 = vmatprep.subr.bf16.mxu1 %v10878_v14  ;;  %v10605_v35 = vcombine.low %v1067_v47, %v1075_v41 }
 0x144   : > { %v1331_v53 = vld [vmem:[%s12155_s21 + $0xcc0] sm:$0xff]  ;;  %7178 = vmatpush2.bf16.msra.mxu0 %v10621_v0  ;;  %7249 = vmatpush2.bf16.msra.mxu1 %v10877_v63  ;;  %v697_v63 = vlaneseq }
 0x145   : > { %v1051_v20 = vld [vmem:[%s12155_s21 + $0x400] sm:$0xff]  ;;  %v10862_v26 = vcombine.high %v1323_v36, %v1331_v53  ;;  %7179 = vmatprep.subr.bf16.mxu0 %v10606_v18  ;;  %v10861_v21 = vcombine.low %v1323_v36, %v1331_v53  ;;  %v12909_v53 = vld [vmem:[#allocation2] sm:$0xff] }
 0x146   : > { %v1059_v30 = vld [vmem:[%s12155_s21 + $0x440] sm:$0xff]  ;;  %v698_v47 = vshrl.u32 %v697_v63, 7 }
 0x147   : > { %v1307_v3 = vld [vmem:[%s12155_s21 + $0xc00] sm:$0xff]  ;;  %v10590_v6 = vcombine.high %v1051_v20, %v1059_v30  ;;  %7250 = vmatprep.subr.bf16.mxu1 %v10862_v26  ;;  %v10589_v23 = vcombine.low %v1051_v20, %v1059_v30  ;;  %v793_v30 = vld [vmem:[#allocation4] sm:$0xff] }
 0x148   : > { %v1315_v29 = vld [vmem:[%s12155_s21 + $0xc40] sm:$0xff]  ;;  %7180 = vmatpush2.bf16.msra.mxu0 %v10605_v35  ;;  %7251 = vmatpush2.bf16.msra.mxu1 %v10861_v21  ;;  %v12907_v36 = vsub.s32 1, %v698_v47  ;;  %v12911_v20 = vsub.s32 3, %v698_v47  ;;  %v12913_v26 = vsub.s32 0, %v698_v47  ;;  %v12915_v35 = vsub.s32 2, %v698_v47 }
 0x149   : > { %v12888_v60 = vld [vmem:[%s12155_s21 + $0x1380] sm:$0xff]  ;;  %v10846_v49 = vcombine.high %v1307_v3, %v1315_v29  ;;  %7181 = vmatprep.subr.bf16.mxu0 %v10590_v6  ;;  %v10845_v11 = vcombine.low %v1307_v3, %v1315_v29  ;;  %v12920_v21 = vsub.s32 5, %v698_v47  ;;  %v12939_v63 = vsub.s32 6, %v698_v47 }
 0x14a   : > { %17895 = vst [vmem:[#allocation46_spill] sm:$0xff] %v12888_v60  ;;  %v12891_v22 = vld [vmem:[%s12155_s21 + $0x13c0] sm:$0xff]  ;;  %17899 = vst [vmem:[#allocation50_spill] sm:$0xff] %v12907_v36  ;;  %v12924_v6 = vrot.slane %v12909_v53, %v12907_v36  ;;  %v12946_v51 = vrot.slane %v12909_v53, %v12911_v20  ;;  %v12949_v17 = vrot.slane %v793_v30, %v12911_v20 }
 0x14b   : > { %17896 = vst [vmem:[#allocation47_spill] sm:$0xff] %v12891_v22  ;;  %v12894_v25 = vld [vmem:[%s12155_s21 + $0x1b80] sm:$0xff]  ;;  %v11086_v14 = vcombine.high %v12888_v60, %v12891_v22  ;;  %7252 = vmatprep.subr.bf16.mxu1 %v10846_v49  ;;  %17900 = vst [vmem:[#allocation51_spill] sm:$0xff] %v12911_v20  ;;  %v12966_v8 = vrot.slane %v12909_v53, %v12915_v35  ;;  %v13066_v22 = vrot.slane %v12909_v53, %v12939_v63 }
 0x14c   : > { %17897 = vst [vmem:[#allocation48_spill] sm:$0xff] %v12894_v25  ;;  %v12897_v24 = vld [vmem:[%s12155_s21 + $0x1bc0] sm:$0xff]  ;;  %7182 = vmatpush2.bf16.msra.mxu0 %v10589_v23  ;;  %7253 = vmatpush2.bf16.msra.mxu1 %v10845_v11  ;;  %17901 = vst [vmem:[#allocation52_spill] sm:$0xff] %v12913_v26  ;;  %v13069_v60 = vrot.slane %v793_v30, %v12939_v63 }
 0x14d   : > { %17898 = vst [vmem:[#allocation49_spill] sm:$0xff] %v12897_v24  ;;  %v11342_v0 = vcombine.high %v12894_v25, %v12897_v24  ;;  %7293 = vmatprep.subr.bf16.mxu0 %v11086_v14  ;;  %17902 = vst [vmem:[#allocation53_spill] sm:$0xff] %v12915_v35  ;;  %v12918_v29 = vld [vmem:[%s12155_s21 + $0x1300] sm:$0xff]  ;;  %v12935_v14 = vsub.s32 7, %v698_v47 }
 0x14e   : > { %17903 = vst [vmem:[#allocation54_spill] sm:$0xff] %v12918_v29  ;;  %17904 = vst [vmem:[#allocation55_spill] sm:$0xff] %v12920_v21  ;;  %v12927_v49 = vld [vmem:[%s12155_s21 + $0x1340] sm:$0xff] }
 0x14f   : > { %7364 = vmatprep.subr.bf16.mxu1 %v11342_v0  ;;  %17905 = vst [vmem:[#allocation56_spill] sm:$0xff] %v12927_v49  ;;  %v12930_v23 = vld [vmem:[%s12155_s21 + $0x1b00] sm:$0xff]  ;;  %17908 = vst [vmem:[#allocation59_spill] sm:$0xff] %v12935_v14  ;;  %v12937_v0 = vsub.s32 4, %v698_v47  ;;  %v13041_v31 = vrot.slane %v12909_v53, %v12935_v14 }
 0x150   : > { %17906 = vst [vmem:[#allocation57_spill] sm:$0xff] %v12930_v23  ;;  %v12933_v11 = vld [vmem:[%s12155_s21 + $0x1b40] sm:$0xff]  ;;  %17910 = vst [vmem:[#allocation61_spill] sm:$0xff] %v12939_v63 }
 0x151   : > { %17907 = vst [vmem:[#allocation58_spill] sm:$0xff] %v12933_v11  ;;  %17909 = vst [vmem:[#allocation60_spill] sm:$0xff] %v12937_v0  ;;  %v12952_v42 = vld [vmem:[%s12155_s21 + $0x1280] sm:$0xff] }
 0x152   : > { %17911 = vst [vmem:[#allocation62_spill] sm:$0xff] %v12952_v42  ;;  %v12955_v54 = vld [vmem:[%s12155_s21 + $0x12c0] sm:$0xff]  ;;  %v13028_v42 = vrot.slane %v793_v30, %v12920_v21 }
 0x153   : > { %17912 = vst [vmem:[#allocation63_spill] sm:$0xff] %v12955_v54  ;;  %v12969_v20 = vld [vmem:[%s12155_s21 + $0x1a80] sm:$0xff]  ;;  %v13025_v54 = vrot.slane %v12909_v53, %v12920_v21  ;;  %v13048_v21 = vrot.slane %v12909_v53, %v12937_v0 }
 0x154   : > { %17913 = vst [vmem:[#allocation64_spill] sm:$0xff] %v12969_v20  ;;  %v13015_v11 = vld [vmem:[%s12155_s21 + $0x19c0] sm:$0xff]  ;;  %v13044_v20 = vrot.slane %v793_v30, %v12935_v14  ;;  %v13062_v14 = vrot.slane %v793_v30, %v12937_v0 }
 0x155   : > { %17920 = vst [vmem:[#allocation71_spill] sm:$0xff] %v13015_v11  ;;  %v13021_v1 = vld [vmem:[%s12155_s21 + $0x1140] sm:$0xff] }
 0x156   : > { %17922 = vst [vmem:[#allocation73_spill] sm:$0xff] %v13021_v1  ;;  %v13034_v23 = vld [vmem:[%s12155_s21 + $0x1940] sm:$0xff] }
 0x157   : > { %v13053_v29 = vld [vmem:[%s12155_s21 + $0x10c0] sm:$0xff] }
 0x158   : > { %17924 = vst [vmem:[#allocation75_spill] sm:$0xff] %v13053_v29  ;;  %v13056_v24 = vld [vmem:[%s12155_s21 + $0x1880] sm:$0xff] }
 0x159   : > { %v13059_v25 = vld [vmem:[%s12155_s21 + $0x18c0] sm:$0xff] }
 0x15a   : > { %v13098_v63 = vld [vmem:[%s12155_s21 + $0x1780] sm:$0xff] }
 0x15b   : > { %17927 = vst [vmem:[#allocation78_spill] sm:$0xff] %v13098_v63  ;;  %v13101_v55 = vld [vmem:[%s12155_s21 + $0x17c0] sm:$0xff] }
 0x15c   : > { %17928 = vst [vmem:[#allocation79_spill] sm:$0xff] %v13101_v55  ;;  %v13110_v37 = vld [vmem:[%s12155_s21 + $0x1f80] sm:$0xff] }
 0x15d   : > { %v13113_v0 = vld [vmem:[%s12155_s21 + $0x1fc0] sm:$0xff] }
 0x15e   : > { %17929 = vst [vmem:[#allocation80_spill] sm:$0xff] %v13113_v0  ;;  %v13116_v11 = vld [vmem:[%s12155_s21 + $0x1700] sm:$0xff] }
 0x15f   : > { %v13127_v1 = vld [vmem:[%s12155_s21 + $0x1740] sm:$0xff] }
 0x160   : > { %v13133_v9 = vld [vmem:[%s12155_s21 + $0x1f40] sm:$0xff] }
 0x1a2   : > { %v555_v41 = vpop.xlane.xlu1 %554 }
 0x1a3   : > { %v618_v18 = vmul.f32 0.0009765625, %v555_v41 }
 0x1a5   : > { %v625_v3 = vadd.f32 1e-05, %v618_v18  ;;  %v12942_v18 = vrot.slane %v793_v30, %v12907_v36  ;;  %v12962_v36 = vrot.slane %v793_v30, %v12913_v26 }
 0x1a6   : > { %v573_v41 = vpop.xlane.xlu1 %572 }
 0x1a7   : > { %11560 = vrsqrt.f32 %v625_v3  ;;  %v620_v47 = vmul.f32 0.0009765625, %v573_v41  ;;  %v12959_v3 = vrot.slane %v12909_v53, %v12913_v26  ;;  %v12978_v41 = vrot.slane %v793_v30, %v12915_v35  ;;  %v13037_v26 = vld [vmem:[%s12155_s21 + $0x1080] sm:$0xff] }
 0x1a8   : > { %17923 = vst [vmem:[#allocation74_spill] sm:$0xff] %v13037_v26  ;;  %v13081_v53 = vld [vmem:[%s12155_s21 + $0x1040] sm:$0xff] }
 0x1a9   : > { %v627_v35 = vadd.f32 1e-05, %v620_v47  ;;  %v13031_v47 = vld [vmem:[%s12155_s21 + $0x1900] sm:$0xff] }
 0x1ab   : > { %11562 = vrsqrt.f32 %v627_v35 }
 0x1ad   : > { %v564_v35 = vpop.xlane.xlu0 %563 }
 0x1ae   : > { %v619_v49 = vmul.f32 0.0009765625, %v564_v35 }
 0x1b0   : > { %v626_v13 = vadd.f32 1e-05, %v619_v49 }
 0x1b2   : > { %11564 = vrsqrt.f32 %v626_v13 }
 0x1b4   : > { %v11561_v26 = vpop.eup %11560  ;;  %v582_v57 = vpop.xlane.xlu0 %581 }
 0x1b5   : > { %v621_v45 = vmul.f32 0.0009765625, %v582_v57  ;;  %v640_v29 = vmul.f32 %v11561_v26, %v12545_v48  ;;  %v642_v39 = vmul.f32 %v11561_v26, %v12551_v10  ;;  %v639_v13 = vmul.f32 %v11561_v26, %v12542_v16 }
 0x1b6   : > { %v641_v55 = vmul.f32 %v11561_v26, %v12548_v34  ;;  %v644_v61 = vmul.f32 %v11561_v26, %v12557_v38  ;;  %v646_v63 = vmul.f32 %v11561_v26, %v12567_v4  ;;  %v643_v49 = vmul.f32 %v11561_v26, %v12554_v52 }
 0x1b7   : > { %v628_v0 = vadd.f32 1e-05, %v621_v45  ;;  %v738_v30 = vmul.f32 %v12924_v6, %v640_v29  ;;  %v740_v35 = vmul.f32 %v12946_v51, %v642_v39  ;;  %v737_v57 = vmul.f32 %v12959_v3, %v639_v13 }
 0x1b8   : > { %v739_v48 = vmul.f32 %v12966_v8, %v641_v55  ;;  %v742_v10 = vmul.f32 %v13025_v54, %v644_v61  ;;  %v744_v16 = vmul.f32 %v13041_v31, %v646_v63  ;;  %v741_v34 = vmul.f32 %v13048_v21, %v643_v49  ;;  %v13171_v38 = vpop.eup %11562 }
 0x1b9   : > { %11566 = vrsqrt.f32 %v628_v0  ;;  %v836_v52 = vadd.f32 %v12942_v18, %v738_v30  ;;  %v838_v45 = vadd.f32 %v12949_v17, %v740_v35  ;;  %v835_v39 = vadd.f32 %v12962_v36, %v737_v57 }
 0x1ba   : > { %v591_v4 = vpop.xlane.xlu1 %590  ;;  %v837_v13 = vadd.f32 %v12978_v41, %v739_v48  ;;  %v656_v61 = vmul.f32 %v13171_v38, %v12577_v58  ;;  %v658_v55 = vmul.f32 %v13171_v38, %v12583_v28  ;;  %v655_v63 = vmul.f32 %v13171_v38, %v12574_v46 }
 0x1bb   : > { %v622_v29 = vmul.f32 0.0009765625, %v591_v4  ;;  %v657_v0 = vmul.f32 %v13171_v38, %v12580_v19  ;;  %v840_v30 = vadd.f32 %v13028_v42, %v742_v10  ;;  %v13187_v35 = vadd.f32 %v13044_v20, %v744_v16 }
 0x1bc   : > { %v754_v57 = vmul.f32 %v12924_v6, %v656_v61  ;;  %v756_v48 = vmul.f32 %v12946_v51, %v658_v55  ;;  %v13192_v58 = vadd.f32 %v13062_v14, %v741_v34  ;;  %v753_v28 = vmul.f32 %v12959_v3, %v655_v63 }
 0x1bd   : > { %v629_v49 = vadd.f32 1e-05, %v622_v29  ;;  %v755_v46 = vmul.f32 %v12966_v8, %v657_v0  ;;  %v645_v4 = vmul.f32 %v11561_v26, %v12564_v2  ;;  %v660_v19 = vmul.f32 %v13171_v38, %v12593_v59 }
 0x1be   : > { %v13200_v10 = vadd.f32 %v12942_v18, %v754_v57  ;;  %v13203_v16 = vadd.f32 %v12949_v17, %v756_v48  ;;  %v13207_v34 = vmul.f32 %v13171_v38, %v12609_v56  ;;  %v13210_v55 = vadd.f32 %v12962_v36, %v753_v28 }
 0x1bf   : > { %11568 = vrsqrt.f32 %v629_v49  ;;  %v11565_v29 = vpop.eup %11564  ;;  %v13213_v2 = vadd.f32 %v12978_v41, %v755_v46  ;;  %v13216_v59 = vmul.f32 %v13066_v22, %v645_v4  ;;  %v13219_v26 = vmul.f32 %v13025_v54, %v660_v19 }
 0x1c0   : > { %v600_v61 = vpop.xlane.xlu0 %599  ;;  %v648_v0 = vmul.f32 %v11565_v29, %v12621_v33  ;;  %v650_v56 = vmul.f32 %v11565_v29, %v12629_v44  ;;  %v647_v49 = vmul.f32 %v11565_v29, %v12618_v15  ;;  %v649_v57 = vmul.f32 %v11565_v29, %v12626_v62 }
 0x1c1   : > { %v623_v63 = vmul.f32 0.0009765625, %v600_v61  ;;  %v652_v48 = vmul.f32 %v11565_v29, %v12645_v50  ;;  %v654_v28 = vmul.f32 %v11565_v29, %v12651_v32  ;;  %v651_v46 = vmul.f32 %v11565_v29, %v12638_v12 }
 0x1c2   : > { %v746_v7 = vmul.f32 %v12924_v6, %v648_v0  ;;  %v748_v19 = vmul.f32 %v12946_v51, %v650_v56  ;;  %v745_v61 = vmul.f32 %v12959_v3, %v647_v49  ;;  %v747_v33 = vmul.f32 %v12966_v8, %v649_v57 }
 0x1c3   : > { %v630_v4 = vadd.f32 1e-05, %v623_v63  ;;  %v750_v44 = vmul.f32 %v13025_v54, %v652_v48  ;;  %v752_v15 = vmul.f32 %v13041_v31, %v654_v28  ;;  %v749_v62 = vmul.f32 %v13048_v21, %v651_v46 }
 0x1c4   : > { %v844_v50 = vadd.f32 %v12942_v18, %v746_v7  ;;  %v846_v12 = vadd.f32 %v12949_v17, %v748_v19  ;;  %v843_v32 = vadd.f32 %v12962_v36, %v745_v61  ;;  %v845_v63 = vadd.f32 %v12978_v41, %v747_v33  ;;  %v17935_v33 = vld [vmem:[#allocation31_spill] sm:$0xff] }
 0x1c5   : > { %11570 = vrsqrt.f32 %v630_v4  ;;  %v848_v0 = vadd.f32 %v13028_v42, %v750_v44  ;;  %v850_v56 = vadd.f32 %v13044_v20, %v752_v15  ;;  %v847_v49 = vadd.f32 %v13062_v14, %v749_v62  ;;  %v17936_v15 = vld [vmem:[#allocation33_spill] sm:$0xff] }
 0x1c6   : > { %v13242_v57 = vpop.eup %11566  ;;  %v13244_v28 = vpack.c.bf16 %v844_v50, %v836_v52  ;;  %v13246_v46 = vpack.c.bf16 %v846_v12, %v838_v45  ;;  %v13248_v7 = vpack.c.bf16 %v843_v32, %v835_v39  ;;  %v653_v4 = vmul.f32 %v11565_v29, %v12648_v5  ;;  %v17937_v52 = vld [vmem:[#allocation30_spill] sm:$0xff]  ;;  %v17938_v39 = vld [vmem:[#allocation32_spill] sm:$0xff] }
 0x1c7   : > { %v617_v48 = vpop.xlane.xlu1 %616  ;;  %v13251_v61 = vpack.c.bf16 %v845_v63, %v837_v13  ;;  %v664_v44 = vmul.f32 %v13242_v57, %v17935_v33  ;;  %v666_v62 = vmul.f32 %v13242_v57, %v17936_v15  ;;  %v663_v45 = vmul.f32 %v13242_v57, %v17937_v52  ;;  %v17941_v63 = vld [vmem:[#allocation46_spill] sm:$0xff]  ;;  %v17944_v15 = vld [vmem:[#allocation48_spill] sm:$0xff]  ;;  %v17945_v52 = vld [vmem:[#allocation49_spill] sm:$0xff] }
 0x1c8   : > { %17931 = vst [vmem:[#allocation82_spill] sm:$0xff] %v13244_v28  ;;  %17932 = vst [vmem:[#allocation83_spill] sm:$0xff] %v13246_v46  ;;  %v624_v19 = vmul.f32 0.0009765625, %v617_v48  ;;  %7183 = vmatprep.mubr.bf16.mxu0 %v13244_v28  ;;  %7254 = vmatprep.mubr.bf16.mxu1 %v13246_v46  ;;  %v665_v50 = vmul.f32 %v13242_v57, %v17938_v39  ;;  %v13263_v5 = vpack.c.bf16 %v848_v0, %v840_v30  ;;  %v17942_v48 = vld [vmem:[#allocation47_spill] sm:$0xff] }
 0x1c9   : > { %17933 = vst [vmem:[#allocation84_spill] sm:$0xff] %v13248_v7  ;;  %17934 = vst [vmem:[#allocation85_spill] sm:$0xff] %v13251_v61  ;;  %7184 = vmatmul.mubr.bf16.vlgmr.msra.gmra.mxu0 %v13248_v7  ;;  %7255 = vmatmul.mubr.bf16.vlgmr.msra.gmra.mxu1 %v13251_v61  ;;  %v762_v29 = vmul.f32 %v12924_v6, %v664_v44  ;;  %v764_v12 = vmul.f32 %v12946_v51, %v666_v62  ;;  %v17948_v62 = vld [vmem:[#allocation54_spill] sm:$0xff]  ;;  %v17993_v7 = vld [vmem:[#allocation16_spill] sm:$0xff] }
 0x1ca   : > { %17939 = vst [vmem:[#allocation31_spill] sm:$0xff] %v13263_v5  ;;  %v631_v13 = vadd.f32 1e-05, %v624_v19  ;;  %v13270_v32 = vpack.c.bf16 %v850_v56, %v13187_v35  ;;  %v17943_v33 = vcombine.low %v17941_v63, %v17942_v48  ;;  %v17946_v30 = vcombine.low %v17944_v15, %v17945_v52  ;;  %v17949_v63 = vld [vmem:[#allocation56_spill] sm:$0xff]  ;;  %v17952_v15 = vld [vmem:[#allocation58_spill] sm:$0xff] }
 0x1cb   : > { %v761_v0 = vmul.f32 %v12959_v3, %v663_v45  ;;  %v763_v19 = vmul.f32 %v12966_v8, %v665_v50  ;;  %v13281_v39 = vpack.c.bf16 %v847_v49, %v13192_v58  ;;  %v860_v35 = vadd.f32 %v12942_v18, %v762_v29  ;;  %v17954_v50 = vld [vmem:[#allocation39_spill] sm:$0xff]  ;;  %v17955_v29 = vld [vmem:[#allocation41_spill] sm:$0xff]  ;;  %v17958_v61 = vld [vmem:[#allocation38_spill] sm:$0xff] }
 0x1cc   : > { %17940 = vst [vmem:[#allocation33_spill] sm:$0xff] %v13270_v32  ;;  %7294 = vmatpush1.bf16.msra.mxu0 %v17943_v33  ;;  %7365 = vmatpush1.bf16.msra.mxu1 %v17946_v30  ;;  %v13283_v44 = vpop.eup %11568  ;;  %11572 = vrsqrt.f32 %v631_v13  ;;  %v862_v56 = vadd.f32 %v12949_v17, %v764_v12  ;;  %v17950_v48 = vcombine.high %v17948_v62, %v17949_v63  ;;  %v17951_v33 = vld [vmem:[#allocation57_spill] sm:$0xff] }
 0x1cd   : > { %17947 = vst [vmem:[#allocation30_spill] sm:$0xff] %v13281_v39  ;;  %v17953_v52 = vcombine.high %v17951_v33, %v17952_v15  ;;  %v751_v45 = vmul.f32 %v13066_v22, %v653_v4  ;;  %v859_v58 = vadd.f32 %v12962_v36, %v761_v0  ;;  %v861_v49 = vadd.f32 %v12978_v41, %v763_v19  ;;  %v17959_v4 = vld [vmem:[#allocation40_spill] sm:$0xff] }
 0x1ce   : > { %7295 = vmatprep.subr.bf16.mxu0 %v17950_v48  ;;  %v672_v13 = vmul.f32 %v13283_v44, %v17954_v50  ;;  %v674_v12 = vmul.f32 %v13283_v44, %v17955_v29  ;;  %v13301_v30 = vpack.c.bf16 %v860_v35, %v13200_v10  ;;  %v13304_v48 = vpack.c.bf16 %v862_v56, %v13203_v16 }
 0x1cf   : > { %7366 = vmatprep.subr.bf16.mxu1 %v17953_v52  ;;  %v671_v52 = vmul.f32 %v13283_v44, %v17958_v61  ;;  %v673_v0 = vmul.f32 %v13283_v44, %v17959_v4  ;;  %v17960_v19 = vcombine.low %v17948_v62, %v17949_v63  ;;  %v17961_v50 = vcombine.low %v17951_v33, %v17952_v15  ;;  %v17964_v63 = vld [vmem:[#allocation62_spill] sm:$0xff]  ;;  %v17965_v33 = vld [vmem:[#allocation63_spill] sm:$0xff] }
 0x1d0   : > { %17956 = vst [vmem:[#allocation32_spill] sm:$0xff] %v13301_v30  ;;  %17957 = vst [vmem:[#allocation46_spill] sm:$0xff] %v13304_v48  ;;  %v13317_v10 = vpack.c.bf16 %v859_v58, %v13210_v55  ;;  %v13320_v16 = vpack.c.bf16 %v861_v49, %v13213_v2  ;;  %v770_v35 = vmul.f32 %v12924_v6, %v672_v13  ;;  %7193 = vmatprep.mubr.bf16.mxu0 %v13301_v30  ;;  %v17967_v55 = vld [vmem:[#allocation64_spill] sm:$0xff]  ;;  %v17968_v58 = vld [vmem:[#allocation65_spill] sm:$0xff] }
 0x1d1   : > { %7296 = vmatpush1.bf16.msra.mxu0 %v17960_v19  ;;  %7367 = vmatpush1.bf16.msra.mxu1 %v17961_v50  ;;  %v772_v61 = vmul.f32 %v12946_v51, %v674_v12  ;;  %v769_v56 = vmul.f32 %v12959_v3, %v671_v52  ;;  %v771_v62 = vmul.f32 %v12966_v8, %v673_v0 }
 0x1d2   : > { %17962 = vst [vmem:[#allocation47_spill] sm:$0xff] %v13317_v10  ;;  %17963 = vst [vmem:[#allocation48_spill] sm:$0xff] %v13320_v16  ;;  %7264 = vmatprep.mubr.bf16.mxu1 %v13304_v48  ;;  %v17966_v15 = vcombine.high %v17964_v63, %v17965_v33  ;;  %v17969_v2 = vcombine.high %v17967_v55, %v17968_v58  ;;  %v868_v49 = vadd.f32 %v12942_v18, %v770_v35  ;;  %v13338_v12 = vpop.eup %11570  ;;  %v17973_v35 = vld [vmem:[#allocation15_spill] sm:$0xff]  ;;  %v17982_v48 = vld [vmem:[#allocation37_spill] sm:$0xff] }
 0x1d3   : > { %v841_v13 = vadd.f32 %v13069_v60, %v13216_v59  ;;  %v849_v29 = vadd.f32 %v13069_v60, %v751_v45  ;;  %7194 = vmatmul.mubr.bf16.gmra.mxu0 %v13317_v10  ;;  %7265 = vmatmul.mubr.bf16.gmra.mxu1 %v13320_v16  ;;  %v870_v52 = vadd.f32 %v12949_v17, %v772_v61  ;;  %v17972_v45 = vld [vmem:[#allocation13_spill] sm:$0xff] }
 0x1d4   : > { %7297 = vmatprep.subr.bf16.mxu0 %v17966_v15  ;;  %7368 = vmatprep.subr.bf16.mxu1 %v17969_v2  ;;  %v867_v4 = vadd.f32 %v12962_v36, %v769_v56  ;;  %v869_v0 = vadd.f32 %v12978_v41, %v771_v62  ;;  %v17970_v19 = vcombine.low %v17964_v63, %v17965_v33  ;;  %v17974_v2 = vld [vmem:[#allocation12_spill] sm:$0xff]  ;;  %v17976_v62 = vld [vmem:[#allocation66_spill] sm:$0xff]  ;;  %v17977_v63 = vld [vmem:[#allocation67_spill] sm:$0xff] }
 0x1d5   : > { %v17971_v59 = vcombine.low %v17967_v55, %v17968_v58  ;;  %v680_v50 = vmul.f32 %v13338_v12, %v17972_v45  ;;  %v682_v15 = vmul.f32 %v13338_v12, %v17973_v35  ;;  %v679_v61 = vmul.f32 %v13338_v12, %v17974_v2 }
 0x1d6   : > { %7298 = vmatpush1.bf16.msra.mxu0 %v17970_v19  ;;  %v17975_v56 = vcombine.high %v12975_v27, %v12987_v43  ;;  %v17978_v33 = vcombine.high %v17976_v62, %v17977_v63  ;;  %v17979_v19 = vld [vmem:[#allocation14_spill] sm:$0xff]  ;;  %v13365_v58 = vpack.c.bf16 %v849_v29, %v841_v13  ;;  %v670_v13 = vmul.f32 %v13242_v57, %v17982_v48 }
 0x1d7   : > { %7369 = vmatpush1.bf16.msra.mxu1 %v17971_v59  ;;  %v681_v55 = vmul.f32 %v13338_v12, %v17979_v19  ;;  %v17981_v59 = vld [vmem:[#allocation35_spill] sm:$0xff]  ;;  %v778_v35 = vmul.f32 %v12924_v6, %v680_v50  ;;  %v780_v2 = vmul.f32 %v12946_v51, %v682_v15  ;;  %v777_v16 = vmul.f32 %v12959_v3, %v679_v61 }
 0x1d8   : > { %7299 = vmatprep.subr.bf16.mxu0 %v17975_v56  ;;  %7370 = vmatprep.subr.bf16.mxu1 %v17978_v33  ;;  %17980 = vst [vmem:[#allocation49_spill] sm:$0xff] %v13365_v58  ;;  %v668_v45 = vmul.f32 %v13242_v57, %v17981_v59  ;;  %v856_v56 = vadd.f32 %v13028_v42, %v13219_v26  ;;  %v17986_v59 = vld [vmem:[#allocation69_spill] sm:$0xff] }
 0x1d9   : > { %v779_v10 = vmul.f32 %v12966_v8, %v681_v55  ;;  %v760_v29 = vmul.f32 %v13041_v31, %v13207_v34  ;;  %v876_v19 = vadd.f32 %v12942_v18, %v778_v35  ;;  %v878_v50 = vadd.f32 %v12949_v17, %v780_v2  ;;  %v17985_v55 = vld [vmem:[#allocation68_spill] sm:$0xff]  ;;  %v17989_v34 = vld [vmem:[#allocation71_spill] sm:$0xff] }
 0x1da   : > { %v766_v33 = vmul.f32 %v13025_v54, %v668_v45  ;;  %v17983_v15 = vcombine.low %v12975_v27, %v12987_v43  ;;  %v17984_v26 = vcombine.low %v17976_v62, %v17977_v63  ;;  %v875_v61 = vadd.f32 %v12962_v36, %v777_v16  ;;  %v17988_v45 = vld [vmem:[#allocation70_spill] sm:$0xff]  ;;  %v13398_v43 = vpop.eup %11572 }
 0x1db   : > { %v17987_v48 = vcombine.high %v17985_v55, %v17986_v59  ;;  %v17990_v30 = vcombine.high %v17988_v45, %v17989_v34  ;;  %v877_v35 = vadd.f32 %v12978_v41, %v779_v10  ;;  %v768_v27 = vmul.f32 %v13041_v31, %v670_v13  ;;  %v17992_v10 = vld [vmem:[#allocation20_spill] sm:$0xff] }
 0x1dc   : > { %7300 = vmatpush1.bf16.msra.mxu0 %v17983_v15  ;;  %7371 = vmatpush1.bf16.msra.mxu1 %v17984_v26  ;;  %v864_v2 = vadd.f32 %v13028_v42, %v766_v33  ;;  %v13400_v62 = vpack.c.bf16 %v876_v19, %v868_v49  ;;  %v13402_v63 = vpack.c.bf16 %v878_v50, %v870_v52  ;;  %v17994_v49 = vld [vmem:[#allocation18_spill] sm:$0xff] }
 0x1dd   : > { %7301 = vmatprep.subr.bf16.mxu0 %v17987_v48  ;;  %7372 = vmatprep.subr.bf16.mxu1 %v17990_v30  ;;  %v13404_v16 = vpack.c.bf16 %v875_v61, %v867_v4  ;;  %v858_v15 = vadd.f32 %v13044_v20, %v760_v29  ;;  %v13407_v26 = vpack.c.bf16 %v877_v35, %v869_v0  ;;  %v17991_v48 = vld [vmem:[#allocation17_spill] sm:$0xff] }
 0x1de   : > { %v688_v30 = vmul.f32 %v13398_v43, %v17991_v48  ;;  %v690_v33 = vmul.f32 %v13398_v43, %v17992_v10  ;;  %v687_v13 = vmul.f32 %v13398_v43, %v17993_v7  ;;  %7203 = vmatprep.mubr.bf16.mxu0 %v13400_v62  ;;  %7274 = vmatprep.mubr.bf16.mxu1 %v13402_v63  ;;  %v18001_v48 = vld [vmem:[#allocation73_spill] sm:$0xff] }
 0x1df   : > { %v689_v52 = vmul.f32 %v13398_v43, %v17994_v49  ;;  %v13419_v4 = vpack.c.bf16 %v864_v2, %v856_v56  ;;  %v866_v0 = vadd.f32 %v13044_v20, %v768_v27  ;;  %7204 = vmatmul.mubr.bf16.gmra.mxu0 %v13404_v16  ;;  %7275 = vmatmul.mubr.bf16.gmra.mxu1 %v13407_v26  ;;  %v17999_v2 = vld [vmem:[#allocation28_spill] sm:$0xff] }
 0x1e0   : > { %v786_v29 = vmul.f32 %v12924_v6, %v688_v30  ;;  %v788_v19 = vmul.f32 %v12946_v51, %v690_v33  ;;  %v785_v7 = vmul.f32 %v12959_v3, %v687_v13  ;;  %v17996_v50 = vcombine.low %v17985_v55, %v17986_v59  ;;  %v18000_v3 = vld [vmem:[#allocation72_spill] sm:$0xff] }
 0x1e1   : > { %17995 = vst [vmem:[#allocation54_spill] sm:$0xff] %v13419_v4  ;;  %v17997_v56 = vcombine.low %v17988_v45, %v17989_v34  ;;  %v787_v61 = vmul.f32 %v12966_v8, %v689_v52  ;;  %v13434_v35 = vpack.c.bf16 %v866_v0, %v858_v15  ;;  %v659_v27 = vmul.f32 %v13171_v38, %v17999_v2  ;;  %v18004_v45 = vld [vmem:[#allocation34_spill] sm:$0xff]  ;;  %v18009_v49 = vld [vmem:[#allocation36_spill] sm:$0xff] }
 0x1e2   : > { %7302 = vmatpush1.bf16.msra.mxu0 %v17996_v50  ;;  %v884_v6 = vadd.f32 %v12942_v18, %v786_v29  ;;  %v886_v51 = vadd.f32 %v12949_v17, %v788_v19  ;;  %v18002_v30 = vcombine.high %v18000_v3, %v18001_v48  ;;  %v18003_v55 = vcombine.high %v13031_v47, %v13034_v23  ;;  %v18005_v18 = vld [vmem:[#allocation29_spill] sm:$0xff] }
 0x1e3   : > { %7373 = vmatpush1.bf16.msra.mxu1 %v17997_v56  ;;  %17998 = vst [vmem:[#allocation56_spill] sm:$0xff] %v13434_v35  ;;  %v883_v59 = vadd.f32 %v12962_v36, %v785_v7  ;;  %v885_v8 = vadd.f32 %v12978_v41, %v787_v61  ;;  %v667_v34 = vmul.f32 %v13242_v57, %v18004_v45  ;;  %v18013_v7 = vld [vmem:[#allocation43_spill] sm:$0xff]  ;;  %v18014_v56 = vld [vmem:[#allocation74_spill] sm:$0xff] }
 0x1e4   : > { %7303 = vmatprep.subr.bf16.mxu0 %v18002_v30  ;;  %7374 = vmatprep.subr.bf16.mxu1 %v18003_v55  ;;  %v757_v15 = vmul.f32 %v13048_v21, %v659_v27  ;;  %v661_v17 = vmul.f32 %v13171_v38, %v18005_v18  ;;  %v13453_v10 = vpack.c.bf16 %v884_v6, %v884_v6  ;;  %v18018_v27 = vld [vmem:[#allocation21_spill] sm:$0xff] }
 0x1e5   : > { %v13455_v33 = vpack.c.bf16 %v886_v51, %v886_v51  ;;  %v13457_v13 = vpack.c.bf16 %v883_v59, %v883_v59  ;;  %v669_v52 = vmul.f32 %v13242_v57, %v18009_v49  ;;  %v18010_v36 = vcombine.low %v18000_v3, %v18001_v48  ;;  %v18019_v51 = vld [vmem:[#allocation45_spill] sm:$0xff] }
 0x1e6   : > { %18006 = vst [vmem:[#allocation57_spill] sm:$0xff] %v13453_v10  ;;  %v18011_v41 = vcombine.low %v13031_v47, %v13034_v23  ;;  %v13467_v0 = vpack.c.bf16 %v885_v8, %v885_v8  ;;  %v765_v38 = vmul.f32 %v13048_v21, %v667_v34  ;;  %v855_v29 = vadd.f32 %v13062_v14, %v757_v15  ;;  %v18015_v23 = vld [vmem:[#allocation75_spill] sm:$0xff]  ;;  %v18023_v15 = vld [vmem:[#allocation25_spill] sm:$0xff] }
 0x1e7   : > { %18007 = vst [vmem:[#allocation58_spill] sm:$0xff] %v13455_v33  ;;  %18008 = vst [vmem:[#allocation39_spill] sm:$0xff] %v13457_v13  ;;  %7304 = vmatpush1.bf16.msra.mxu0 %v18010_v36  ;;  %7213 = vmatprep.mubr.bf16.mxu0 %v13453_v10  ;;  %v759_v57 = vmul.f32 %v13066_v22, %v661_v17  ;;  %v767_v19 = vmul.f32 %v13066_v22, %v669_v52  ;;  %v18027_v36 = vld [vmem:[#allocation77_spill] sm:$0xff] }
 0x1e8   : > { %7375 = vmatpush1.bf16.msra.mxu1 %v18011_v41  ;;  %18012 = vst [vmem:[#allocation41_spill] sm:$0xff] %v13467_v0  ;;  %7284 = vmatprep.mubr.bf16.mxu1 %v13455_v33  ;;  %v676_v50 = vmul.f32 %v13283_v44, %v18013_v7  ;;  %v18016_v47 = vcombine.high %v18014_v56, %v18015_v23 }
 0x1e9   : > { %v18017_v61 = vcombine.high %v13056_v24, %v13059_v25  ;;  %v863_v2 = vadd.f32 %v13062_v14, %v765_v38  ;;  %v684_v6 = vmul.f32 %v13338_v12, %v18018_v27  ;;  %v678_v3 = vmul.f32 %v13283_v44, %v18019_v51  ;;  %7214 = vmatmul.mubr.bf16.gmra.mxu0 %v13457_v13  ;;  %v1643_v51 = vld [vmem:[%s12155_s21 + $0x1680] sm:$0xff] }
 0x1ea   : > { %7305 = vmatprep.subr.bf16.mxu0 %v18016_v47  ;;  %7285 = vmatmul.mubr.bf16.gmra.mxu1 %v13467_v0  ;;  %v857_v48 = vadd.f32 %v13069_v60, %v759_v57  ;;  %v865_v30 = vadd.f32 %v13069_v60, %v767_v19  ;;  %v774_v55 = vmul.f32 %v13025_v54, %v676_v50  ;;  %v18029_v57 = vld [vmem:[#allocation42_spill] sm:$0xff]  ;;  %v18030_v50 = vld [vmem:[#allocation19_spill] sm:$0xff] }
 0x1eb   : > { %7376 = vmatprep.subr.bf16.mxu1 %v18017_v61  ;;  %v18020_v59 = vcombine.low %v18014_v56, %v18015_v23  ;;  %v18021_v8 = vcombine.low %v13056_v24, %v13059_v25  ;;  %v13499_v45 = vpack.c.bf16 %v863_v2, %v855_v29  ;;  %v782_v34 = vmul.f32 %v13025_v54, %v684_v6  ;;  %v18026_v24 = vld [vmem:[#allocation76_spill] sm:$0xff]  ;;  %v18032_v61 = vld [vmem:[#allocation23_spill] sm:$0xff] }
 0x1ec   : > { %v686_v18 = vmul.f32 %v13338_v12, %v18023_v15  ;;  %7325 = vmatprep.mubr.bf16.mxu0 %v13263_v5  ;;  %7396 = vmatprep.mubr.bf16.mxu1 %v13270_v32  ;;  %v13506_v17 = vpack.c.bf16 %v865_v30, %v857_v48  ;;  %v872_v49 = vadd.f32 %v13028_v42, %v774_v55  ;;  %v18031_v23 = vld [vmem:[#allocation44_spill] sm:$0xff]  ;;  %v18036_v55 = vld [vmem:[#allocation78_spill] sm:$0xff] }
 0x1ed   : > { %7306 = vmatpush1.bf16.msra.mxu0 %v18020_v59  ;;  %7377 = vmatpush1.bf16.msra.mxu1 %v18021_v8  ;;  %18022 = vst [vmem:[#allocation38_spill] sm:$0xff] %v13499_v45  ;;  %v776_v52 = vmul.f32 %v13041_v31, %v678_v3  ;;  %v18025_v25 = vcombine.high %v13078_v40, %v13081_v53 }
 0x1ee   : > { %18024 = vst [vmem:[#allocation40_spill] sm:$0xff] %v13506_v17  ;;  %v18028_v41 = vcombine.high %v18026_v24, %v18027_v36  ;;  %v880_v38 = vadd.f32 %v13028_v42, %v782_v34  ;;  %v784_v29 = vmul.f32 %v13041_v31, %v686_v18  ;;  %v675_v19 = vmul.f32 %v13283_v44, %v18029_v57  ;;  %v1907_v34 = vld [vmem:[%s12155_s21 + $0x1ec0] sm:$0xff] }
 0x1ef   : > { %7307 = vmatprep.subr.bf16.mxu0 %v18025_v25  ;;  %v874_v7 = vadd.f32 %v13044_v20, %v776_v52  ;;  %v683_v56 = vmul.f32 %v13338_v12, %v18030_v50  ;;  %v677_v47 = vmul.f32 %v13283_v44, %v18031_v23  ;;  %v685_v2 = vmul.f32 %v13338_v12, %v18032_v61  ;;  %v18037_v44 = vld [vmem:[#allocation79_spill] sm:$0xff]  ;;  %v18039_v12 = vld [vmem:[#allocation80_spill] sm:$0xff]  ;;  %v18041_v25 = vld [vmem:[#allocation81_spill] sm:$0xff] }
 0x1f0   : > { %7378 = vmatprep.subr.bf16.mxu1 %v18028_v41  ;;  %v18033_v27 = vcombine.low %v13078_v40, %v13081_v53  ;;  %v18034_v6 = vcombine.low %v18026_v24, %v18027_v36  ;;  %v13534_v3 = vpack.c.bf16 %v880_v38, %v872_v49  ;;  %v882_v48 = vadd.f32 %v13044_v20, %v784_v29  ;;  %v1651_v40 = vld [vmem:[%s12155_s21 + $0x16c0] sm:$0xff]  ;;  %v18046_v61 = vld [vmem:[#allocation26_spill] sm:$0xff] }
 0x1f1   : > { %v773_v30 = vmul.f32 %v13048_v21, %v675_v19  ;;  %v18038_v59 = vcombine.high %v18036_v55, %v18037_v44  ;;  %v18040_v8 = vcombine.high %v13110_v37, %v18039_v12  ;;  %v1899_v53 = vld [vmem:[%s12155_s21 + $0x1e80] sm:$0xff]  ;;  %v781_v15 = vmul.f32 %v13048_v21, %v683_v56  ;;  %v18043_v19 = vld [vmem:[#allocation22_spill] sm:$0xff] }
 0x1f2   : > { %7308 = vmatpush1.bf16.msra.mxu0 %v18033_v27  ;;  %7379 = vmatpush1.bf16.msra.mxu1 %v18034_v6  ;;  %18035 = vst [vmem:[#allocation62_spill] sm:$0xff] %v13534_v3  ;;  %v775_v18 = vmul.f32 %v13066_v22, %v677_v47  ;;  %v783_v49 = vmul.f32 %v13066_v22, %v685_v2 }
 0x1f3   : > { %7309 = vmatprep.subr.bf16.mxu0 %v18038_v59  ;;  %7380 = vmatprep.subr.bf16.mxu1 %v18040_v8  ;;  %v11197_v52 = vcombine.low %v13116_v11, %v13127_v1  ;;  %v11453_v24 = vcombine.low %v18041_v25, %v13133_v9  ;;  %v13554_v36 = vpack.c.bf16 %v882_v48, %v874_v7  ;;  %v1627_v48 = vld [vmem:[%s12155_s21 + $0x1600] sm:$0xff] }
 0x1f4   : > { %v871_v41 = vadd.f32 %v13062_v14, %v773_v30  ;;  %v879_v38 = vadd.f32 %v13062_v14, %v781_v15  ;;  %v873_v29 = vadd.f32 %v13069_v60, %v775_v18  ;;  %v881_v57 = vadd.f32 %v13069_v60, %v783_v49  ;;  %v1883_v59 = vld [vmem:[%s12155_s21 + $0x1e00] sm:$0xff] }
 0x1f5   : > { %18042 = vst [vmem:[#allocation63_spill] sm:$0xff] %v13554_v36  ;;  %v691_v50 = vmul.f32 %v13398_v43, %v18043_v19  ;;  %v18044_v56 = vcombine.low %v18036_v55, %v18037_v44  ;;  %v18045_v7 = vcombine.low %v13110_v37, %v18039_v12  ;;  %v11182_v23 = vcombine.high %v1643_v51, %v1651_v40  ;;  %v1635_v44 = vld [vmem:[%s12155_s21 + $0x1640] sm:$0xff] }
 0x1f6   : > { %v11438_v47 = vcombine.high %v1899_v53, %v1907_v34  ;;  %v693_v2 = vmul.f32 %v13398_v43, %v18046_v61  ;;  %v18047_v27 = vcombine.high %v13116_v11, %v13127_v1  ;;  %v18048_v6 = vcombine.high %v18041_v25, %v13133_v9  ;;  %v1891_v12 = vld [vmem:[%s12155_s21 + $0x1e40] sm:$0xff] }
 0x1f7   : > { %7310 = vmatpush2.bf16.msra.mxu0 %v18044_v56  ;;  %7381 = vmatpush2.bf16.msra.mxu1 %v18045_v7  ;;  %v13577_v30 = vpack.c.bf16 %v879_v38, %v871_v41  ;;  %v13579_v55 = vpack.c.bf16 %v881_v57, %v873_v29  ;;  %v789_v37 = vmul.f32 %v13048_v21, %v691_v50  ;;  %v1611_v49 = vld [vmem:[%s12155_s21 + $0x1580] sm:$0xff] }
 0x1f8   : > { %7311 = vmatprep.subr.bf16.mxu0 %v18047_v27  ;;  %7382 = vmatprep.subr.bf16.mxu1 %v18048_v6  ;;  %v791_v1 = vmul.f32 %v13066_v22, %v693_v2  ;;  %v11181_v9 = vcombine.low %v1643_v51, %v1651_v40  ;;  %v11437_v8 = vcombine.low %v1899_v53, %v1907_v34  ;;  %v1619_v22 = vld [vmem:[%s12155_s21 + $0x15c0] sm:$0xff] }
 0x1f9   : > { %18049 = vst [vmem:[#allocation64_spill] sm:$0xff] %v13577_v30  ;;  %18050 = vst [vmem:[#allocation65_spill] sm:$0xff] %v13579_v55  ;;  %v13587_v11 = vadd.f32 %v13062_v14, %v789_v37  ;;  %v11166_v21 = vcombine.high %v1627_v48, %v1635_v44  ;;  %v11422_v18 = vcombine.high %v1883_v59, %v1891_v12  ;;  %v1867_v25 = vld [vmem:[%s12155_s21 + $0x1d80] sm:$0xff] }
 0x1fa   : > { %v13590_v15 = vadd.f32 %v13069_v60, %v791_v1  ;;  %v1875_v14 = vld [vmem:[%s12155_s21 + $0x1dc0] sm:$0xff]  ;;  %v11421_v51 = vcombine.low %v1883_v59, %v1891_v12  ;;  %v11150_v60 = vcombine.high %v1611_v49, %v1619_v22  ;;  %v11149_v38 = vcombine.low %v1611_v49, %v1619_v22  ;;  %v1300_v49 = vld [vmem:[%s12155_s21 + $0xbc8] sm:$0xff] }
 0x1fb   : > { %7312 = vmatpush2.bf16.msra.mxu0 %v11197_v52  ;;  %7383 = vmatpush2.bf16.msra.mxu1 %v11453_v24  ;;  %v11165_v52 = vcombine.low %v1627_v48, %v1635_v44  ;;  %v11406_v40 = vcombine.high %v1867_v25, %v1875_v14  ;;  %v1595_v53 = vld [vmem:[%s12155_s21 + $0x1500] sm:$0xff]  ;;  %v11405_v29 = vcombine.low %v1867_v25, %v1875_v14 }
 0x1fc   : > { %7313 = vmatprep.subr.bf16.mxu0 %v11182_v23  ;;  %7384 = vmatprep.subr.bf16.mxu1 %v11438_v47  ;;  %v1603_v34 = vld [vmem:[%s12155_s21 + $0x1540] sm:$0xff] }
 0x1fd   : > { %v1851_v24 = vld [vmem:[%s12155_s21 + $0x1d00] sm:$0xff]  ;;  %v11134_v57 = vcombine.high %v1595_v53, %v1603_v34  ;;  %v11133_v47 = vcombine.low %v1595_v53, %v1603_v34  ;;  %v1284_v53 = vld [vmem:[%s12155_s21 + $0xb48] sm:$0xff] }
 0x1fe   : > { %v1859_v41 = vld [vmem:[%s12155_s21 + $0x1d40] sm:$0xff] }
 0x1ff   : > { %7314 = vmatpush2.bf16.msra.mxu0 %v11181_v9  ;;  %7385 = vmatpush2.bf16.msra.mxu1 %v11437_v8  ;;  %v11390_v19 = vcombine.high %v1851_v24, %v1859_v41  ;;  %v1579_v50 = vld [vmem:[%s12155_s21 + $0x1480] sm:$0xff]  ;;  %v11389_v61 = vcombine.low %v1851_v24, %v1859_v41  ;;  %v1036_v8 = vld [vmem:[%s12155_s21 + $0x388] sm:$0xff] }
 0x200   : > { %7315 = vmatprep.subr.bf16.mxu0 %v11166_v21  ;;  %7386 = vmatprep.subr.bf16.mxu1 %v11422_v18  ;;  %v1587_v56 = vld [vmem:[%s12155_s21 + $0x14c0] sm:$0xff]  ;;  %v1044_v21 = vld [vmem:[%s12155_s21 + $0x3c8] sm:$0xff] }
 0x201   : > { %v1835_v7 = vld [vmem:[%s12155_s21 + $0x1c80] sm:$0xff]  ;;  %v11118_v2 = vcombine.high %v1579_v50, %v1587_v56  ;;  %v11117_v59 = vcombine.low %v1579_v50, %v1587_v56  ;;  %v1292_v18 = vld [vmem:[%s12155_s21 + $0xb88] sm:$0xff]  ;;  %v10576_v14 = vcombine.high %v1036_v8, %v1044_v21  ;;  %v10575_v34 = vcombine.low %v1036_v8, %v1044_v21 }
 0x202   : > { %v1843_v23 = vld [vmem:[%s12155_s21 + $0x1cc0] sm:$0xff]  ;;  %v10831_v24 = vcombine.low %v1292_v18, %v1300_v49  ;;  %v1268_v50 = vld [vmem:[%s12155_s21 + $0xac8] sm:$0xff] }
 0x203   : > { %7316 = vmatpush2.bf16.msra.mxu0 %v11165_v52  ;;  %7387 = vmatpush2.bf16.msra.mxu1 %v11421_v51  ;;  %v11374_v27 = vcombine.high %v1835_v7, %v1843_v23  ;;  %v1563_v6 = vld [vmem:[%s12155_s21 + $0x1400] sm:$0xff]  ;;  %v11373_v12 = vcombine.low %v1835_v7, %v1843_v23  ;;  %v10832_v52 = vcombine.high %v1292_v18, %v1300_v49  ;;  %v1020_v51 = vld [vmem:[%s12155_s21 + $0x308] sm:$0xff] }
 0x204   : > { %7317 = vmatprep.subr.bf16.mxu0 %v11150_v60  ;;  %7388 = vmatprep.subr.bf16.mxu1 %v11406_v40  ;;  %v1571_v48 = vld [vmem:[%s12155_s21 + $0x1440] sm:$0xff]  ;;  %v1028_v60 = vld [vmem:[%s12155_s21 + $0x348] sm:$0xff] }
 0x205   : > { %v1819_v37 = vld [vmem:[%s12155_s21 + $0x1c00] sm:$0xff]  ;;  %v11102_v1 = vcombine.high %v1563_v6, %v1571_v48  ;;  %v11101_v22 = vcombine.low %v1563_v6, %v1571_v48  ;;  %v1276_v40 = vld [vmem:[%s12155_s21 + $0xb08] sm:$0xff]  ;;  %v10560_v41 = vcombine.high %v1020_v51, %v1028_v60  ;;  %v10559_v56 = vcombine.low %v1020_v51, %v1028_v60  ;;  %v18052_v48 = vld [vmem:[#allocation27_spill] sm:$0xff] }
 0x206   : > { %v1827_v44 = vld [vmem:[%s12155_s21 + $0x1c40] sm:$0xff]  ;;  %v10815_v7 = vcombine.low %v1276_v40, %v1284_v53  ;;  %v972_v21 = vld [vmem:[%s12155_s21 + $0x188] sm:$0xff] }
 0x207   : > { %7318 = vmatpush2.bf16.msra.mxu0 %v11149_v38  ;;  %7389 = vmatpush2.bf16.msra.mxu1 %v11405_v29  ;;  %v11358_v9 = vcombine.high %v1819_v37, %v1827_v44  ;;  %v11357_v25 = vcombine.low %v1819_v37, %v1827_v44  ;;  %v10816_v38 = vcombine.high %v1276_v40, %v1284_v53  ;;  %v1004_v29 = vld [vmem:[%s12155_s21 + $0x288] sm:$0xff] }
 0x208   : > { %7319 = vmatprep.subr.bf16.mxu0 %v11134_v57  ;;  %7390 = vmatprep.subr.bf16.mxu1 %v11390_v19  ;;  %v1012_v57 = vld [vmem:[%s12155_s21 + $0x2c8] sm:$0xff]  ;;  %v694_v37 = vmul.f32 %v13398_v43, %v18052_v48 }
 0x209   : > { %v1260_v19 = vld [vmem:[%s12155_s21 + $0xa88] sm:$0xff]  ;;  %v10544_v23 = vcombine.high %v1004_v29, %v1012_v57 }
 0x20a   : > { %v1244_v44 = vld [vmem:[%s12155_s21 + $0xa08] sm:$0xff] }
 0x20b   : > { %7320 = vmatpush2.bf16.msra.mxu0 %v11133_v47  ;;  %7391 = vmatpush2.bf16.msra.mxu1 %v11389_v61  ;;  %v10800_v47 = vcombine.high %v1260_v19, %v1268_v50  ;;  %v988_v61 = vld [vmem:[%s12155_s21 + $0x208] sm:$0xff] }
 0x20c   : > { %7321 = vmatprep.subr.bf16.mxu0 %v11118_v2  ;;  %7392 = vmatprep.subr.bf16.mxu1 %v11374_v27  ;;  %v996_v2 = vld [vmem:[%s12155_s21 + $0x248] sm:$0xff]  ;;  %v18051_v27 = vld [vmem:[#allocation24_spill] sm:$0xff] }
 0x20d   : > { %v692_v6 = vmul.f32 %v13398_v43, %v18051_v27  ;;  %v980_v18 = vld [vmem:[%s12155_s21 + $0x1c8] sm:$0xff] }
 0x20e   : > { %v1228_v43 = vld [vmem:[%s12155_s21 + $0x988] sm:$0xff] }
 0x20f   : > { %7322 = vmatpush2.bf16.msra.mxu0 %v11117_v59  ;;  %7393 = vmatpush2.bf16.msra.mxu1 %v11373_v12  ;;  %v1252_v59 = vld [vmem:[%s12155_s21 + $0xa48] sm:$0xff]  ;;  %v10543_v12 = vcombine.low %v1004_v29, %v1012_v57  ;;  %v790_v49 = vmul.f32 %v13025_v54, %v692_v6 }
 0x210   : > { %7323 = vmatprep.subr.bf16.mxu0 %v11102_v1  ;;  %7394 = vmatprep.subr.bf16.mxu1 %v11358_v9  ;;  %v10799_v1 = vcombine.low %v1260_v19, %v1268_v50  ;;  %v10528_v9 = vcombine.high %v988_v61, %v996_v2  ;;  %v10784_v8 = vcombine.high %v1244_v44, %v1252_v59  ;;  %v956_v40 = vld [vmem:[%s12155_s21 + $0x108] sm:$0xff] }
 0x211   : > { %v10783_v54 = vcombine.low %v1244_v44, %v1252_v59  ;;  %v888_v51 = vadd.f32 %v13028_v42, %v790_v49  ;;  %v964_v53 = vld [vmem:[%s12155_s21 + $0x148] sm:$0xff]  ;;  %v13666_v59 = vpack.c.bf16 %v13587_v11, %v13587_v11 }
 0x212   : > { %v10496_v29 = vcombine.high %v956_v40, %v964_v53  ;;  %v948_v50 = vld [vmem:[%s12155_s21 + $0xc8] sm:$0xff] }
 0x213   : > { %7324 = vmatpush2.bf16.msra.mxu0 %v11101_v22  ;;  %7395 = vmatpush2.bf16.msra.mxu1 %v11357_v25  ;;  %v792_v22 = vmul.f32 %v13041_v31, %v694_v37  ;;  %v1236_v25 = vld [vmem:[%s12155_s21 + $0x9c8] sm:$0xff]  ;;  %v13648_v57 = vpack.c.bf16 %v888_v51, %v888_v51  ;;  %18055 = vst [vmem:[#allocation12_spill] sm:$0xff] %v13666_v59 }
 0x214   : > { %7435 = vmatprep.subr.bf16.mxu0 %v10576_v14  ;;  %7506 = vmatprep.subr.bf16.mxu1 %v10832_v52  ;;  %v10527_v14 = vcombine.low %v988_v61, %v996_v2  ;;  %v10512_v52 = vcombine.high %v972_v21, %v980_v18  ;;  %v10768_v31 = vcombine.high %v1228_v43, %v1236_v25  ;;  %v924_v27 = vld [vmem:[%s12155_s21 + $0x8] sm:$0xff] }
 0x215   : > { %v890_v60 = vadd.f32 %v13044_v20, %v792_v22  ;;  %18053 = vst [vmem:[#allocation13_spill] sm:$0xff] %v13648_v57  ;;  %v940_v20 = vld [vmem:[%s12155_s21 + $0x88] sm:$0xff] }
 0x216   : > { %7326 = vmatmul.mubr.bf16.vlgmr.msra.gmra.mxu0 %v13281_v39  ;;  %7397 = vmatmul.mubr.bf16.vlgmr.msra.gmra.mxu1 %v13365_v58  ;;  %v10480_v61 = vcombine.high %v940_v20, %v948_v50  ;;  %v932_v6 = vld [vmem:[%s12155_s21 + $0x48] sm:$0xff]  ;;  %v10479_v44 = vcombine.low %v940_v20, %v948_v50 }
 0x217   : > { %7335 = vmatprep.mubr.bf16.mxu0 %v13419_v4  ;;  %7406 = vmatprep.mubr.bf16.mxu1 %v13434_v35  ;;  %v13650_v42 = vpack.c.bf16 %v890_v60, %v890_v60  ;;  %v1180_v48 = vld [vmem:[%s12155_s21 + $0x808] sm:$0xff] }
 0x218   : > { %7436 = vmatpush1.bf16.msra.mxu0 %v10575_v34  ;;  %7507 = vmatpush1.bf16.msra.mxu1 %v10831_v24  ;;  %v1212_v34 = vld [vmem:[%s12155_s21 + $0x908] sm:$0xff] }
 0x219   : > { %7437 = vmatprep.subr.bf16.mxu0 %v10560_v41  ;;  %7508 = vmatprep.subr.bf16.mxu1 %v10816_v38  ;;  %v1220_v24 = vld [vmem:[%s12155_s21 + $0x948] sm:$0xff]  ;;  %v10511_v41 = vcombine.low %v972_v21, %v980_v18  ;;  %v10767_v38 = vcombine.low %v1228_v43, %v1236_v25  ;;  %18054 = vst [vmem:[#allocation15_spill] sm:$0xff] %v13650_v42 }
 0x21a   : > { %v10752_v19 = vcombine.high %v1212_v34, %v1220_v24  ;;  %v1188_v37 = vld [vmem:[%s12155_s21 + $0x848] sm:$0xff] }
 0x21b   : > { %v1164_v21 = vld [vmem:[%s12155_s21 + $0x788] sm:$0xff]  ;;  %v10719_v22 = vcombine.low %v1180_v48, %v1188_v37 }
 0x21c   : > { %7438 = vmatpush1.bf16.msra.mxu0 %v10559_v56  ;;  %7509 = vmatpush1.bf16.msra.mxu1 %v10815_v7  ;;  %v1196_v56 = vld [vmem:[%s12155_s21 + $0x888] sm:$0xff] }
 0x21d   : > { %7439 = vmatprep.subr.bf16.mxu0 %v10544_v23  ;;  %7510 = vmatprep.subr.bf16.mxu1 %v10800_v47  ;;  %v1204_v7 = vld [vmem:[%s12155_s21 + $0x8c8] sm:$0xff]  ;;  %v10495_v23 = vcombine.low %v956_v40, %v964_v53  ;;  %v10751_v47 = vcombine.low %v1212_v34, %v1220_v24 }
 0x21e   : > { %7336 = vmatmul.mubr.bf16.gmra.mxu0 %v13499_v45  ;;  %7407 = vmatmul.mubr.bf16.gmra.mxu1 %v13506_v17  ;;  %v10736_v2 = vcombine.high %v1196_v56, %v1204_v7  ;;  %v1172_v18 = vld [vmem:[%s12155_s21 + $0x7c8] sm:$0xff] }
 0x21f   : > { %7345 = vmatprep.mubr.bf16.mxu0 %v13534_v3  ;;  %7416 = vmatprep.mubr.bf16.mxu1 %v13554_v36  ;;  %v1420_v11 = vld [vmem:[%s12155_s21 + $0xf88] sm:$0xff]  ;;  %v10704_v43 = vcombine.high %v1164_v21, %v1172_v18  ;;  %v10703_v51 = vcombine.low %v1164_v21, %v1172_v18 }
 0x220   : > { %7440 = vmatpush1.bf16.msra.mxu0 %v10543_v12  ;;  %7511 = vmatpush1.bf16.msra.mxu1 %v10799_v1  ;;  %v13670_v12 = vpack.c.bf16 %v13590_v15, %v13590_v15  ;;  %v10735_v1 = vcombine.low %v1196_v56, %v1204_v7  ;;  %v1428_v49 = vld [vmem:[%s12155_s21 + $0xfc8] sm:$0xff]  ;;  %v10463_v15 = vcombine.low %v924_v27, %v932_v6 }
 0x221   : > { %7441 = vmatprep.subr.bf16.mxu0 %v10528_v9  ;;  %7512 = vmatprep.subr.bf16.mxu1 %v10784_v8  ;;  %v10464_v9 = vcombine.high %v924_v27, %v932_v6  ;;  %v10720_v8 = vcombine.high %v1180_v48, %v1188_v37  ;;  %v10960_v25 = vcombine.high %v1420_v11, %v1428_v49  ;;  %v1132_v34 = vld [vmem:[%s12155_s21 + $0x688] sm:$0xff] }
 0x222   : > { %18056 = vst [vmem:[#allocation66_spill] sm:$0xff] %v13670_v12  ;;  %v10959_v60 = vcombine.low %v1420_v11, %v1428_v49  ;;  %v1140_v24 = vld [vmem:[%s12155_s21 + $0x6c8] sm:$0xff] }
 0x223   : > { %v10672_v20 = vcombine.high %v1132_v34, %v1140_v24  ;;  %v1116_v56 = vld [vmem:[%s12155_s21 + $0x608] sm:$0xff] }
 0x224   : > { %7442 = vmatpush1.bf16.msra.mxu0 %v10527_v14  ;;  %7513 = vmatpush1.bf16.msra.mxu1 %v10783_v54  ;;  %v1148_v14 = vld [vmem:[%s12155_s21 + $0x708] sm:$0xff] }
 0x225   : > { %7443 = vmatprep.subr.bf16.mxu0 %v10512_v52  ;;  %7514 = vmatprep.subr.bf16.mxu1 %v10768_v31  ;;  %v1156_v54 = vld [vmem:[%s12155_s21 + $0x748] sm:$0xff] }
 0x226   : > { %7346 = vmatmul.mubr.bf16.gmra.mxu0 %v13577_v30  ;;  %7417 = vmatmul.mubr.bf16.gmra.mxu1 %v13579_v55  ;;  %v1404_v52 = vld [vmem:[%s12155_s21 + $0xf08] sm:$0xff]  ;;  %v10688_v40 = vcombine.high %v1148_v14, %v1156_v54 }
 0x227   : > { %7355 = vmatprep.mubr.bf16.mxu0 %v13648_v57  ;;  %7426 = vmatprep.mubr.bf16.mxu1 %v13650_v42  ;;  %v1412_v31 = vld [vmem:[%s12155_s21 + $0xf48] sm:$0xff] }
 0x228   : > { %7444 = vmatpush1.bf16.msra.mxu0 %v10511_v41  ;;  %7515 = vmatpush1.bf16.msra.mxu1 %v10767_v38  ;;  %v10944_v53 = vcombine.high %v1404_v52, %v1412_v31  ;;  %v1388_v41 = vld [vmem:[%s12155_s21 + $0xe88] sm:$0xff] }
 0x229   : > { %7445 = vmatprep.subr.bf16.mxu0 %v10496_v29  ;;  %7516 = vmatprep.subr.bf16.mxu1 %v10752_v19  ;;  %v1396_v38 = vld [vmem:[%s12155_s21 + $0xec8] sm:$0xff]  ;;  %v10687_v29 = vcombine.low %v1148_v14, %v1156_v54  ;;  %v10943_v19 = vcombine.low %v1404_v52, %v1412_v31 }
 0x22a   : > { %v10928_v50 = vcombine.high %v1388_v41, %v1396_v38  ;;  %v1124_v7 = vld [vmem:[%s12155_s21 + $0x648] sm:$0xff] }
 0x22b   : > { %v10656_v27 = vcombine.high %v1116_v56, %v1124_v7  ;;  %v1100_v48 = vld [vmem:[%s12155_s21 + $0x588] sm:$0xff] }
 0x22c   : > { %7446 = vmatpush1.bf16.msra.mxu0 %v10495_v23  ;;  %7517 = vmatpush1.bf16.msra.mxu1 %v10751_v47  ;;  %v1372_v23 = vld [vmem:[%s12155_s21 + $0xe08] sm:$0xff] }
 0x22d   : > { %7447 = vmatprep.subr.bf16.mxu0 %v10480_v61  ;;  %7518 = vmatprep.subr.bf16.mxu1 %v10736_v2  ;;  %v1380_v47 = vld [vmem:[%s12155_s21 + $0xe48] sm:$0xff]  ;;  %v10671_v61 = vcombine.low %v1132_v34, %v1140_v24  ;;  %v10927_v2 = vcombine.low %v1388_v41, %v1396_v38 }
 0x22e   : > { %7356 = vmatmul.mubr.bf16.gmra.mxu0 %v13666_v59  ;;  %7427 = vmatmul.mubr.bf16.gmra.mxu1 %v13670_v12  ;;  %v10912_v6 = vcombine.high %v1372_v23, %v1380_v47  ;;  %v1108_v37 = vld [vmem:[%s12155_s21 + $0x5c8] sm:$0xff] }
 0x22f   : > { %7467 = vmatprep.mubr.bf16.mxu0 %v13244_v28  ;;  %7538 = vmatprep.mubr.bf16.mxu1 %v13246_v46  ;;  %v10640_v21 = vcombine.high %v1100_v48, %v1108_v37  ;;  %v1084_v11 = vld [vmem:[%s12155_s21 + $0x508] sm:$0xff] }
 0x230   : > { %7448 = vmatpush1.bf16.msra.mxu0 %v10479_v44  ;;  %7519 = vmatpush1.bf16.msra.mxu1 %v10735_v1  ;;  %v1356_v44 = vld [vmem:[%s12155_s21 + $0xd88] sm:$0xff] }
 0x231   : > { %7449 = vmatprep.subr.bf16.mxu0 %v10464_v9  ;;  %7520 = vmatprep.subr.bf16.mxu1 %v10720_v8  ;;  %v1364_v1 = vld [vmem:[%s12155_s21 + $0xdc8] sm:$0xff]  ;;  %v10655_v9 = vcombine.low %v1116_v56, %v1124_v7  ;;  %v10911_v8 = vcombine.low %v1372_v23, %v1380_v47 }
 0x232   : > { %v10896_v18 = vcombine.high %v1356_v44, %v1364_v1  ;;  %v1092_v49 = vld [vmem:[%s12155_s21 + $0x548] sm:$0xff] }
 0x233   : > { %v10624_v14 = vcombine.high %v1084_v11, %v1092_v49  ;;  %v1068_v52 = vld [vmem:[%s12155_s21 + $0x488] sm:$0xff] }
 0x234   : > { %7450 = vmatpush1.bf16.msra.mxu0 %v10463_v15  ;;  %7521 = vmatpush1.bf16.msra.mxu1 %v10719_v22  ;;  %v1340_v15 = vld [vmem:[%s12155_s21 + $0xd08] sm:$0xff] }
 0x235   : > { %7451 = vmatprep.subr.bf16.mxu0 %v10704_v43  ;;  %7522 = vmatprep.subr.bf16.mxu1 %v10960_v25  ;;  %v1348_v22 = vld [vmem:[%s12155_s21 + $0xd48] sm:$0xff]  ;;  %v10639_v43 = vcombine.low %v1100_v48, %v1108_v37  ;;  %v10895_v25 = vcombine.low %v1356_v44, %v1364_v1 }
 0x236   : > { %v10880_v54 = vcombine.high %v1340_v15, %v1348_v22  ;;  %v1076_v31 = vld [vmem:[%s12155_s21 + $0x4c8] sm:$0xff] }
 0x237   : > { %v10608_v34 = vcombine.high %v1068_v52, %v1076_v31  ;;  %v1052_v41 = vld [vmem:[%s12155_s21 + $0x408] sm:$0xff] }
 0x238   : > { %7452 = vmatpush2.bf16.msra.mxu0 %v10703_v51  ;;  %7523 = vmatpush2.bf16.msra.mxu1 %v10959_v60  ;;  %v1324_v51 = vld [vmem:[%s12155_s21 + $0xc88] sm:$0xff] }
 0x239   : > { %7453 = vmatprep.subr.bf16.mxu0 %v10688_v40  ;;  %7524 = vmatprep.subr.bf16.mxu1 %v10944_v53  ;;  %v1332_v60 = vld [vmem:[%s12155_s21 + $0xcc8] sm:$0xff]  ;;  %v10623_v40 = vcombine.low %v1084_v11, %v1092_v49  ;;  %v10879_v53 = vcombine.low %v1340_v15, %v1348_v22  ;;  %v18057_v22 = vld [vmem:[#allocation84_spill] sm:$0xff] }
 0x23a   : > { %v10864_v24 = vcombine.high %v1324_v51, %v1332_v60  ;;  %v1060_v38 = vld [vmem:[%s12155_s21 + $0x448] sm:$0xff] }
 0x23b   : > { %v10592_v56 = vcombine.high %v1052_v41, %v1060_v38  ;;  %v1548_v23 = vld [vmem:[%s12155_s21 + $0x1388] sm:$0xff] }
 0x23c   : > { %7454 = vmatpush2.bf16.msra.mxu0 %v10687_v29  ;;  %7525 = vmatpush2.bf16.msra.mxu1 %v10943_v19  ;;  %v1308_v29 = vld [vmem:[%s12155_s21 + $0xc08] sm:$0xff] }
 0x23d   : > { %7455 = vmatprep.subr.bf16.mxu0 %v10672_v20  ;;  %7526 = vmatprep.subr.bf16.mxu1 %v10928_v50  ;;  %v1316_v19 = vld [vmem:[%s12155_s21 + $0xc48] sm:$0xff]  ;;  %v10607_v20 = vcombine.low %v1068_v52, %v1076_v31  ;;  %v10863_v50 = vcombine.low %v1324_v51, %v1332_v60  ;;  %v18059_v52 = vld [vmem:[#allocation32_spill] sm:$0xff]  ;;  %v18060_v31 = vld [vmem:[#allocation46_spill] sm:$0xff] }
 0x23e   : > { %v10848_v7 = vcombine.high %v1308_v29, %v1316_v19  ;;  %v1556_v47 = vld [vmem:[%s12155_s21 + $0x13c8] sm:$0xff] }
 0x23f   : > { %v11088_v48 = vcombine.high %v1548_v23, %v1556_v47  ;;  %v1532_v44 = vld [vmem:[%s12155_s21 + $0x1308] sm:$0xff] }
 0x240   : > { %7456 = vmatpush2.bf16.msra.mxu0 %v10671_v61  ;;  %7527 = vmatpush2.bf16.msra.mxu1 %v10927_v2  ;;  %v1804_v61 = vld [vmem:[%s12155_s21 + $0x1b88] sm:$0xff] }
 0x241   : > { %7457 = vmatprep.subr.bf16.mxu0 %v10656_v27  ;;  %7528 = vmatprep.subr.bf16.mxu1 %v10912_v6  ;;  %v1812_v2 = vld [vmem:[%s12155_s21 + $0x1bc8] sm:$0xff]  ;;  %v10591_v27 = vcombine.low %v1052_v41, %v1060_v38  ;;  %v10847_v6 = vcombine.low %v1308_v29, %v1316_v19 }
 0x242   : > { %v11344_v37 = vcombine.high %v1804_v61, %v1812_v2  ;;  %v1540_v1 = vld [vmem:[%s12155_s21 + $0x1348] sm:$0xff] }
 0x243   : > { %v11072_v11 = vcombine.high %v1532_v44, %v1540_v1  ;;  %v1516_v15 = vld [vmem:[%s12155_s21 + $0x1288] sm:$0xff]  ;;  %v11071_v51 = vcombine.low %v1532_v44, %v1540_v1 }
 0x244   : > { %7458 = vmatpush2.bf16.msra.mxu0 %v10655_v9  ;;  %7529 = vmatpush2.bf16.msra.mxu1 %v10911_v8  ;;  %v1788_v9 = vld [vmem:[%s12155_s21 + $0x1b08] sm:$0xff] }
 0x245   : > { %7459 = vmatprep.subr.bf16.mxu0 %v10640_v21  ;;  %7530 = vmatprep.subr.bf16.mxu1 %v10896_v18  ;;  %v1796_v8 = vld [vmem:[%s12155_s21 + $0x1b48] sm:$0xff]  ;;  %v11087_v21 = vcombine.low %v1548_v23, %v1556_v47  ;;  %v11343_v18 = vcombine.low %v1804_v61, %v1812_v2  ;;  %v18062_v23 = vld [vmem:[#allocation48_spill] sm:$0xff] }
 0x246   : > { %v11328_v49 = vcombine.high %v1788_v9, %v1796_v8  ;;  %v11327_v60 = vcombine.low %v1788_v9, %v1796_v8  ;;  %v1756_v41 = vld [vmem:[%s12155_s21 + $0x1a08] sm:$0xff] }
 0x247   : > { %v1764_v38 = vld [vmem:[%s12155_s21 + $0x1a48] sm:$0xff] }
 0x248   : > { %7460 = vmatpush2.bf16.msra.mxu0 %v10639_v43  ;;  %7531 = vmatpush2.bf16.msra.mxu1 %v10895_v25  ;;  %v18058_v43 = vld [vmem:[#allocation85_spill] sm:$0xff] }
 0x249   : > { %7461 = vmatprep.subr.bf16.mxu0 %v10624_v14  ;;  %7532 = vmatprep.subr.bf16.mxu1 %v10880_v54  ;;  %v1524_v25 = vld [vmem:[%s12155_s21 + $0x12c8] sm:$0xff] }
 0x24a   : > { %v1772_v14 = vld [vmem:[%s12155_s21 + $0x1a88] sm:$0xff]  ;;  %v11055_v29 = vcombine.low %v1516_v15, %v1524_v25 }
 0x24b   : > { %v1780_v54 = vld [vmem:[%s12155_s21 + $0x1ac8] sm:$0xff] }
 0x24c   : > { %7462 = vmatpush2.bf16.msra.mxu0 %v10623_v40  ;;  %7533 = vmatpush2.bf16.msra.mxu1 %v10879_v53  ;;  %v11056_v40 = vcombine.high %v1516_v15, %v1524_v25  ;;  %v11312_v53 = vcombine.high %v1772_v14, %v1780_v54  ;;  %v11311_v19 = vcombine.low %v1772_v14, %v1780_v54  ;;  %v1492_v47 = vld [vmem:[%s12155_s21 + $0x11c8] sm:$0xff] }
 0x24d   : > { %7463 = vmatprep.subr.bf16.mxu0 %v10608_v34  ;;  %7534 = vmatprep.subr.bf16.mxu1 %v10864_v24  ;;  %v1500_v34 = vld [vmem:[%s12155_s21 + $0x1208] sm:$0xff] }
 0x24e   : > { %v1508_v24 = vld [vmem:[%s12155_s21 + $0x1248] sm:$0xff] }
 0x24f   : > { %v1740_v61 = vld [vmem:[%s12155_s21 + $0x1988] sm:$0xff] }
 0x250   : > { %7464 = vmatpush2.bf16.msra.mxu0 %v10607_v20  ;;  %7535 = vmatpush2.bf16.msra.mxu1 %v10863_v50  ;;  %v11040_v20 = vcombine.high %v1500_v34, %v1508_v24  ;;  %v11296_v50 = vcombine.high %v1756_v41, %v1764_v38  ;;  %v1748_v2 = vld [vmem:[%s12155_s21 + $0x19c8] sm:$0xff] }
 0x251   : > { %7465 = vmatprep.subr.bf16.mxu0 %v10592_v56  ;;  %7536 = vmatprep.subr.bf16.mxu1 %v10848_v7  ;;  %v1484_v56 = vld [vmem:[%s12155_s21 + $0x1188] sm:$0xff]  ;;  %v18061_v7 = vld [vmem:[#allocation47_spill] sm:$0xff] }
 0x252   : > { %v1468_v44 = vld [vmem:[%s12155_s21 + $0x1108] sm:$0xff] }
 0x253   : > { %v1476_v1 = vld [vmem:[%s12155_s21 + $0x1148] sm:$0xff] }
 0x254   : > { %7466 = vmatpush2.bf16.msra.mxu0 %v10591_v27  ;;  %7537 = vmatpush2.bf16.msra.mxu1 %v10847_v6  ;;  %v11039_v27 = vcombine.low %v1500_v34, %v1508_v24  ;;  %v11295_v6 = vcombine.low %v1756_v41, %v1764_v38  ;;  %v1724_v9 = vld [vmem:[%s12155_s21 + $0x1908] sm:$0xff] }
 0x255   : > { %7577 = vmatprep.subr.bf16.mxu0 %v11088_v48  ;;  %7648 = vmatprep.subr.bf16.mxu1 %v11344_v37  ;;  %v11024_v48 = vcombine.high %v1484_v56, %v1492_v47  ;;  %v11280_v37 = vcombine.high %v1740_v61, %v1748_v2  ;;  %v1732_v8 = vld [vmem:[%s12155_s21 + $0x1948] sm:$0xff] }
 0x256   : > { %v1452_v15 = vld [vmem:[%s12155_s21 + $0x1088] sm:$0xff] }
 0x257   : > { %7468 = vmatmul.mubr.bf16.vlgmr.msra.gmra.mxu0 %v18057_v22  ;;  %7539 = vmatmul.mubr.bf16.vlgmr.msra.gmra.mxu1 %v18058_v43  ;;  %v1460_v25 = vld [vmem:[%s12155_s21 + $0x10c8] sm:$0xff] }
 0x258   : > { %7477 = vmatprep.mubr.bf16.mxu0 %v18059_v52  ;;  %7548 = vmatprep.mubr.bf16.mxu1 %v18060_v31  ;;  %v1708_v14 = vld [vmem:[%s12155_s21 + $0x1888] sm:$0xff] }
 0x259   : > { %7578 = vmatpush1.bf16.msra.mxu0 %v11087_v21  ;;  %7649 = vmatpush1.bf16.msra.mxu1 %v11343_v18  ;;  %v11023_v21 = vcombine.low %v1484_v56, %v1492_v47  ;;  %v11279_v18 = vcombine.low %v1740_v61, %v1748_v2  ;;  %v1716_v54 = vld [vmem:[%s12155_s21 + $0x18c8] sm:$0xff] }
 0x25a   : > { %7579 = vmatprep.subr.bf16.mxu0 %v11072_v11  ;;  %7650 = vmatprep.subr.bf16.mxu1 %v11328_v49  ;;  %v11008_v11 = vcombine.high %v1468_v44, %v1476_v1  ;;  %v11264_v49 = vcombine.high %v1724_v9, %v1732_v8  ;;  %v1436_v34 = vld [vmem:[%s12155_s21 + $0x1008] sm:$0xff] }
 0x25b   : > { %v1444_v24 = vld [vmem:[%s12155_s21 + $0x1048] sm:$0xff] }
 0x25c   : > { %v1692_v41 = vld [vmem:[%s12155_s21 + $0x1808] sm:$0xff] }
 0x25d   : > { %7580 = vmatpush1.bf16.msra.mxu0 %v11071_v51  ;;  %7651 = vmatpush1.bf16.msra.mxu1 %v11327_v60  ;;  %v11007_v51 = vcombine.low %v1468_v44, %v1476_v1  ;;  %v11263_v60 = vcombine.low %v1724_v9, %v1732_v8  ;;  %v1700_v38 = vld [vmem:[%s12155_s21 + $0x1848] sm:$0xff] }
 0x25e   : > { %7581 = vmatprep.subr.bf16.mxu0 %v11056_v40  ;;  %7652 = vmatprep.subr.bf16.mxu1 %v11312_v53  ;;  %v10992_v40 = vcombine.high %v1452_v15, %v1460_v25  ;;  %v11248_v53 = vcombine.high %v1708_v14, %v1716_v54  ;;  %v1676_v56 = vld [vmem:[%s12155_s21 + $0x1788] sm:$0xff] }
 0x25f   : > { %7478 = vmatmul.mubr.bf16.gmra.mxu0 %v18061_v7  ;;  %7549 = vmatmul.mubr.bf16.gmra.mxu1 %v18062_v23  ;;  %v1684_v47 = vld [vmem:[%s12155_s21 + $0x17c8] sm:$0xff] }
 0x260   : > { %7487 = vmatprep.mubr.bf16.mxu0 %v13400_v62  ;;  %7558 = vmatprep.mubr.bf16.mxu1 %v13402_v63  ;;  %v1932_v61 = vld [vmem:[%s12155_s21 + $0x1f88] sm:$0xff] }
 0x261   : > { %7582 = vmatpush1.bf16.msra.mxu0 %v11055_v29  ;;  %7653 = vmatpush1.bf16.msra.mxu1 %v11311_v19  ;;  %v10991_v29 = vcombine.low %v1452_v15, %v1460_v25  ;;  %v11247_v19 = vcombine.low %v1708_v14, %v1716_v54  ;;  %v1940_v2 = vld [vmem:[%s12155_s21 + $0x1fc8] sm:$0xff] }
 0x262   : > { %7583 = vmatprep.subr.bf16.mxu0 %v11040_v20  ;;  %7654 = vmatprep.subr.bf16.mxu1 %v11296_v50  ;;  %v10976_v20 = vcombine.high %v1436_v34, %v1444_v24  ;;  %v11232_v50 = vcombine.high %v1692_v41, %v1700_v38  ;;  %v1660_v44 = vld [vmem:[%s12155_s21 + $0x1708] sm:$0xff] }
 0x263   : > { %v1668_v1 = vld [vmem:[%s12155_s21 + $0x1748] sm:$0xff] }
 0x264   : > { %v1916_v9 = vld [vmem:[%s12155_s21 + $0x1f08] sm:$0xff] }
 0x265   : > { %7584 = vmatpush1.bf16.msra.mxu0 %v11039_v27  ;;  %7655 = vmatpush1.bf16.msra.mxu1 %v11295_v6  ;;  %v10975_v27 = vcombine.low %v1436_v34, %v1444_v24  ;;  %v11231_v6 = vcombine.low %v1692_v41, %v1700_v38  ;;  %v1924_v8 = vld [vmem:[%s12155_s21 + $0x1f48] sm:$0xff] }
 0x266   : > { %7585 = vmatprep.subr.bf16.mxu0 %v11024_v48  ;;  %7656 = vmatprep.subr.bf16.mxu1 %v11280_v37  ;;  %v11216_v48 = vcombine.high %v1676_v56, %v1684_v47  ;;  %v11472_v37 = vcombine.high %v1932_v61, %v1940_v2  ;;  %v1644_v15 = vld [vmem:[%s12155_s21 + $0x1688] sm:$0xff] }
 0x267   : > { %7488 = vmatmul.mubr.bf16.gmra.mxu0 %v13404_v16  ;;  %7559 = vmatmul.mubr.bf16.gmra.mxu1 %v13407_v26  ;;  %v1652_v25 = vld [vmem:[%s12155_s21 + $0x16c8] sm:$0xff] }
 0x268   : > { %7497 = vmatprep.mubr.bf16.mxu0 %v13453_v10  ;;  %7568 = vmatprep.mubr.bf16.mxu1 %v13455_v33  ;;  %v1900_v14 = vld [vmem:[%s12155_s21 + $0x1e88] sm:$0xff]  ;;  %v14020_v10 = vld [vmem:[%s12155_s21 + $0x11d0] sm:$0xff] }
 0x269   : > { %7586 = vmatpush1.bf16.msra.mxu0 %v11023_v21  ;;  %7657 = vmatpush1.bf16.msra.mxu1 %v11279_v18  ;;  %v11215_v21 = vcombine.low %v1676_v56, %v1684_v47  ;;  %v11471_v18 = vcombine.low %v1932_v61, %v1940_v2  ;;  %v1908_v54 = vld [vmem:[%s12155_s21 + $0x1ec8] sm:$0xff] }
 0x26a   : > { %7587 = vmatprep.subr.bf16.mxu0 %v11008_v11  ;;  %7658 = vmatprep.subr.bf16.mxu1 %v11264_v49  ;;  %v11200_v11 = vcombine.high %v1660_v44, %v1668_v1  ;;  %v11456_v49 = vcombine.high %v1916_v9, %v1924_v8  ;;  %v1628_v34 = vld [vmem:[%s12155_s21 + $0x1608] sm:$0xff] }
 0x26b   : > { %v1636_v24 = vld [vmem:[%s12155_s21 + $0x1648] sm:$0xff] }
 0x26c   : > { %v1884_v41 = vld [vmem:[%s12155_s21 + $0x1e08] sm:$0xff] }
 0x26d   : > { %7588 = vmatpush1.bf16.msra.mxu0 %v11007_v51  ;;  %7659 = vmatpush1.bf16.msra.mxu1 %v11263_v60  ;;  %v11199_v51 = vcombine.low %v1660_v44, %v1668_v1  ;;  %v11455_v60 = vcombine.low %v1916_v9, %v1924_v8  ;;  %v1892_v38 = vld [vmem:[%s12155_s21 + $0x1e48] sm:$0xff] }
 0x26e   : > { %7589 = vmatprep.subr.bf16.mxu0 %v10992_v40  ;;  %7660 = vmatprep.subr.bf16.mxu1 %v11248_v53  ;;  %v11184_v40 = vcombine.high %v1644_v15, %v1652_v25  ;;  %v11440_v53 = vcombine.high %v1900_v14, %v1908_v54  ;;  %v1612_v56 = vld [vmem:[%s12155_s21 + $0x1588] sm:$0xff] }
 0x26f   : > { %7498 = vmatmul.mubr.bf16.gmra.mxu0 %v13457_v13  ;;  %7569 = vmatmul.mubr.bf16.gmra.mxu1 %v13467_v0  ;;  %v1620_v47 = vld [vmem:[%s12155_s21 + $0x15c8] sm:$0xff]  ;;  %v1157_v0 = vld [vmem:[%s12155_s21 + $0x750] sm:$0xff] }
 0x270   : > { %7609 = vmatprep.mubr.bf16.mxu0 %v13263_v5  ;;  %7680 = vmatprep.mubr.bf16.mxu1 %v13270_v32  ;;  %v1868_v61 = vld [vmem:[%s12155_s21 + $0x1d88] sm:$0xff]  ;;  %v1149_v32 = vld [vmem:[%s12155_s21 + $0x710] sm:$0xff] }
 0x271   : > { %7590 = vmatpush1.bf16.msra.mxu0 %v10991_v29  ;;  %7661 = vmatpush1.bf16.msra.mxu1 %v11247_v19  ;;  %v11183_v29 = vcombine.low %v1644_v15, %v1652_v25  ;;  %v11439_v19 = vcombine.low %v1900_v14, %v1908_v54  ;;  %v1876_v2 = vld [vmem:[%s12155_s21 + $0x1dc8] sm:$0xff]  ;;  %v1413_v13 = vld [vmem:[%s12155_s21 + $0xf50] sm:$0xff] }
 0x272   : > { %7591 = vmatprep.subr.bf16.mxu0 %v10976_v20  ;;  %7662 = vmatprep.subr.bf16.mxu1 %v11232_v50  ;;  %v11168_v20 = vcombine.high %v1628_v34, %v1636_v24  ;;  %v11424_v50 = vcombine.high %v1884_v41, %v1892_v38  ;;  %v1596_v44 = vld [vmem:[%s12155_s21 + $0x1508] sm:$0xff] }
 0x273   : > { %v1604_v1 = vld [vmem:[%s12155_s21 + $0x1548] sm:$0xff] }
 0x274   : > { %v1852_v9 = vld [vmem:[%s12155_s21 + $0x1d08] sm:$0xff] }
 0x275   : > { %7592 = vmatpush1.bf16.msra.mxu0 %v10975_v27  ;;  %7663 = vmatpush1.bf16.msra.mxu1 %v11231_v6  ;;  %v11167_v27 = vcombine.low %v1628_v34, %v1636_v24  ;;  %v11423_v6 = vcombine.low %v1884_v41, %v1892_v38  ;;  %v1860_v8 = vld [vmem:[%s12155_s21 + $0x1d48] sm:$0xff] }
 0x276   : > { %7593 = vmatprep.subr.bf16.mxu0 %v11216_v48  ;;  %7664 = vmatprep.subr.bf16.mxu1 %v11472_v37  ;;  %v11152_v48 = vcombine.high %v1612_v56, %v1620_v47  ;;  %v11408_v37 = vcombine.high %v1868_v61, %v1876_v2  ;;  %v1580_v15 = vld [vmem:[%s12155_s21 + $0x1488] sm:$0xff] }
 0x277   : > { %v1588_v25 = vld [vmem:[%s12155_s21 + $0x14c8] sm:$0xff] }
 0x278   : > { %v1836_v14 = vld [vmem:[%s12155_s21 + $0x1c88] sm:$0xff] }
 0x279   : > { %7594 = vmatpush2.bf16.msra.mxu0 %v11215_v21  ;;  %7665 = vmatpush2.bf16.msra.mxu1 %v11471_v18  ;;  %v11151_v21 = vcombine.low %v1612_v56, %v1620_v47  ;;  %v11407_v18 = vcombine.low %v1868_v61, %v1876_v2  ;;  %v1844_v54 = vld [vmem:[%s12155_s21 + $0x1cc8] sm:$0xff]  ;;  %v1037_v56 = vld [vmem:[%s12155_s21 + $0x390] sm:$0xff] }
 0x27a   : > { %7595 = vmatprep.subr.bf16.mxu0 %v11200_v11  ;;  %7666 = vmatprep.subr.bf16.mxu1 %v11456_v49  ;;  %v11136_v11 = vcombine.high %v1596_v44, %v1604_v1  ;;  %v11392_v49 = vcombine.high %v1852_v9, %v1860_v8  ;;  %v1564_v34 = vld [vmem:[%s12155_s21 + $0x1408] sm:$0xff]  ;;  %v1045_v47 = vld [vmem:[%s12155_s21 + $0x3d0] sm:$0xff] }
 0x27b   : > { %v1572_v24 = vld [vmem:[%s12155_s21 + $0x1448] sm:$0xff]  ;;  %v1293_v61 = vld [vmem:[%s12155_s21 + $0xb90] sm:$0xff] }
 0x27c   : > { %v1820_v41 = vld [vmem:[%s12155_s21 + $0x1c08] sm:$0xff]  ;;  %v1301_v2 = vld [vmem:[%s12155_s21 + $0xbd0] sm:$0xff] }
 0x27d   : > { %7596 = vmatpush2.bf16.msra.mxu0 %v11199_v51  ;;  %7667 = vmatpush2.bf16.msra.mxu1 %v11455_v60  ;;  %v11135_v51 = vcombine.low %v1596_v44, %v1604_v1  ;;  %v11391_v60 = vcombine.low %v1852_v9, %v1860_v8  ;;  %v1828_v38 = vld [vmem:[%s12155_s21 + $0x1c48] sm:$0xff]  ;;  %v1021_v44 = vld [vmem:[%s12155_s21 + $0x310] sm:$0xff] }
 0x27e   : > { %7597 = vmatprep.subr.bf16.mxu0 %v11184_v40  ;;  %7668 = vmatprep.subr.bf16.mxu1 %v11440_v53  ;;  %v11120_v40 = vcombine.high %v1580_v15, %v1588_v25  ;;  %v11376_v53 = vcombine.high %v1836_v14, %v1844_v54  ;;  %v1029_v8 = vld [vmem:[%s12155_s21 + $0x350] sm:$0xff] }
 0x281   : > { %7598 = vmatpush2.bf16.msra.mxu0 %v11183_v29  ;;  %7669 = vmatpush2.bf16.msra.mxu1 %v11439_v19  ;;  %v11119_v29 = vcombine.low %v1580_v15, %v1588_v25  ;;  %v11375_v19 = vcombine.low %v1836_v14, %v1844_v54  ;;  %v10562_v14 = vcombine.high %v1021_v44, %v1029_v8 }
 0x282   : > { %7599 = vmatprep.subr.bf16.mxu0 %v11168_v20  ;;  %7670 = vmatprep.subr.bf16.mxu1 %v11424_v50  ;;  %v11104_v20 = vcombine.high %v1564_v34, %v1572_v24  ;;  %v11360_v50 = vcombine.high %v1820_v41, %v1828_v38 }
 0x285   : > { %7600 = vmatpush2.bf16.msra.mxu0 %v11167_v27  ;;  %7671 = vmatpush2.bf16.msra.mxu1 %v11423_v6  ;;  %v11103_v27 = vcombine.low %v1564_v34, %v1572_v24  ;;  %v11359_v6 = vcombine.low %v1820_v41, %v1828_v38  ;;  %v1261_v34 = vld [vmem:[%s12155_s21 + $0xa90] sm:$0xff]  ;;  %v10561_v41 = vcombine.low %v1021_v44, %v1029_v8 }
 0x286   : > { %7601 = vmatprep.subr.bf16.mxu0 %v11152_v48  ;;  %7672 = vmatprep.subr.bf16.mxu1 %v11408_v37  ;;  %v10578_v48 = vcombine.high %v1037_v56, %v1045_v47  ;;  %v10834_v37 = vcombine.high %v1293_v61, %v1301_v2  ;;  %v1269_v24 = vld [vmem:[%s12155_s21 + $0xad0] sm:$0xff] }
 0x289   : > { %7602 = vmatpush2.bf16.msra.mxu0 %v11151_v21  ;;  %7673 = vmatpush2.bf16.msra.mxu1 %v11407_v18  ;;  %v13793_v1 = vpop.f32.mrf.mxu0  ;;  %v13795_v9 = vpop.f32.mrf.mxu1  ;;  %v1277_v21 = vld [vmem:[%s12155_s21 + $0xb10] sm:$0xff] }
 0x28a   : > { %7603 = vmatprep.subr.bf16.mxu0 %v11136_v11  ;;  %7674 = vmatprep.subr.bf16.mxu1 %v11392_v49  ;;  %v1285_v18 = vld [vmem:[%s12155_s21 + $0xb50] sm:$0xff]  ;;  %v10577_v11 = vcombine.low %v1037_v56, %v1045_v47  ;;  %v10833_v49 = vcombine.low %v1293_v61, %v1301_v2 }
 0x28b   : > { %v13800_v15 = vpop.f32.mrf.mxu0  ;;  %v13802_v25 = vpop.f32.mrf.mxu1  ;;  %v10818_v54 = vcombine.high %v1277_v21, %v1285_v18  ;;  %v10817_v38 = vcombine.low %v1277_v21, %v1285_v18  ;;  %v989_v56 = vld [vmem:[%s12155_s21 + $0x210] sm:$0xff] }
 0x28c   : > { %v997_v2 = vld [vmem:[%s12155_s21 + $0x250] sm:$0xff] }
 0x28d   : > { %7604 = vmatpush2.bf16.msra.mxu0 %v11135_v51  ;;  %7675 = vmatpush2.bf16.msra.mxu1 %v11391_v60  ;;  %v1005_v51 = vld [vmem:[%s12155_s21 + $0x290] sm:$0xff]  ;;  %v13807_v60 = vpop.f32.mrf.mxu0  ;;  %v10530_v21 = vcombine.high %v989_v56, %v997_v2 }
 0x28e   : > { %7605 = vmatprep.subr.bf16.mxu0 %v11120_v40  ;;  %7676 = vmatprep.subr.bf16.mxu1 %v11376_v53  ;;  %v13809_v40 = vpop.f32.mrf.mxu1  ;;  %v1013_v53 = vld [vmem:[%s12155_s21 + $0x2d0] sm:$0xff] }
 0x291   : > { %7606 = vmatpush2.bf16.msra.mxu0 %v11119_v29  ;;  %7677 = vmatpush2.bf16.msra.mxu1 %v11375_v19  ;;  %v13816_v29 = vpop.f32.mrf.mxu0  ;;  %v13818_v19 = vpop.f32.mrf.mxu1 }
 0x292   : > { %7607 = vmatprep.subr.bf16.mxu0 %v11104_v20  ;;  %7678 = vmatprep.subr.bf16.mxu1 %v11360_v50  ;;  %v10546_v20 = vcombine.high %v1005_v51, %v1013_v53  ;;  %v10802_v50 = vcombine.high %v1261_v34, %v1269_v24 }
 0x293   : > { %v13821_v47 = vpop.f32.mrf.mxu0  ;;  %v13823_v61 = vpop.f32.mrf.mxu1 }
 0x295   : > { %7608 = vmatpush2.bf16.msra.mxu0 %v11103_v27  ;;  %7679 = vmatpush2.bf16.msra.mxu1 %v11359_v6  ;;  %v1245_v27 = vld [vmem:[%s12155_s21 + $0xa10] sm:$0xff]  ;;  %v13828_v44 = vpop.f32.mrf.mxu0  ;;  %v13830_v8 = vpop.f32.mrf.mxu1 }
 0x296   : > { %7719 = vmatprep.subr.bf16.mxu0 %v10578_v48  ;;  %7790 = vmatprep.subr.bf16.mxu1 %v10834_v37  ;;  %v1253_v6 = vld [vmem:[%s12155_s21 + $0xa50] sm:$0xff]  ;;  %v10545_v48 = vcombine.low %v1005_v51, %v1013_v53  ;;  %v10801_v37 = vcombine.low %v1261_v34, %v1269_v24  ;;  %v10529_v34 = vcombine.low %v989_v56, %v997_v2 }
 0x297   : > { %v10786_v18 = vcombine.high %v1245_v27, %v1253_v6  ;;  %v1229_v51 = vld [vmem:[%s12155_s21 + $0x990] sm:$0xff]  ;;  %v10785_v24 = vcombine.low %v1245_v27, %v1253_v6 }
 0x298   : > { %7610 = vmatmul.mubr.bf16.vlgmr.msra.gmra.mxu0 %v13281_v39  ;;  %7681 = vmatmul.mubr.bf16.vlgmr.msra.gmra.mxu1 %v13365_v58  ;;  %v1237_v53 = vld [vmem:[%s12155_s21 + $0x9d0] sm:$0xff] }
 0x299   : > { %7619 = vmatprep.mubr.bf16.mxu0 %v13419_v4  ;;  %7690 = vmatprep.mubr.bf16.mxu1 %v13434_v35  ;;  %v1213_v35 = vld [vmem:[%s12155_s21 + $0x910] sm:$0xff]  ;;  %v10769_v2 = vcombine.low %v1229_v51, %v1237_v53 }
 0x29a   : > { %7720 = vmatpush1.bf16.msra.mxu0 %v10577_v11  ;;  %7791 = vmatpush1.bf16.msra.mxu1 %v10833_v49  ;;  %v973_v11 = vld [vmem:[%s12155_s21 + $0x190] sm:$0xff]  ;;  %v13835_v49 = vpop.f32.mrf.mxu0 }
 0x29b   : > { %7721 = vmatprep.subr.bf16.mxu0 %v10562_v14  ;;  %7792 = vmatprep.subr.bf16.mxu1 %v10818_v54  ;;  %v13837_v14 = vpop.f32.mrf.mxu1  ;;  %v981_v54 = vld [vmem:[%s12155_s21 + $0x1d0] sm:$0xff] }
 0x29c   : > { %v1221_v4 = vld [vmem:[%s12155_s21 + $0x950] sm:$0xff]  ;;  %v10513_v56 = vcombine.low %v973_v11, %v981_v54 }
 0x29d   : > { %v1181_v58 = vld [vmem:[%s12155_s21 + $0x810] sm:$0xff] }
 0x29e   : > { %7722 = vmatpush1.bf16.msra.mxu0 %v10561_v41  ;;  %7793 = vmatpush1.bf16.msra.mxu1 %v10817_v38  ;;  %v13844_v41 = vpop.f32.mrf.mxu0  ;;  %v13846_v38 = vpop.f32.mrf.mxu1 }
 0x29f   : > { %7723 = vmatprep.subr.bf16.mxu0 %v10546_v20  ;;  %7794 = vmatprep.subr.bf16.mxu1 %v10802_v50  ;;  %v10514_v20 = vcombine.high %v973_v11, %v981_v54  ;;  %v10770_v50 = vcombine.high %v1229_v51, %v1237_v53  ;;  %v949_v11 = vld [vmem:[%s12155_s21 + $0xd0] sm:$0xff] }
 0x2a0   : > { %7620 = vmatmul.mubr.bf16.gmra.mxu0 %v13499_v45  ;;  %7691 = vmatmul.mubr.bf16.gmra.mxu1 %v13506_v17  ;;  %v957_v17 = vld [vmem:[%s12155_s21 + $0x110] sm:$0xff]  ;;  %v13852_v27 = vpop.f32.mrf.mxu0  ;;  %v13854_v6 = vpop.f32.mrf.mxu1 }
 0x2a1   : > { %7629 = vmatprep.mubr.bf16.mxu0 %v13534_v3  ;;  %7700 = vmatprep.mubr.bf16.mxu1 %v13554_v36  ;;  %v965_v45 = vld [vmem:[%s12155_s21 + $0x150] sm:$0xff] }
 0x2a2   : > { %7724 = vmatpush1.bf16.msra.mxu0 %v10545_v48  ;;  %7795 = vmatpush1.bf16.msra.mxu1 %v10801_v37  ;;  %v10498_v48 = vcombine.high %v957_v17, %v965_v45  ;;  %v10754_v37 = vcombine.high %v1213_v35, %v1221_v4  ;;  %v1197_v54 = vld [vmem:[%s12155_s21 + $0x890] sm:$0xff]  ;;  %v10497_v53 = vcombine.low %v957_v17, %v965_v45 }
 0x2a3   : > { %7725 = vmatprep.subr.bf16.mxu0 %v10530_v21  ;;  %7796 = vmatprep.subr.bf16.mxu1 %v10786_v18  ;;  %v941_v21 = vld [vmem:[%s12155_s21 + $0x90] sm:$0xff]  ;;  %v13859_v18 = vpop.f32.mrf.mxu0 }
 0x2a4   : > { %v1205_v51 = vld [vmem:[%s12155_s21 + $0x8d0] sm:$0xff] }
 0x2a5   : > { %v925_v36 = vld [vmem:[%s12155_s21 + $0x10] sm:$0xff] }
 0x2a6   : > { %7726 = vmatpush1.bf16.msra.mxu0 %v10529_v34  ;;  %7797 = vmatpush1.bf16.msra.mxu1 %v10785_v24  ;;  %v13861_v34 = vpop.f32.mrf.mxu1  ;;  %v10753_v24 = vcombine.low %v1213_v35, %v1221_v4  ;;  %v10481_v4 = vcombine.low %v941_v21, %v949_v11  ;;  %v10737_v35 = vcombine.low %v1197_v54, %v1205_v51 }
 0x2a7   : > { %7727 = vmatprep.subr.bf16.mxu0 %v10514_v20  ;;  %7798 = vmatprep.subr.bf16.mxu1 %v10770_v50  ;;  %v13868_v20 = vpop.f32.mrf.mxu0 }
 0x2a8   : > { %7630 = vmatmul.mubr.bf16.gmra.mxu0 %v13577_v30  ;;  %7701 = vmatmul.mubr.bf16.gmra.mxu1 %v13579_v55  ;;  %v13870_v50 = vpop.f32.mrf.mxu1  ;;  %v10482_v55 = vcombine.high %v941_v21, %v949_v11  ;;  %v10738_v30 = vcombine.high %v1197_v54, %v1205_v51  ;;  %v1173_v21 = vld [vmem:[%s12155_s21 + $0x7d0] sm:$0xff] }
 0x2a9   : > { %7639 = vmatprep.mubr.bf16.mxu0 %v13648_v57  ;;  %7710 = vmatprep.mubr.bf16.mxu1 %v13650_v42  ;;  %v13873_v3 = vpop.f32.mrf.mxu0  ;;  %v933_v42 = vld [vmem:[%s12155_s21 + $0x50] sm:$0xff] }
 0x2aa   : > { %7728 = vmatpush1.bf16.msra.mxu0 %v10513_v56  ;;  %7799 = vmatpush1.bf16.msra.mxu1 %v10769_v2  ;;  %v13875_v57 = vpop.f32.mrf.mxu1  ;;  %v1189_v56 = vld [vmem:[%s12155_s21 + $0x850] sm:$0xff]  ;;  %v10466_v2 = vcombine.high %v925_v36, %v933_v42 }
 0x2ab   : > { %7729 = vmatprep.subr.bf16.mxu0 %v10498_v48  ;;  %7800 = vmatprep.subr.bf16.mxu1 %v10754_v37  ;;  %18063 = vst [vmem:[#allocation67_spill] sm:$0xff] %v13875_v57  ;;  %v13880_v45 = vpop.f32.mrf.mxu0  ;;  %v10722_v48 = vcombine.high %v1181_v58, %v1189_v56  ;;  %v1165_v37 = vld [vmem:[%s12155_s21 + $0x790] sm:$0xff] }
 0x2ac   : > { %v13882_v17 = vpop.f32.mrf.mxu1  ;;  %v1421_v11 = vld [vmem:[%s12155_s21 + $0xf90] sm:$0xff] }
 0x2ad   : > { %18064 = vst [vmem:[#allocation14_spill] sm:$0xff] %v13882_v17  ;;  %v13887_v39 = vpop.f32.mrf.mxu0  ;;  %v1429_v54 = vld [vmem:[%s12155_s21 + $0xfd0] sm:$0xff] }
 0x2ae   : > { %7730 = vmatpush1.bf16.msra.mxu0 %v10497_v53  ;;  %7801 = vmatpush1.bf16.msra.mxu1 %v10753_v24  ;;  %18065 = vst [vmem:[#allocation35_spill] sm:$0xff] %v13887_v39  ;;  %v13889_v53 = vpop.f32.mrf.mxu1 }
 0x2af   : > { %7731 = vmatprep.subr.bf16.mxu0 %v10482_v55  ;;  %7802 = vmatprep.subr.bf16.mxu1 %v10738_v30  ;;  %18066 = vst [vmem:[#allocation37_spill] sm:$0xff] %v13889_v53  ;;  %v10465_v30 = vcombine.low %v925_v36, %v933_v42  ;;  %v10721_v55 = vcombine.low %v1181_v58, %v1189_v56  ;;  %v7219_v51 = vpop.f32.mrf.mxu0 }
 0x2b0   : > { %7640 = vmatmul.mubr.bf16.gmra.mxu0 %v13666_v59  ;;  %7711 = vmatmul.mubr.bf16.gmra.mxu1 %v13670_v12  ;;  %v7290_v24 = vpop.f32.mrf.mxu1  ;;  %v10706_v12 = vcombine.high %v1165_v37, %v1173_v21  ;;  %v10962_v59 = vcombine.high %v1421_v11, %v1429_v54  ;;  %v10705_v36 = vcombine.low %v1165_v37, %v1173_v21  ;;  %v1117_v37 = vld [vmem:[%s12155_s21 + $0x610] sm:$0xff] }
 0x2b1   : > { %7751 = vmatprep.mubr.bf16.mxu0 %v13244_v28  ;;  %7822 = vmatprep.mubr.bf16.mxu1 %v13246_v46  ;;  %v7220_v5 = vpop.f32.mrf.mxu0  ;;  %v1405_v46 = vld [vmem:[%s12155_s21 + $0xf10] sm:$0xff]  ;;  %v10961_v58 = vcombine.low %v1421_v11, %v1429_v54  ;;  %v10690_v42 = vcombine.high %v1149_v32, %v1157_v0 }
 0x2b2   : > { %7732 = vmatpush1.bf16.msra.mxu0 %v10481_v4  ;;  %7803 = vmatpush1.bf16.msra.mxu1 %v10737_v35  ;;  %v7291_v28 = vpop.f32.mrf.mxu1  ;;  %v10946_v56 = vcombine.high %v1405_v46, %v1413_v13  ;;  %v1133_v4 = vld [vmem:[%s12155_s21 + $0x690] sm:$0xff] }
 0x2b3   : > { %7733 = vmatprep.subr.bf16.mxu0 %v10466_v2  ;;  %7804 = vmatprep.subr.bf16.mxu1 %v10722_v48  ;;  %v1141_v35 = vld [vmem:[%s12155_s21 + $0x6d0] sm:$0xff]  ;;  %v10689_v28 = vcombine.low %v1149_v32, %v1157_v0  ;;  %v10945_v48 = vcombine.low %v1405_v46, %v1413_v13 }
 0x2b4   : > { %v1389_v5 = vld [vmem:[%s12155_s21 + $0xe90] sm:$0xff] }
 0x2b5   : > { %v1397_v2 = vld [vmem:[%s12155_s21 + $0xed0] sm:$0xff] }
 0x2b6   : > { %7734 = vmatpush1.bf16.msra.mxu0 %v10465_v30  ;;  %7805 = vmatpush1.bf16.msra.mxu1 %v10721_v55  ;;  %v1125_v21 = vld [vmem:[%s12155_s21 + $0x650] sm:$0xff]  ;;  %v10673_v30 = vcombine.low %v1133_v4, %v1141_v35  ;;  %v10929_v55 = vcombine.low %v1389_v5, %v1397_v2 }
 0x2b7   : > { %7735 = vmatprep.subr.bf16.mxu0 %v10706_v12  ;;  %7806 = vmatprep.subr.bf16.mxu1 %v10962_v59  ;;  %v10674_v12 = vcombine.high %v1133_v4, %v1141_v35  ;;  %v10930_v59 = vcombine.high %v1389_v5, %v1397_v2  ;;  %v1373_v11 = vld [vmem:[%s12155_s21 + $0xe10] sm:$0xff]  ;;  %v10658_v46 = vcombine.high %v1117_v37, %v1125_v21 }
 0x2b8   : > { %v1381_v54 = vld [vmem:[%s12155_s21 + $0xe50] sm:$0xff] }
 0x2b9   : > { %v10914_v32 = vcombine.high %v1373_v11, %v1381_v54  ;;  %v1101_v13 = vld [vmem:[%s12155_s21 + $0x590] sm:$0xff] }
 0x2ba   : > { %7736 = vmatpush2.bf16.msra.mxu0 %v10705_v36  ;;  %7807 = vmatpush2.bf16.msra.mxu1 %v10961_v58  ;;  %v1109_v0 = vld [vmem:[%s12155_s21 + $0x5d0] sm:$0xff]  ;;  %v10657_v36 = vcombine.low %v1117_v37, %v1125_v21  ;;  %v10913_v58 = vcombine.low %v1373_v11, %v1381_v54 }
 0x2bb   : > { %7737 = vmatprep.subr.bf16.mxu0 %v10690_v42  ;;  %7808 = vmatprep.subr.bf16.mxu1 %v10946_v56  ;;  %v1357_v51 = vld [vmem:[%s12155_s21 + $0xd90] sm:$0xff]  ;;  %v10642_v42 = vcombine.high %v1101_v13, %v1109_v0 }
 0x2bc   : > { %v1365_v24 = vld [vmem:[%s12155_s21 + $0xdd0] sm:$0xff] }
 0x2bd   : > { %v10898_v56 = vcombine.high %v1357_v51, %v1365_v24  ;;  %v1085_v4 = vld [vmem:[%s12155_s21 + $0x510] sm:$0xff] }
 0x2be   : > { %7738 = vmatpush2.bf16.msra.mxu0 %v10689_v28  ;;  %7809 = vmatpush2.bf16.msra.mxu1 %v10945_v48  ;;  %v1093_v35 = vld [vmem:[%s12155_s21 + $0x550] sm:$0xff]  ;;  %v10641_v28 = vcombine.low %v1101_v13, %v1109_v0  ;;  %v10897_v48 = vcombine.low %v1357_v51, %v1365_v24 }
 0x2bf   : > { %7739 = vmatprep.subr.bf16.mxu0 %v10674_v12  ;;  %7810 = vmatprep.subr.bf16.mxu1 %v10930_v59  ;;  %v1341_v5 = vld [vmem:[%s12155_s21 + $0xd10] sm:$0xff]  ;;  %v10626_v12 = vcombine.high %v1085_v4, %v1093_v35 }
 0x2c0   : > { %v1349_v2 = vld [vmem:[%s12155_s21 + $0xd50] sm:$0xff] }
 0x2c1   : > { %v10882_v59 = vcombine.high %v1341_v5, %v1349_v2  ;;  %v1069_v37 = vld [vmem:[%s12155_s21 + $0x490] sm:$0xff] }
 0x2c2   : > { %7740 = vmatpush2.bf16.msra.mxu0 %v10673_v30  ;;  %7811 = vmatpush2.bf16.msra.mxu1 %v10929_v55  ;;  %v1077_v21 = vld [vmem:[%s12155_s21 + $0x4d0] sm:$0xff]  ;;  %v10625_v55 = vcombine.low %v1085_v4, %v1093_v35 }
 0x2c3   : > { %7741 = vmatprep.subr.bf16.mxu0 %v10658_v46  ;;  %7812 = vmatprep.subr.bf16.mxu1 %v10914_v32  ;;  %v1325_v11 = vld [vmem:[%s12155_s21 + $0xc90] sm:$0xff]  ;;  %v10881_v46 = vcombine.low %v1341_v5, %v1349_v2  ;;  %v10610_v32 = vcombine.high %v1069_v37, %v1077_v21 }
 0x2c4   : > { %v1333_v54 = vld [vmem:[%s12155_s21 + $0xcd0] sm:$0xff] }
 0x2c5   : > { %v1947_v30 = vld [vmem:[%s13921_s15] sm:$0xff]  ;;  %v10866_v13 = vcombine.high %v1325_v11, %v1333_v54  ;;  %v10865_v4 = vcombine.low %v1325_v11, %v1333_v54 }
 0x2c6   : > { %7742 = vmatpush2.bf16.msra.mxu0 %v10657_v36  ;;  %7813 = vmatpush2.bf16.msra.mxu1 %v10913_v58  ;;  %v1053_v0 = vld [vmem:[%s12155_s21 + $0x410] sm:$0xff]  ;;  %v18067_v58 = vld [vmem:[#allocation52_spill] sm:$0xff] }
 0x2c7   : > { %7743 = vmatprep.subr.bf16.mxu0 %v10642_v42  ;;  %7814 = vmatprep.subr.bf16.mxu1 %v10898_v56  ;;  %v1061_v51 = vld [vmem:[%s12155_s21 + $0x450] sm:$0xff]  ;;  %v13929_v42 = vrot.slane %v1947_v30, %v18067_v58  ;;  %v10609_v56 = vcombine.low %v1069_v37, %v1077_v21 }
 0x2c8   : > { %v1309_v24 = vld [vmem:[%s12155_s21 + $0xc10] sm:$0xff]  ;;  %v10594_v2 = vcombine.high %v1053_v0, %v1061_v51 }
 0x2c9   : > { %v1317_v36 = vld [vmem:[%s12155_s21 + $0xc50] sm:$0xff]  ;;  %v7186_v37 = vadd.f32 %v13793_v1, %v13929_v42 }
 0x2ca   : > { %7744 = vmatpush2.bf16.msra.mxu0 %v10641_v28  ;;  %7815 = vmatpush2.bf16.msra.mxu1 %v10897_v48  ;;  %v18068_v35 = vld [vmem:[#allocation50_spill] sm:$0xff]  ;;  %v10850_v28 = vcombine.high %v1309_v24, %v1317_v36 }
 0x2cb   : > { %7745 = vmatprep.subr.bf16.mxu0 %v10626_v12  ;;  %7816 = vmatprep.subr.bf16.mxu1 %v10882_v59  ;;  %v13932_v5 = vrot.slane %v1947_v30, %v18068_v35  ;;  %v13935_v48 = vld [vmem:[%s12155_s21 + $0x1390] sm:$0xff]  ;;  %v10593_v30 = vcombine.low %v1053_v0, %v1061_v51 }
 0x2cc   : > { %v13938_v12 = vld [vmem:[%s12155_s21 + $0x13d0] sm:$0xff] }
 0x2cd   : > { %v13941_v59 = vld [vmem:[%s12155_s21 + $0x1b90] sm:$0xff]  ;;  %v7188_v58 = vadd.f32 %v13800_v15, %v13932_v5  ;;  %v11090_v0 = vcombine.high %v13935_v48, %v13938_v12 }
 0x2ce   : > { %7746 = vmatpush2.bf16.msra.mxu0 %v10625_v55  ;;  %7817 = vmatpush2.bf16.msra.mxu1 %v10881_v46  ;;  %v13944_v55 = vld [vmem:[%s12155_s21 + $0x1bd0] sm:$0xff]  ;;  %v10849_v46 = vcombine.low %v1309_v24, %v1317_v36 }
 0x2cf   : > { %7747 = vmatprep.subr.bf16.mxu0 %v10610_v32  ;;  %7818 = vmatprep.subr.bf16.mxu1 %v10866_v13  ;;  %v13949_v21 = vld [vmem:[%s12155_s21 + $0x1310] sm:$0xff]  ;;  %v11089_v32 = vcombine.low %v13935_v48, %v13938_v12  ;;  %v11346_v51 = vcombine.high %v13941_v59, %v13944_v55  ;;  %v11345_v15 = vcombine.low %v13941_v59, %v13944_v55 }
 0x2d0   : > { %v13952_v11 = vld [vmem:[%s12155_s21 + $0x1350] sm:$0xff]  ;;  %v7257_v12 = vadd.f32 %v13795_v9, %v7186_v37  ;;  %v7259_v59 = vadd.f32 %v13802_v25, %v7188_v58  ;;  %v7192_v37 = vadd.f32 %v13816_v29, %v13932_v5  ;;  %v7196_v58 = vadd.f32 %v13821_v47, %v13929_v42 }
 0x2d1   : > { %v13955_v54 = vld [vmem:[%s12155_s21 + $0x1b10] sm:$0xff] }
 0x2d2   : > { %7748 = vmatpush2.bf16.msra.mxu0 %v10609_v56  ;;  %7819 = vmatpush2.bf16.msra.mxu1 %v10865_v4  ;;  %v13960_v13 = vld [vmem:[%s12155_s21 + $0x1b50] sm:$0xff]  ;;  %v7190_v56 = vadd.f32 %v13807_v60, %v13929_v42 }
 0x2d3   : > { %v13963_v1 = vld [vmem:[%s12155_s21 + $0x1290] sm:$0xff]  ;;  %7749 = vmatprep.subr.bf16.mxu0 %v10594_v2  ;;  %7820 = vmatprep.subr.bf16.mxu1 %v10850_v28  ;;  %v11074_v2 = vcombine.high %v13949_v21, %v13952_v11  ;;  %v11330_v60 = vcombine.high %v13955_v54, %v13960_v13 }
 0x2d4   : > { %v13966_v35 = vld [vmem:[%s12155_s21 + $0x12d0] sm:$0xff]  ;;  %v7261_v9 = vadd.f32 %v13809_v40, %v7190_v56 }
 0x2d5   : > { %v13975_v24 = vld [vmem:[%s12155_s21 + $0x1a90] sm:$0xff] }
 0x2d6   : > { %v13978_v36 = vld [vmem:[%s12155_s21 + $0x1ad0] sm:$0xff]  ;;  %7750 = vmatpush2.bf16.msra.mxu0 %v10593_v30  ;;  %7821 = vmatpush2.bf16.msra.mxu1 %v10849_v46  ;;  %v7327_v17 = vpop.f32.mrf.mxu0  ;;  %v7398_v57 = vpop.f32.mrf.mxu1 }
 0x2d7   : > { %v13989_v28 = vld [vmem:[%s12155_s21 + $0x1210] sm:$0xff]  ;;  %v7328_v33 = vadd.f32 %v7327_v17, %v7257_v12  ;;  %7861 = vmatprep.subr.bf16.mxu0 %v11090_v0  ;;  %7932 = vmatprep.subr.bf16.mxu1 %v11346_v51 }
 0x2d8   : > { %v13992_v48 = vld [vmem:[%s12155_s21 + $0x1250] sm:$0xff]  ;;  %v7329_v53 = vpop.f32.mrf.mxu0  ;;  %v7400_v39 = vpop.f32.mrf.mxu1 }
 0x2d9   : > { %v14002_v55 = vld [vmem:[%s12155_s21 + $0x1a10] sm:$0xff]  ;;  %v14031_v0 = vadd.f32 %v7398_v57, %v7328_v33  ;;  %7752 = vmatmul.mubr.bf16.vlgmr.msra.gmra.mxu0 %v18057_v22  ;;  %7823 = vmatmul.mubr.bf16.vlgmr.msra.gmra.mxu1 %v18058_v43  ;;  %v7330_v40 = vadd.f32 %v7329_v53, %v7259_v59  ;;  %v7198_v53 = vadd.f32 %v13828_v44, %v13932_v5 }
 0x2da   : > { %v14005_v4 = vld [vmem:[%s12155_s21 + $0x1a50] sm:$0xff]  ;;  %7761 = vmatprep.mubr.bf16.mxu0 %v18059_v52  ;;  %7832 = vmatprep.mubr.bf16.mxu1 %v18060_v31  ;;  %v7331_v56 = vpop.f32.mrf.mxu0  ;;  %v7402_v12 = vpop.f32.mrf.mxu1  ;;  %v7263_v33 = vadd.f32 %v13818_v19, %v7192_v37  ;;  %v7200_v57 = vadd.f32 %v13835_v49, %v13929_v42 }
 0x2db   : > { %v14017_v46 = vld [vmem:[%s12155_s21 + $0x1190] sm:$0xff]  ;;  %v9535_v59 = vmul.f32 0.70710677, %v14031_v0  ;;  %7862 = vmatpush1.bf16.msra.mxu0 %v11089_v32  ;;  %7933 = vmatpush1.bf16.msra.mxu1 %v11345_v15  ;;  %v14052_v17 = vadd.f32 %v7400_v39, %v7330_v40  ;;  %v7332_v30 = vadd.f32 %v7331_v56, %v7261_v9  ;;  %v7267_v39 = vadd.f32 %v13823_v61, %v7196_v58 }
 0x2dc   : > { %v14036_v29 = vld [vmem:[%s12155_s21 + $0x1990] sm:$0xff]  ;;  %7863 = vmatprep.subr.bf16.mxu0 %v11074_v2  ;;  %7934 = vmatprep.subr.bf16.mxu1 %v11330_v60  ;;  %v7333_v44 = vpop.f32.mrf.mxu0  ;;  %v7404_v47 = vpop.f32.mrf.mxu1  ;;  %v7269_v40 = vadd.f32 %v13830_v8, %v7198_v53  ;;  %v18069_v56 = vcombine.low %v13949_v21, %v13952_v11  ;;  %v7271_v8 = vadd.f32 %v13837_v14, %v7200_v57 }
 0x2dd   : > { %v14039_v51 = vld [vmem:[%s12155_s21 + $0x19d0] sm:$0xff]  ;;  %11574 = verf.f32 %v9535_v59  ;;  %v9536_v15 = vmul.f32 0.70710677, %v14052_v17  ;;  %v14067_v9 = vadd.f32 %v7402_v12, %v7332_v30  ;;  %v7334_v19 = vadd.f32 %v7333_v44, %v7263_v33 }
 0x2de   : > { %v14055_v25 = vld [vmem:[%s12155_s21 + $0x1110] sm:$0xff]  ;;  %v11281_v32 = vcombine.low %v14036_v29, %v14039_v51  ;;  %v7337_v49 = vpop.f32.mrf.mxu0  ;;  %v7408_v37 = vpop.f32.mrf.mxu1  ;;  %v11282_v2 = vcombine.high %v14036_v29, %v14039_v51  ;;  %v18070_v12 = vcombine.low %v13955_v54, %v13960_v13  ;;  %v7202_v53 = vadd.f32 %v13844_v41, %v13932_v5 }
 0x2df   : > { %v14058_v31 = vld [vmem:[%s12155_s21 + $0x1150] sm:$0xff]  ;;  %11576 = verf.f32 %v9536_v15  ;;  %v9551_v30 = vmul.f32 0.70710677, %v14067_v9  ;;  %7864 = vmatpush1.bf16.msra.mxu0 %v18069_v56  ;;  %v7338_v33 = vadd.f32 %v7337_v49, %v7267_v39  ;;  %v14098_v21 = vadd.f32 %v7404_v47, %v7334_v19 }
 0x2e0   : > { %v11010_v61 = vcombine.high %v14055_v25, %v14058_v31  ;;  %v14076_v58 = vld [vmem:[%s12155_s21 + $0x1910] sm:$0xff]  ;;  %7935 = vmatpush1.bf16.msra.mxu1 %v18070_v12  ;;  %v18071_v11 = vcombine.high %v13963_v1, %v13966_v35  ;;  %v18072_v54 = vcombine.high %v13975_v24, %v13978_v36  ;;  %v7339_v13 = vpop.f32.mrf.mxu0  ;;  %v7410_v39 = vpop.f32.mrf.mxu1  ;;  %v7206_v15 = vadd.f32 %v13852_v27, %v13929_v42 }
 0x2e1   : > { %v14087_v59 = vld [vmem:[%s12155_s21 + $0x1950] sm:$0xff]  ;;  %11578 = verf.f32 %v9551_v30  ;;  %v14108_v14 = vadd.f32 %v7408_v37, %v7338_v33  ;;  %7762 = vmatmul.mubr.bf16.gmra.mxu0 %v18061_v7  ;;  %7833 = vmatmul.mubr.bf16.gmra.mxu1 %v18062_v23  ;;  %v7340_v41 = vadd.f32 %v7339_v13, %v7269_v40  ;;  %v9552_v19 = vmul.f32 0.70710677, %v14098_v21 }
 0x2e2   : > { %v14090_v44 = vld [vmem:[%s12155_s21 + $0x1090] sm:$0xff]  ;;  %7865 = vmatprep.subr.bf16.mxu0 %v18071_v11  ;;  %7936 = vmatprep.subr.bf16.mxu1 %v18072_v54  ;;  %v7341_v27 = vpop.f32.mrf.mxu0  ;;  %v7412_v49 = vpop.f32.mrf.mxu1  ;;  %v7208_v56 = vadd.f32 %v13859_v18, %v13932_v5  ;;  %v18073_v33 = vcombine.low %v13963_v1, %v13966_v35  ;;  %v18074_v11 = vcombine.low %v13975_v24, %v13978_v36 }
 0x2e3   : > { %v14093_v60 = vld [vmem:[%s12155_s21 + $0x10d0] sm:$0xff]  ;;  %7771 = vmatprep.mubr.bf16.mxu0 %v13400_v62  ;;  %7842 = vmatprep.mubr.bf16.mxu1 %v13402_v63  ;;  %v9567_v12 = vmul.f32 0.70710677, %v14108_v14  ;;  %v14136_v54 = vadd.f32 %v7410_v39, %v7340_v41  ;;  %v7342_v13 = vadd.f32 %v7341_v27, %v7271_v8  ;;  %v7273_v30 = vadd.f32 %v13846_v38, %v7202_v53 }
 0x2e4   : > { %v14113_v57 = vld [vmem:[%s12155_s21 + $0x1890] sm:$0xff]  ;;  %7866 = vmatpush1.bf16.msra.mxu0 %v18073_v33  ;;  %7937 = vmatpush1.bf16.msra.mxu1 %v18074_v11  ;;  %11580 = verf.f32 %v9552_v19  ;;  %v18075_v18 = vcombine.high %v13989_v28, %v13992_v48  ;;  %v18076_v35 = vcombine.high %v14002_v55, %v14005_v4  ;;  %v7343_v1 = vpop.f32.mrf.mxu0  ;;  %v7414_v24 = vpop.f32.mrf.mxu1  ;;  %v10994_v36 = vcombine.high %v14090_v44, %v14093_v60 }
 0x2e5   : > { %v14116_v47 = vld [vmem:[%s12155_s21 + $0x18d0] sm:$0xff]  ;;  %v7277_v39 = vadd.f32 %v13854_v6, %v7206_v15  ;;  %11582 = verf.f32 %v9567_v12  ;;  %v9568_v38 = vmul.f32 0.70710677, %v14136_v54  ;;  %v14157_v53 = vadd.f32 %v7412_v49, %v7342_v13 }
 0x2e6   : > { %v14139_v37 = vld [vmem:[%s12155_s21 + $0x1010] sm:$0xff]  ;;  %7867 = vmatprep.subr.bf16.mxu0 %v18075_v18  ;;  %7938 = vmatprep.subr.bf16.mxu1 %v18076_v35  ;;  %v11249_v8 = vcombine.low %v14113_v57, %v14116_v47  ;;  %v7210_v41 = vadd.f32 %v13868_v20, %v13929_v42  ;;  %v7344_v19 = vadd.f32 %v7343_v1, %v7273_v30  ;;  %v7347_v27 = vpop.f32.mrf.mxu0  ;;  %v7418_v33 = vpop.f32.mrf.mxu1 }
 0x2e7   : > { %v14142_v40 = vld [vmem:[%s12155_s21 + $0x1050] sm:$0xff]  ;;  %v11250_v11 = vcombine.high %v14113_v57, %v14116_v47  ;;  %v7279_v15 = vadd.f32 %v13861_v34, %v7208_v56  ;;  %11584 = verf.f32 %v9568_v38  ;;  %v9583_v12 = vmul.f32 0.70710677, %v14157_v53  ;;  %v18081_v38 = vld [vmem:[#allocation57_spill] sm:$0xff] }
 0x2e8   : > { %v10977_v6 = vcombine.low %v14139_v37, %v14142_v40  ;;  %v18077_v49 = vcombine.low %v13989_v28, %v13992_v48  ;;  %v18078_v20 = vcombine.low %v14002_v55, %v14005_v4  ;;  %v7348_v30 = vadd.f32 %v7347_v27, %v7277_v39  ;;  %v14174_v13 = vld [vmem:[%s12155_s21 + $0x1810] sm:$0xff]  ;;  %v7349_v4 = vpop.f32.mrf.mxu0  ;;  %v7420_v48 = vpop.f32.mrf.mxu1 }
 0x2e9   : > { %v14177_v18 = vld [vmem:[%s12155_s21 + $0x1850] sm:$0xff]  ;;  %v7212_v35 = vadd.f32 %v13873_v3, %v13932_v5  ;;  %v7216_v34 = vadd.f32 %v13880_v45, %v13929_v42  ;;  %v14184_v56 = vadd.f32 %v7414_v24, %v7344_v19  ;;  %v18079_v28 = vcombine.high %v14017_v46, %v14020_v10  ;;  %7772 = vmatmul.mubr.bf16.gmra.mxu0 %v13404_v16  ;;  %v18080_v24 = vld [vmem:[#allocation35_spill] sm:$0xff] }
 0x2ea   : > { %7868 = vmatpush1.bf16.msra.mxu0 %v18077_v49  ;;  %7939 = vmatpush1.bf16.msra.mxu1 %v18078_v20  ;;  %11586 = verf.f32 %v9583_v12  ;;  %v14192_v55 = vadd.f32 %v7418_v33, %v7348_v30  ;;  %v7350_v3 = vadd.f32 %v7349_v4, %v7279_v15  ;;  %v10978_v45 = vcombine.high %v14139_v37, %v14142_v40  ;;  %v11575_v42 = vpop.eup %11574  ;;  %v18082_v19 = vld [vmem:[#allocation58_spill] sm:$0xff]  ;;  %v7351_v27 = vpop.f32.mrf.mxu0  ;;  %v18084_v30 = vld [vmem:[#allocation67_spill] sm:$0xff] }
 0x2eb   : > { %7869 = vmatprep.subr.bf16.mxu0 %v18079_v28  ;;  %7940 = vmatprep.subr.bf16.mxu1 %v11282_v2  ;;  %v7281_v1 = vadd.f32 %v13870_v50, %v7210_v41  ;;  %v7218_v39 = vadd.f32 %v18080_v24, %v13932_v5  ;;  %v9584_v2 = vmul.f32 0.70710677, %v14184_v56  ;;  %v7422_v33 = vpop.f32.mrf.mxu1  ;;  %v11233_v15 = vcombine.low %v14174_v13, %v14177_v18  ;;  %v18085_v4 = vld [vmem:[#allocation14_spill] sm:$0xff] }
 0x2ec   : > { %7843 = vmatmul.mubr.bf16.gmra.mxu1 %v13407_v26  ;;  %7781 = vmatprep.mubr.bf16.mxu0 %v18081_v38  ;;  %v9423_v12 = vmul.f32 0.5, %v14031_v0  ;;  %v9759_v49 = vadd.f32 1.0, %v11575_v42  ;;  %v9599_v20 = vmul.f32 0.70710677, %v14192_v55  ;;  %v18083_v50 = vcombine.low %v14017_v46, %v14020_v10  ;;  %v11577_v41 = vpop.eup %11576  ;;  %v7353_v46 = vpop.f32.mrf.mxu0  ;;  %v1661_v47 = vld [vmem:[%s12155_s21 + $0x1710] sm:$0xff] }
 0x2ed   : > { %7852 = vmatprep.mubr.bf16.mxu1 %v18082_v19  ;;  %v14214_v5 = vadd.f32 %v7420_v48, %v7350_v3  ;;  %v7283_v28 = vadd.f32 %v18084_v30, %v7212_v35  ;;  %v7287_v24 = vadd.f32 %v18085_v4, %v7216_v34  ;;  %11588 = verf.f32 %v9584_v2  ;;  %v7424_v29 = vpop.f32.mrf.mxu1  ;;  %v18087_v34 = vld [vmem:[#allocation37_spill] sm:$0xff]  ;;  %v18090_v4 = vld [vmem:[#allocation39_spill] sm:$0xff]  ;;  %v1901_v37 = vld [vmem:[%s12155_s21 + $0x1e90] sm:$0xff] }
 0x2ee   : > { %7870 = vmatpush1.bf16.msra.mxu0 %v18083_v50  ;;  %7941 = vmatpush1.bf16.msra.mxu1 %v11281_v32  ;;  %v7352_v0 = vadd.f32 %v7351_v27, %v7281_v1  ;;  %v18086_v10 = vcombine.high %v14076_v58, %v14087_v59  ;;  %v9871_v51 = vmul.f32 %v9759_v49, %v9423_v12  ;;  %v9424_v32 = vmul.f32 0.5, %v14052_v17  ;;  %v11579_v35 = vpop.eup %11578  ;;  %v1909_v40 = vld [vmem:[%s12155_s21 + $0x1ed0] sm:$0xff]  ;;  %v14579_v19 = vld [vmem:[%s12155_s21 + $0x11d8] sm:$0xff] }
 0x2ef   : > { %7871 = vmatprep.subr.bf16.mxu0 %v11010_v61  ;;  %v9760_v48 = vadd.f32 1.0, %v11577_v41  ;;  %11590 = verf.f32 %v9599_v20  ;;  %v7289_v3 = vadd.f32 %v18087_v34, %v7218_v39  ;;  %v9600_v42 = vmul.f32 0.70710677, %v14214_v5  ;;  %v7357_v61 = vpop.f32.mrf.mxu0  ;;  %v7428_v27 = vpop.f32.mrf.mxu1 }
 0x2f0   : > { %7942 = vmatprep.subr.bf16.mxu1 %v18086_v10  ;;  %v14227_v1 = vadd.f32 %v7422_v33, %v7352_v0  ;;  %v7354_v2 = vadd.f32 %v7353_v46, %v7283_v28  ;;  %9983 = vst [vmem:[%s14231_s27] sm:$0xff] %v9871_v51  ;;  %v9439_v17 = vmul.f32 0.5, %v14067_v9  ;;  %v9775_v49 = vadd.f32 1.0, %v11579_v35  ;;  %v14261_v0 = vld [vmem:[%s12155_s21 + $0x17d0] sm:$0xff]  ;;  %v18093_v35 = vld [vmem:[#allocation33_spill] sm:$0xff] }
 0x2f1   : > { %v9872_v12 = vmul.f32 %v9760_v48, %v9424_v32  ;;  %v18088_v39 = vcombine.low %v14055_v25, %v14058_v31  ;;  %v18089_v33 = vcombine.low %v14076_v58, %v14087_v59  ;;  %v7358_v20 = vadd.f32 %v7357_v61, %v7287_v24  ;;  %v7359_v31 = vpop.f32.mrf.mxu0  ;;  %v7430_v25 = vpop.f32.mrf.mxu1  ;;  %v14253_v58 = vld [vmem:[%s12155_s21 + $0x1790] sm:$0xff]  ;;  %7782 = vmatmul.mubr.bf16.gmra.mxu0 %v18090_v4  ;;  %v18092_v48 = vld [vmem:[#allocation31_spill] sm:$0xff] }
 0x2f2   : > { %11592 = verf.f32 %v9600_v42  ;;  %v9615_v50 = vmul.f32 0.70710677, %v14227_v1  ;;  %v14242_v41 = vadd.f32 %v7424_v29, %v7354_v2  ;;  %v11234_v9 = vcombine.high %v14174_v13, %v14177_v18  ;;  %v11581_v59 = vpop.eup %11580  ;;  %v14267_v10 = vld [vmem:[%s12155_s21 + $0x1fd0] sm:$0xff]  ;;  %7893 = vmatprep.mubr.bf16.mxu0 %v18092_v48  ;;  %v1158_v48 = vld [vmem:[%s12155_s21 + $0x758] sm:$0xff] }
 0x2f3   : > { %7872 = vmatpush1.bf16.msra.mxu0 %v18088_v39  ;;  %7943 = vmatpush1.bf16.msra.mxu1 %v18089_v33  ;;  %9984 = vst [vmem:[%s14231_s27 + $0x8] sm:$0xff] %v9872_v12  ;;  %v9887_v30 = vmul.f32 %v9775_v49, %v9439_v17  ;;  %v14256_v28 = vadd.f32 %v7428_v27, %v7358_v20  ;;  %v11583_v46 = vpop.eup %11582  ;;  %v9440_v29 = vmul.f32 0.5, %v14098_v21  ;;  %v9776_v51 = vadd.f32 1.0, %v11581_v59  ;;  %v7361_v34 = vpop.f32.mrf.mxu0  ;;  %v1669_v33 = vld [vmem:[%s12155_s21 + $0x1750] sm:$0xff] }
 0x2f4   : > { %7873 = vmatprep.subr.bf16.mxu0 %v10994_v36  ;;  %7944 = vmatprep.subr.bf16.mxu1 %v11250_v11  ;;  %v18091_v36 = vld [vmem:[#allocation41_spill] sm:$0xff]  ;;  %v7360_v24 = vadd.f32 %v7359_v31, %v7289_v3  ;;  %v14264_v11 = vld [vmem:[%s12155_s21 + $0x1f90] sm:$0xff]  ;;  %11594 = verf.f32 %v9615_v50  ;;  %v9616_v32 = vmul.f32 0.70710677, %v14242_v41  ;;  %v7432_v42 = vpop.f32.mrf.mxu1  ;;  %v9455_v3 = vmul.f32 0.5, %v14108_v14  ;;  %v11585_v12 = vpop.eup %11584 }
 0x2f5   : > { %7853 = vmatmul.mubr.bf16.gmra.mxu1 %v18091_v36  ;;  %9999 = vst [vmem:[%s14231_s27 + $0x80] sm:$0xff] %v9887_v30  ;;  %v9791_v2 = vadd.f32 1.0, %v11583_v46  ;;  %v9631_v61 = vmul.f32 0.70710677, %v14256_v28  ;;  %v18094_v21 = vcombine.low %v14090_v44, %v14093_v60  ;;  %v9888_v17 = vmul.f32 %v9776_v51, %v9440_v29  ;;  %v7362_v60 = vpop.f32.mrf.mxu0  ;;  %v1917_v20 = vld [vmem:[%s12155_s21 + $0x1f10] sm:$0xff]  ;;  %v1414_v36 = vld [vmem:[%s12155_s21 + $0xf58] sm:$0xff] }
 0x2f6   : > { %7964 = vmatprep.mubr.bf16.mxu1 %v18093_v35  ;;  %v14282_v27 = vadd.f32 %v7430_v25, %v7360_v24  ;;  %11596 = verf.f32 %v9616_v32  ;;  %v7433_v44 = vpop.f32.mrf.mxu1  ;;  %v11218_v14 = vcombine.high %v14253_v58, %v14261_v0  ;;  %v11474_v57 = vcombine.high %v14264_v11, %v14267_v10  ;;  %v1925_v50 = vld [vmem:[%s12155_s21 + $0x1f50] sm:$0xff] }
 0x2f7   : > { %7874 = vmatpush1.bf16.msra.mxu0 %v18094_v21  ;;  %7945 = vmatpush1.bf16.msra.mxu1 %v11249_v8  ;;  %v9903_v8 = vmul.f32 %v9791_v2, %v9455_v3  ;;  %v9456_v49 = vmul.f32 0.5, %v14136_v54  ;;  %v9792_v39 = vadd.f32 1.0, %v11585_v12  ;;  %11598 = verf.f32 %v9631_v61  ;;  %10000 = vst [vmem:[%s14231_s27 + $0x88] sm:$0xff] %v9888_v17  ;;  %v1653_v29 = vld [vmem:[%s12155_s21 + $0x16d0] sm:$0xff] }
 0x2f8   : > { %7875 = vmatprep.subr.bf16.mxu0 %v10978_v45  ;;  %7946 = vmatprep.subr.bf16.mxu1 %v11234_v9  ;;  %v11587_v45 = vpop.eup %11586  ;;  %v9632_v31 = vmul.f32 0.70710677, %v14282_v27  ;;  %v11217_v25 = vcombine.low %v14253_v58, %v14261_v0  ;;  %v9471_v54 = vmul.f32 0.5, %v14157_v53  ;;  %v11473_v30 = vcombine.low %v14264_v11, %v14267_v10  ;;  %v1645_v53 = vld [vmem:[%s12155_s21 + $0x1690] sm:$0xff] }
 0x2f9   : > { %10015 = vst [vmem:[%s14231_s27 + $0x100] sm:$0xff] %v9903_v8  ;;  %v9904_v9 = vmul.f32 %v9792_v39, %v9456_v49  ;;  %v9807_v59 = vadd.f32 1.0, %v11587_v45  ;;  %v11202_v58 = vcombine.high %v1661_v47, %v1669_v33  ;;  %v11458_v24 = vcombine.high %v1917_v20, %v1925_v50  ;;  %v1629_v3 = vld [vmem:[%s12155_s21 + $0x1610] sm:$0xff] }
 0x2fa   : > { %11600 = verf.f32 %v9632_v31  ;;  %v11589_v0 = vpop.eup %11588  ;;  %v9472_v13 = vmul.f32 0.5, %v14184_v56  ;;  %v11201_v10 = vcombine.low %v1661_v47, %v1669_v33  ;;  %v11457_v51 = vcombine.low %v1917_v20, %v1925_v50  ;;  %v1637_v56 = vld [vmem:[%s12155_s21 + $0x1650] sm:$0xff] }
 0x2fb   : > { %7876 = vmatpush1.bf16.msra.mxu0 %v10977_v6  ;;  %7947 = vmatpush1.bf16.msra.mxu1 %v11233_v15  ;;  %10016 = vst [vmem:[%s14231_s27 + $0x108] sm:$0xff] %v9904_v9  ;;  %v9919_v46 = vmul.f32 %v9807_v59, %v9471_v54  ;;  %v9808_v18 = vadd.f32 1.0, %v11589_v0  ;;  %v9487_v15 = vmul.f32 0.5, %v14192_v55  ;;  %v11186_v34 = vcombine.high %v1645_v53, %v1653_v29  ;;  %v1885_v21 = vld [vmem:[%s12155_s21 + $0x1e10] sm:$0xff] }
 0x2fc   : > { %7877 = vmatprep.subr.bf16.mxu0 %v11218_v14  ;;  %7948 = vmatprep.subr.bf16.mxu1 %v11474_v57  ;;  %v11591_v6 = vpop.eup %11590  ;;  %v11442_v42 = vcombine.high %v1901_v37, %v1909_v40  ;;  %v1893_v12 = vld [vmem:[%s12155_s21 + $0x1e50] sm:$0xff]  ;;  %v9488_v55 = vmul.f32 0.5, %v14214_v5  ;;  %v11185_v44 = vcombine.low %v1645_v53, %v1653_v29  ;;  %v11441_v14 = vcombine.low %v1901_v37, %v1909_v40 }
 0x2fd   : > { %10031 = vst [vmem:[%s14231_s27 + $0x180] sm:$0xff] %v9919_v46  ;;  %v9823_v11 = vadd.f32 1.0, %v11591_v6  ;;  %v9920_v32 = vmul.f32 %v9808_v18, %v9472_v13  ;;  %v11170_v57 = vcombine.high %v1629_v3, %v1637_v56  ;;  %v9503_v8 = vmul.f32 0.5, %v14227_v1  ;;  %v1613_v5 = vld [vmem:[%s12155_s21 + $0x1590] sm:$0xff] }
 0x2fe   : > { %v11426_v39 = vcombine.high %v1885_v21, %v1893_v12  ;;  %v1621_v20 = vld [vmem:[%s12155_s21 + $0x15d0] sm:$0xff]  ;;  %v9504_v9 = vmul.f32 0.5, %v14242_v41  ;;  %v9519_v1 = vmul.f32 0.5, %v14256_v28  ;;  %v9520_v6 = vmul.f32 0.5, %v14282_v27 }
 0x2ff   : > { %7878 = vmatpush2.bf16.msra.mxu0 %v11217_v25  ;;  %7949 = vmatpush2.bf16.msra.mxu1 %v11473_v30  ;;  %v11593_v2 = vpop.eup %11592  ;;  %v9935_v61 = vmul.f32 %v9823_v11, %v9487_v15  ;;  %10032 = vst [vmem:[%s14231_s27 + $0x188] sm:$0xff] %v9920_v32  ;;  %v1869_v50 = vld [vmem:[%s12155_s21 + $0x1d90] sm:$0xff]  ;;  %v11169_v30 = vcombine.low %v1629_v3, %v1637_v56 }
 0x300   : > { %7879 = vmatprep.subr.bf16.mxu0 %v11202_v58  ;;  %7950 = vmatprep.subr.bf16.mxu1 %v11458_v24  ;;  %v9824_v17 = vadd.f32 1.0, %v11593_v2  ;;  %v1877_v45 = vld [vmem:[%s12155_s21 + $0x1dd0] sm:$0xff]  ;;  %v11425_v58 = vcombine.low %v1885_v21, %v1893_v12  ;;  %v11154_v53 = vcombine.high %v1613_v5, %v1621_v20  ;;  %v11153_v18 = vcombine.low %v1613_v5, %v1621_v20 }
 0x301   : > { %v11595_v60 = vpop.eup %11594  ;;  %10047 = vst [vmem:[%s14231_s27 + $0x200] sm:$0xff] %v9935_v61  ;;  %v11410_v0 = vcombine.high %v1869_v50, %v1877_v45  ;;  %v1597_v41 = vld [vmem:[%s12155_s21 + $0x1510] sm:$0xff]  ;;  %v11409_v15 = vcombine.low %v1869_v50, %v1877_v45  ;;  %v1022_v45 = vld [vmem:[%s12155_s21 + $0x318] sm:$0xff] }
 0x302   : > { %v9936_v47 = vmul.f32 %v9824_v17, %v9488_v55  ;;  %v9839_v49 = vadd.f32 1.0, %v11595_v60  ;;  %v1605_v37 = vld [vmem:[%s12155_s21 + $0x1550] sm:$0xff] }
 0x303   : > { %7880 = vmatpush2.bf16.msra.mxu0 %v11201_v10  ;;  %7951 = vmatpush2.bf16.msra.mxu1 %v11457_v51  ;;  %v11597_v33 = vpop.eup %11596  ;;  %v1853_v28 = vld [vmem:[%s12155_s21 + $0x1d10] sm:$0xff]  ;;  %v11138_v10 = vcombine.high %v1597_v41, %v1605_v37  ;;  %v11137_v3 = vcombine.low %v1597_v41, %v1605_v37  ;;  %v1006_v41 = vld [vmem:[%s12155_s21 + $0x298] sm:$0xff] }
 0x304   : > { %7881 = vmatprep.subr.bf16.mxu0 %v11186_v34  ;;  %7952 = vmatprep.subr.bf16.mxu1 %v11442_v42  ;;  %v11599_v31 = vpop.eup %11598  ;;  %10048 = vst [vmem:[%s14231_s27 + $0x208] sm:$0xff] %v9936_v47  ;;  %v9951_v25 = vmul.f32 %v9839_v49, %v9503_v8  ;;  %v9840_v54 = vadd.f32 1.0, %v11597_v33  ;;  %v1861_v40 = vld [vmem:[%s12155_s21 + $0x1d50] sm:$0xff]  ;;  %v1038_v47 = vld [vmem:[%s12155_s21 + $0x398] sm:$0xff] }
 0x305   : > { %v9855_v59 = vadd.f32 1.0, %v11599_v31  ;;  %v11394_v51 = vcombine.high %v1853_v28, %v1861_v40  ;;  %v1581_v32 = vld [vmem:[%s12155_s21 + $0x1490] sm:$0xff]  ;;  %v11393_v56 = vcombine.low %v1853_v28, %v1861_v40  ;;  %v1046_v8 = vld [vmem:[%s12155_s21 + $0x3d8] sm:$0xff] }
 0x306   : > { %10063 = vst [vmem:[%s14231_s27 + $0x280] sm:$0xff] %v9951_v25  ;;  %v9952_v24 = vmul.f32 %v9840_v54, %v9504_v9  ;;  %v1589_v34 = vld [vmem:[%s12155_s21 + $0x14d0] sm:$0xff]  ;;  %v1294_v49 = vld [vmem:[%s12155_s21 + $0xb98] sm:$0xff]  ;;  %v10580_v20 = vcombine.high %v1038_v47, %v1046_v8 }
 0x307   : > { %7882 = vmatpush2.bf16.msra.mxu0 %v11185_v44  ;;  %7953 = vmatpush2.bf16.msra.mxu1 %v11441_v14  ;;  %v11601_v46 = vpop.eup %11600  ;;  %v9967_v29 = vmul.f32 %v9855_v59, %v9519_v1  ;;  %v1837_v42 = vld [vmem:[%s12155_s21 + $0x1c90] sm:$0xff]  ;;  %v11122_v2 = vcombine.high %v1581_v32, %v1589_v34  ;;  %v11121_v60 = vcombine.low %v1581_v32, %v1589_v34  ;;  %v1030_v31 = vld [vmem:[%s12155_s21 + $0x358] sm:$0xff] }
 0x308   : > { %7883 = vmatprep.subr.bf16.mxu0 %v11170_v57  ;;  %7954 = vmatprep.subr.bf16.mxu1 %v11426_v39  ;;  %10064 = vst [vmem:[%s14231_s27 + $0x288] sm:$0xff] %v9952_v24  ;;  %v9856_v13 = vadd.f32 1.0, %v11601_v46  ;;  %v1845_v27 = vld [vmem:[%s12155_s21 + $0x1cd0] sm:$0xff]  ;;  %v1302_v39 = vld [vmem:[%s12155_s21 + $0xbd8] sm:$0xff]  ;;  %v10579_v59 = vcombine.low %v1038_v47, %v1046_v8  ;;  %v18100_v8 = vld [vmem:[#allocation40_spill] sm:$0xff] }
 0x309   : > { %10079 = vst [vmem:[%s14231_s27 + $0x300] sm:$0x1] %v9967_v29  ;;  %v11378_v61 = vcombine.high %v1837_v42, %v1845_v27  ;;  %v1565_v21 = vld [vmem:[%s12155_s21 + $0x1410] sm:$0xff]  ;;  %v11377_v44 = vcombine.low %v1837_v42, %v1845_v27  ;;  %v10836_v50 = vcombine.high %v1294_v49, %v1302_v39  ;;  %v1278_v25 = vld [vmem:[%s12155_s21 + $0xb18] sm:$0xff]  ;;  %v18096_v29 = vld [vmem:[#allocation49_spill] sm:$0xff] }
 0x30a   : > { %v9968_v11 = vmul.f32 %v9856_v13, %v9520_v6  ;;  %v1573_v12 = vld [vmem:[%s12155_s21 + $0x1450] sm:$0xff]  ;;  %v1286_v9 = vld [vmem:[%s12155_s21 + $0xb58] sm:$0xff]  ;;  %v18098_v13 = vld [vmem:[#allocation56_spill] sm:$0xff] }
 0x30b   : > { %7884 = vmatpush2.bf16.msra.mxu0 %v11169_v30  ;;  %7955 = vmatpush2.bf16.msra.mxu1 %v11425_v58  ;;  %v1821_v55 = vld [vmem:[%s12155_s21 + $0x1c10] sm:$0xff]  ;;  %v11106_v14 = vcombine.high %v1565_v21, %v1573_v12  ;;  %v11105_v5 = vcombine.low %v1565_v21, %v1573_v12  ;;  %v10835_v30 = vcombine.low %v1294_v49, %v1302_v39  ;;  %v1014_v37 = vld [vmem:[%s12155_s21 + $0x2d8] sm:$0xff] }
 0x30c   : > { %7885 = vmatprep.subr.bf16.mxu0 %v11154_v53  ;;  %7956 = vmatprep.subr.bf16.mxu1 %v11410_v0  ;;  %10080 = vst [vmem:[%s14231_s27 + $0x308] sm:$0x1] %v9968_v11  ;;  %v1829_v17 = vld [vmem:[%s12155_s21 + $0x1c50] sm:$0xff]  ;;  %v10564_v53 = vcombine.high %v1022_v45, %v1030_v31  ;;  %v10820_v0 = vcombine.high %v1278_v25, %v1286_v9  ;;  %v1262_v28 = vld [vmem:[%s12155_s21 + $0xa98] sm:$0xff] }
 0x30d   : > { %v11362_v57 = vcombine.high %v1821_v55, %v1829_v17  ;;  %v11361_v33 = vcombine.low %v1821_v55, %v1829_v17  ;;  %v18095_v46 = vld [vmem:[#allocation30_spill] sm:$0xff]  ;;  %v1270_v40 = vld [vmem:[%s12155_s21 + $0xad8] sm:$0xff]  ;;  %v10563_v11 = vcombine.low %v1022_v45, %v1030_v31  ;;  %v10548_v34 = vcombine.high %v1006_v41, %v1014_v37 }
 0x30e   : > { %v18097_v6 = vld [vmem:[#allocation54_spill] sm:$0xff]  ;;  %v10804_v42 = vcombine.high %v1262_v28, %v1270_v40  ;;  %v990_v27 = vld [vmem:[%s12155_s21 + $0x218] sm:$0xff]  ;;  %v10547_v12 = vcombine.low %v1006_v41, %v1014_v37  ;;  %v10803_v55 = vcombine.low %v1262_v28, %v1270_v40 }
 0x30f   : > { %7886 = vmatpush2.bf16.msra.mxu0 %v11153_v18  ;;  %7957 = vmatpush2.bf16.msra.mxu1 %v11409_v15  ;;  %v18099_v47 = vld [vmem:[#allocation38_spill] sm:$0xff]  ;;  %v982_v49 = vld [vmem:[%s12155_s21 + $0x1d8] sm:$0xff] }
 0x310   : > { %7887 = vmatprep.subr.bf16.mxu0 %v11138_v10  ;;  %7958 = vmatprep.subr.bf16.mxu1 %v11394_v51  ;;  %v10819_v10 = vcombine.low %v1278_v25, %v1286_v9  ;;  %v1230_v39 = vld [vmem:[%s12155_s21 + $0x998] sm:$0xff] }
 0x311   : > { %v966_v41 = vld [vmem:[%s12155_s21 + $0x158] sm:$0xff] }
 0x312   : > { %v1214_v37 = vld [vmem:[%s12155_s21 + $0x918] sm:$0xff] }
 0x313   : > { %7888 = vmatpush2.bf16.msra.mxu0 %v11137_v3  ;;  %7959 = vmatpush2.bf16.msra.mxu1 %v11393_v56  ;;  %v998_v3 = vld [vmem:[%s12155_s21 + $0x258] sm:$0xff] }
 0x314   : > { %7889 = vmatprep.subr.bf16.mxu0 %v11122_v2  ;;  %7960 = vmatprep.subr.bf16.mxu1 %v11378_v61  ;;  %v1246_v56 = vld [vmem:[%s12155_s21 + $0xa18] sm:$0xff]  ;;  %v10531_v31 = vcombine.low %v990_v27, %v998_v3 }
 0x315   : > { %v1254_v2 = vld [vmem:[%s12155_s21 + $0xa58] sm:$0xff] }
 0x316   : > { %v10787_v25 = vcombine.low %v1246_v56, %v1254_v2  ;;  %v1222_v28 = vld [vmem:[%s12155_s21 + $0x958] sm:$0xff] }
 0x317   : > { %7890 = vmatpush2.bf16.msra.mxu0 %v11121_v60  ;;  %7961 = vmatpush2.bf16.msra.mxu1 %v11377_v44  ;;  %v14358_v54 = vpop.f32.mrf.mxu0  ;;  %v14360_v1 = vpop.f32.mrf.mxu1  ;;  %v10532_v44 = vcombine.high %v990_v27, %v998_v3 }
 0x318   : > { %7891 = vmatprep.subr.bf16.mxu0 %v11106_v14  ;;  %7962 = vmatprep.subr.bf16.mxu1 %v11362_v57  ;;  %v10788_v14 = vcombine.high %v1246_v56, %v1254_v2  ;;  %v974_v57 = vld [vmem:[%s12155_s21 + $0x198] sm:$0xff]  ;;  %v10756_v56 = vcombine.high %v1214_v37, %v1222_v28 }
 0x319   : > { %v14362_v58 = vpop.f32.mrf.mxu0  ;;  %v14364_v24 = vpop.f32.mrf.mxu1  ;;  %v942_v2 = vld [vmem:[%s12155_s21 + $0x98] sm:$0xff] }
 0x31b   : > { %7892 = vmatpush2.bf16.msra.mxu0 %v11105_v5  ;;  %7963 = vmatpush2.bf16.msra.mxu1 %v11361_v33  ;;  %v14374_v18 = vpop.f32.mrf.mxu0  ;;  %v14376_v15 = vpop.f32.mrf.mxu1  ;;  %v1238_v5 = vld [vmem:[%s12155_s21 + $0x9d8] sm:$0xff]  ;;  %v18101_v33 = vld [vmem:[#allocation62_spill] sm:$0xff] }
 0x31c   : > { %8003 = vmatprep.subr.bf16.mxu0 %v10580_v20  ;;  %8074 = vmatprep.subr.bf16.mxu1 %v10836_v50  ;;  %v18102_v20 = vld [vmem:[#allocation63_spill] sm:$0xff] }
 0x31d   : > { %v14378_v51 = vpop.f32.mrf.mxu0  ;;  %v14380_v32 = vpop.f32.mrf.mxu1 }
 0x31e   : > { %7894 = vmatmul.mubr.bf16.vlgmr.msra.gmra.mxu0 %v18095_v46  ;;  %7965 = vmatmul.mubr.bf16.vlgmr.msra.gmra.mxu1 %v18096_v29  ;;  %v1174_v29 = vld [vmem:[%s12155_s21 + $0x7d8] sm:$0xff] }
 0x31f   : > { %7903 = vmatprep.mubr.bf16.mxu0 %v18097_v6  ;;  %7974 = vmatprep.mubr.bf16.mxu1 %v18098_v13  ;;  %v14386_v61 = vpop.f32.mrf.mxu0  ;;  %v14388_v21 = vpop.f32.mrf.mxu1  ;;  %v18110_v13 = vld [vmem:[#allocation12_spill] sm:$0xff]  ;;  %v18111_v6 = vld [vmem:[#allocation66_spill] sm:$0xff]  ;;  %v1422_v46 = vld [vmem:[%s12155_s21 + $0xf98] sm:$0xff] }
 0x320   : > { %8004 = vmatpush1.bf16.msra.mxu0 %v10579_v59  ;;  %8075 = vmatpush1.bf16.msra.mxu1 %v10835_v30  ;;  %v10516_v30 = vcombine.high %v974_v57, %v982_v49 }
 0x321   : > { %8005 = vmatprep.subr.bf16.mxu0 %v10564_v53  ;;  %8076 = vmatprep.subr.bf16.mxu1 %v10820_v0  ;;  %v14390_v17 = vpop.f32.mrf.mxu0  ;;  %v14392_v60 = vpop.f32.mrf.mxu1  ;;  %v10772_v53 = vcombine.high %v1230_v39, %v1238_v5  ;;  %v958_v0 = vld [vmem:[%s12155_s21 + $0x118] sm:$0xff] }
 0x322   : > { %v10500_v3 = vcombine.high %v958_v0, %v966_v41 }
 0x323   : > { %v14402_v50 = vpop.f32.mrf.mxu0  ;;  %v14404_v45 = vpop.f32.mrf.mxu1 }
 0x324   : > { %8006 = vmatpush1.bf16.msra.mxu0 %v10563_v11  ;;  %8077 = vmatpush1.bf16.msra.mxu1 %v10819_v10  ;;  %v10515_v10 = vcombine.low %v974_v57, %v982_v49  ;;  %v18106_v57 = vld [vmem:[#allocation15_spill] sm:$0xff] }
 0x325   : > { %8007 = vmatprep.subr.bf16.mxu0 %v10548_v34  ;;  %8078 = vmatprep.subr.bf16.mxu1 %v10804_v42  ;;  %v14406_v9 = vpop.f32.mrf.mxu0  ;;  %v14408_v59 = vpop.f32.mrf.mxu1  ;;  %v10771_v34 = vcombine.low %v1230_v39, %v1238_v5  ;;  %v10499_v5 = vcombine.low %v958_v0, %v966_v41 }
 0x326   : > { %7904 = vmatmul.mubr.bf16.gmra.mxu0 %v18099_v47  ;;  %7975 = vmatmul.mubr.bf16.gmra.mxu1 %v18100_v8  ;;  %v1190_v8 = vld [vmem:[%s12155_s21 + $0x858] sm:$0xff] }
 0x327   : > { %7913 = vmatprep.mubr.bf16.mxu0 %v18101_v33  ;;  %7984 = vmatprep.mubr.bf16.mxu1 %v18102_v20  ;;  %v14414_v40 = vpop.f32.mrf.mxu0  ;;  %v14416_v11 = vpop.f32.mrf.mxu1  ;;  %v926_v20 = vld [vmem:[%s12155_s21 + $0x18] sm:$0xff] }
 0x328   : > { %8008 = vmatpush1.bf16.msra.mxu0 %v10547_v12  ;;  %8079 = vmatpush1.bf16.msra.mxu1 %v10803_v55  ;;  %v18103_v12 = vld [vmem:[#allocation64_spill] sm:$0xff]  ;;  %v18104_v55 = vld [vmem:[#allocation65_spill] sm:$0xff]  ;;  %v1182_v33 = vld [vmem:[%s12155_s21 + $0x818] sm:$0xff] }
 0x329   : > { %8009 = vmatprep.subr.bf16.mxu0 %v10532_v44  ;;  %8080 = vmatprep.subr.bf16.mxu1 %v10788_v14  ;;  %v14418_v42 = vpop.f32.mrf.mxu0  ;;  %v14420_v27 = vpop.f32.mrf.mxu1  ;;  %v950_v44 = vld [vmem:[%s12155_s21 + $0xd8] sm:$0xff] }
 0x32a   : > { %v1198_v14 = vld [vmem:[%s12155_s21 + $0x898] sm:$0xff]  ;;  %v10483_v0 = vcombine.low %v942_v2, %v950_v44 }
 0x32b   : > { %v14430_v49 = vpop.f32.mrf.mxu0  ;;  %v14432_v39 = vpop.f32.mrf.mxu1 }
 0x32c   : > { %8010 = vmatpush1.bf16.msra.mxu0 %v10531_v31  ;;  %8081 = vmatpush1.bf16.msra.mxu1 %v10787_v25  ;;  %v1206_v31 = vld [vmem:[%s12155_s21 + $0x8d8] sm:$0xff]  ;;  %v18105_v25 = vld [vmem:[#allocation13_spill] sm:$0xff] }
 0x32d   : > { %8011 = vmatprep.subr.bf16.mxu0 %v10516_v30  ;;  %8082 = vmatprep.subr.bf16.mxu1 %v10772_v53  ;;  %v10755_v30 = vcombine.low %v1214_v37, %v1222_v28  ;;  %v14434_v53 = vpop.f32.mrf.mxu0  ;;  %v10739_v41 = vcombine.low %v1198_v14, %v1206_v31 }
 0x32e   : > { %7914 = vmatmul.mubr.bf16.gmra.mxu0 %v18103_v12  ;;  %7985 = vmatmul.mubr.bf16.gmra.mxu1 %v18104_v55  ;;  %v14436_v55 = vpop.f32.mrf.mxu1  ;;  %v10484_v12 = vcombine.high %v942_v2, %v950_v44  ;;  %v18113_v2 = vld [vmem:[#allocation83_spill] sm:$0xff] }
 0x32f   : > { %7923 = vmatprep.mubr.bf16.mxu0 %v18105_v25  ;;  %7994 = vmatprep.mubr.bf16.mxu1 %v18106_v57  ;;  %18107 = vst [vmem:[#allocation68_spill] sm:$0xff] %v14436_v55  ;;  %v10740_v25 = vcombine.high %v1198_v14, %v1206_v31  ;;  %v934_v57 = vld [vmem:[%s12155_s21 + $0x58] sm:$0xff]  ;;  %v14442_v47 = vpop.f32.mrf.mxu0  ;;  %v10723_v31 = vcombine.low %v1182_v33, %v1190_v8 }
 0x330   : > { %8012 = vmatpush1.bf16.msra.mxu0 %v10515_v10  ;;  %8083 = vmatpush1.bf16.msra.mxu1 %v10771_v34  ;;  %v14444_v10 = vpop.f32.mrf.mxu1  ;;  %v10468_v34 = vcombine.high %v926_v20, %v934_v57  ;;  %v10467_v14 = vcombine.low %v926_v20, %v934_v57  ;;  %v1142_v20 = vld [vmem:[%s12155_s21 + $0x6d8] sm:$0xff] }
 0x331   : > { %8013 = vmatprep.subr.bf16.mxu0 %v10500_v3  ;;  %8084 = vmatprep.subr.bf16.mxu1 %v10756_v56  ;;  %18108 = vst [vmem:[#allocation69_spill] sm:$0xff] %v14444_v10  ;;  %v14446_v37 = vpop.f32.mrf.mxu0  ;;  %v10724_v3 = vcombine.high %v1182_v33, %v1190_v8  ;;  %v1166_v56 = vld [vmem:[%s12155_s21 + $0x798] sm:$0xff] }
 0x332   : > { %v14448_v28 = vpop.f32.mrf.mxu1  ;;  %v1134_v33 = vld [vmem:[%s12155_s21 + $0x698] sm:$0xff] }
 0x333   : > { %18109 = vst [vmem:[#allocation70_spill] sm:$0xff] %v14448_v28  ;;  %v1390_v57 = vld [vmem:[%s12155_s21 + $0xe98] sm:$0xff] }
 0x334   : > { %8014 = vmatpush1.bf16.msra.mxu0 %v10499_v5  ;;  %8085 = vmatpush1.bf16.msra.mxu1 %v10755_v30  ;;  %v1430_v5 = vld [vmem:[%s12155_s21 + $0xfd8] sm:$0xff]  ;;  %v18112_v30 = vld [vmem:[#allocation82_spill] sm:$0xff]  ;;  %v7574_v44 = vpop.f32.mrf.mxu1 }
 0x335   : > { %8015 = vmatprep.subr.bf16.mxu0 %v10484_v12  ;;  %8086 = vmatprep.subr.bf16.mxu1 %v10740_v25  ;;  %v7503_v12 = vpop.f32.mrf.mxu0  ;;  %v10964_v35 = vcombine.high %v1422_v46, %v1430_v5  ;;  %v10675_v44 = vcombine.low %v1134_v33, %v1142_v20 }
 0x336   : > { %7924 = vmatmul.mubr.bf16.gmra.mxu0 %v18110_v13  ;;  %7995 = vmatmul.mubr.bf16.gmra.mxu1 %v18111_v6  ;;  %v7575_v6 = vpop.f32.mrf.mxu1  ;;  %v10708_v13 = vcombine.high %v1166_v56, %v1174_v29 }
 0x337   : > { %8035 = vmatprep.mubr.bf16.mxu0 %v18112_v30  ;;  %8106 = vmatprep.mubr.bf16.mxu1 %v18113_v2  ;;  %v7504_v25 = vpop.f32.mrf.mxu0  ;;  %v1150_v30 = vld [vmem:[%s12155_s21 + $0x718] sm:$0xff] }
 0x338   : > { %8016 = vmatpush1.bf16.msra.mxu0 %v10483_v0  ;;  %8087 = vmatpush1.bf16.msra.mxu1 %v10739_v41  ;;  %v1406_v2 = vld [vmem:[%s12155_s21 + $0xf18] sm:$0xff]  ;;  %v10707_v0 = vcombine.low %v1166_v56, %v1174_v29  ;;  %v10963_v41 = vcombine.low %v1422_v46, %v1430_v5  ;;  %v10692_v8 = vcombine.high %v1150_v30, %v1158_v48 }
 0x339   : > { %8017 = vmatprep.subr.bf16.mxu0 %v10468_v34  ;;  %8088 = vmatprep.subr.bf16.mxu1 %v10724_v3  ;;  %v10948_v6 = vcombine.high %v1406_v2, %v1414_v36  ;;  %v1398_v34 = vld [vmem:[%s12155_s21 + $0xed8] sm:$0xff]  ;;  %v10691_v3 = vcombine.low %v1150_v30, %v1158_v48  ;;  %v10947_v12 = vcombine.low %v1406_v2, %v1414_v36 }
 0x33a   : > { %v10676_v46 = vcombine.high %v1134_v33, %v1142_v20  ;;  %v1118_v29 = vld [vmem:[%s12155_s21 + $0x618] sm:$0xff] }
 0x33b   : > { %v1374_v56 = vld [vmem:[%s12155_s21 + $0xe18] sm:$0xff] }
 0x33c   : > { %8018 = vmatpush1.bf16.msra.mxu0 %v10467_v14  ;;  %8089 = vmatpush1.bf16.msra.mxu1 %v10723_v31  ;;  %v1382_v5 = vld [vmem:[%s12155_s21 + $0xe58] sm:$0xff]  ;;  %v10931_v14 = vcombine.low %v1390_v57, %v1398_v34 }
 0x33d   : > { %8019 = vmatprep.subr.bf16.mxu0 %v10708_v13  ;;  %8090 = vmatprep.subr.bf16.mxu1 %v10964_v35  ;;  %v10932_v35 = vcombine.high %v1390_v57, %v1398_v34  ;;  %v1126_v13 = vld [vmem:[%s12155_s21 + $0x658] sm:$0xff]  ;;  %v10916_v48 = vcombine.high %v1374_v56, %v1382_v5 }
 0x33e   : > { %v10660_v36 = vcombine.high %v1118_v29, %v1126_v13  ;;  %v1102_v30 = vld [vmem:[%s12155_s21 + $0x598] sm:$0xff] }
 0x33f   : > { %v1110_v2 = vld [vmem:[%s12155_s21 + $0x5d8] sm:$0xff] }
 0x340   : > { %8020 = vmatpush2.bf16.msra.mxu0 %v10707_v0  ;;  %8091 = vmatpush2.bf16.msra.mxu1 %v10963_v41  ;;  %v1358_v31 = vld [vmem:[%s12155_s21 + $0xd98] sm:$0xff]  ;;  %v10659_v0 = vcombine.low %v1118_v29, %v1126_v13  ;;  %v10915_v41 = vcombine.low %v1374_v56, %v1382_v5 }
 0x341   : > { %8021 = vmatprep.subr.bf16.mxu0 %v10692_v8  ;;  %8092 = vmatprep.subr.bf16.mxu1 %v10948_v6  ;;  %v1366_v25 = vld [vmem:[%s12155_s21 + $0xdd8] sm:$0xff]  ;;  %v10644_v8 = vcombine.high %v1102_v30, %v1110_v2 }
 0x342   : > { %v10900_v6 = vcombine.high %v1358_v31, %v1366_v25  ;;  %v1086_v33 = vld [vmem:[%s12155_s21 + $0x518] sm:$0xff] }
 0x343   : > { %v1094_v20 = vld [vmem:[%s12155_s21 + $0x558] sm:$0xff] }
 0x344   : > { %8022 = vmatpush2.bf16.msra.mxu0 %v10691_v3  ;;  %8093 = vmatpush2.bf16.msra.mxu1 %v10947_v12  ;;  %v1342_v57 = vld [vmem:[%s12155_s21 + $0xd18] sm:$0xff]  ;;  %v10643_v3 = vcombine.low %v1102_v30, %v1110_v2  ;;  %v10899_v12 = vcombine.low %v1358_v31, %v1366_v25 }
 0x345   : > { %8023 = vmatprep.subr.bf16.mxu0 %v10676_v46  ;;  %8094 = vmatprep.subr.bf16.mxu1 %v10932_v35  ;;  %v1350_v34 = vld [vmem:[%s12155_s21 + $0xd58] sm:$0xff]  ;;  %v10628_v46 = vcombine.high %v1086_v33, %v1094_v20 }
 0x346   : > { %v10884_v35 = vcombine.high %v1342_v57, %v1350_v34  ;;  %v1070_v29 = vld [vmem:[%s12155_s21 + $0x498] sm:$0xff] }
 0x347   : > { %v1078_v13 = vld [vmem:[%s12155_s21 + $0x4d8] sm:$0xff] }
 0x348   : > { %8024 = vmatpush2.bf16.msra.mxu0 %v10675_v44  ;;  %8095 = vmatpush2.bf16.msra.mxu1 %v10931_v14  ;;  %v1326_v56 = vld [vmem:[%s12155_s21 + $0xc98] sm:$0xff]  ;;  %v10627_v44 = vcombine.low %v1086_v33, %v1094_v20  ;;  %v10883_v14 = vcombine.low %v1342_v57, %v1350_v34 }
 0x349   : > { %8025 = vmatprep.subr.bf16.mxu0 %v10660_v36  ;;  %8096 = vmatprep.subr.bf16.mxu1 %v10916_v48  ;;  %v1334_v5 = vld [vmem:[%s12155_s21 + $0xcd8] sm:$0xff]  ;;  %v10612_v36 = vcombine.high %v1070_v29, %v1078_v13 }
 0x34a   : > { %v10868_v48 = vcombine.high %v1326_v56, %v1334_v5  ;;  %v1054_v30 = vld [vmem:[%s12155_s21 + $0x418] sm:$0xff]  ;;  %v10867_v33 = vcombine.low %v1326_v56, %v1334_v5 }
 0x34b   : > { %v1062_v2 = vld [vmem:[%s12155_s21 + $0x458] sm:$0xff] }
 0x34c   : > { %8026 = vmatpush2.bf16.msra.mxu0 %v10659_v0  ;;  %8097 = vmatpush2.bf16.msra.mxu1 %v10915_v41  ;;  %v1310_v31 = vld [vmem:[%s12155_s21 + $0xc18] sm:$0xff]  ;;  %v11798_v0 = vld [vmem:[%s13921_s15] sm:$0xff]  ;;  %v18114_v41 = vld [vmem:[#allocation53_spill] sm:$0xff]  ;;  %v10596_v34 = vcombine.high %v1054_v30, %v1062_v2 }
 0x34d   : > { %8027 = vmatprep.subr.bf16.mxu0 %v10644_v8  ;;  %8098 = vmatprep.subr.bf16.mxu1 %v10900_v6  ;;  %v1318_v25 = vld [vmem:[%s12155_s21 + $0xc58] sm:$0xff]  ;;  %v14488_v8 = vrot.slane %v11798_v0, %v18114_v41  ;;  %v10611_v6 = vcombine.low %v1070_v29, %v1078_v13 }
 0x34e   : > { %v18115_v20 = vld [vmem:[#allocation51_spill] sm:$0xff] }
 0x34f   : > { %v14491_v57 = vrot.slane %v11798_v0, %v18115_v20  ;;  %v7470_v29 = vadd.f32 %v14358_v54, %v14488_v8  ;;  %v14508_v13 = vld [vmem:[%s12155_s21 + $0x1318] sm:$0xff] }
 0x350   : > { %8028 = vmatpush2.bf16.msra.mxu0 %v10643_v3  ;;  %8099 = vmatpush2.bf16.msra.mxu1 %v10899_v12  ;;  %v10852_v3 = vcombine.high %v1310_v31, %v1318_v25  ;;  %v14494_v12 = vld [vmem:[%s12155_s21 + $0x1398] sm:$0xff] }
 0x351   : > { %8029 = vmatprep.subr.bf16.mxu0 %v10628_v46  ;;  %8100 = vmatprep.subr.bf16.mxu1 %v10884_v35  ;;  %v14497_v46 = vld [vmem:[%s12155_s21 + $0x13d8] sm:$0xff]  ;;  %v7472_v41 = vadd.f32 %v14362_v58, %v14491_v57 }
 0x352   : > { %v14500_v35 = vld [vmem:[%s12155_s21 + $0x1b98] sm:$0xff] }
 0x353   : > { %v14511_v56 = vld [vmem:[%s12155_s21 + $0x1358] sm:$0xff] }
 0x354   : > { %8030 = vmatpush2.bf16.msra.mxu0 %v10627_v44  ;;  %8101 = vmatpush2.bf16.msra.mxu1 %v10883_v14  ;;  %v14503_v44 = vld [vmem:[%s12155_s21 + $0x1bd8] sm:$0xff]  ;;  %v10595_v14 = vcombine.low %v1054_v30, %v1062_v2  ;;  %v11092_v30 = vcombine.high %v14494_v12, %v14497_v46 }
 0x355   : > { %8031 = vmatprep.subr.bf16.mxu0 %v10612_v36  ;;  %8102 = vmatprep.subr.bf16.mxu1 %v10868_v48  ;;  %v14514_v5 = vld [vmem:[%s12155_s21 + $0x1b18] sm:$0xff]  ;;  %v10851_v36 = vcombine.low %v1310_v31, %v1318_v25  ;;  %v11091_v48 = vcombine.low %v14494_v12, %v14497_v46  ;;  %v11348_v2 = vcombine.high %v14500_v35, %v14503_v44 }
 0x356   : > { %v14519_v0 = vld [vmem:[%s12155_s21 + $0x1b58] sm:$0xff]  ;;  %v11347_v58 = vcombine.low %v14500_v35, %v14503_v44  ;;  %v7541_v46 = vadd.f32 %v14360_v1, %v7470_v29  ;;  %v7543_v35 = vadd.f32 %v14364_v24, %v7472_v41  ;;  %v7476_v29 = vadd.f32 %v14378_v51, %v14491_v57 }
 0x357   : > { %v14522_v54 = vld [vmem:[%s12155_s21 + $0x1298] sm:$0xff]  ;;  %v7480_v41 = vadd.f32 %v14386_v61, %v14488_v8 }
 0x358   : > { %8032 = vmatpush2.bf16.msra.mxu0 %v10611_v6  ;;  %8103 = vmatpush2.bf16.msra.mxu1 %v10867_v33  ;;  %v14525_v20 = vld [vmem:[%s12155_s21 + $0x12d8] sm:$0xff]  ;;  %v7474_v6 = vadd.f32 %v14374_v18, %v14488_v8  ;;  %v11332_v18 = vcombine.high %v14514_v5, %v14519_v0  ;;  %v7611_v28 = vpop.f32.mrf.mxu0  ;;  %v7682_v10 = vpop.f32.mrf.mxu1  ;;  %v7547_v61 = vadd.f32 %v14380_v32, %v7476_v29 }
 0x359   : > { %8033 = vmatprep.subr.bf16.mxu0 %v10596_v34  ;;  %8104 = vmatprep.subr.bf16.mxu1 %v10852_v3  ;;  %v14534_v31 = vld [vmem:[%s12155_s21 + $0x1a98] sm:$0xff]  ;;  %v11076_v34 = vcombine.high %v14508_v13, %v14511_v56  ;;  %v7612_v55 = vadd.f32 %v7611_v28, %v7541_v46 }
 0x35a   : > { %v14537_v25 = vld [vmem:[%s12155_s21 + $0x1ad8] sm:$0xff]  ;;  %v7545_v1 = vadd.f32 %v14376_v15, %v7474_v6  ;;  %v7613_v4 = vpop.f32.mrf.mxu0  ;;  %v7684_v38 = vpop.f32.mrf.mxu1  ;;  %v18116_v6 = vld [vmem:[#allocation46_spill] sm:$0xff] }
 0x35b   : > { %v14548_v3 = vld [vmem:[%s12155_s21 + $0x1218] sm:$0xff]  ;;  %v7614_v15 = vadd.f32 %v7613_v4, %v7543_v35 }
 0x35c   : > { %v14551_v12 = vld [vmem:[%s12155_s21 + $0x1258] sm:$0xff]  ;;  %8034 = vmatpush2.bf16.msra.mxu0 %v10595_v14  ;;  %8105 = vmatpush2.bf16.msra.mxu1 %v10851_v36  ;;  %v7615_v46 = vpop.f32.mrf.mxu0  ;;  %v7686_v28 = vpop.f32.mrf.mxu1 }
 0x35d   : > { %v14561_v44 = vld [vmem:[%s12155_s21 + $0x1a18] sm:$0xff]  ;;  %8145 = vmatprep.subr.bf16.mxu0 %v11092_v30  ;;  %8216 = vmatprep.subr.bf16.mxu1 %v11348_v2  ;;  %v14590_v30 = vadd.f32 %v7682_v10, %v7612_v55  ;;  %v7482_v10 = vadd.f32 %v14390_v17, %v14491_v57  ;;  %v14611_v14 = vadd.f32 %v7684_v38, %v7614_v15 }
 0x35e   : > { %v14564_v33 = vld [vmem:[%s12155_s21 + $0x1a58] sm:$0xff]  ;;  %v7616_v24 = vadd.f32 %v7615_v46, %v7545_v1  ;;  %v7484_v55 = vadd.f32 %v14402_v50, %v14488_v8  ;;  %v7617_v17 = vpop.f32.mrf.mxu0  ;;  %v7688_v4 = vpop.f32.mrf.mxu1  ;;  %v7551_v38 = vadd.f32 %v14388_v21, %v7480_v41  ;;  %v18118_v46 = vcombine.low %v14514_v5, %v14519_v0 }
 0x35f   : > { %v14576_v36 = vld [vmem:[%s12155_s21 + $0x1198] sm:$0xff]  ;;  %8036 = vmatmul.mubr.bf16.vlgmr.msra.gmra.mxu0 %v18057_v22  ;;  %8107 = vmatmul.mubr.bf16.vlgmr.msra.gmra.mxu1 %v18058_v43  ;;  %v9537_v35 = vmul.f32 0.70710677, %v14590_v30  ;;  %v7618_v32 = vadd.f32 %v7617_v17, %v7547_v61  ;;  %v7553_v15 = vadd.f32 %v14392_v60, %v7482_v10  ;;  %v7486_v10 = vadd.f32 %v14406_v9, %v14491_v57 }
 0x360   : > { %v14595_v51 = vld [vmem:[%s12155_s21 + $0x1998] sm:$0xff]  ;;  %8045 = vmatprep.mubr.bf16.mxu0 %v18059_v52  ;;  %8116 = vmatprep.mubr.bf16.mxu1 %v18116_v6  ;;  %v14626_v1 = vadd.f32 %v7686_v28, %v7616_v24  ;;  %v7621_v50 = vpop.f32.mrf.mxu0  ;;  %v7692_v29 = vpop.f32.mrf.mxu1  ;;  %v18117_v28 = vcombine.low %v14508_v13, %v14511_v56  ;;  %v7555_v60 = vadd.f32 %v14404_v45, %v7484_v55 }
 0x361   : > { %v14598_v2 = vld [vmem:[%s12155_s21 + $0x19d8] sm:$0xff]  ;;  %8146 = vmatpush1.bf16.msra.mxu0 %v11091_v48  ;;  %8217 = vmatpush1.bf16.msra.mxu1 %v11347_v58  ;;  %11602 = verf.f32 %v9537_v35  ;;  %v9538_v58 = vmul.f32 0.70710677, %v14611_v14  ;;  %v7622_v61 = vadd.f32 %v7621_v50, %v7551_v38  ;;  %v14657_v13 = vadd.f32 %v7688_v4, %v7618_v32 }
 0x362   : > { %v14614_v6 = vld [vmem:[%s12155_s21 + $0x1118] sm:$0xff]  ;;  %8147 = vmatprep.subr.bf16.mxu0 %v11076_v34  ;;  %8218 = vmatprep.subr.bf16.mxu1 %v11332_v18  ;;  %v11283_v48 = vcombine.low %v14595_v51, %v14598_v2  ;;  %v11284_v34 = vcombine.high %v14595_v51, %v14598_v2  ;;  %v9553_v24 = vmul.f32 0.70710677, %v14626_v1  ;;  %v18119_v56 = vcombine.high %v14522_v54, %v14525_v20  ;;  %v7623_v0 = vpop.f32.mrf.mxu0  ;;  %v7694_v38 = vpop.f32.mrf.mxu1 }
 0x363   : > { %v14617_v52 = vld [vmem:[%s12155_s21 + $0x1158] sm:$0xff]  ;;  %11604 = verf.f32 %v9538_v58  ;;  %v18120_v5 = vcombine.high %v14534_v31, %v14537_v25  ;;  %v7490_v58 = vadd.f32 %v14414_v40, %v14488_v8  ;;  %v14667_v45 = vadd.f32 %v7692_v29, %v7622_v61 }
 0x364   : > { %v11012_v21 = vcombine.high %v14614_v6, %v14617_v52  ;;  %v14635_v41 = vld [vmem:[%s12155_s21 + $0x1918] sm:$0xff]  ;;  %11606 = verf.f32 %v9553_v24  ;;  %v7624_v9 = vadd.f32 %v7623_v0, %v7553_v15  ;;  %v9554_v32 = vmul.f32 0.70710677, %v14657_v13  ;;  %v7625_v40 = vpop.f32.mrf.mxu0  ;;  %v7696_v50 = vpop.f32.mrf.mxu1 }
 0x365   : > { %8148 = vmatpush1.bf16.msra.mxu0 %v18117_v28  ;;  %8219 = vmatpush1.bf16.msra.mxu1 %v18118_v46  ;;  %v14646_v35 = vld [vmem:[%s12155_s21 + $0x1958] sm:$0xff]  ;;  %v7492_v28 = vadd.f32 %v14418_v42, %v14491_v57  ;;  %v9569_v46 = vmul.f32 0.70710677, %v14667_v45  ;;  %v18121_v61 = vcombine.low %v14522_v54, %v14525_v20  ;;  %v7626_v0 = vadd.f32 %v7625_v40, %v7555_v60 }
 0x366   : > { %v14649_v17 = vld [vmem:[%s12155_s21 + $0x1098] sm:$0xff]  ;;  %8149 = vmatprep.subr.bf16.mxu0 %v18119_v56  ;;  %8220 = vmatprep.subr.bf16.mxu1 %v18120_v5  ;;  %v18122_v56 = vcombine.low %v14534_v31, %v14537_v25  ;;  %v14695_v5 = vadd.f32 %v7694_v38, %v7624_v9  ;;  %v7557_v24 = vadd.f32 %v14408_v59, %v7486_v10  ;;  %11608 = verf.f32 %v9554_v32  ;;  %v7627_v54 = vpop.f32.mrf.mxu0  ;;  %v7698_v31 = vpop.f32.mrf.mxu1 }
 0x367   : > { %v14652_v18 = vld [vmem:[%s12155_s21 + $0x10d8] sm:$0xff]  ;;  %8046 = vmatmul.mubr.bf16.gmra.mxu0 %v18061_v7  ;;  %8117 = vmatmul.mubr.bf16.gmra.mxu1 %v18062_v23  ;;  %v18123_v42 = vcombine.high %v14548_v3, %v14551_v12  ;;  %v18124_v20 = vcombine.high %v14561_v44, %v14564_v33  ;;  %v7561_v38 = vadd.f32 %v14416_v11, %v7490_v58  ;;  %11610 = verf.f32 %v9569_v46 }
 0x368   : > { %v14672_v55 = vld [vmem:[%s12155_s21 + $0x1898] sm:$0xff]  ;;  %8055 = vmatprep.mubr.bf16.mxu0 %v13400_v62  ;;  %8126 = vmatprep.mubr.bf16.mxu1 %v13402_v63  ;;  %v10996_v25 = vcombine.high %v14649_v17, %v14652_v18  ;;  %v9570_v59 = vmul.f32 0.70710677, %v14695_v5  ;;  %v14716_v10 = vadd.f32 %v7696_v50, %v7626_v0  ;;  %v7494_v9 = vadd.f32 %v14430_v49, %v14488_v8  ;;  %v7631_v40 = vpop.f32.mrf.mxu0 }
 0x369   : > { %v14675_v4 = vld [vmem:[%s12155_s21 + $0x18d8] sm:$0xff]  ;;  %8150 = vmatpush1.bf16.msra.mxu0 %v18121_v61  ;;  %8221 = vmatpush1.bf16.msra.mxu1 %v18122_v56  ;;  %v7628_v32 = vadd.f32 %v7627_v54, %v7557_v24  ;;  %v7702_v61 = vpop.f32.mrf.mxu1  ;;  %v7563_v11 = vadd.f32 %v14420_v27, %v7492_v28  ;;  %v18125_v50 = vcombine.low %v14548_v3, %v14551_v12 }
 0x36a   : > { %v14698_v29 = vld [vmem:[%s12155_s21 + $0x1018] sm:$0xff]  ;;  %8151 = vmatprep.subr.bf16.mxu0 %v18123_v42  ;;  %8222 = vmatprep.subr.bf16.mxu1 %v18124_v20  ;;  %v11251_v60 = vcombine.low %v14672_v55, %v14675_v4  ;;  %v11252_v56 = vcombine.high %v14672_v55, %v14675_v4  ;;  %11612 = verf.f32 %v9570_v59  ;;  %v9585_v58 = vmul.f32 0.70710677, %v14716_v10  ;;  %v18129_v59 = vld [vmem:[#allocation58_spill] sm:$0xff] }
 0x36b   : > { %v14701_v15 = vld [vmem:[%s12155_s21 + $0x1058] sm:$0xff]  ;;  %v18126_v49 = vcombine.low %v14561_v44, %v14564_v33  ;;  %v7632_v24 = vadd.f32 %v7631_v40, %v7561_v38  ;;  %v7496_v20 = vadd.f32 %v14434_v53, %v14491_v57  ;;  %v7500_v27 = vadd.f32 %v14442_v47, %v14488_v8  ;;  %v7633_v33 = vpop.f32.mrf.mxu0  ;;  %v7704_v12 = vpop.f32.mrf.mxu1  ;;  %v18128_v38 = vld [vmem:[#allocation57_spill] sm:$0xff] }
 0x36c   : > { %v10979_v42 = vcombine.low %v14698_v29, %v14701_v15  ;;  %v14733_v46 = vld [vmem:[%s12155_s21 + $0x1818] sm:$0xff]  ;;  %v14742_v28 = vadd.f32 %v7698_v31, %v7628_v32  ;;  %v18127_v3 = vcombine.high %v14576_v36, %v14579_v19  ;;  %11614 = verf.f32 %v9585_v58 }
 0x36d   : > { %8152 = vmatpush1.bf16.msra.mxu0 %v18125_v50  ;;  %8223 = vmatpush1.bf16.msra.mxu1 %v18126_v49  ;;  %v14736_v0 = vld [vmem:[%s12155_s21 + $0x1858] sm:$0xff]  ;;  %v14750_v44 = vadd.f32 %v7702_v61, %v7632_v24  ;;  %v7634_v47 = vadd.f32 %v7633_v33, %v7563_v11  ;;  %v10980_v53 = vcombine.high %v14698_v29, %v14701_v15  ;;  %v7635_v32 = vpop.f32.mrf.mxu0  ;;  %v7706_v40 = vpop.f32.mrf.mxu1  ;;  %v9425_v11 = vmul.f32 0.5, %v14590_v30  ;;  %v18132_v24 = vld [vmem:[#allocation69_spill] sm:$0xff] }
 0x36e   : > { %8153 = vmatprep.subr.bf16.mxu0 %v18127_v3  ;;  %8224 = vmatprep.subr.bf16.mxu1 %v11284_v34  ;;  %v11603_v8 = vpop.eup %11602  ;;  %v7565_v54 = vadd.f32 %v14432_v39, %v7494_v9  ;;  %v7502_v31 = vadd.f32 %v14446_v37, %v14491_v57  ;;  %v9586_v34 = vmul.f32 0.70710677, %v14742_v28  ;;  %v11235_v61 = vcombine.low %v14733_v46, %v14736_v0  ;;  %v18131_v9 = vld [vmem:[#allocation68_spill] sm:$0xff]  ;;  %v1662_v4 = vld [vmem:[%s12155_s21 + $0x1718] sm:$0xff] }
 0x36f   : > { %8056 = vmatmul.mubr.bf16.gmra.mxu0 %v13404_v16  ;;  %8127 = vmatmul.mubr.bf16.gmra.mxu1 %v13407_v26  ;;  %v9761_v58 = vadd.f32 1.0, %v11603_v8  ;;  %v9601_v50 = vmul.f32 0.70710677, %v14750_v44  ;;  %v18130_v39 = vcombine.low %v14576_v36, %v14579_v19  ;;  %v14772_v37 = vadd.f32 %v7704_v12, %v7634_v47  ;;  %v7637_v36 = vpop.f32.mrf.mxu0  ;;  %v7708_v51 = vpop.f32.mrf.mxu1  ;;  %v1902_v29 = vld [vmem:[%s12155_s21 + $0x1e98] sm:$0xff] }
 0x370   : > { %8065 = vmatprep.mubr.bf16.mxu0 %v18128_v38  ;;  %8136 = vmatprep.mubr.bf16.mxu1 %v18129_v59  ;;  %v11605_v57 = vpop.eup %11604  ;;  %v7567_v49 = vadd.f32 %v18131_v9, %v7496_v20  ;;  %v7571_v3 = vadd.f32 %v18132_v24, %v7500_v27  ;;  %11616 = verf.f32 %v9586_v34  ;;  %v7636_v30 = vadd.f32 %v7635_v32, %v7565_v54  ;;  %v18134_v27 = vld [vmem:[#allocation70_spill] sm:$0xff]  ;;  %v1910_v15 = vld [vmem:[%s12155_s21 + $0x1ed8] sm:$0xff] }
 0x371   : > { %8154 = vmatpush1.bf16.msra.mxu0 %v18130_v39  ;;  %8225 = vmatpush1.bf16.msra.mxu1 %v11283_v48  ;;  %v18133_v19 = vcombine.high %v14635_v41, %v14646_v35  ;;  %v9873_v2 = vmul.f32 %v9761_v58, %v9425_v11  ;;  %v9426_v48 = vmul.f32 0.5, %v14611_v14  ;;  %v9762_v33 = vadd.f32 1.0, %v11605_v57  ;;  %v11607_v20 = vpop.eup %11606  ;;  %v7712_v34 = vpop.f32.mrf.mxu1 }
 0x372   : > { %8155 = vmatprep.subr.bf16.mxu0 %v11012_v21  ;;  %11618 = verf.f32 %v9601_v50  ;;  %v7573_v12 = vadd.f32 %v18134_v27, %v7502_v31  ;;  %v9602_v47 = vmul.f32 0.70710677, %v14772_v37  ;;  %v14785_v8 = vadd.f32 %v7706_v40, %v7636_v30  ;;  %v7641_v21 = vpop.f32.mrf.mxu0  ;;  %v14821_v30 = vld [vmem:[%s12155_s21 + $0x1fd8] sm:$0xff] }
 0x373   : > { %8226 = vmatprep.subr.bf16.mxu1 %v18133_v19  ;;  %v7638_v54 = vadd.f32 %v7637_v36, %v7567_v49  ;;  %9985 = vst [vmem:[%s14231_s27 + $0x10] sm:$0xff] %v9873_v2  ;;  %v9874_v32 = vmul.f32 %v9762_v33, %v9426_v48  ;;  %v9441_v11 = vmul.f32 0.5, %v14626_v1  ;;  %v9777_v58 = vadd.f32 1.0, %v11607_v20  ;;  %v18137_v49 = vld [vmem:[#allocation39_spill] sm:$0xff]  ;;  %v18140_v33 = vld [vmem:[#allocation33_spill] sm:$0xff] }
 0x374   : > { %v18135_v14 = vcombine.low %v14614_v6, %v14617_v52  ;;  %v18136_v31 = vcombine.low %v14635_v41, %v14646_v35  ;;  %v7642_v40 = vadd.f32 %v7641_v21, %v7571_v3  ;;  %11620 = verf.f32 %v9602_v47  ;;  %v7643_v52 = vpop.f32.mrf.mxu0  ;;  %v7714_v6 = vpop.f32.mrf.mxu1  ;;  %v14807_v41 = vld [vmem:[%s12155_s21 + $0x1798] sm:$0xff] }
 0x375   : > { %v9617_v50 = vmul.f32 0.70710677, %v14785_v8  ;;  %v14796_v39 = vadd.f32 %v7708_v51, %v7638_v54  ;;  %v11236_v1 = vcombine.high %v14733_v46, %v14736_v0  ;;  %v11609_v35 = vpop.eup %11608  ;;  %9986 = vst [vmem:[%s14231_s27 + $0x18] sm:$0xff] %v9874_v32  ;;  %v9889_v57 = vmul.f32 %v9777_v58, %v9441_v11  ;;  %v14815_v3 = vld [vmem:[%s12155_s21 + $0x17d8] sm:$0xff] }
 0x376   : > { %8156 = vmatpush1.bf16.msra.mxu0 %v18135_v14  ;;  %8227 = vmatpush1.bf16.msra.mxu1 %v18136_v31  ;;  %v14810_v9 = vadd.f32 %v7712_v34, %v7642_v40  ;;  %v7644_v24 = vadd.f32 %v7643_v52, %v7573_v12  ;;  %v11611_v19 = vpop.eup %11610  ;;  %v9442_v36 = vmul.f32 0.5, %v14657_v13  ;;  %v9778_v51 = vadd.f32 1.0, %v11609_v35  ;;  %v18139_v48 = vld [vmem:[#allocation31_spill] sm:$0xff]  ;;  %v7645_v20 = vpop.f32.mrf.mxu0 }
 0x377   : > { %8157 = vmatprep.subr.bf16.mxu0 %v10996_v25  ;;  %8228 = vmatprep.subr.bf16.mxu1 %v11252_v56  ;;  %v18138_v25 = vld [vmem:[#allocation41_spill] sm:$0xff]  ;;  %v14818_v56 = vld [vmem:[%s12155_s21 + $0x1f98] sm:$0xff]  ;;  %11622 = verf.f32 %v9617_v50  ;;  %v9618_v2 = vmul.f32 0.70710677, %v14796_v39  ;;  %v7716_v27 = vpop.f32.mrf.mxu1  ;;  %10001 = vst [vmem:[%s14231_s27 + $0x90] sm:$0xff] %v9889_v57  ;;  %v9457_v12 = vmul.f32 0.5, %v14667_v45  ;;  %v18141_v13 = vcombine.low %v14649_v17, %v14652_v18  ;;  %v11613_v34 = vpop.eup %11612 }
 0x378   : > { %8066 = vmatmul.mubr.bf16.gmra.mxu0 %v18137_v49  ;;  %8137 = vmatmul.mubr.bf16.gmra.mxu1 %v18138_v25  ;;  %v9793_v47 = vadd.f32 1.0, %v11611_v19  ;;  %v9633_v54 = vmul.f32 0.70710677, %v14810_v9  ;;  %v14836_v21 = vadd.f32 %v7714_v6, %v7644_v24  ;;  %v9890_v32 = vmul.f32 %v9778_v51, %v9442_v36  ;;  %v7646_v18 = vpop.f32.mrf.mxu0  ;;  %v1670_v14 = vld [vmem:[%s12155_s21 + $0x1758] sm:$0xff] }
 0x379   : > { %8177 = vmatprep.mubr.bf16.mxu0 %v18139_v48  ;;  %8248 = vmatprep.mubr.bf16.mxu1 %v18140_v33  ;;  %11624 = verf.f32 %v9618_v2  ;;  %v7717_v17 = vpop.f32.mrf.mxu1  ;;  %v11220_v45 = vcombine.high %v14807_v41, %v14815_v3  ;;  %v11476_v55 = vcombine.high %v14818_v56, %v14821_v30  ;;  %v9458_v11 = vmul.f32 0.5, %v14695_v5  ;;  %v1918_v31 = vld [vmem:[%s12155_s21 + $0x1f18] sm:$0xff]  ;;  %v1159_v33 = vld [vmem:[%s12155_s21 + $0x760] sm:$0xff] }
 0x37a   : > { %8158 = vmatpush1.bf16.msra.mxu0 %v18141_v13  ;;  %8229 = vmatpush1.bf16.msra.mxu1 %v11251_v60  ;;  %v9905_v60 = vmul.f32 %v9793_v47, %v9457_v12  ;;  %v9794_v58 = vadd.f32 1.0, %v11613_v34  ;;  %11626 = verf.f32 %v9633_v54  ;;  %v1926_v40 = vld [vmem:[%s12155_s21 + $0x1f58] sm:$0xff]  ;;  %10002 = vst [vmem:[%s14231_s27 + $0x98] sm:$0xff] %v9890_v32  ;;  %v9634_v50 = vmul.f32 0.70710677, %v14836_v21  ;;  %v1415_v48 = vld [vmem:[%s12155_s21 + $0xf60] sm:$0xff] }
 0x37b   : > { %8159 = vmatprep.subr.bf16.mxu0 %v10980_v53  ;;  %8230 = vmatprep.subr.bf16.mxu1 %v11236_v1  ;;  %v11615_v53 = vpop.eup %11614  ;;  %v11219_v52 = vcombine.low %v14807_v41, %v14815_v3  ;;  %v9473_v5 = vmul.f32 0.5, %v14716_v10  ;;  %v11475_v35 = vcombine.low %v14818_v56, %v14821_v30  ;;  %v11204_v41 = vcombine.high %v1662_v4, %v1670_v14  ;;  %v1646_v10 = vld [vmem:[%s12155_s21 + $0x1698] sm:$0xff] }
 0x37c   : > { %10017 = vst [vmem:[%s14231_s27 + $0x110] sm:$0xff] %v9905_v60  ;;  %v9906_v6 = vmul.f32 %v9794_v58, %v9458_v11  ;;  %v9809_v1 = vadd.f32 1.0, %v11615_v53  ;;  %11628 = verf.f32 %v9634_v50  ;;  %v11460_v57 = vcombine.high %v1918_v31, %v1926_v40  ;;  %v1654_v19 = vld [vmem:[%s12155_s21 + $0x16d8] sm:$0xff] }
 0x37d   : > { %v11617_v24 = vpop.eup %11616  ;;  %v9474_v46 = vmul.f32 0.5, %v14742_v28  ;;  %v11203_v30 = vcombine.low %v1662_v4, %v1670_v14  ;;  %v11459_v36 = vcombine.low %v1918_v31, %v1926_v40  ;;  %v11188_v2 = vcombine.high %v1646_v10, %v1654_v19  ;;  %v1630_v27 = vld [vmem:[%s12155_s21 + $0x1618] sm:$0xff] }
 0x37e   : > { %8160 = vmatpush1.bf16.msra.mxu0 %v10979_v42  ;;  %8231 = vmatpush1.bf16.msra.mxu1 %v11235_v61  ;;  %10018 = vst [vmem:[%s14231_s27 + $0x118] sm:$0xff] %v9906_v6  ;;  %v9921_v3 = vmul.f32 %v9809_v1, %v9473_v5  ;;  %v9810_v0 = vadd.f32 1.0, %v11617_v24  ;;  %v9489_v61 = vmul.f32 0.5, %v14750_v44  ;;  %v11444_v20 = vcombine.high %v1902_v29, %v1910_v15  ;;  %v1638_v28 = vld [vmem:[%s12155_s21 + $0x1658] sm:$0xff] }
 0x37f   : > { %8161 = vmatprep.subr.bf16.mxu0 %v11220_v45  ;;  %8232 = vmatprep.subr.bf16.mxu1 %v11476_v55  ;;  %v11619_v42 = vpop.eup %11618  ;;  %v1886_v54 = vld [vmem:[%s12155_s21 + $0x1e18] sm:$0xff]  ;;  %v9490_v44 = vmul.f32 0.5, %v14772_v37  ;;  %v11187_v18 = vcombine.low %v1646_v10, %v1654_v19  ;;  %v11443_v17 = vcombine.low %v1902_v29, %v1910_v15  ;;  %v11172_v45 = vcombine.high %v1630_v27, %v1638_v28 }
 0x380   : > { %10033 = vst [vmem:[%s14231_s27 + $0x190] sm:$0xff] %v9921_v3  ;;  %v9825_v56 = vadd.f32 1.0, %v11619_v42  ;;  %v9922_v51 = vmul.f32 %v9810_v0, %v9474_v46  ;;  %v1894_v13 = vld [vmem:[%s12155_s21 + $0x1e58] sm:$0xff]  ;;  %v9505_v4 = vmul.f32 0.5, %v14785_v8  ;;  %v9521_v8 = vmul.f32 0.5, %v14810_v9 }
 0x381   : > { %v11621_v12 = vpop.eup %11620  ;;  %v11428_v11 = vcombine.high %v1886_v54, %v1894_v13  ;;  %v1614_v37 = vld [vmem:[%s12155_s21 + $0x1598] sm:$0xff]  ;;  %v11171_v1 = vcombine.low %v1630_v27, %v1638_v28  ;;  %v9522_v15 = vmul.f32 0.5, %v14836_v21 }
 0x382   : > { %8162 = vmatpush2.bf16.msra.mxu0 %v11219_v52  ;;  %8233 = vmatpush2.bf16.msra.mxu1 %v11475_v35  ;;  %v9937_v47 = vmul.f32 %v9825_v56, %v9489_v61  ;;  %10034 = vst [vmem:[%s14231_s27 + $0x198] sm:$0xff] %v9922_v51  ;;  %v9826_v34 = vadd.f32 1.0, %v11621_v12  ;;  %v1622_v14 = vld [vmem:[%s12155_s21 + $0x15d8] sm:$0xff]  ;;  %v9506_v52 = vmul.f32 0.5, %v14796_v39  ;;  %v11427_v35 = vcombine.low %v1886_v54, %v1894_v13 }
 0x383   : > { %8163 = vmatprep.subr.bf16.mxu0 %v11204_v41  ;;  %8234 = vmatprep.subr.bf16.mxu1 %v11460_v57  ;;  %v1870_v31 = vld [vmem:[%s12155_s21 + $0x1d98] sm:$0xff]  ;;  %v11156_v57 = vcombine.high %v1614_v37, %v1622_v14  ;;  %v11155_v46 = vcombine.low %v1614_v37, %v1622_v14 }
 0x384   : > { %v11623_v32 = vpop.eup %11622  ;;  %10049 = vst [vmem:[%s14231_s27 + $0x210] sm:$0xff] %v9937_v47  ;;  %v9938_v55 = vmul.f32 %v9826_v34, %v9490_v44  ;;  %v1878_v40 = vld [vmem:[%s12155_s21 + $0x1dd8] sm:$0xff] }
 0x385   : > { %v9841_v60 = vadd.f32 1.0, %v11623_v32  ;;  %v11412_v10 = vcombine.high %v1870_v31, %v1878_v40  ;;  %v1598_v39 = vld [vmem:[%s12155_s21 + $0x1518] sm:$0xff]  ;;  %v11411_v0 = vcombine.low %v1870_v31, %v1878_v40  ;;  %v1023_v31 = vld [vmem:[%s12155_s21 + $0x320] sm:$0xff] }
 0x386   : > { %8164 = vmatpush2.bf16.msra.mxu0 %v11203_v30  ;;  %8235 = vmatpush2.bf16.msra.mxu1 %v11459_v36  ;;  %v11625_v58 = vpop.eup %11624  ;;  %10050 = vst [vmem:[%s14231_s27 + $0x218] sm:$0xff] %v9938_v55  ;;  %v1606_v19 = vld [vmem:[%s12155_s21 + $0x1558] sm:$0xff]  ;;  %v1047_v55 = vld [vmem:[%s12155_s21 + $0x3e0] sm:$0xff] }
 0x387   : > { %8165 = vmatprep.subr.bf16.mxu0 %v11188_v2  ;;  %8236 = vmatprep.subr.bf16.mxu1 %v11444_v20  ;;  %v11627_v53 = vpop.eup %11626  ;;  %v9953_v50 = vmul.f32 %v9841_v60, %v9505_v4  ;;  %v9842_v6 = vadd.f32 1.0, %v11625_v58  ;;  %v1854_v9 = vld [vmem:[%s12155_s21 + $0x1d18] sm:$0xff]  ;;  %v11140_v56 = vcombine.high %v1598_v39, %v1606_v19  ;;  %v11139_v20 = vcombine.low %v1598_v39, %v1606_v19  ;;  %v1295_v4 = vld [vmem:[%s12155_s21 + $0xba0] sm:$0xff]  ;;  %v18142_v39 = vld [vmem:[#allocation30_spill] sm:$0xff] }
 0x388   : > { %v9857_v5 = vadd.f32 1.0, %v11627_v53  ;;  %v1862_v29 = vld [vmem:[%s12155_s21 + $0x1d58] sm:$0xff]  ;;  %v1303_v60 = vld [vmem:[%s12155_s21 + $0xbe0] sm:$0xff] }
 0x389   : > { %10065 = vst [vmem:[%s14231_s27 + $0x290] sm:$0xff] %v9953_v50  ;;  %v9954_v41 = vmul.f32 %v9842_v6, %v9506_v52  ;;  %v11629_v24 = vpop.eup %11628  ;;  %v11396_v30 = vcombine.high %v1854_v9, %v1862_v29  ;;  %v1582_v36 = vld [vmem:[%s12155_s21 + $0x1498] sm:$0xff]  ;;  %v11395_v27 = vcombine.low %v1854_v9, %v1862_v29  ;;  %v10838_v14 = vcombine.high %v1295_v4, %v1303_v60  ;;  %v1031_v40 = vld [vmem:[%s12155_s21 + $0x360] sm:$0xff]  ;;  %v18144_v29 = vld [vmem:[#allocation54_spill] sm:$0xff] }
 0x38a   : > { %8166 = vmatpush2.bf16.msra.mxu0 %v11187_v18  ;;  %8237 = vmatpush2.bf16.msra.mxu1 %v11443_v17  ;;  %v9969_v3 = vmul.f32 %v9857_v5, %v9521_v8  ;;  %v9858_v42 = vadd.f32 1.0, %v11629_v24  ;;  %v1590_v51 = vld [vmem:[%s12155_s21 + $0x14d8] sm:$0xff]  ;;  %v1279_v53 = vld [vmem:[%s12155_s21 + $0xb20] sm:$0xff]  ;;  %v10837_v5 = vcombine.low %v1295_v4, %v1303_v60  ;;  %v18143_v24 = vld [vmem:[#allocation49_spill] sm:$0xff] }
 0x38b   : > { %8167 = vmatprep.subr.bf16.mxu0 %v11172_v45  ;;  %8238 = vmatprep.subr.bf16.mxu1 %v11428_v11  ;;  %10066 = vst [vmem:[%s14231_s27 + $0x298] sm:$0xff] %v9954_v41  ;;  %v1838_v2 = vld [vmem:[%s12155_s21 + $0x1c98] sm:$0xff]  ;;  %v11124_v28 = vcombine.high %v1582_v36, %v1590_v51  ;;  %v11123_v34 = vcombine.low %v1582_v36, %v1590_v51  ;;  %v1039_v45 = vld [vmem:[%s12155_s21 + $0x3a0] sm:$0xff] }
 0x38c   : > { %10081 = vst [vmem:[%s14231_s27 + $0x310] sm:$0x1] %v9969_v3  ;;  %v9970_v61 = vmul.f32 %v9858_v42, %v9522_v15  ;;  %v1846_v21 = vld [vmem:[%s12155_s21 + $0x1cd8] sm:$0xff]  ;;  %v10582_v58 = vcombine.high %v1039_v45, %v1047_v55  ;;  %v1287_v50 = vld [vmem:[%s12155_s21 + $0xb60] sm:$0xff]  ;;  %v10581_v8 = vcombine.low %v1039_v45, %v1047_v55  ;;  %v10566_v41 = vcombine.high %v1023_v31, %v1031_v40 }
 0x38d   : > { %v11380_v12 = vcombine.high %v1838_v2, %v1846_v21  ;;  %v1566_v47 = vld [vmem:[%s12155_s21 + $0x1418] sm:$0xff]  ;;  %v11379_v32 = vcombine.low %v1838_v2, %v1846_v21  ;;  %v1015_v3 = vld [vmem:[%s12155_s21 + $0x2e0] sm:$0xff] }
 0x38e   : > { %8168 = vmatpush2.bf16.msra.mxu0 %v11171_v1  ;;  %8239 = vmatpush2.bf16.msra.mxu1 %v11427_v35  ;;  %10082 = vst [vmem:[%s14231_s27 + $0x318] sm:$0x1] %v9970_v61  ;;  %v1574_v54 = vld [vmem:[%s12155_s21 + $0x1458] sm:$0xff]  ;;  %v1263_v19 = vld [vmem:[%s12155_s21 + $0xaa0] sm:$0xff]  ;;  %v10821_v61 = vcombine.low %v1279_v53, %v1287_v50 }
 0x38f   : > { %8169 = vmatprep.subr.bf16.mxu0 %v11156_v57  ;;  %8240 = vmatprep.subr.bf16.mxu1 %v11412_v10  ;;  %v1822_v13 = vld [vmem:[%s12155_s21 + $0x1c18] sm:$0xff]  ;;  %v11108_v18 = vcombine.high %v1566_v47, %v1574_v54  ;;  %v11107_v11 = vcombine.low %v1566_v47, %v1574_v54  ;;  %v10822_v57 = vcombine.high %v1279_v53, %v1287_v50  ;;  %v1007_v10 = vld [vmem:[%s12155_s21 + $0x2a0] sm:$0xff] }
 0x390   : > { %v1830_v44 = vld [vmem:[%s12155_s21 + $0x1c58] sm:$0xff]  ;;  %v1271_v9 = vld [vmem:[%s12155_s21 + $0xae0] sm:$0xff]  ;;  %v10550_v36 = vcombine.high %v1007_v10, %v1015_v3  ;;  %v10549_v47 = vcombine.low %v1007_v10, %v1015_v3 }
 0x391   : > { %v11364_v17 = vcombine.high %v1822_v13, %v1830_v44  ;;  %v11363_v37 = vcombine.low %v1822_v13, %v1830_v44  ;;  %v18145_v15 = vld [vmem:[#allocation56_spill] sm:$0xff]  ;;  %v10806_v51 = vcombine.high %v1263_v19, %v1271_v9  ;;  %v10805_v54 = vcombine.low %v1263_v19, %v1271_v9 }
 0x392   : > { %8170 = vmatpush2.bf16.msra.mxu0 %v11155_v46  ;;  %8241 = vmatpush2.bf16.msra.mxu1 %v11411_v0  ;;  %v10565_v0 = vcombine.low %v1023_v31, %v1031_v40  ;;  %v991_v2 = vld [vmem:[%s12155_s21 + $0x220] sm:$0xff] }
 0x393   : > { %8171 = vmatprep.subr.bf16.mxu0 %v11140_v56  ;;  %8242 = vmatprep.subr.bf16.mxu1 %v11396_v30  ;;  %v999_v21 = vld [vmem:[%s12155_s21 + $0x260] sm:$0xff] }
 0x394   : > { %v18147_v45 = vld [vmem:[#allocation40_spill] sm:$0xff]  ;;  %v10533_v31 = vcombine.low %v991_v2, %v999_v21 }
 0x395   : > { %v983_v55 = vld [vmem:[%s12155_s21 + $0x1e0] sm:$0xff] }
 0x396   : > { %8172 = vmatpush2.bf16.msra.mxu0 %v11139_v20  ;;  %8243 = vmatpush2.bf16.msra.mxu1 %v11395_v27  ;;  %v1247_v20 = vld [vmem:[%s12155_s21 + $0xa20] sm:$0xff] }
 0x397   : > { %8173 = vmatprep.subr.bf16.mxu0 %v11124_v28  ;;  %8244 = vmatprep.subr.bf16.mxu1 %v11380_v12  ;;  %v1255_v27 = vld [vmem:[%s12155_s21 + $0xa60] sm:$0xff] }
 0x398   : > { %v1231_v4 = vld [vmem:[%s12155_s21 + $0x9a0] sm:$0xff]  ;;  %v10789_v40 = vcombine.low %v1247_v20, %v1255_v27 }
 0x399   : > { %v14912_v52 = vpop.f32.mrf.mxu0  ;;  %v14914_v6 = vpop.f32.mrf.mxu1  ;;  %v1239_v60 = vld [vmem:[%s12155_s21 + $0x9e0] sm:$0xff] }
 0x39a   : > { %8174 = vmatpush2.bf16.msra.mxu0 %v11123_v34  ;;  %8245 = vmatpush2.bf16.msra.mxu1 %v11379_v32  ;;  %v10534_v34 = vcombine.high %v991_v2, %v999_v21  ;;  %v10790_v32 = vcombine.high %v1247_v20, %v1255_v27  ;;  %v1215_v10 = vld [vmem:[%s12155_s21 + $0x920] sm:$0xff] }
 0x39b   : > { %8175 = vmatprep.subr.bf16.mxu0 %v11108_v18  ;;  %8246 = vmatprep.subr.bf16.mxu1 %v11364_v17  ;;  %v14916_v1 = vpop.f32.mrf.mxu0  ;;  %v14918_v35 = vpop.f32.mrf.mxu1  ;;  %v975_v18 = vld [vmem:[%s12155_s21 + $0x1a0] sm:$0xff]  ;;  %v18146_v17 = vld [vmem:[#allocation38_spill] sm:$0xff] }
 0x39c   : > { %v1223_v3 = vld [vmem:[%s12155_s21 + $0x960] sm:$0xff] }
 0x39d   : > { %v14928_v42 = vpop.f32.mrf.mxu0  ;;  %v14930_v46 = vpop.f32.mrf.mxu1  ;;  %v10758_v21 = vcombine.high %v1215_v10, %v1223_v3  ;;  %v943_v20 = vld [vmem:[%s12155_s21 + $0xa0] sm:$0xff] }
 0x39e   : > { %8176 = vmatpush2.bf16.msra.mxu0 %v11107_v11  ;;  %8247 = vmatpush2.bf16.msra.mxu1 %v11363_v37  ;;  %v18148_v11 = vld [vmem:[#allocation62_spill] sm:$0xff]  ;;  %v18149_v37 = vld [vmem:[#allocation63_spill] sm:$0xff]  ;;  %v18150_v27 = vld [vmem:[#allocation64_spill] sm:$0xff] }
 0x39f   : > { %8287 = vmatprep.subr.bf16.mxu0 %v10582_v58  ;;  %8358 = vmatprep.subr.bf16.mxu1 %v10838_v14  ;;  %v14932_v56 = vpop.f32.mrf.mxu0  ;;  %v14934_v30 = vpop.f32.mrf.mxu1 }
 0x3a1   : > { %8178 = vmatmul.mubr.bf16.vlgmr.msra.gmra.mxu0 %v18142_v39  ;;  %8249 = vmatmul.mubr.bf16.vlgmr.msra.gmra.mxu1 %v18143_v24  ;;  %v14940_v28 = vpop.f32.mrf.mxu0  ;;  %v14942_v12 = vpop.f32.mrf.mxu1  ;;  %v1423_v24 = vld [vmem:[%s12155_s21 + $0xfa0] sm:$0xff] }
 0x3a2   : > { %8187 = vmatprep.mubr.bf16.mxu0 %v18144_v29  ;;  %8258 = vmatprep.mubr.bf16.mxu1 %v18145_v15  ;;  %v18158_v15 = vld [vmem:[#allocation66_spill] sm:$0xff]  ;;  %v1175_v29 = vld [vmem:[%s12155_s21 + $0x7e0] sm:$0xff] }
 0x3a3   : > { %8288 = vmatpush1.bf16.msra.mxu0 %v10581_v8  ;;  %8359 = vmatpush1.bf16.msra.mxu1 %v10837_v5  ;;  %v14944_v13 = vpop.f32.mrf.mxu0  ;;  %v14946_v44 = vpop.f32.mrf.mxu1  ;;  %v10518_v8 = vcombine.high %v975_v18, %v983_v55  ;;  %v10774_v5 = vcombine.high %v1231_v4, %v1239_v60 }
 0x3a4   : > { %8289 = vmatprep.subr.bf16.mxu0 %v10566_v41  ;;  %8360 = vmatprep.subr.bf16.mxu1 %v10822_v57  ;;  %v959_v41 = vld [vmem:[%s12155_s21 + $0x120] sm:$0xff] }
 0x3a5   : > { %v14956_v58 = vpop.f32.mrf.mxu0  ;;  %v14958_v14 = vpop.f32.mrf.mxu1  ;;  %v967_v57 = vld [vmem:[%s12155_s21 + $0x160] sm:$0xff] }
 0x3a6   : > { %v10502_v2 = vcombine.high %v959_v41, %v967_v57 }
 0x3a7   : > { %8290 = vmatpush1.bf16.msra.mxu0 %v10565_v0  ;;  %8361 = vmatpush1.bf16.msra.mxu1 %v10821_v61  ;;  %v14960_v53 = vpop.f32.mrf.mxu0  ;;  %v14962_v50 = vpop.f32.mrf.mxu1  ;;  %v10517_v0 = vcombine.low %v975_v18, %v983_v55  ;;  %v10773_v61 = vcombine.low %v1231_v4, %v1239_v60  ;;  %v18153_v18 = vld [vmem:[#allocation15_spill] sm:$0xff]  ;;  %v10501_v60 = vcombine.low %v959_v41, %v967_v57 }
 0x3a8   : > { %8291 = vmatprep.subr.bf16.mxu0 %v10550_v36  ;;  %8362 = vmatprep.subr.bf16.mxu1 %v10806_v51 }
 0x3a9   : > { %8188 = vmatmul.mubr.bf16.gmra.mxu0 %v18146_v17  ;;  %8259 = vmatmul.mubr.bf16.gmra.mxu1 %v18147_v45  ;;  %v14968_v19 = vpop.f32.mrf.mxu0  ;;  %v18157_v17 = vld [vmem:[#allocation12_spill] sm:$0xff] }
 0x3aa   : > { %8197 = vmatprep.mubr.bf16.mxu0 %v18148_v11  ;;  %8268 = vmatprep.mubr.bf16.mxu1 %v18149_v37  ;;  %v1183_v37 = vld [vmem:[%s12155_s21 + $0x820] sm:$0xff] }
 0x3ab   : > { %8292 = vmatpush1.bf16.msra.mxu0 %v10549_v47  ;;  %8363 = vmatpush1.bf16.msra.mxu1 %v10805_v54  ;;  %v14972_v36 = vpop.f32.mrf.mxu0  ;;  %v18151_v47 = vld [vmem:[#allocation65_spill] sm:$0xff]  ;;  %v951_v54 = vld [vmem:[%s12155_s21 + $0xe0] sm:$0xff] }
 0x3ac   : > { %8293 = vmatprep.subr.bf16.mxu0 %v10534_v34  ;;  %8364 = vmatprep.subr.bf16.mxu1 %v10790_v32  ;;  %v14970_v9 = vpop.f32.mrf.mxu1  ;;  %v1199_v34 = vld [vmem:[%s12155_s21 + $0x8a0] sm:$0xff]  ;;  %v10485_v41 = vcombine.low %v943_v20, %v951_v54 }
 0x3ad   : > { %v1207_v32 = vld [vmem:[%s12155_s21 + $0x8e0] sm:$0xff]  ;;  %v14984_v55 = vpop.f32.mrf.mxu0 }
 0x3ae   : > { %v14974_v51 = vpop.f32.mrf.mxu1  ;;  %v1191_v11 = vld [vmem:[%s12155_s21 + $0x860] sm:$0xff]  ;;  %v10741_v57 = vcombine.low %v1199_v34, %v1207_v32 }
 0x3af   : > { %8294 = vmatpush1.bf16.msra.mxu0 %v10533_v31  ;;  %8365 = vmatpush1.bf16.msra.mxu1 %v10789_v40  ;;  %v18152_v31 = vld [vmem:[#allocation13_spill] sm:$0xff]  ;;  %v10757_v40 = vcombine.low %v1215_v10, %v1223_v3 }
 0x3b0   : > { %8295 = vmatprep.subr.bf16.mxu0 %v10518_v8  ;;  %8366 = vmatprep.subr.bf16.mxu1 %v10774_v5  ;;  %v14986_v4 = vpop.f32.mrf.mxu1  ;;  %v14988_v8 = vpop.f32.mrf.mxu0 }
 0x3b1   : > { %8198 = vmatmul.mubr.bf16.gmra.mxu0 %v18150_v27  ;;  %8269 = vmatmul.mubr.bf16.gmra.mxu1 %v18151_v47  ;;  %v10486_v47 = vcombine.high %v943_v20, %v951_v54  ;;  %v927_v27 = vld [vmem:[%s12155_s21 + $0x20] sm:$0xff]  ;;  %v18160_v20 = vld [vmem:[#allocation83_spill] sm:$0xff] }
 0x3b2   : > { %8207 = vmatprep.mubr.bf16.mxu0 %v18152_v31  ;;  %8278 = vmatprep.mubr.bf16.mxu1 %v18153_v18  ;;  %v14990_v5 = vpop.f32.mrf.mxu1  ;;  %v10742_v31 = vcombine.high %v1199_v34, %v1207_v32  ;;  %v935_v18 = vld [vmem:[%s12155_s21 + $0x60] sm:$0xff]  ;;  %v14996_v45 = vpop.f32.mrf.mxu0  ;;  %v10725_v32 = vcombine.low %v1183_v37, %v1191_v11 }
 0x3b3   : > { %8296 = vmatpush1.bf16.msra.mxu0 %v10517_v0  ;;  %8367 = vmatpush1.bf16.msra.mxu1 %v10773_v61  ;;  %18154 = vst [vmem:[#allocation71_spill] sm:$0xff] %v14990_v5  ;;  %v10470_v61 = vcombine.high %v927_v27, %v935_v18  ;;  %v10469_v34 = vcombine.low %v927_v27, %v935_v18  ;;  %v1143_v27 = vld [vmem:[%s12155_s21 + $0x6e0] sm:$0xff] }
 0x3b4   : > { %8297 = vmatprep.subr.bf16.mxu0 %v10502_v2  ;;  %8368 = vmatprep.subr.bf16.mxu1 %v10758_v21  ;;  %v15000_v10 = vpop.f32.mrf.mxu0  ;;  %v10726_v2 = vcombine.high %v1183_v37, %v1191_v11  ;;  %v1167_v21 = vld [vmem:[%s12155_s21 + $0x7a0] sm:$0xff] }
 0x3b5   : > { %v14998_v0 = vpop.f32.mrf.mxu1  ;;  %v1135_v37 = vld [vmem:[%s12155_s21 + $0x6a0] sm:$0xff] }
 0x3b6   : > { %18155 = vst [vmem:[#allocation17_spill] sm:$0xff] %v14998_v0  ;;  %v1391_v18 = vld [vmem:[%s12155_s21 + $0xea0] sm:$0xff] }
 0x3b7   : > { %8298 = vmatpush1.bf16.msra.mxu0 %v10501_v60  ;;  %8369 = vmatpush1.bf16.msra.mxu1 %v10757_v40  ;;  %v15002_v3 = vpop.f32.mrf.mxu1  ;;  %v1431_v60 = vld [vmem:[%s12155_s21 + $0xfe0] sm:$0xff]  ;;  %v18159_v40 = vld [vmem:[#allocation82_spill] sm:$0xff] }
 0x3b8   : > { %8299 = vmatprep.subr.bf16.mxu0 %v10486_v47  ;;  %8370 = vmatprep.subr.bf16.mxu1 %v10742_v31  ;;  %18156 = vst [vmem:[#allocation20_spill] sm:$0xff] %v15002_v3  ;;  %v7787_v47 = vpop.f32.mrf.mxu0  ;;  %v10966_v39 = vcombine.high %v1423_v24, %v1431_v60  ;;  %v15133_v5 = vld [vmem:[%s12155_s21 + $0x11e0] sm:$0xff] }
 0x3b9   : > { %8208 = vmatmul.mubr.bf16.gmra.mxu0 %v18157_v17  ;;  %8279 = vmatmul.mubr.bf16.gmra.mxu1 %v18158_v15  ;;  %v7858_v54 = vpop.f32.mrf.mxu1  ;;  %v10710_v17 = vcombine.high %v1167_v21, %v1175_v29 }
 0x3ba   : > { %8319 = vmatprep.mubr.bf16.mxu0 %v18159_v40  ;;  %8390 = vmatprep.mubr.bf16.mxu1 %v18160_v20  ;;  %v7788_v31 = vpop.f32.mrf.mxu0  ;;  %v1151_v40 = vld [vmem:[%s12155_s21 + $0x720] sm:$0xff]  ;;  %v10677_v54 = vcombine.low %v1135_v37, %v1143_v27 }
 0x3bb   : > { %8300 = vmatpush1.bf16.msra.mxu0 %v10485_v41  ;;  %8371 = vmatpush1.bf16.msra.mxu1 %v10741_v57  ;;  %v7859_v15 = vpop.f32.mrf.mxu1  ;;  %v1407_v20 = vld [vmem:[%s12155_s21 + $0xf20] sm:$0xff]  ;;  %v10709_v41 = vcombine.low %v1167_v21, %v1175_v29  ;;  %v10965_v57 = vcombine.low %v1423_v24, %v1431_v60  ;;  %v10694_v11 = vcombine.high %v1151_v40, %v1159_v33 }
 0x3bc   : > { %8301 = vmatprep.subr.bf16.mxu0 %v10470_v61  ;;  %8372 = vmatprep.subr.bf16.mxu1 %v10726_v2  ;;  %v10950_v15 = vcombine.high %v1407_v20, %v1415_v48  ;;  %v1399_v61 = vld [vmem:[%s12155_s21 + $0xee0] sm:$0xff]  ;;  %v10693_v2 = vcombine.low %v1151_v40, %v1159_v33  ;;  %v10949_v47 = vcombine.low %v1407_v20, %v1415_v48 }
 0x3bd   : > { %v10678_v24 = vcombine.high %v1135_v37, %v1143_v27  ;;  %v1119_v29 = vld [vmem:[%s12155_s21 + $0x620] sm:$0xff] }
 0x3be   : > { %v1375_v21 = vld [vmem:[%s12155_s21 + $0xe20] sm:$0xff] }
 0x3bf   : > { %8302 = vmatpush1.bf16.msra.mxu0 %v10469_v34  ;;  %8373 = vmatpush1.bf16.msra.mxu1 %v10725_v32  ;;  %v1383_v60 = vld [vmem:[%s12155_s21 + $0xe60] sm:$0xff]  ;;  %v10933_v34 = vcombine.low %v1391_v18, %v1399_v61 }
 0x3c0   : > { %8303 = vmatprep.subr.bf16.mxu0 %v10710_v17  ;;  %8374 = vmatprep.subr.bf16.mxu1 %v10966_v39  ;;  %v10934_v39 = vcombine.high %v1391_v18, %v1399_v61  ;;  %v1127_v17 = vld [vmem:[%s12155_s21 + $0x660] sm:$0xff]  ;;  %v10918_v33 = vcombine.high %v1375_v21, %v1383_v60 }
 0x3c1   : > { %v10662_v48 = vcombine.high %v1119_v29, %v1127_v17  ;;  %v1103_v40 = vld [vmem:[%s12155_s21 + $0x5a0] sm:$0xff] }
 0x3c2   : > { %v1111_v20 = vld [vmem:[%s12155_s21 + $0x5e0] sm:$0xff] }
 0x3c3   : > { %8304 = vmatpush2.bf16.msra.mxu0 %v10709_v41  ;;  %8375 = vmatpush2.bf16.msra.mxu1 %v10965_v57  ;;  %v1359_v32 = vld [vmem:[%s12155_s21 + $0xda0] sm:$0xff]  ;;  %v10661_v41 = vcombine.low %v1119_v29, %v1127_v17  ;;  %v10917_v57 = vcombine.low %v1375_v21, %v1383_v60 }
 0x3c4   : > { %8305 = vmatprep.subr.bf16.mxu0 %v10694_v11  ;;  %8376 = vmatprep.subr.bf16.mxu1 %v10950_v15  ;;  %v1367_v31 = vld [vmem:[%s12155_s21 + $0xde0] sm:$0xff]  ;;  %v10646_v11 = vcombine.high %v1103_v40, %v1111_v20 }
 0x3c5   : > { %v10902_v15 = vcombine.high %v1359_v32, %v1367_v31  ;;  %v1087_v37 = vld [vmem:[%s12155_s21 + $0x520] sm:$0xff] }
 0x3c6   : > { %v1095_v27 = vld [vmem:[%s12155_s21 + $0x560] sm:$0xff] }
 0x3c7   : > { %8306 = vmatpush2.bf16.msra.mxu0 %v10693_v2  ;;  %8377 = vmatpush2.bf16.msra.mxu1 %v10949_v47  ;;  %v1343_v18 = vld [vmem:[%s12155_s21 + $0xd20] sm:$0xff]  ;;  %v10645_v2 = vcombine.low %v1103_v40, %v1111_v20  ;;  %v10901_v47 = vcombine.low %v1359_v32, %v1367_v31 }
 0x3c8   : > { %8307 = vmatprep.subr.bf16.mxu0 %v10678_v24  ;;  %8378 = vmatprep.subr.bf16.mxu1 %v10934_v39  ;;  %v1351_v61 = vld [vmem:[%s12155_s21 + $0xd60] sm:$0xff]  ;;  %v10630_v24 = vcombine.high %v1087_v37, %v1095_v27 }
 0x3c9   : > { %v10886_v39 = vcombine.high %v1343_v18, %v1351_v61  ;;  %v1071_v29 = vld [vmem:[%s12155_s21 + $0x4a0] sm:$0xff] }
 0x3ca   : > { %v1079_v17 = vld [vmem:[%s12155_s21 + $0x4e0] sm:$0xff] }
 0x3cb   : > { %8308 = vmatpush2.bf16.msra.mxu0 %v10677_v54  ;;  %8379 = vmatpush2.bf16.msra.mxu1 %v10933_v34  ;;  %v1327_v21 = vld [vmem:[%s12155_s21 + $0xca0] sm:$0xff]  ;;  %v10629_v54 = vcombine.low %v1087_v37, %v1095_v27  ;;  %v10885_v34 = vcombine.low %v1343_v18, %v1351_v61  ;;  %v18162_v27 = vld [vmem:[#allocation55_spill] sm:$0xff] }
 0x3cc   : > { %8309 = vmatprep.subr.bf16.mxu0 %v10662_v48  ;;  %8380 = vmatprep.subr.bf16.mxu1 %v10918_v33  ;;  %v1335_v60 = vld [vmem:[%s12155_s21 + $0xce0] sm:$0xff]  ;;  %v10614_v48 = vcombine.high %v1071_v29, %v1079_v17 }
 0x3cd   : > { %v10870_v33 = vcombine.high %v1327_v21, %v1335_v60  ;;  %v1055_v40 = vld [vmem:[%s12155_s21 + $0x420] sm:$0xff]  ;;  %v10869_v37 = vcombine.low %v1327_v21, %v1335_v60 }
 0x3ce   : > { %v1063_v20 = vld [vmem:[%s12155_s21 + $0x460] sm:$0xff] }
 0x3cf   : > { %8310 = vmatpush2.bf16.msra.mxu0 %v10661_v41  ;;  %8381 = vmatpush2.bf16.msra.mxu1 %v10917_v57  ;;  %v1311_v32 = vld [vmem:[%s12155_s21 + $0xc20] sm:$0xff]  ;;  %v10598_v61 = vcombine.high %v1055_v40, %v1063_v20 }
 0x3d0   : > { %8311 = vmatprep.subr.bf16.mxu0 %v10646_v11  ;;  %8382 = vmatprep.subr.bf16.mxu1 %v10902_v15  ;;  %v1319_v31 = vld [vmem:[%s12155_s21 + $0xc60] sm:$0xff]  ;;  %v10613_v15 = vcombine.low %v1071_v29, %v1079_v17 }
 0x3d1   : > { %v11799_v41 = vld [vmem:[%s13921_s15] sm:$0xff] }
 0x3d2   : > { %v18161_v57 = vld [vmem:[#allocation60_spill] sm:$0xff]  ;;  %v15045_v18 = vrot.slane %v11799_v41, %v18162_v27 }
 0x3d3   : > { %8312 = vmatpush2.bf16.msra.mxu0 %v10645_v2  ;;  %8383 = vmatpush2.bf16.msra.mxu1 %v10901_v47  ;;  %v15042_v11 = vrot.slane %v11799_v41, %v18161_v57  ;;  %v10854_v2 = vcombine.high %v1311_v32, %v1319_v31  ;;  %v15048_v47 = vld [vmem:[%s12155_s21 + $0x13a0] sm:$0xff] }
 0x3d4   : > { %8313 = vmatprep.subr.bf16.mxu0 %v10630_v24  ;;  %8384 = vmatprep.subr.bf16.mxu1 %v10886_v39  ;;  %v15051_v24 = vld [vmem:[%s12155_s21 + $0x13e0] sm:$0xff]  ;;  %v7756_v57 = vadd.f32 %v14916_v1, %v15045_v18 }
 0x3d5   : > { %v15054_v39 = vld [vmem:[%s12155_s21 + $0x1ba0] sm:$0xff]  ;;  %v7754_v29 = vadd.f32 %v14912_v52, %v15042_v11 }
 0x3d6   : > { %v15062_v17 = vld [vmem:[%s12155_s21 + $0x1320] sm:$0xff] }
 0x3d7   : > { %8314 = vmatpush2.bf16.msra.mxu0 %v10629_v54  ;;  %8385 = vmatpush2.bf16.msra.mxu1 %v10885_v34  ;;  %v15057_v54 = vld [vmem:[%s12155_s21 + $0x1be0] sm:$0xff]  ;;  %v10597_v34 = vcombine.low %v1055_v40, %v1063_v20  ;;  %v11094_v40 = vcombine.high %v15048_v47, %v15051_v24 }
 0x3d8   : > { %8315 = vmatprep.subr.bf16.mxu0 %v10614_v48  ;;  %8386 = vmatprep.subr.bf16.mxu1 %v10870_v33  ;;  %v15065_v21 = vld [vmem:[%s12155_s21 + $0x1360] sm:$0xff]  ;;  %v10853_v48 = vcombine.low %v1311_v32, %v1319_v31  ;;  %v11093_v33 = vcombine.low %v15048_v47, %v15051_v24  ;;  %v11350_v20 = vcombine.high %v15054_v39, %v15057_v54 }
 0x3d9   : > { %v15068_v60 = vld [vmem:[%s12155_s21 + $0x1b20] sm:$0xff]  ;;  %v11349_v1 = vcombine.low %v15054_v39, %v15057_v54  ;;  %v7825_v24 = vadd.f32 %v14914_v6, %v7754_v29  ;;  %v7827_v39 = vadd.f32 %v14918_v35, %v7756_v57  ;;  %v7760_v29 = vadd.f32 %v14932_v56, %v15045_v18 }
 0x3da   : > { %v15073_v41 = vld [vmem:[%s12155_s21 + $0x1b60] sm:$0xff]  ;;  %v7764_v57 = vadd.f32 %v14940_v28, %v15042_v11 }
 0x3db   : > { %8316 = vmatpush2.bf16.msra.mxu0 %v10613_v15  ;;  %8387 = vmatpush2.bf16.msra.mxu1 %v10869_v37  ;;  %v15076_v52 = vld [vmem:[%s12155_s21 + $0x12a0] sm:$0xff]  ;;  %v7758_v15 = vadd.f32 %v14928_v42, %v15042_v11  ;;  %v11334_v42 = vcombine.high %v15068_v60, %v15073_v41  ;;  %v7831_v28 = vadd.f32 %v14934_v30, %v7760_v29 }
 0x3dc   : > { %v15079_v27 = vld [vmem:[%s12155_s21 + $0x12e0] sm:$0xff]  ;;  %8317 = vmatprep.subr.bf16.mxu0 %v10598_v61  ;;  %8388 = vmatprep.subr.bf16.mxu1 %v10854_v2  ;;  %v11078_v61 = vcombine.high %v15062_v17, %v15065_v21 }
 0x3dd   : > { %v15088_v32 = vld [vmem:[%s12155_s21 + $0x1aa0] sm:$0xff]  ;;  %v7829_v6 = vadd.f32 %v14930_v46, %v7758_v15 }
 0x3de   : > { %v15091_v31 = vld [vmem:[%s12155_s21 + $0x1ae0] sm:$0xff]  ;;  %v7895_v49 = vpop.f32.mrf.mxu0  ;;  %v7966_v3 = vpop.f32.mrf.mxu1 }
 0x3df   : > { %v15102_v2 = vld [vmem:[%s12155_s21 + $0x1220] sm:$0xff]  ;;  %8318 = vmatpush2.bf16.msra.mxu0 %v10597_v34  ;;  %8389 = vmatpush2.bf16.msra.mxu1 %v10853_v48  ;;  %v7896_v0 = vadd.f32 %v7895_v49, %v7825_v24  ;;  %v18164_v24 = vld [vmem:[#allocation46_spill] sm:$0xff] }
 0x3e0   : > { %v15105_v47 = vld [vmem:[%s12155_s21 + $0x1260] sm:$0xff]  ;;  %8429 = vmatprep.subr.bf16.mxu0 %v11094_v40  ;;  %8500 = vmatprep.subr.bf16.mxu1 %v11350_v20  ;;  %v7897_v25 = vpop.f32.mrf.mxu0  ;;  %v7968_v59 = vpop.f32.mrf.mxu1 }
 0x3e1   : > { %v15115_v54 = vld [vmem:[%s12155_s21 + $0x1a20] sm:$0xff]  ;;  %v15144_v40 = vadd.f32 %v7966_v3, %v7896_v0  ;;  %v7898_v46 = vadd.f32 %v7897_v25, %v7827_v39  ;;  %v7766_v3 = vadd.f32 %v14944_v13, %v15045_v18  ;;  %v7768_v0 = vadd.f32 %v14956_v58, %v15042_v11 }
 0x3e2   : > { %v15118_v37 = vld [vmem:[%s12155_s21 + $0x1a60] sm:$0xff]  ;;  %8320 = vmatmul.mubr.bf16.vlgmr.msra.gmra.mxu0 %v18057_v22  ;;  %8391 = vmatmul.mubr.bf16.vlgmr.msra.gmra.mxu1 %v18058_v43  ;;  %v7899_v35 = vpop.f32.mrf.mxu0  ;;  %v7970_v34 = vpop.f32.mrf.mxu1 }
 0x3e3   : > { %v15130_v48 = vld [vmem:[%s12155_s21 + $0x11a0] sm:$0xff]  ;;  %8400 = vmatprep.mubr.bf16.mxu1 %v18164_v24  ;;  %v9539_v39 = vmul.f32 0.70710677, %v15144_v40  ;;  %8430 = vmatpush1.bf16.msra.mxu0 %v11093_v33  ;;  %v15165_v49 = vadd.f32 %v7968_v59, %v7898_v46  ;;  %v7900_v24 = vadd.f32 %v7899_v35, %v7829_v6  ;;  %v7835_v59 = vadd.f32 %v14942_v12, %v7764_v57 }
 0x3e4   : > { %v15149_v56 = vld [vmem:[%s12155_s21 + $0x19a0] sm:$0xff]  ;;  %8501 = vmatpush1.bf16.msra.mxu1 %v11349_v1  ;;  %8431 = vmatprep.subr.bf16.mxu0 %v11078_v61  ;;  %v7901_v13 = vpop.f32.mrf.mxu0  ;;  %v7972_v25 = vpop.f32.mrf.mxu1  ;;  %v7837_v57 = vadd.f32 %v14946_v44, %v7766_v3  ;;  %v18165_v46 = vcombine.low %v15062_v17, %v15065_v21  ;;  %v7839_v44 = vadd.f32 %v14958_v14, %v7768_v0 }
 0x3e5   : > { %v15152_v20 = vld [vmem:[%s12155_s21 + $0x19e0] sm:$0xff]  ;;  %8502 = vmatprep.subr.bf16.mxu1 %v11334_v42  ;;  %11630 = verf.f32 %v9539_v39  ;;  %v9540_v1 = vmul.f32 0.70710677, %v15165_v49  ;;  %v15180_v6 = vadd.f32 %v7970_v34, %v7900_v24  ;;  %v7902_v30 = vadd.f32 %v7901_v13, %v7831_v28 }
 0x3e6   : > { %v18163_v15 = vld [vmem:[#allocation32_spill] sm:$0xff]  ;;  %v11285_v33 = vcombine.low %v15149_v56, %v15152_v20  ;;  %v7905_v58 = vpop.f32.mrf.mxu0  ;;  %v7976_v29 = vpop.f32.mrf.mxu1  ;;  %v11286_v61 = vcombine.high %v15149_v56, %v15152_v20  ;;  %v18166_v24 = vcombine.low %v15068_v60, %v15073_v41  ;;  %v7770_v3 = vadd.f32 %v14960_v53, %v15045_v18 }
 0x3e7   : > { %8329 = vmatprep.mubr.bf16.mxu0 %v18163_v15  ;;  %v15168_v15 = vld [vmem:[%s12155_s21 + $0x1120] sm:$0xff]  ;;  %11632 = verf.f32 %v9540_v1  ;;  %v9555_v34 = vmul.f32 0.70710677, %v15180_v6  ;;  %8432 = vmatpush1.bf16.msra.mxu0 %v18165_v46  ;;  %v7906_v28 = vadd.f32 %v7905_v58, %v7835_v59  ;;  %v15211_v17 = vadd.f32 %v7972_v25, %v7902_v30 }
 0x3e8   : > { %v15171_v43 = vld [vmem:[%s12155_s21 + $0x1160] sm:$0xff]  ;;  %8503 = vmatpush1.bf16.msra.mxu1 %v18166_v24  ;;  %v18167_v21 = vcombine.high %v15076_v52, %v15079_v27  ;;  %v18168_v60 = vcombine.high %v15088_v32, %v15091_v31  ;;  %v7907_v41 = vpop.f32.mrf.mxu0  ;;  %v7978_v59 = vpop.f32.mrf.mxu1  ;;  %v7774_v1 = vadd.f32 %v14968_v19, %v15042_v11  ;;  %v7776_v46 = vadd.f32 %v14972_v36, %v15045_v18 }
 0x3e9   : > { %v11014_v12 = vcombine.high %v15168_v15, %v15171_v43  ;;  %v15189_v35 = vld [vmem:[%s12155_s21 + $0x1920] sm:$0xff]  ;;  %11634 = verf.f32 %v9555_v34  ;;  %v15221_v14 = vadd.f32 %v7976_v29, %v7906_v28  ;;  %v7908_v53 = vadd.f32 %v7907_v41, %v7837_v57 }
 0x3ea   : > { %v15200_v39 = vld [vmem:[%s12155_s21 + $0x1960] sm:$0xff]  ;;  %8433 = vmatprep.subr.bf16.mxu0 %v18167_v21  ;;  %8504 = vmatprep.subr.bf16.mxu1 %v18168_v60  ;;  %v9556_v30 = vmul.f32 0.70710677, %v15211_v17  ;;  %v7909_v19 = vpop.f32.mrf.mxu0  ;;  %v7980_v58 = vpop.f32.mrf.mxu1  ;;  %v18169_v28 = vcombine.low %v15076_v52, %v15079_v27  ;;  %v18170_v21 = vcombine.low %v15088_v32, %v15091_v31  ;;  %v7841_v34 = vadd.f32 %v14962_v50, %v7770_v3 }
 0x3eb   : > { %v15203_v13 = vld [vmem:[%s12155_s21 + $0x10a0] sm:$0xff]  ;;  %8330 = vmatmul.mubr.bf16.gmra.mxu0 %v18061_v7  ;;  %8401 = vmatmul.mubr.bf16.gmra.mxu1 %v18062_v23  ;;  %v9571_v24 = vmul.f32 0.70710677, %v15221_v14  ;;  %v15249_v60 = vadd.f32 %v7978_v59, %v7908_v53  ;;  %v7910_v41 = vadd.f32 %v7909_v19, %v7839_v44  ;;  %v18171_v36 = vcombine.high %v15102_v2, %v15105_v47 }
 0x3ec   : > { %v15206_v42 = vld [vmem:[%s12155_s21 + $0x10e0] sm:$0xff]  ;;  %8339 = vmatprep.mubr.bf16.mxu0 %v13400_v62  ;;  %8410 = vmatprep.mubr.bf16.mxu1 %v13402_v63  ;;  %11636 = verf.f32 %v9556_v30  ;;  %v18172_v27 = vcombine.high %v15115_v54, %v15118_v37  ;;  %v7911_v52 = vpop.f32.mrf.mxu0  ;;  %v7982_v32 = vpop.f32.mrf.mxu1  ;;  %v7845_v59 = vadd.f32 %v14970_v9, %v7774_v1  ;;  %v7778_v53 = vadd.f32 %v14984_v55, %v15042_v11 }
 0x3ed   : > { %v15226_v0 = vld [vmem:[%s12155_s21 + $0x18a0] sm:$0xff]  ;;  %8434 = vmatpush1.bf16.msra.mxu0 %v18169_v28  ;;  %8505 = vmatpush1.bf16.msra.mxu1 %v18170_v21  ;;  %v10998_v31 = vcombine.high %v15203_v13, %v15206_v42  ;;  %11638 = verf.f32 %v9571_v24  ;;  %v9572_v50 = vmul.f32 0.70710677, %v15249_v60  ;;  %v15270_v3 = vadd.f32 %v7980_v58, %v7910_v41 }
 0x3ee   : > { %v15229_v25 = vld [vmem:[%s12155_s21 + $0x18e0] sm:$0xff]  ;;  %8435 = vmatprep.subr.bf16.mxu0 %v18171_v36  ;;  %8506 = vmatprep.subr.bf16.mxu1 %v18172_v27  ;;  %v7912_v30 = vadd.f32 %v7911_v52, %v7841_v34  ;;  %v7915_v19 = vpop.f32.mrf.mxu0  ;;  %v7986_v28 = vpop.f32.mrf.mxu1  ;;  %v7847_v9 = vadd.f32 %v14974_v51, %v7776_v46  ;;  %v18173_v58 = vcombine.low %v15102_v2, %v15105_v47 }
 0x3ef   : > { %v15252_v29 = vld [vmem:[%s12155_s21 + $0x1020] sm:$0xff]  ;;  %v11253_v44 = vcombine.low %v15226_v0, %v15229_v25  ;;  %v11254_v21 = vcombine.high %v15226_v0, %v15229_v25  ;;  %11640 = verf.f32 %v9572_v50  ;;  %v9587_v1 = vmul.f32 0.70710677, %v15270_v3 }
 0x3f0   : > { %v15255_v57 = vld [vmem:[%s12155_s21 + $0x1060] sm:$0xff]  ;;  %v18174_v55 = vcombine.low %v15115_v54, %v15118_v37  ;;  %v7916_v34 = vadd.f32 %v7915_v19, %v7845_v59  ;;  %v7780_v27 = vadd.f32 %v14988_v8, %v15045_v18  ;;  %v7784_v51 = vadd.f32 %v14996_v45, %v15042_v11  ;;  %v7917_v37 = vpop.f32.mrf.mxu0  ;;  %v7988_v47 = vpop.f32.mrf.mxu1  ;;  %v18176_v59 = vld [vmem:[#allocation58_spill] sm:$0xff] }
 0x3f1   : > { %v10981_v36 = vcombine.low %v15252_v29, %v15255_v57  ;;  %8436 = vmatpush1.bf16.msra.mxu0 %v18173_v58  ;;  %v15287_v24 = vld [vmem:[%s12155_s21 + $0x1820] sm:$0xff]  ;;  %v15296_v46 = vadd.f32 %v7982_v32, %v7912_v30  ;;  %v18175_v2 = vcombine.high %v15130_v48, %v15133_v5  ;;  %11642 = verf.f32 %v9587_v1 }
 0x3f2   : > { %8507 = vmatpush1.bf16.msra.mxu1 %v18174_v55  ;;  %v15290_v41 = vld [vmem:[%s12155_s21 + $0x1860] sm:$0xff]  ;;  %v15304_v54 = vadd.f32 %v7986_v28, %v7916_v34  ;;  %v7918_v45 = vadd.f32 %v7917_v37, %v7847_v9  ;;  %v10982_v8 = vcombine.high %v15252_v29, %v15255_v57  ;;  %v11631_v11 = vpop.eup %11630  ;;  %v7849_v52 = vadd.f32 %v14986_v4, %v7778_v53  ;;  %v7919_v50 = vpop.f32.mrf.mxu0  ;;  %v18178_v53 = vld [vmem:[#allocation71_spill] sm:$0xff]  ;;  %v18179_v55 = vld [vmem:[#allocation17_spill] sm:$0xff] }
 0x3f3   : > { %8437 = vmatprep.subr.bf16.mxu0 %v18175_v2  ;;  %8508 = vmatprep.subr.bf16.mxu1 %v11286_v61  ;;  %v7786_v32 = vadd.f32 %v15000_v10, %v15045_v18  ;;  %v9588_v61 = vmul.f32 0.70710677, %v15296_v46  ;;  %v7990_v30 = vpop.f32.mrf.mxu1  ;;  %v11237_v19 = vcombine.low %v15287_v24, %v15290_v41  ;;  %v9427_v28 = vmul.f32 0.5, %v15144_v40  ;;  %v1663_v25 = vld [vmem:[%s12155_s21 + $0x1720] sm:$0xff] }
 0x3f4   : > { %8340 = vmatmul.mubr.bf16.gmra.mxu0 %v13404_v16  ;;  %8411 = vmatmul.mubr.bf16.gmra.mxu1 %v13407_v26  ;;  %v9763_v9 = vadd.f32 1.0, %v11631_v11  ;;  %v9603_v1 = vmul.f32 0.70710677, %v15304_v54  ;;  %v18177_v4 = vcombine.low %v15130_v48, %v15133_v5  ;;  %v15326_v10 = vadd.f32 %v7988_v47, %v7918_v45  ;;  %v11633_v18 = vpop.eup %11632  ;;  %v7921_v48 = vpop.f32.mrf.mxu0  ;;  %v1903_v29 = vld [vmem:[%s12155_s21 + $0x1ea0] sm:$0xff] }
 0x3f5   : > { %8349 = vmatprep.mubr.bf16.mxu0 %v18128_v38  ;;  %8420 = vmatprep.mubr.bf16.mxu1 %v18176_v59  ;;  %v7851_v58 = vadd.f32 %v18178_v53, %v7780_v27  ;;  %v7855_v34 = vadd.f32 %v18179_v55, %v7784_v51  ;;  %11644 = verf.f32 %v9588_v61  ;;  %v7920_v40 = vadd.f32 %v7919_v50, %v7849_v52  ;;  %v7992_v56 = vpop.f32.mrf.mxu1  ;;  %v18181_v51 = vld [vmem:[#allocation20_spill] sm:$0xff]  ;;  %v18184_v53 = vld [vmem:[#allocation39_spill] sm:$0xff] }
 0x3f6   : > { %8438 = vmatpush1.bf16.msra.mxu0 %v18177_v4  ;;  %8509 = vmatpush1.bf16.msra.mxu1 %v11285_v33  ;;  %v18180_v5 = vcombine.high %v15189_v35, %v15200_v39  ;;  %v9875_v20 = vmul.f32 %v9763_v9, %v9427_v28  ;;  %v9428_v33 = vmul.f32 0.5, %v15165_v49  ;;  %v9764_v2 = vadd.f32 1.0, %v11633_v18  ;;  %v11635_v27 = vpop.eup %11634  ;;  %v15369_v55 = vld [vmem:[%s12155_s21 + $0x17e0] sm:$0xff] }
 0x3f7   : > { %8439 = vmatprep.subr.bf16.mxu0 %v11014_v12  ;;  %11646 = verf.f32 %v9603_v1  ;;  %v7857_v37 = vadd.f32 %v18181_v51, %v7786_v32  ;;  %v9604_v47 = vmul.f32 0.70710677, %v15326_v10  ;;  %v15339_v45 = vadd.f32 %v7990_v30, %v7920_v40  ;;  %v7925_v12 = vpop.f32.mrf.mxu0  ;;  %v7996_v52 = vpop.f32.mrf.mxu1  ;;  %v1911_v57 = vld [vmem:[%s12155_s21 + $0x1ee0] sm:$0xff] }
 0x3f8   : > { %8510 = vmatprep.subr.bf16.mxu1 %v18180_v5  ;;  %v7922_v11 = vadd.f32 %v7921_v48, %v7851_v58  ;;  %9987 = vst [vmem:[%s14231_s27 + $0x20] sm:$0xff] %v9875_v20  ;;  %v9876_v61 = vmul.f32 %v9764_v2, %v9428_v33  ;;  %v9443_v50 = vmul.f32 0.5, %v15180_v6  ;;  %v9779_v28 = vadd.f32 1.0, %v11635_v27  ;;  %v18186_v20 = vld [vmem:[#allocation31_spill] sm:$0xff]  ;;  %v18187_v33 = vld [vmem:[#allocation33_spill] sm:$0xff] }
 0x3f9   : > { %v18182_v49 = vcombine.low %v15168_v15, %v15171_v43  ;;  %v18183_v32 = vcombine.low %v15189_v35, %v15200_v39  ;;  %v7926_v30 = vadd.f32 %v7925_v12, %v7855_v34  ;;  %11648 = verf.f32 %v9604_v47  ;;  %v7927_v43 = vpop.f32.mrf.mxu0  ;;  %v7998_v15 = vpop.f32.mrf.mxu1  ;;  %v15361_v35 = vld [vmem:[%s12155_s21 + $0x17a0] sm:$0xff] }
 0x3fa   : > { %v9619_v9 = vmul.f32 0.70710677, %v15339_v45  ;;  %v15350_v1 = vadd.f32 %v7992_v56, %v7922_v11  ;;  %v11238_v6 = vcombine.high %v15287_v24, %v15290_v41  ;;  %v11637_v39 = vpop.eup %11636  ;;  %9988 = vst [vmem:[%s14231_s27 + $0x28] sm:$0xff] %v9876_v61  ;;  %v9891_v4 = vmul.f32 %v9779_v28, %v9443_v50  ;;  %v15375_v34 = vld [vmem:[%s12155_s21 + $0x1fe0] sm:$0xff] }
 0x3fb   : > { %8440 = vmatpush1.bf16.msra.mxu0 %v18182_v49  ;;  %8511 = vmatpush1.bf16.msra.mxu1 %v18183_v32  ;;  %v15364_v18 = vadd.f32 %v7996_v52, %v7926_v30  ;;  %v7928_v58 = vadd.f32 %v7927_v43, %v7857_v37  ;;  %v11639_v40 = vpop.eup %11638  ;;  %v9444_v5 = vmul.f32 0.5, %v15211_v17  ;;  %v9780_v48 = vadd.f32 1.0, %v11637_v39  ;;  %v7929_v2 = vpop.f32.mrf.mxu0  ;;  %v1671_v28 = vld [vmem:[%s12155_s21 + $0x1760] sm:$0xff] }
 0x3fc   : > { %8441 = vmatprep.subr.bf16.mxu0 %v10998_v31  ;;  %8512 = vmatprep.subr.bf16.mxu1 %v11254_v21  ;;  %v18185_v31 = vld [vmem:[#allocation41_spill] sm:$0xff]  ;;  %v15372_v21 = vld [vmem:[%s12155_s21 + $0x1fa0] sm:$0xff]  ;;  %11650 = verf.f32 %v9619_v9  ;;  %v9620_v56 = vmul.f32 0.70710677, %v15350_v1  ;;  %v8000_v27 = vpop.f32.mrf.mxu1  ;;  %10003 = vst [vmem:[%s14231_s27 + $0xa0] sm:$0xff] %v9891_v4  ;;  %v9459_v51 = vmul.f32 0.5, %v15221_v14  ;;  %v18188_v17 = vcombine.low %v15203_v13, %v15206_v42  ;;  %v11641_v12 = vpop.eup %11640 }
 0x3fd   : > { %8350 = vmatmul.mubr.bf16.gmra.mxu0 %v18184_v53  ;;  %8421 = vmatmul.mubr.bf16.gmra.mxu1 %v18185_v31  ;;  %v9795_v37 = vadd.f32 1.0, %v11639_v40  ;;  %v9635_v47 = vmul.f32 0.70710677, %v15364_v18  ;;  %v15390_v11 = vadd.f32 %v7998_v15, %v7928_v58  ;;  %v9892_v52 = vmul.f32 %v9780_v48, %v9444_v5  ;;  %v7930_v42 = vpop.f32.mrf.mxu0  ;;  %v1919_v49 = vld [vmem:[%s12155_s21 + $0x1f20] sm:$0xff] }
 0x3fe   : > { %8461 = vmatprep.mubr.bf16.mxu0 %v18186_v20  ;;  %8532 = vmatprep.mubr.bf16.mxu1 %v18187_v33  ;;  %11652 = verf.f32 %v9620_v56  ;;  %v8001_v13 = vpop.f32.mrf.mxu1  ;;  %v11222_v14 = vcombine.high %v15361_v35, %v15369_v55  ;;  %v11478_v0 = vcombine.high %v15372_v21, %v15375_v34  ;;  %v9460_v61 = vmul.f32 0.5, %v15249_v60  ;;  %v1927_v32 = vld [vmem:[%s12155_s21 + $0x1f60] sm:$0xff]  ;;  %v1416_v33 = vld [vmem:[%s12155_s21 + $0xf68] sm:$0xff] }
 0x3ff   : > { %8442 = vmatpush1.bf16.msra.mxu0 %v18188_v17  ;;  %8513 = vmatpush1.bf16.msra.mxu1 %v11253_v44  ;;  %v9907_v44 = vmul.f32 %v9795_v37, %v9459_v51  ;;  %v9796_v50 = vadd.f32 1.0, %v11641_v12  ;;  %11654 = verf.f32 %v9635_v47  ;;  %10004 = vst [vmem:[%s14231_s27 + $0xa8] sm:$0xff] %v9892_v52  ;;  %v9636_v30 = vmul.f32 0.70710677, %v15390_v11  ;;  %v1631_v2 = vld [vmem:[%s12155_s21 + $0x1620] sm:$0xff] }
 0x400   : > { %8443 = vmatprep.subr.bf16.mxu0 %v10982_v8  ;;  %8514 = vmatprep.subr.bf16.mxu1 %v11238_v6  ;;  %v11643_v8 = vpop.eup %11642  ;;  %v11221_v9 = vcombine.low %v15361_v35, %v15369_v55  ;;  %v9475_v60 = vmul.f32 0.5, %v15270_v3  ;;  %v11477_v6 = vcombine.low %v15372_v21, %v15375_v34  ;;  %v11206_v35 = vcombine.high %v1663_v25, %v1671_v28  ;;  %v1647_v3 = vld [vmem:[%s12155_s21 + $0x16a0] sm:$0xff] }
 0x401   : > { %10019 = vst [vmem:[%s14231_s27 + $0x120] sm:$0xff] %v9907_v44  ;;  %v9908_v43 = vmul.f32 %v9796_v50, %v9460_v61  ;;  %v9811_v15 = vadd.f32 1.0, %v11643_v8  ;;  %11656 = verf.f32 %v9636_v30  ;;  %v11462_v39 = vcombine.high %v1919_v49, %v1927_v32  ;;  %v1655_v55 = vld [vmem:[%s12155_s21 + $0x16e0] sm:$0xff] }
 0x402   : > { %v11645_v4 = vpop.eup %11644  ;;  %v9476_v24 = vmul.f32 0.5, %v15296_v46  ;;  %v11205_v34 = vcombine.low %v1663_v25, %v1671_v28  ;;  %v11461_v40 = vcombine.low %v1919_v49, %v1927_v32  ;;  %v11190_v48 = vcombine.high %v1647_v3, %v1655_v55  ;;  %v1639_v46 = vld [vmem:[%s12155_s21 + $0x1660] sm:$0xff] }
 0x403   : > { %8444 = vmatpush1.bf16.msra.mxu0 %v10981_v36  ;;  %8515 = vmatpush1.bf16.msra.mxu1 %v11237_v19  ;;  %10020 = vst [vmem:[%s14231_s27 + $0x128] sm:$0xff] %v9908_v43  ;;  %v9923_v58 = vmul.f32 %v9811_v15, %v9475_v60  ;;  %v9812_v41 = vadd.f32 1.0, %v11645_v4  ;;  %v9491_v19 = vmul.f32 0.5, %v15304_v54  ;;  %v11446_v56 = vcombine.high %v1903_v29, %v1911_v57  ;;  %v1887_v37 = vld [vmem:[%s12155_s21 + $0x1e20] sm:$0xff] }
 0x404   : > { %8445 = vmatprep.subr.bf16.mxu0 %v11222_v14  ;;  %8516 = vmatprep.subr.bf16.mxu1 %v11478_v0  ;;  %v11647_v36 = vpop.eup %11646  ;;  %v1895_v47 = vld [vmem:[%s12155_s21 + $0x1e60] sm:$0xff]  ;;  %v9492_v54 = vmul.f32 0.5, %v15326_v10  ;;  %v11189_v52 = vcombine.low %v1647_v3, %v1655_v55  ;;  %v11445_v42 = vcombine.low %v1903_v29, %v1911_v57  ;;  %v11174_v13 = vcombine.high %v1631_v2, %v1639_v46 }
 0x405   : > { %10035 = vst [vmem:[%s14231_s27 + $0x1a0] sm:$0xff] %v9923_v58  ;;  %v9827_v21 = vadd.f32 1.0, %v11647_v36  ;;  %v9924_v5 = vmul.f32 %v9812_v41, %v9476_v24  ;;  %v9507_v0 = vmul.f32 0.5, %v15339_v45  ;;  %v11430_v44 = vcombine.high %v1887_v37, %v1895_v47  ;;  %v1615_v10 = vld [vmem:[%s12155_s21 + $0x15a0] sm:$0xff] }
 0x406   : > { %v11649_v27 = vpop.eup %11648  ;;  %v1623_v50 = vld [vmem:[%s12155_s21 + $0x15e0] sm:$0xff]  ;;  %v9508_v30 = vmul.f32 0.5, %v15350_v1  ;;  %v9523_v45 = vmul.f32 0.5, %v15364_v18  ;;  %v11173_v60 = vcombine.low %v1631_v2, %v1639_v46  ;;  %v11429_v15 = vcombine.low %v1887_v37, %v1895_v47 }
 0x407   : > { %8446 = vmatpush2.bf16.msra.mxu0 %v11221_v9  ;;  %8517 = vmatpush2.bf16.msra.mxu1 %v11477_v6  ;;  %v9939_v51 = vmul.f32 %v9827_v21, %v9491_v19  ;;  %10036 = vst [vmem:[%s14231_s27 + $0x1a8] sm:$0xff] %v9924_v5  ;;  %v9828_v17 = vadd.f32 1.0, %v11649_v27  ;;  %v1871_v28 = vld [vmem:[%s12155_s21 + $0x1da0] sm:$0xff]  ;;  %v9524_v29 = vmul.f32 0.5, %v15390_v11  ;;  %v11157_v36 = vcombine.low %v1615_v10, %v1623_v50 }
 0x408   : > { %8447 = vmatprep.subr.bf16.mxu0 %v11206_v35  ;;  %8518 = vmatprep.subr.bf16.mxu1 %v11462_v39  ;;  %v1879_v49 = vld [vmem:[%s12155_s21 + $0x1de0] sm:$0xff]  ;;  %v11158_v35 = vcombine.high %v1615_v10, %v1623_v50  ;;  %v1024_v50 = vld [vmem:[%s12155_s21 + $0x328] sm:$0xff] }
 0x409   : > { %v11651_v12 = vpop.eup %11650  ;;  %10051 = vst [vmem:[%s14231_s27 + $0x220] sm:$0xff] %v9939_v51  ;;  %v9940_v14 = vmul.f32 %v9828_v17, %v9492_v54  ;;  %v11414_v39 = vcombine.high %v1871_v28, %v1879_v49  ;;  %v1599_v1 = vld [vmem:[%s12155_s21 + $0x1520] sm:$0xff]  ;;  %v11413_v24 = vcombine.low %v1871_v28, %v1879_v49  ;;  %v1032_v28 = vld [vmem:[%s12155_s21 + $0x368] sm:$0xff] }
 0x40a   : > { %v9843_v25 = vadd.f32 1.0, %v11651_v12  ;;  %v1607_v58 = vld [vmem:[%s12155_s21 + $0x1560] sm:$0xff]  ;;  %v1280_v49 = vld [vmem:[%s12155_s21 + $0xb28] sm:$0xff] }
 0x40b   : > { %8448 = vmatpush2.bf16.msra.mxu0 %v11205_v34  ;;  %8519 = vmatpush2.bf16.msra.mxu1 %v11461_v40  ;;  %v11653_v61 = vpop.eup %11652  ;;  %10052 = vst [vmem:[%s14231_s27 + $0x228] sm:$0xff] %v9940_v14  ;;  %v1855_v18 = vld [vmem:[%s12155_s21 + $0x1d20] sm:$0xff]  ;;  %v11142_v19 = vcombine.high %v1599_v1, %v1607_v58  ;;  %v1296_v14 = vld [vmem:[%s12155_s21 + $0xba8] sm:$0xff] }
 0x40c   : > { %8449 = vmatprep.subr.bf16.mxu0 %v11190_v48  ;;  %8520 = vmatprep.subr.bf16.mxu1 %v11446_v56  ;;  %v11655_v32 = vpop.eup %11654  ;;  %v9955_v8 = vmul.f32 %v9843_v25, %v9507_v0  ;;  %v9844_v9 = vadd.f32 1.0, %v11653_v61  ;;  %v1863_v55 = vld [vmem:[%s12155_s21 + $0x1d60] sm:$0xff]  ;;  %v11141_v48 = vcombine.low %v1599_v1, %v1607_v58  ;;  %v1304_v0 = vld [vmem:[%s12155_s21 + $0xbe8] sm:$0xff] }
 0x40d   : > { %v9859_v43 = vadd.f32 1.0, %v11655_v32  ;;  %v11398_v21 = vcombine.high %v1855_v18, %v1863_v55  ;;  %v1583_v34 = vld [vmem:[%s12155_s21 + $0x14a0] sm:$0xff]  ;;  %v11397_v56 = vcombine.low %v1855_v18, %v1863_v55  ;;  %v10840_v61 = vcombine.high %v1296_v14, %v1304_v0  ;;  %v1288_v32 = vld [vmem:[%s12155_s21 + $0xb68] sm:$0xff]  ;;  %v18191_v18 = vld [vmem:[#allocation54_spill] sm:$0xff] }
 0x40e   : > { %10067 = vst [vmem:[%s14231_s27 + $0x2a0] sm:$0xff] %v9955_v8  ;;  %v9956_v6 = vmul.f32 %v9844_v9, %v9508_v30  ;;  %v11657_v3 = vpop.eup %11656  ;;  %v1591_v40 = vld [vmem:[%s12155_s21 + $0x14e0] sm:$0xff]  ;;  %v18190_v1 = vld [vmem:[#allocation49_spill] sm:$0xff] }
 0x40f   : > { %8450 = vmatpush2.bf16.msra.mxu0 %v11189_v52  ;;  %8521 = vmatpush2.bf16.msra.mxu1 %v11445_v42  ;;  %v9971_v4 = vmul.f32 %v9859_v43, %v9523_v45  ;;  %v9860_v57 = vadd.f32 1.0, %v11657_v3  ;;  %v1839_v5 = vld [vmem:[%s12155_s21 + $0x1ca0] sm:$0xff]  ;;  %v11126_v2 = vcombine.high %v1583_v34, %v1591_v40  ;;  %v11125_v54 = vcombine.low %v1583_v34, %v1591_v40  ;;  %v1040_v42 = vld [vmem:[%s12155_s21 + $0x3a8] sm:$0xff] }
 0x410   : > { %8451 = vmatprep.subr.bf16.mxu0 %v11174_v13  ;;  %8522 = vmatprep.subr.bf16.mxu1 %v11430_v44  ;;  %10068 = vst [vmem:[%s14231_s27 + $0x2a8] sm:$0xff] %v9956_v6  ;;  %v1847_v11 = vld [vmem:[%s12155_s21 + $0x1ce0] sm:$0xff]  ;;  %v1048_v13 = vld [vmem:[%s12155_s21 + $0x3e8] sm:$0xff]  ;;  %v10839_v45 = vcombine.low %v1296_v14, %v1304_v0  ;;  %v10824_v6 = vcombine.high %v1280_v49, %v1288_v32  ;;  %v18195_v0 = vld [vmem:[#allocation62_spill] sm:$0xff] }
 0x411   : > { %10083 = vst [vmem:[%s14231_s27 + $0x320] sm:$0x1] %v9971_v4  ;;  %v9972_v41 = vmul.f32 %v9860_v57, %v9524_v29  ;;  %v11382_v46 = vcombine.high %v1839_v5, %v1847_v11  ;;  %v1567_v27 = vld [vmem:[%s12155_s21 + $0x1420] sm:$0xff]  ;;  %v11381_v17 = vcombine.low %v1839_v5, %v1847_v11  ;;  %v10584_v10 = vcombine.high %v1040_v42, %v1048_v13  ;;  %v1016_v3 = vld [vmem:[%s12155_s21 + $0x2e8] sm:$0xff] }
 0x412   : > { %v1575_v51 = vld [vmem:[%s12155_s21 + $0x1460] sm:$0xff]  ;;  %v10583_v9 = vcombine.low %v1040_v42, %v1048_v13  ;;  %v1264_v4 = vld [vmem:[%s12155_s21 + $0xaa8] sm:$0xff] }
 0x413   : > { %8452 = vmatpush2.bf16.msra.mxu0 %v11173_v60  ;;  %8523 = vmatpush2.bf16.msra.mxu1 %v11429_v15  ;;  %10084 = vst [vmem:[%s14231_s27 + $0x328] sm:$0x1] %v9972_v41  ;;  %v1823_v37 = vld [vmem:[%s12155_s21 + $0x1c20] sm:$0xff]  ;;  %v11110_v12 = vcombine.high %v1567_v27, %v1575_v51  ;;  %v11109_v25 = vcombine.low %v1567_v27, %v1575_v51  ;;  %v1272_v58 = vld [vmem:[%s12155_s21 + $0xae8] sm:$0xff] }
 0x414   : > { %8453 = vmatprep.subr.bf16.mxu0 %v11158_v35  ;;  %8524 = vmatprep.subr.bf16.mxu1 %v11414_v39  ;;  %v1831_v47 = vld [vmem:[%s12155_s21 + $0x1c60] sm:$0xff]  ;;  %v10568_v15 = vcombine.high %v1024_v50, %v1032_v28  ;;  %v1008_v35 = vld [vmem:[%s12155_s21 + $0x2a8] sm:$0xff]  ;;  %v18189_v39 = vld [vmem:[#allocation30_spill] sm:$0xff]  ;;  %v10808_v34 = vcombine.high %v1264_v4, %v1272_v58  ;;  %v10807_v27 = vcombine.low %v1264_v4, %v1272_v58 }
 0x415   : > { %v11366_v52 = vcombine.high %v1823_v37, %v1831_v47  ;;  %v11365_v44 = vcombine.low %v1823_v37, %v1831_v47  ;;  %v18192_v55 = vld [vmem:[#allocation56_spill] sm:$0xff]  ;;  %v992_v40 = vld [vmem:[%s12155_s21 + $0x228] sm:$0xff] }
 0x416   : > { %v1000_v5 = vld [vmem:[%s12155_s21 + $0x268] sm:$0xff] }
 0x417   : > { %8454 = vmatpush2.bf16.msra.mxu0 %v11157_v36  ;;  %8525 = vmatpush2.bf16.msra.mxu1 %v11413_v24  ;;  %v10567_v36 = vcombine.low %v1024_v50, %v1032_v28  ;;  %v10823_v24 = vcombine.low %v1280_v49, %v1288_v32  ;;  %v1248_v11 = vld [vmem:[%s12155_s21 + $0xa28] sm:$0xff]  ;;  %v10536_v47 = vcombine.high %v992_v40, %v1000_v5 }
 0x418   : > { %8455 = vmatprep.subr.bf16.mxu0 %v11142_v19  ;;  %8526 = vmatprep.subr.bf16.mxu1 %v11398_v21  ;;  %v10552_v21 = vcombine.high %v1008_v35, %v1016_v3  ;;  %v984_v42 = vld [vmem:[%s12155_s21 + $0x1e8] sm:$0xff] }
 0x419   : > { %v1232_v13 = vld [vmem:[%s12155_s21 + $0x9a8] sm:$0xff] }
 0x41a   : > { %v1240_v14 = vld [vmem:[%s12155_s21 + $0x9e8] sm:$0xff] }
 0x41b   : > { %8456 = vmatpush2.bf16.msra.mxu0 %v11141_v48  ;;  %8527 = vmatpush2.bf16.msra.mxu1 %v11397_v56  ;;  %v1256_v48 = vld [vmem:[%s12155_s21 + $0xa68] sm:$0xff] }
 0x41c   : > { %8457 = vmatprep.subr.bf16.mxu0 %v11126_v2  ;;  %8528 = vmatprep.subr.bf16.mxu1 %v11382_v46  ;;  %v10551_v46 = vcombine.low %v1008_v35, %v1016_v3  ;;  %v10791_v50 = vcombine.low %v1248_v11, %v1256_v48  ;;  %v1224_v35 = vld [vmem:[%s12155_s21 + $0x968] sm:$0xff] }
 0x41f   : > { %8458 = vmatpush2.bf16.msra.mxu0 %v11125_v54  ;;  %8529 = vmatpush2.bf16.msra.mxu1 %v11381_v17  ;;  %v15466_v8 = vpop.f32.mrf.mxu0  ;;  %v15468_v30 = vpop.f32.mrf.mxu1  ;;  %v10792_v54 = vcombine.high %v1248_v11, %v1256_v48  ;;  %v976_v17 = vld [vmem:[%s12155_s21 + $0x1a8] sm:$0xff]  ;;  %v18197_v11 = vld [vmem:[#allocation64_spill] sm:$0xff] }
 0x420   : > { %8459 = vmatprep.subr.bf16.mxu0 %v11110_v12  ;;  %8530 = vmatprep.subr.bf16.mxu1 %v11366_v52  ;;  %v18193_v12 = vld [vmem:[#allocation38_spill] sm:$0xff]  ;;  %v18194_v52 = vld [vmem:[#allocation40_spill] sm:$0xff]  ;;  %v10520_v32 = vcombine.high %v976_v17, %v984_v42  ;;  %v10519_v58 = vcombine.low %v976_v17, %v984_v42  ;;  %v18198_v48 = vld [vmem:[#allocation65_spill] sm:$0xff] }
 0x421   : > { %v15470_v43 = vpop.f32.mrf.mxu0  ;;  %v15472_v60 = vpop.f32.mrf.mxu1  ;;  %v18200_v17 = vld [vmem:[#allocation15_spill] sm:$0xff] }
 0x423   : > { %8460 = vmatpush2.bf16.msra.mxu0 %v11109_v25  ;;  %8531 = vmatpush2.bf16.msra.mxu1 %v11365_v44  ;;  %v15482_v29 = vpop.f32.mrf.mxu0  ;;  %v15484_v57 = vpop.f32.mrf.mxu1  ;;  %v18196_v25 = vld [vmem:[#allocation63_spill] sm:$0xff] }
 0x424   : > { %8571 = vmatprep.subr.bf16.mxu0 %v10584_v10  ;;  %8642 = vmatprep.subr.bf16.mxu1 %v10840_v61  ;;  %v10535_v61 = vcombine.low %v992_v40, %v1000_v5  ;;  %v944_v5 = vld [vmem:[%s12155_s21 + $0xa8] sm:$0xff] }
 0x425   : > { %v15486_v41 = vpop.f32.mrf.mxu0  ;;  %v15488_v19 = vpop.f32.mrf.mxu1 }
 0x426   : > { %8462 = vmatmul.mubr.bf16.vlgmr.msra.gmra.mxu0 %v18189_v39  ;;  %8533 = vmatmul.mubr.bf16.vlgmr.msra.gmra.mxu1 %v18190_v1  ;;  %v1160_v39 = vld [vmem:[%s12155_s21 + $0x768] sm:$0xff] }
 0x427   : > { %8471 = vmatprep.mubr.bf16.mxu0 %v18191_v18  ;;  %8542 = vmatprep.mubr.bf16.mxu1 %v18192_v55  ;;  %v15494_v56 = vpop.f32.mrf.mxu0  ;;  %v15496_v2 = vpop.f32.mrf.mxu1  ;;  %v1176_v55 = vld [vmem:[%s12155_s21 + $0x7e8] sm:$0xff] }
 0x428   : > { %8572 = vmatpush1.bf16.msra.mxu0 %v10583_v9  ;;  %8643 = vmatpush1.bf16.msra.mxu1 %v10839_v45  ;;  %v10776_v9 = vcombine.high %v1232_v13, %v1240_v14  ;;  %v960_v45 = vld [vmem:[%s12155_s21 + $0x128] sm:$0xff] }
 0x429   : > { %8573 = vmatprep.subr.bf16.mxu0 %v10568_v15  ;;  %8644 = vmatprep.subr.bf16.mxu1 %v10824_v6  ;;  %v15498_v51 = vpop.f32.mrf.mxu0  ;;  %v15500_v37 = vpop.f32.mrf.mxu1  ;;  %v968_v15 = vld [vmem:[%s12155_s21 + $0x168] sm:$0xff] }
 0x42a   : > { %v1216_v6 = vld [vmem:[%s12155_s21 + $0x928] sm:$0xff] }
 0x42b   : > { %v15510_v44 = vpop.f32.mrf.mxu0  ;;  %v15512_v10 = vpop.f32.mrf.mxu1  ;;  %v10760_v40 = vcombine.high %v1216_v6, %v1224_v35  ;;  %v1424_v18 = vld [vmem:[%s12155_s21 + $0xfa8] sm:$0xff] }
 0x42c   : > { %8574 = vmatpush1.bf16.msra.mxu0 %v10567_v36  ;;  %8645 = vmatpush1.bf16.msra.mxu1 %v10823_v24  ;;  %v10775_v36 = vcombine.low %v1232_v13, %v1240_v14  ;;  %v10503_v14 = vcombine.low %v960_v45, %v968_v15 }
 0x42d   : > { %8575 = vmatprep.subr.bf16.mxu0 %v10552_v21  ;;  %8646 = vmatprep.subr.bf16.mxu1 %v10808_v34  ;;  %v15514_v28 = vpop.f32.mrf.mxu0  ;;  %v15516_v49 = vpop.f32.mrf.mxu1  ;;  %v10504_v34 = vcombine.high %v960_v45, %v968_v15 }
 0x42e   : > { %8472 = vmatmul.mubr.bf16.gmra.mxu0 %v18193_v12  ;;  %8543 = vmatmul.mubr.bf16.gmra.mxu1 %v18194_v52  ;;  %v18204_v52 = vld [vmem:[#allocation12_spill] sm:$0xff]  ;;  %v18205_v12 = vld [vmem:[#allocation66_spill] sm:$0xff] }
 0x42f   : > { %8481 = vmatprep.mubr.bf16.mxu0 %v18195_v0  ;;  %8552 = vmatprep.mubr.bf16.mxu1 %v18196_v25  ;;  %v15522_v3 = vpop.f32.mrf.mxu0  ;;  %v15524_v4 = vpop.f32.mrf.mxu1  ;;  %v1192_v25 = vld [vmem:[%s12155_s21 + $0x868] sm:$0xff] }
 0x430   : > { %8576 = vmatpush1.bf16.msra.mxu0 %v10551_v46  ;;  %8647 = vmatpush1.bf16.msra.mxu1 %v10807_v27  ;;  %v952_v46 = vld [vmem:[%s12155_s21 + $0xe8] sm:$0xff] }
 0x431   : > { %8577 = vmatprep.subr.bf16.mxu0 %v10536_v47  ;;  %8648 = vmatprep.subr.bf16.mxu1 %v10792_v54  ;;  %v15526_v24 = vpop.f32.mrf.mxu0  ;;  %v15528_v21 = vpop.f32.mrf.mxu1  ;;  %v1200_v27 = vld [vmem:[%s12155_s21 + $0x8a8] sm:$0xff]  ;;  %v10487_v45 = vcombine.low %v944_v5, %v952_v46 }
 0x432   : > { %v1208_v47 = vld [vmem:[%s12155_s21 + $0x8e8] sm:$0xff] }
 0x433   : > { %v18199_v54 = vld [vmem:[#allocation13_spill] sm:$0xff]  ;;  %v15538_v42 = vpop.f32.mrf.mxu0  ;;  %v15540_v13 = vpop.f32.mrf.mxu1  ;;  %v10743_v15 = vcombine.low %v1200_v27, %v1208_v47 }
 0x434   : > { %8578 = vmatpush1.bf16.msra.mxu0 %v10535_v61  ;;  %8649 = vmatpush1.bf16.msra.mxu1 %v10791_v50  ;;  %v10759_v61 = vcombine.low %v1216_v6, %v1224_v35 }
 0x435   : > { %8579 = vmatprep.subr.bf16.mxu0 %v10520_v32  ;;  %8650 = vmatprep.subr.bf16.mxu1 %v10776_v9  ;;  %v15542_v50 = vpop.f32.mrf.mxu0  ;;  %v15544_v32 = vpop.f32.mrf.mxu1  ;;  %v10488_v9 = vcombine.high %v944_v5, %v952_v46  ;;  %v18207_v5 = vld [vmem:[#allocation83_spill] sm:$0xff] }
 0x436   : > { %8482 = vmatmul.mubr.bf16.gmra.mxu0 %v18197_v11  ;;  %8553 = vmatmul.mubr.bf16.gmra.mxu1 %v18198_v48  ;;  %18201 = vst [vmem:[#allocation16_spill] sm:$0xff] %v15544_v32  ;;  %v928_v48 = vld [vmem:[%s12155_s21 + $0x28] sm:$0xff] }
 0x437   : > { %8491 = vmatprep.mubr.bf16.mxu0 %v18199_v54  ;;  %8562 = vmatprep.mubr.bf16.mxu1 %v18200_v17  ;;  %v10744_v54 = vcombine.high %v1200_v27, %v1208_v47  ;;  %v936_v17 = vld [vmem:[%s12155_s21 + $0x68] sm:$0xff] }
 0x438   : > { %8580 = vmatpush1.bf16.msra.mxu0 %v10519_v58  ;;  %8651 = vmatpush1.bf16.msra.mxu1 %v10775_v36  ;;  %v1184_v11 = vld [vmem:[%s12155_s21 + $0x828] sm:$0xff]  ;;  %v15550_v0 = vpop.f32.mrf.mxu0  ;;  %v15552_v58 = vpop.f32.mrf.mxu1  ;;  %v10472_v36 = vcombine.high %v928_v48, %v936_v17  ;;  %v10471_v47 = vcombine.low %v928_v48, %v936_v17 }
 0x439   : > { %8581 = vmatprep.subr.bf16.mxu0 %v10504_v34  ;;  %8652 = vmatprep.subr.bf16.mxu1 %v10760_v40  ;;  %18202 = vst [vmem:[#allocation18_spill] sm:$0xff] %v15552_v58  ;;  %v10728_v34 = vcombine.high %v1184_v11, %v1192_v25  ;;  %v1168_v40 = vld [vmem:[%s12155_s21 + $0x7a8] sm:$0xff] }
 0x43a   : > { %v15554_v6 = vpop.f32.mrf.mxu0  ;;  %v15556_v35 = vpop.f32.mrf.mxu1  ;;  %v1144_v48 = vld [vmem:[%s12155_s21 + $0x6e8] sm:$0xff] }
 0x43b   : > { %18203 = vst [vmem:[#allocation28_spill] sm:$0xff] %v15556_v35  ;;  %v1392_v17 = vld [vmem:[%s12155_s21 + $0xea8] sm:$0xff] }
 0x43c   : > { %8582 = vmatpush1.bf16.msra.mxu0 %v10503_v14  ;;  %8653 = vmatpush1.bf16.msra.mxu1 %v10759_v61  ;;  %v1432_v14 = vld [vmem:[%s12155_s21 + $0xfe8] sm:$0xff]  ;;  %v18206_v61 = vld [vmem:[#allocation82_spill] sm:$0xff]  ;;  %v8071_v46 = vpop.f32.mrf.mxu0  ;;  %v8142_v27 = vpop.f32.mrf.mxu1 }
 0x43d   : > { %8583 = vmatprep.subr.bf16.mxu0 %v10488_v9  ;;  %8654 = vmatprep.subr.bf16.mxu1 %v10744_v54  ;;  %v10727_v54 = vcombine.low %v1184_v11, %v1192_v25  ;;  %v10968_v1 = vcombine.high %v1424_v18, %v1432_v14  ;;  %v1136_v11 = vld [vmem:[%s12155_s21 + $0x6a8] sm:$0xff] }
 0x43e   : > { %8492 = vmatmul.mubr.bf16.gmra.mxu0 %v18204_v52  ;;  %8563 = vmatmul.mubr.bf16.gmra.mxu1 %v18205_v12  ;;  %v8072_v9 = vpop.f32.mrf.mxu0  ;;  %v8143_v12 = vpop.f32.mrf.mxu1  ;;  %v10712_v52 = vcombine.high %v1168_v40, %v1176_v55  ;;  %v10679_v27 = vcombine.low %v1136_v11, %v1144_v48  ;;  %v15687_v58 = vld [vmem:[%s12155_s21 + $0x11e8] sm:$0xff] }
 0x43f   : > { %8603 = vmatprep.mubr.bf16.mxu0 %v18206_v61  ;;  %8674 = vmatprep.mubr.bf16.mxu1 %v18207_v5  ;;  %v1152_v61 = vld [vmem:[%s12155_s21 + $0x728] sm:$0xff] }
 0x440   : > { %8584 = vmatpush1.bf16.msra.mxu0 %v10487_v45  ;;  %8655 = vmatpush1.bf16.msra.mxu1 %v10743_v15  ;;  %v1408_v5 = vld [vmem:[%s12155_s21 + $0xf28] sm:$0xff]  ;;  %v10711_v45 = vcombine.low %v1168_v40, %v1176_v55  ;;  %v10967_v15 = vcombine.low %v1424_v18, %v1432_v14  ;;  %v10696_v25 = vcombine.high %v1152_v61, %v1160_v39 }
 0x441   : > { %8585 = vmatprep.subr.bf16.mxu0 %v10472_v36  ;;  %8656 = vmatprep.subr.bf16.mxu1 %v10728_v34  ;;  %v10952_v12 = vcombine.high %v1408_v5, %v1416_v33  ;;  %v1400_v36 = vld [vmem:[%s12155_s21 + $0xee8] sm:$0xff]  ;;  %v10695_v34 = vcombine.low %v1152_v61, %v1160_v39  ;;  %v10951_v46 = vcombine.low %v1408_v5, %v1416_v33 }
 0x442   : > { %v10680_v18 = vcombine.high %v1136_v11, %v1144_v48  ;;  %v1120_v55 = vld [vmem:[%s12155_s21 + $0x628] sm:$0xff] }
 0x443   : > { %v1376_v40 = vld [vmem:[%s12155_s21 + $0xe28] sm:$0xff] }
 0x444   : > { %8586 = vmatpush1.bf16.msra.mxu0 %v10471_v47  ;;  %8657 = vmatpush1.bf16.msra.mxu1 %v10727_v54  ;;  %v1384_v14 = vld [vmem:[%s12155_s21 + $0xe68] sm:$0xff]  ;;  %v10935_v47 = vcombine.low %v1392_v17, %v1400_v36 }
 0x445   : > { %8587 = vmatprep.subr.bf16.mxu0 %v10712_v52  ;;  %8658 = vmatprep.subr.bf16.mxu1 %v10968_v1  ;;  %v10936_v1 = vcombine.high %v1392_v17, %v1400_v36  ;;  %v1128_v52 = vld [vmem:[%s12155_s21 + $0x668] sm:$0xff]  ;;  %v10920_v39 = vcombine.high %v1376_v40, %v1384_v14 }
 0x446   : > { %v10664_v33 = vcombine.high %v1120_v55, %v1128_v52  ;;  %v1104_v61 = vld [vmem:[%s12155_s21 + $0x5a8] sm:$0xff] }
 0x447   : > { %v1112_v5 = vld [vmem:[%s12155_s21 + $0x5e8] sm:$0xff] }
 0x448   : > { %8588 = vmatpush2.bf16.msra.mxu0 %v10711_v45  ;;  %8659 = vmatpush2.bf16.msra.mxu1 %v10967_v15  ;;  %v1360_v54 = vld [vmem:[%s12155_s21 + $0xda8] sm:$0xff]  ;;  %v10663_v45 = vcombine.low %v1120_v55, %v1128_v52  ;;  %v10919_v15 = vcombine.low %v1376_v40, %v1384_v14 }
 0x449   : > { %8589 = vmatprep.subr.bf16.mxu0 %v10696_v25  ;;  %8660 = vmatprep.subr.bf16.mxu1 %v10952_v12  ;;  %v1368_v9 = vld [vmem:[%s12155_s21 + $0xde8] sm:$0xff]  ;;  %v10648_v25 = vcombine.high %v1104_v61, %v1112_v5 }
 0x44a   : > { %v10904_v12 = vcombine.high %v1360_v54, %v1368_v9  ;;  %v1088_v11 = vld [vmem:[%s12155_s21 + $0x528] sm:$0xff] }
 0x44b   : > { %v1096_v48 = vld [vmem:[%s12155_s21 + $0x568] sm:$0xff] }
 0x44c   : > { %8590 = vmatpush2.bf16.msra.mxu0 %v10695_v34  ;;  %8661 = vmatpush2.bf16.msra.mxu1 %v10951_v46  ;;  %v1344_v17 = vld [vmem:[%s12155_s21 + $0xd28] sm:$0xff]  ;;  %v10647_v34 = vcombine.low %v1104_v61, %v1112_v5  ;;  %v10903_v46 = vcombine.low %v1360_v54, %v1368_v9 }
 0x44d   : > { %8591 = vmatprep.subr.bf16.mxu0 %v10680_v18  ;;  %8662 = vmatprep.subr.bf16.mxu1 %v10936_v1  ;;  %v1352_v36 = vld [vmem:[%s12155_s21 + $0xd68] sm:$0xff]  ;;  %v10632_v18 = vcombine.high %v1088_v11, %v1096_v48 }
 0x44e   : > { %v10888_v1 = vcombine.high %v1344_v17, %v1352_v36  ;;  %v1072_v55 = vld [vmem:[%s12155_s21 + $0x4a8] sm:$0xff] }
 0x44f   : > { %v1080_v52 = vld [vmem:[%s12155_s21 + $0x4e8] sm:$0xff] }
 0x450   : > { %8592 = vmatpush2.bf16.msra.mxu0 %v10679_v27  ;;  %8663 = vmatpush2.bf16.msra.mxu1 %v10935_v47  ;;  %v1328_v40 = vld [vmem:[%s12155_s21 + $0xca8] sm:$0xff]  ;;  %v10631_v27 = vcombine.low %v1088_v11, %v1096_v48  ;;  %v10887_v47 = vcombine.low %v1344_v17, %v1352_v36  ;;  %v18209_v48 = vld [vmem:[#allocation59_spill] sm:$0xff] }
 0x451   : > { %8593 = vmatprep.subr.bf16.mxu0 %v10664_v33  ;;  %8664 = vmatprep.subr.bf16.mxu1 %v10920_v39  ;;  %v1336_v14 = vld [vmem:[%s12155_s21 + $0xce8] sm:$0xff]  ;;  %v10616_v33 = vcombine.high %v1072_v55, %v1080_v52 }
 0x452   : > { %v10872_v39 = vcombine.high %v1328_v40, %v1336_v14  ;;  %v1056_v61 = vld [vmem:[%s12155_s21 + $0x428] sm:$0xff]  ;;  %v10871_v11 = vcombine.low %v1328_v40, %v1336_v14 }
 0x453   : > { %v1064_v5 = vld [vmem:[%s12155_s21 + $0x468] sm:$0xff] }
 0x454   : > { %8594 = vmatpush2.bf16.msra.mxu0 %v10663_v45  ;;  %8665 = vmatpush2.bf16.msra.mxu1 %v10919_v15  ;;  %v1312_v54 = vld [vmem:[%s12155_s21 + $0xc28] sm:$0xff]  ;;  %v11800_v45 = vld [vmem:[%s13921_s15] sm:$0xff]  ;;  %v10600_v36 = vcombine.high %v1056_v61, %v1064_v5 }
 0x455   : > { %8595 = vmatprep.subr.bf16.mxu0 %v10648_v25  ;;  %8666 = vmatprep.subr.bf16.mxu1 %v10904_v12  ;;  %v1320_v9 = vld [vmem:[%s12155_s21 + $0xc68] sm:$0xff]  ;;  %v10615_v12 = vcombine.low %v1072_v55, %v1080_v52  ;;  %v15599_v17 = vrot.slane %v11800_v45, %v18209_v48 }
 0x456   : > { %v18208_v15 = vld [vmem:[#allocation61_spill] sm:$0xff] }
 0x457   : > { %v15596_v25 = vrot.slane %v11800_v45, %v18208_v15  ;;  %v15616_v52 = vld [vmem:[%s12155_s21 + $0x1328] sm:$0xff]  ;;  %v8040_v15 = vadd.f32 %v15470_v43, %v15599_v17 }
 0x458   : > { %8596 = vmatpush2.bf16.msra.mxu0 %v10647_v34  ;;  %8667 = vmatpush2.bf16.msra.mxu1 %v10903_v46  ;;  %v10856_v34 = vcombine.high %v1312_v54, %v1320_v9  ;;  %v15602_v46 = vld [vmem:[%s12155_s21 + $0x13a8] sm:$0xff] }
 0x459   : > { %8597 = vmatprep.subr.bf16.mxu0 %v10632_v18  ;;  %8668 = vmatprep.subr.bf16.mxu1 %v10888_v1  ;;  %v15605_v18 = vld [vmem:[%s12155_s21 + $0x13e8] sm:$0xff]  ;;  %v8038_v55 = vadd.f32 %v15466_v8, %v15596_v25 }
 0x45a   : > { %v15608_v1 = vld [vmem:[%s12155_s21 + $0x1ba8] sm:$0xff] }
 0x45b   : > { %v15619_v40 = vld [vmem:[%s12155_s21 + $0x1368] sm:$0xff] }
 0x45c   : > { %8598 = vmatpush2.bf16.msra.mxu0 %v10631_v27  ;;  %8669 = vmatpush2.bf16.msra.mxu1 %v10887_v47  ;;  %v15611_v27 = vld [vmem:[%s12155_s21 + $0x1be8] sm:$0xff]  ;;  %v10599_v47 = vcombine.low %v1056_v61, %v1064_v5  ;;  %v11096_v61 = vcombine.high %v15602_v46, %v15605_v18 }
 0x45d   : > { %8599 = vmatprep.subr.bf16.mxu0 %v10616_v33  ;;  %8670 = vmatprep.subr.bf16.mxu1 %v10872_v39  ;;  %v15622_v14 = vld [vmem:[%s12155_s21 + $0x1b28] sm:$0xff]  ;;  %v10855_v33 = vcombine.low %v1312_v54, %v1320_v9  ;;  %v11095_v39 = vcombine.low %v15602_v46, %v15605_v18  ;;  %v11352_v5 = vcombine.high %v15608_v1, %v15611_v27 }
 0x45e   : > { %v15627_v45 = vld [vmem:[%s12155_s21 + $0x1b68] sm:$0xff]  ;;  %v11351_v43 = vcombine.low %v15608_v1, %v15611_v27  ;;  %v8109_v18 = vadd.f32 %v15468_v30, %v8038_v55  ;;  %v8111_v1 = vadd.f32 %v15472_v60, %v8040_v15  ;;  %v8044_v55 = vadd.f32 %v15486_v41, %v15599_v17 }
 0x45f   : > { %v15630_v8 = vld [vmem:[%s12155_s21 + $0x12a8] sm:$0xff]  ;;  %v8048_v15 = vadd.f32 %v15494_v56, %v15596_v25  ;;  %v8052_v56 = vadd.f32 %v15510_v44, %v15596_v25 }
 0x460   : > { %8600 = vmatpush2.bf16.msra.mxu0 %v10615_v12  ;;  %8671 = vmatpush2.bf16.msra.mxu1 %v10871_v11  ;;  %v15633_v48 = vld [vmem:[%s12155_s21 + $0x12e8] sm:$0xff]  ;;  %v8042_v12 = vadd.f32 %v15482_v29, %v15596_v25  ;;  %v11336_v29 = vcombine.high %v15622_v14, %v15627_v45 }
 0x461   : > { %8601 = vmatprep.subr.bf16.mxu0 %v10600_v36  ;;  %8672 = vmatprep.subr.bf16.mxu1 %v10856_v34  ;;  %v15642_v54 = vld [vmem:[%s12155_s21 + $0x1aa8] sm:$0xff]  ;;  %v11080_v36 = vcombine.high %v15616_v52, %v15619_v40  ;;  %v8179_v31 = vpop.f32.mrf.mxu0  ;;  %v8250_v53 = vpop.f32.mrf.mxu1 }
 0x462   : > { %v15645_v9 = vld [vmem:[%s12155_s21 + $0x1ae8] sm:$0xff]  ;;  %v8180_v35 = vadd.f32 %v8179_v31, %v8109_v18  ;;  %v8113_v30 = vadd.f32 %v15484_v57, %v8042_v12  ;;  %v18211_v18 = vld [vmem:[#allocation32_spill] sm:$0xff]  ;;  %v18212_v31 = vld [vmem:[#allocation46_spill] sm:$0xff] }
 0x463   : > { %v15656_v34 = vld [vmem:[%s12155_s21 + $0x1228] sm:$0xff]  ;;  %v8181_v20 = vpop.f32.mrf.mxu0  ;;  %v8252_v32 = vpop.f32.mrf.mxu1 }
 0x464   : > { %v15659_v46 = vld [vmem:[%s12155_s21 + $0x1268] sm:$0xff]  ;;  %8602 = vmatpush2.bf16.msra.mxu0 %v10599_v47  ;;  %8673 = vmatpush2.bf16.msra.mxu1 %v10855_v33  ;;  %v8182_v57 = vadd.f32 %v8181_v20, %v8111_v1 }
 0x465   : > { %v15669_v27 = vld [vmem:[%s12155_s21 + $0x1a28] sm:$0xff]  ;;  %8713 = vmatprep.subr.bf16.mxu0 %v11096_v61  ;;  %8784 = vmatprep.subr.bf16.mxu1 %v11352_v5  ;;  %v15698_v61 = vadd.f32 %v8250_v53, %v8180_v35  ;;  %v8183_v60 = vpop.f32.mrf.mxu0  ;;  %v8254_v47 = vpop.f32.mrf.mxu1  ;;  %v8050_v35 = vadd.f32 %v15498_v51, %v15599_v17  ;;  %v8115_v53 = vadd.f32 %v15488_v19, %v8044_v55 }
 0x466   : > { %v15672_v11 = vld [vmem:[%s12155_s21 + $0x1a68] sm:$0xff] }
 0x467   : > { %v15684_v33 = vld [vmem:[%s12155_s21 + $0x11a8] sm:$0xff]  ;;  %8604 = vmatmul.mubr.bf16.vlgmr.msra.gmra.mxu0 %v18057_v22  ;;  %v9541_v1 = vmul.f32 0.70710677, %v15698_v61  ;;  %v8185_v51 = vpop.f32.mrf.mxu0  ;;  %v8256_v20 = vpop.f32.mrf.mxu1 }
 0x468   : > { %v18210_v5 = vld [vmem:[#allocation85_spill] sm:$0xff]  ;;  %8613 = vmatprep.mubr.bf16.mxu0 %v18211_v18  ;;  %8714 = vmatpush1.bf16.msra.mxu0 %v11095_v39  ;;  %v15719_v18 = vadd.f32 %v8252_v32, %v8182_v57  ;;  %v8119_v32 = vadd.f32 %v15496_v2, %v8048_v15  ;;  %v8186_v19 = vadd.f32 %v8185_v51, %v8115_v53 }
 0x469   : > { %8675 = vmatmul.mubr.bf16.vlgmr.msra.gmra.mxu1 %v18210_v5  ;;  %v15703_v41 = vld [vmem:[%s12155_s21 + $0x19a8] sm:$0xff]  ;;  %8715 = vmatprep.subr.bf16.mxu0 %v11080_v36  ;;  %11658 = verf.f32 %v9541_v1  ;;  %v8189_v44 = vpop.f32.mrf.mxu0  ;;  %v8260_v55 = vpop.f32.mrf.mxu1  ;;  %v8121_v15 = vadd.f32 %v15500_v37, %v8050_v35  ;;  %v18214_v57 = vcombine.low %v15622_v14, %v15627_v45  ;;  %v8123_v37 = vadd.f32 %v15512_v10, %v8052_v56 }
 0x46a   : > { %v15706_v12 = vld [vmem:[%s12155_s21 + $0x19e8] sm:$0xff]  ;;  %8684 = vmatprep.mubr.bf16.mxu1 %v18212_v31  ;;  %8785 = vmatpush1.bf16.msra.mxu1 %v11351_v43  ;;  %v8184_v31 = vadd.f32 %v8183_v60, %v8113_v30  ;;  %v9542_v43 = vmul.f32 0.70710677, %v15719_v18  ;;  %v8190_v53 = vadd.f32 %v8189_v44, %v8119_v32  ;;  %v8054_v35 = vadd.f32 %v15514_v28, %v15599_v17 }
 0x46b   : > { %v15722_v5 = vld [vmem:[%s12155_s21 + $0x1128] sm:$0xff]  ;;  %8786 = vmatprep.subr.bf16.mxu1 %v11336_v29  ;;  %v11287_v39 = vcombine.low %v15703_v41, %v15706_v12  ;;  %v11288_v36 = vcombine.high %v15703_v41, %v15706_v12  ;;  %v18216_v14 = vcombine.high %v15642_v54, %v15645_v9  ;;  %v8191_v45 = vpop.f32.mrf.mxu0  ;;  %v8262_v32 = vpop.f32.mrf.mxu1 }
 0x46c   : > { %v15725_v22 = vld [vmem:[%s12155_s21 + $0x1168] sm:$0xff]  ;;  %v15734_v30 = vadd.f32 %v8254_v47, %v8184_v31  ;;  %11660 = verf.f32 %v9542_v43  ;;  %v18213_v31 = vcombine.low %v15616_v52, %v15619_v40  ;;  %v15765_v52 = vadd.f32 %v8256_v20, %v8186_v19 }
 0x46d   : > { %v11016_v2 = vcombine.high %v15722_v5, %v15725_v22  ;;  %v15743_v60 = vld [vmem:[%s12155_s21 + $0x1928] sm:$0xff]  ;;  %v18215_v40 = vcombine.high %v15630_v8, %v15633_v48  ;;  %v8058_v43 = vadd.f32 %v15522_v3, %v15596_v25  ;;  %v15775_v10 = vadd.f32 %v8260_v55, %v8190_v53  ;;  %v8193_v3 = vpop.f32.mrf.mxu0  ;;  %v8264_v44 = vpop.f32.mrf.mxu1 }
 0x46e   : > { %v9557_v47 = vmul.f32 0.70710677, %v15734_v30  ;;  %8716 = vmatpush1.bf16.msra.mxu0 %v18213_v31  ;;  %8787 = vmatpush1.bf16.msra.mxu1 %v18214_v57  ;;  %v15754_v1 = vld [vmem:[%s12155_s21 + $0x1968] sm:$0xff]  ;;  %v8192_v28 = vadd.f32 %v8191_v45, %v8121_v15  ;;  %v9558_v19 = vmul.f32 0.70710677, %v15765_v52  ;;  %v8060_v31 = vadd.f32 %v15526_v24, %v15599_v17 }
 0x46f   : > { %v15757_v51 = vld [vmem:[%s12155_s21 + $0x10a8] sm:$0xff]  ;;  %8717 = vmatprep.subr.bf16.mxu0 %v18215_v40  ;;  %8788 = vmatprep.subr.bf16.mxu1 %v18216_v14  ;;  %v9573_v57 = vmul.f32 0.70710677, %v15775_v10  ;;  %v18217_v53 = vcombine.low %v15630_v8, %v15633_v48  ;;  %v18218_v40 = vcombine.low %v15642_v54, %v15645_v9  ;;  %v8194_v45 = vadd.f32 %v8193_v3, %v8123_v37  ;;  %v8195_v8 = vpop.f32.mrf.mxu0  ;;  %v8266_v54 = vpop.f32.mrf.mxu1 }
 0x470   : > { %v15760_v29 = vld [vmem:[%s12155_s21 + $0x10e8] sm:$0xff]  ;;  %11662 = verf.f32 %v9557_v47  ;;  %8614 = vmatmul.mubr.bf16.gmra.mxu0 %v18061_v7  ;;  %v15803_v14 = vadd.f32 %v8262_v32, %v8192_v28  ;;  %v8125_v47 = vadd.f32 %v15516_v49, %v8054_v35  ;;  %v18219_v24 = vcombine.high %v15656_v34, %v15659_v46 }
 0x471   : > { %8685 = vmatmul.mubr.bf16.gmra.mxu1 %v18062_v23  ;;  %v15780_v56 = vld [vmem:[%s12155_s21 + $0x18a8] sm:$0xff]  ;;  %8623 = vmatprep.mubr.bf16.mxu0 %v13400_v62  ;;  %11664 = verf.f32 %v9558_v19  ;;  %v18220_v48 = vcombine.high %v15669_v27, %v15672_v11  ;;  %v10999_v9 = vcombine.low %v15757_v51, %v15760_v29  ;;  %v8129_v32 = vadd.f32 %v15524_v4, %v8058_v43  ;;  %v8199_v3 = vpop.f32.mrf.mxu0 }
 0x472   : > { %v15783_v20 = vld [vmem:[%s12155_s21 + $0x18e8] sm:$0xff]  ;;  %8694 = vmatprep.mubr.bf16.mxu1 %v13402_v63  ;;  %8718 = vmatpush1.bf16.msra.mxu0 %v18217_v53  ;;  %11666 = verf.f32 %v9573_v57  ;;  %v9574_v49 = vmul.f32 0.70710677, %v15803_v14  ;;  %v15824_v35 = vadd.f32 %v8264_v44, %v8194_v45  ;;  %v8062_v28 = vadd.f32 %v15538_v42, %v15596_v25  ;;  %v8270_v53 = vpop.f32.mrf.mxu1 }
 0x473   : > { %8789 = vmatpush1.bf16.msra.mxu1 %v18218_v40  ;;  %v15806_v55 = vld [vmem:[%s12155_s21 + $0x1028] sm:$0xff]  ;;  %8719 = vmatprep.subr.bf16.mxu0 %v18219_v24  ;;  %v11255_v37 = vcombine.low %v15780_v56, %v15783_v20  ;;  %v8196_v19 = vadd.f32 %v8195_v8, %v8125_v47  ;;  %v11256_v40 = vcombine.high %v15780_v56, %v15783_v20 }
 0x474   : > { %v15809_v15 = vld [vmem:[%s12155_s21 + $0x1068] sm:$0xff]  ;;  %8790 = vmatprep.subr.bf16.mxu1 %v18220_v48  ;;  %v8131_v4 = vadd.f32 %v15528_v21, %v8060_v31  ;;  %11668 = verf.f32 %v9574_v49  ;;  %v9589_v43 = vmul.f32 0.70710677, %v15824_v35  ;;  %v18221_v44 = vcombine.low %v15656_v34, %v15659_v46  ;;  %v8272_v46 = vpop.f32.mrf.mxu1 }
 0x475   : > { %v10983_v24 = vcombine.low %v15806_v55, %v15809_v15  ;;  %v18222_v42 = vcombine.low %v15669_v27, %v15672_v11  ;;  %v8200_v47 = vadd.f32 %v8199_v3, %v8129_v32  ;;  %v15841_v57 = vld [vmem:[%s12155_s21 + $0x1828] sm:$0xff]  ;;  %v8064_v48 = vadd.f32 %v15542_v50, %v15599_v17  ;;  %v8201_v11 = vpop.f32.mrf.mxu0 }
 0x476   : > { %8720 = vmatpush1.bf16.msra.mxu0 %v18221_v44  ;;  %v15844_v45 = vld [vmem:[%s12155_s21 + $0x1868] sm:$0xff]  ;;  %v8068_v21 = vadd.f32 %v15550_v0, %v15596_v25  ;;  %v15850_v31 = vadd.f32 %v8266_v54, %v8196_v19  ;;  %v18223_v34 = vcombine.high %v15684_v33, %v15687_v58  ;;  %11670 = verf.f32 %v9589_v43  ;;  %v11659_v25 = vpop.eup %11658  ;;  %v8274_v49 = vpop.f32.mrf.mxu1  ;;  %v18226_v44 = vld [vmem:[#allocation18_spill] sm:$0xff] }
 0x477   : > { %8791 = vmatpush1.bf16.msra.mxu1 %v18222_v42  ;;  %v15858_v27 = vadd.f32 %v8270_v53, %v8200_v47  ;;  %v8202_v0 = vadd.f32 %v8201_v11, %v8131_v4  ;;  %v10984_v50 = vcombine.high %v15806_v55, %v15809_v15  ;;  %v8133_v8 = vadd.f32 %v15540_v13, %v8062_v28  ;;  %v8203_v32 = vpop.f32.mrf.mxu0  ;;  %v18225_v28 = vld [vmem:[#allocation16_spill] sm:$0xff]  ;;  %v1664_v20 = vld [vmem:[%s12155_s21 + $0x1728] sm:$0xff] }
 0x478   : > { %8721 = vmatprep.subr.bf16.mxu0 %v18223_v34  ;;  %8792 = vmatprep.subr.bf16.mxu1 %v11288_v36  ;;  %v8070_v54 = vadd.f32 %v15554_v6, %v15599_v17  ;;  %v9590_v36 = vmul.f32 0.70710677, %v15850_v31  ;;  %v11239_v19 = vcombine.low %v15841_v57, %v15844_v45  ;;  %v9429_v3 = vmul.f32 0.5, %v15698_v61  ;;  %v8276_v41 = vpop.f32.mrf.mxu1  ;;  %v1904_v55 = vld [vmem:[%s12155_s21 + $0x1ea8] sm:$0xff] }
 0x479   : > { %8624 = vmatmul.mubr.bf16.gmra.mxu0 %v13404_v16  ;;  %8695 = vmatmul.mubr.bf16.gmra.mxu1 %v13407_v26  ;;  %v9765_v53 = vadd.f32 1.0, %v11659_v25  ;;  %v9605_v4 = vmul.f32 0.70710677, %v15858_v27  ;;  %v18224_v13 = vcombine.low %v15684_v33, %v15687_v58  ;;  %v15880_v6 = vadd.f32 %v8272_v46, %v8202_v0  ;;  %v11661_v17 = vpop.eup %11660  ;;  %v8205_v33 = vpop.f32.mrf.mxu0  ;;  %v1912_v15 = vld [vmem:[%s12155_s21 + $0x1ee8] sm:$0xff] }
 0x47a   : > { %8633 = vmatprep.mubr.bf16.mxu0 %v18128_v38  ;;  %8704 = vmatprep.mubr.bf16.mxu1 %v18176_v59  ;;  %v8135_v43 = vadd.f32 %v18225_v28, %v8064_v48  ;;  %v8139_v42 = vadd.f32 %v18226_v44, %v8068_v21  ;;  %11672 = verf.f32 %v9590_v36  ;;  %v8204_v61 = vadd.f32 %v8203_v32, %v8133_v8  ;;  %v18228_v21 = vld [vmem:[#allocation28_spill] sm:$0xff]  ;;  %v8280_v25 = vpop.f32.mrf.mxu1  ;;  %v18232_v28 = vld [vmem:[#allocation39_spill] sm:$0xff] }
 0x47b   : > { %8722 = vmatpush1.bf16.msra.mxu0 %v18224_v13  ;;  %8793 = vmatpush1.bf16.msra.mxu1 %v11287_v39  ;;  %v18227_v58 = vcombine.high %v15743_v60, %v15754_v1  ;;  %v9877_v12 = vmul.f32 %v9765_v53, %v9429_v3  ;;  %v9430_v39 = vmul.f32 0.5, %v15719_v18  ;;  %v9766_v47 = vadd.f32 1.0, %v11661_v17 }
 0x47c   : > { %8723 = vmatprep.subr.bf16.mxu0 %v11016_v2  ;;  %11674 = verf.f32 %v9605_v4  ;;  %v8141_v34 = vadd.f32 %v18228_v21, %v8070_v54  ;;  %v9606_v11 = vmul.f32 0.70710677, %v15880_v6  ;;  %v15893_v46 = vadd.f32 %v8274_v49, %v8204_v61  ;;  %v8209_v2 = vpop.f32.mrf.mxu0  ;;  %v15929_v61 = vld [vmem:[%s12155_s21 + $0x1fe8] sm:$0xff] }
 0x47d   : > { %8794 = vmatprep.subr.bf16.mxu1 %v18227_v58  ;;  %v11663_v48 = vpop.eup %11662  ;;  %v8206_v0 = vadd.f32 %v8205_v33, %v8135_v43  ;;  %9989 = vst [vmem:[%s14231_s27 + $0x30] sm:$0xff] %v9877_v12  ;;  %v9878_v8 = vmul.f32 %v9766_v47, %v9430_v39  ;;  %v9445_v36 = vmul.f32 0.5, %v15734_v30  ;;  %v18229_v18 = vcombine.low %v15722_v5, %v15725_v22  ;;  %v8282_v5 = vpop.f32.mrf.mxu1  ;;  %v18233_v43 = vld [vmem:[#allocation41_spill] sm:$0xff]  ;;  %v18234_v39 = vld [vmem:[#allocation31_spill] sm:$0xff] }
 0x47e   : > { %v9781_v32 = vadd.f32 1.0, %v11663_v48  ;;  %v18230_v54 = vcombine.low %v15743_v60, %v15754_v1  ;;  %v8210_v49 = vadd.f32 %v8209_v2, %v8139_v42  ;;  %11676 = verf.f32 %v9606_v11  ;;  %v8211_v22 = vpop.f32.mrf.mxu0  ;;  %v15915_v1 = vld [vmem:[%s12155_s21 + $0x17a8] sm:$0xff]  ;;  %v11665_v4 = vpop.eup %11664 }
 0x47f   : > { %8724 = vmatpush1.bf16.msra.mxu0 %v18229_v18  ;;  %v9621_v3 = vmul.f32 0.70710677, %v15893_v46  ;;  %v15904_v53 = vadd.f32 %v8276_v41, %v8206_v0  ;;  %v18231_v30 = vcombine.high %v15757_v51, %v15760_v29  ;;  %v11240_v60 = vcombine.high %v15841_v57, %v15844_v45  ;;  %9990 = vst [vmem:[%s14231_s27 + $0x38] sm:$0xff] %v9878_v8  ;;  %v15923_v42 = vld [vmem:[%s12155_s21 + $0x17e8] sm:$0xff]  ;;  %v11667_v58 = vpop.eup %11666  ;;  %v8284_v21 = vpop.f32.mrf.mxu1 }
 0x480   : > { %8795 = vmatpush1.bf16.msra.mxu1 %v18230_v54  ;;  %v9893_v13 = vmul.f32 %v9781_v32, %v9445_v36  ;;  %v15918_v17 = vadd.f32 %v8280_v25, %v8210_v49  ;;  %v8212_v44 = vadd.f32 %v8211_v22, %v8141_v34  ;;  %v9446_v33 = vmul.f32 0.5, %v15765_v52  ;;  %v18235_v47 = vld [vmem:[#allocation33_spill] sm:$0xff]  ;;  %v8213_v48 = vpop.f32.mrf.mxu0 }
 0x481   : > { %8725 = vmatprep.subr.bf16.mxu0 %v18231_v30  ;;  %8796 = vmatprep.subr.bf16.mxu1 %v11256_v40  ;;  %v15926_v40 = vld [vmem:[%s12155_s21 + $0x1fa8] sm:$0xff]  ;;  %v9782_v41 = vadd.f32 1.0, %v11665_v4  ;;  %11678 = verf.f32 %v9621_v3  ;;  %v9622_v12 = vmul.f32 0.70710677, %v15904_v53  ;;  %v9461_v34 = vmul.f32 0.5, %v15775_v10  ;;  %v11669_v2 = vpop.eup %11668  ;;  %v8285_v51 = vpop.f32.mrf.mxu1 }
 0x482   : > { %8634 = vmatmul.mubr.bf16.gmra.mxu0 %v18232_v28  ;;  %8705 = vmatmul.mubr.bf16.gmra.mxu1 %v18233_v43  ;;  %10005 = vst [vmem:[%s14231_s27 + $0xb0] sm:$0xff] %v9893_v13  ;;  %v9797_v11 = vadd.f32 1.0, %v11667_v58  ;;  %v9637_v0 = vmul.f32 0.70710677, %v15918_v17  ;;  %v15944_v52 = vadd.f32 %v8282_v5, %v8212_v44  ;;  %v8214_v29 = vpop.f32.mrf.mxu0  ;;  %v11224_v10 = vcombine.high %v15915_v1, %v15923_v42  ;;  %v1672_v36 = vld [vmem:[%s12155_s21 + $0x1768] sm:$0xff] }
 0x483   : > { %8745 = vmatprep.mubr.bf16.mxu0 %v18234_v39  ;;  %8816 = vmatprep.mubr.bf16.mxu1 %v18235_v47  ;;  %v9894_v25 = vmul.f32 %v9782_v41, %v9446_v33  ;;  %11680 = verf.f32 %v9622_v12  ;;  %v11480_v56 = vcombine.high %v15926_v40, %v15929_v61  ;;  %v9798_v8 = vadd.f32 1.0, %v11669_v2  ;;  %v1920_v32 = vld [vmem:[%s12155_s21 + $0x1f28] sm:$0xff] }
 0x484   : > { %8726 = vmatpush1.bf16.msra.mxu0 %v10999_v9  ;;  %8797 = vmatpush1.bf16.msra.mxu1 %v11255_v37  ;;  %v9909_v9 = vmul.f32 %v9797_v11, %v9461_v34  ;;  %v9462_v37 = vmul.f32 0.5, %v15803_v14  ;;  %11682 = verf.f32 %v9637_v0  ;;  %v1928_v18 = vld [vmem:[%s12155_s21 + $0x1f68] sm:$0xff]  ;;  %v9638_v54 = vmul.f32 0.70710677, %v15944_v52 }
 0x485   : > { %8727 = vmatprep.subr.bf16.mxu0 %v10984_v50  ;;  %8798 = vmatprep.subr.bf16.mxu1 %v11240_v60  ;;  %v11671_v50 = vpop.eup %11670  ;;  %10006 = vst [vmem:[%s14231_s27 + $0xb8] sm:$0xff] %v9894_v25  ;;  %v11223_v49 = vcombine.low %v15915_v1, %v15923_v42  ;;  %v9477_v14 = vmul.f32 0.5, %v15824_v35  ;;  %v11479_v22 = vcombine.low %v15926_v40, %v15929_v61  ;;  %v1648_v35 = vld [vmem:[%s12155_s21 + $0x16a8] sm:$0xff]  ;;  %v9478_v57 = vmul.f32 0.5, %v15850_v31 }
 0x486   : > { %10021 = vst [vmem:[%s14231_s27 + $0x130] sm:$0xff] %v9909_v9  ;;  %v9910_v3 = vmul.f32 %v9798_v8, %v9462_v37  ;;  %v9813_v30 = vadd.f32 1.0, %v11671_v50  ;;  %11684 = verf.f32 %v9638_v54  ;;  %v11208_v5 = vcombine.high %v1664_v20, %v1672_v36  ;;  %v1656_v13 = vld [vmem:[%s12155_s21 + $0x16e8] sm:$0xff] }
 0x487   : > { %v11464_v60 = vcombine.high %v1920_v32, %v1928_v18  ;;  %v11673_v1 = vpop.eup %11672  ;;  %v11207_v42 = vcombine.low %v1664_v20, %v1672_v36  ;;  %v11463_v40 = vcombine.low %v1920_v32, %v1928_v18  ;;  %v11192_v58 = vcombine.high %v1648_v35, %v1656_v13  ;;  %v1632_v41 = vld [vmem:[%s12155_s21 + $0x1628] sm:$0xff] }
 0x488   : > { %8728 = vmatpush1.bf16.msra.mxu0 %v10983_v24  ;;  %8799 = vmatpush1.bf16.msra.mxu1 %v11239_v19  ;;  %10022 = vst [vmem:[%s14231_s27 + $0x138] sm:$0xff] %v9910_v3  ;;  %v9925_v4 = vmul.f32 %v9813_v30, %v9477_v14  ;;  %v9814_v45 = vadd.f32 1.0, %v11673_v1  ;;  %v9493_v19 = vmul.f32 0.5, %v15858_v27  ;;  %v11448_v33 = vcombine.high %v1904_v55, %v1912_v15  ;;  %v1640_v31 = vld [vmem:[%s12155_s21 + $0x1668] sm:$0xff] }
 0x489   : > { %8729 = vmatprep.subr.bf16.mxu0 %v11224_v10  ;;  %8800 = vmatprep.subr.bf16.mxu1 %v11480_v56  ;;  %v11675_v24 = vpop.eup %11674  ;;  %v1888_v21 = vld [vmem:[%s12155_s21 + $0x1e28] sm:$0xff]  ;;  %v9494_v27 = vmul.f32 0.5, %v15880_v6  ;;  %v11191_v2 = vcombine.low %v1648_v35, %v1656_v13  ;;  %v11447_v25 = vcombine.low %v1904_v55, %v1912_v15  ;;  %v11176_v29 = vcombine.high %v1632_v41, %v1640_v31 }
 0x48a   : > { %10037 = vst [vmem:[%s14231_s27 + $0x1b0] sm:$0xff] %v9925_v4  ;;  %v9829_v44 = vadd.f32 1.0, %v11675_v24  ;;  %v9926_v61 = vmul.f32 %v9814_v45, %v9478_v57  ;;  %v1896_v34 = vld [vmem:[%s12155_s21 + $0x1e68] sm:$0xff]  ;;  %v9509_v10 = vmul.f32 0.5, %v15893_v46  ;;  %v9510_v50 = vmul.f32 0.5, %v15904_v53 }
 0x48b   : > { %v11677_v12 = vpop.eup %11676  ;;  %v11432_v20 = vcombine.high %v1888_v21, %v1896_v34  ;;  %v1616_v6 = vld [vmem:[%s12155_s21 + $0x15a8] sm:$0xff]  ;;  %v9525_v46 = vmul.f32 0.5, %v15918_v17  ;;  %v11175_v3 = vcombine.low %v1632_v41, %v1640_v31  ;;  %v11431_v14 = vcombine.low %v1888_v21, %v1896_v34 }
 0x48c   : > { %8730 = vmatpush2.bf16.msra.mxu0 %v11223_v49  ;;  %8801 = vmatpush2.bf16.msra.mxu1 %v11479_v22  ;;  %v9941_v48 = vmul.f32 %v9829_v44, %v9493_v19  ;;  %10038 = vst [vmem:[%s14231_s27 + $0x1b8] sm:$0xff] %v9926_v61  ;;  %v9830_v11 = vadd.f32 1.0, %v11677_v12  ;;  %v1624_v37 = vld [vmem:[%s12155_s21 + $0x15e8] sm:$0xff]  ;;  %v9526_v13 = vmul.f32 0.5, %v15944_v52 }
 0x48d   : > { %8731 = vmatprep.subr.bf16.mxu0 %v11208_v5  ;;  %8802 = vmatprep.subr.bf16.mxu1 %v11464_v60  ;;  %v1872_v8 = vld [vmem:[%s12155_s21 + $0x1da8] sm:$0xff]  ;;  %v11160_v22 = vcombine.high %v1616_v6, %v1624_v37  ;;  %v11159_v15 = vcombine.low %v1616_v6, %v1624_v37  ;;  %v1033_v37 = vld [vmem:[%s12155_s21 + $0x370] sm:$0xff] }
 0x48e   : > { %v11679_v0 = vpop.eup %11678  ;;  %10053 = vst [vmem:[%s14231_s27 + $0x230] sm:$0xff] %v9941_v48  ;;  %v9942_v51 = vmul.f32 %v9830_v11, %v9494_v27  ;;  %v1880_v36 = vld [vmem:[%s12155_s21 + $0x1de8] sm:$0xff] }
 0x48f   : > { %v9845_v56 = vadd.f32 1.0, %v11679_v0  ;;  %v11416_v5 = vcombine.high %v1872_v8, %v1880_v36  ;;  %v1600_v53 = vld [vmem:[%s12155_s21 + $0x1528] sm:$0xff]  ;;  %v11415_v24 = vcombine.low %v1872_v8, %v1880_v36  ;;  %v1281_v8 = vld [vmem:[%s12155_s21 + $0xb30] sm:$0xff] }
 0x490   : > { %8732 = vmatpush2.bf16.msra.mxu0 %v11207_v42  ;;  %8803 = vmatpush2.bf16.msra.mxu1 %v11463_v40  ;;  %v11681_v9 = vpop.eup %11680  ;;  %10054 = vst [vmem:[%s14231_s27 + $0x238] sm:$0xff] %v9942_v51  ;;  %v1608_v1 = vld [vmem:[%s12155_s21 + $0x1568] sm:$0xff]  ;;  %v1305_v51 = vld [vmem:[%s12155_s21 + $0xbf0] sm:$0xff] }
 0x491   : > { %8733 = vmatprep.subr.bf16.mxu0 %v11192_v58  ;;  %8804 = vmatprep.subr.bf16.mxu1 %v11448_v33  ;;  %v11683_v32 = vpop.eup %11682  ;;  %v9957_v18 = vmul.f32 %v9845_v56, %v9509_v10  ;;  %v9846_v54 = vadd.f32 1.0, %v11681_v9  ;;  %v1856_v17 = vld [vmem:[%s12155_s21 + $0x1d28] sm:$0xff]  ;;  %v11144_v45 = vcombine.high %v1600_v53, %v1608_v1  ;;  %v11143_v61 = vcombine.low %v1600_v53, %v1608_v1  ;;  %v1025_v9 = vld [vmem:[%s12155_s21 + $0x330] sm:$0xff] }
 0x492   : > { %v9861_v49 = vadd.f32 1.0, %v11683_v32  ;;  %v1864_v4 = vld [vmem:[%s12155_s21 + $0x1d68] sm:$0xff]  ;;  %v1289_v36 = vld [vmem:[%s12155_s21 + $0xb70] sm:$0xff] }
 0x493   : > { %10069 = vst [vmem:[%s14231_s27 + $0x2b0] sm:$0xff] %v9957_v18  ;;  %v9958_v30 = vmul.f32 %v9846_v54, %v9510_v50  ;;  %v11685_v60 = vpop.eup %11684  ;;  %v11400_v19 = vcombine.high %v1856_v17, %v1864_v4  ;;  %v1584_v44 = vld [vmem:[%s12155_s21 + $0x14a8] sm:$0xff]  ;;  %v11399_v58 = vcombine.low %v1856_v17, %v1864_v4  ;;  %v1017_v53 = vld [vmem:[%s12155_s21 + $0x2f0] sm:$0xff]  ;;  %v18239_v17 = vld [vmem:[#allocation56_spill] sm:$0xff] }
 0x494   : > { %8734 = vmatpush2.bf16.msra.mxu0 %v11191_v2  ;;  %8805 = vmatpush2.bf16.msra.mxu1 %v11447_v25  ;;  %v9973_v35 = vmul.f32 %v9861_v49, %v9525_v46  ;;  %v9862_v55 = vadd.f32 1.0, %v11685_v60  ;;  %v1592_v42 = vld [vmem:[%s12155_s21 + $0x14e8] sm:$0xff]  ;;  %v1041_v2 = vld [vmem:[%s12155_s21 + $0x3b0] sm:$0xff] }
 0x495   : > { %8735 = vmatprep.subr.bf16.mxu0 %v11176_v29  ;;  %8806 = vmatprep.subr.bf16.mxu1 %v11432_v20  ;;  %10070 = vst [vmem:[%s14231_s27 + $0x2b8] sm:$0xff] %v9958_v30  ;;  %v1840_v40 = vld [vmem:[%s12155_s21 + $0x1ca8] sm:$0xff]  ;;  %v11128_v33 = vcombine.high %v1584_v44, %v1592_v42  ;;  %v11127_v34 = vcombine.low %v1584_v44, %v1592_v42  ;;  %v1049_v25 = vld [vmem:[%s12155_s21 + $0x3f0] sm:$0xff] }
 0x496   : > { %10085 = vst [vmem:[%s14231_s27 + $0x330] sm:$0x1] %v9973_v35  ;;  %v9974_v57 = vmul.f32 %v9862_v55, %v9526_v13  ;;  %v1848_v52 = vld [vmem:[%s12155_s21 + $0x1ce8] sm:$0xff]  ;;  %v1297_v29 = vld [vmem:[%s12155_s21 + $0xbb0] sm:$0xff]  ;;  %v10586_v20 = vcombine.high %v1041_v2, %v1049_v25  ;;  %v10585_v50 = vcombine.low %v1041_v2, %v1049_v25  ;;  %v10569_v55 = vcombine.low %v1025_v9, %v1033_v37 }
 0x497   : > { %v11384_v41 = vcombine.high %v1840_v40, %v1848_v52  ;;  %v1568_v31 = vld [vmem:[%s12155_s21 + $0x1428] sm:$0xff]  ;;  %v11383_v27 = vcombine.low %v1840_v40, %v1848_v52  ;;  %v10842_v6 = vcombine.high %v1297_v29, %v1305_v51  ;;  %v10841_v54 = vcombine.low %v1297_v29, %v1305_v51  ;;  %v1009_v30 = vld [vmem:[%s12155_s21 + $0x2b0] sm:$0xff]  ;;  %v18243_v51 = vld [vmem:[#allocation63_spill] sm:$0xff] }
 0x498   : > { %8736 = vmatpush2.bf16.msra.mxu0 %v11175_v3  ;;  %8807 = vmatpush2.bf16.msra.mxu1 %v11431_v14  ;;  %10086 = vst [vmem:[%s14231_s27 + $0x338] sm:$0x1] %v9974_v57  ;;  %v1576_v12 = vld [vmem:[%s12155_s21 + $0x1468] sm:$0xff]  ;;  %v10570_v3 = vcombine.high %v1025_v9, %v1033_v37  ;;  %v10826_v14 = vcombine.high %v1281_v8, %v1289_v36  ;;  %v1265_v60 = vld [vmem:[%s12155_s21 + $0xab0] sm:$0xff] }
 0x499   : > { %8737 = vmatprep.subr.bf16.mxu0 %v11160_v22  ;;  %8808 = vmatprep.subr.bf16.mxu1 %v11416_v5  ;;  %v1824_v48 = vld [vmem:[%s12155_s21 + $0x1c28] sm:$0xff]  ;;  %v11112_v11 = vcombine.high %v1568_v31, %v1576_v12  ;;  %v11111_v10 = vcombine.low %v1568_v31, %v1576_v12  ;;  %v18236_v22 = vld [vmem:[#allocation30_spill] sm:$0xff] }
 0x49a   : > { %v1832_v21 = vld [vmem:[%s12155_s21 + $0x1c68] sm:$0xff]  ;;  %v1273_v35 = vld [vmem:[%s12155_s21 + $0xaf0] sm:$0xff] }
 0x49b   : > { %v11368_v0 = vcombine.high %v1824_v48, %v1832_v21  ;;  %v11367_v56 = vcombine.low %v1824_v48, %v1832_v21  ;;  %v18237_v5 = vld [vmem:[#allocation49_spill] sm:$0xff]  ;;  %v18238_v1 = vld [vmem:[#allocation54_spill] sm:$0xff] }
 0x49c   : > { %8738 = vmatpush2.bf16.msra.mxu0 %v11159_v15  ;;  %8809 = vmatpush2.bf16.msra.mxu1 %v11415_v24  ;;  %v10825_v15 = vcombine.low %v1281_v8, %v1289_v36  ;;  %v993_v44 = vld [vmem:[%s12155_s21 + $0x230] sm:$0xff] }
 0x49d   : > { %8739 = vmatprep.subr.bf16.mxu0 %v11144_v45  ;;  %8810 = vmatprep.subr.bf16.mxu1 %v11400_v19  ;;  %v10554_v45 = vcombine.high %v1009_v30, %v1017_v53  ;;  %v10810_v19 = vcombine.high %v1265_v60, %v1273_v35  ;;  %v1001_v42 = vld [vmem:[%s12155_s21 + $0x270] sm:$0xff] }
 0x49e   : > { %v1249_v40 = vld [vmem:[%s12155_s21 + $0xa30] sm:$0xff]  ;;  %v10538_v48 = vcombine.high %v993_v44, %v1001_v42 }
 0x49f   : > { %v1257_v52 = vld [vmem:[%s12155_s21 + $0xa70] sm:$0xff] }
 0x4a0   : > { %8740 = vmatpush2.bf16.msra.mxu0 %v11143_v61  ;;  %8811 = vmatpush2.bf16.msra.mxu1 %v11399_v58  ;;  %v10794_v21 = vcombine.high %v1249_v40, %v1257_v52  ;;  %v1233_v2 = vld [vmem:[%s12155_s21 + $0x9b0] sm:$0xff] }
 0x4a1   : > { %8741 = vmatprep.subr.bf16.mxu0 %v11128_v33  ;;  %8812 = vmatprep.subr.bf16.mxu1 %v11384_v41  ;;  %v10553_v33 = vcombine.low %v1009_v30, %v1017_v53  ;;  %v10809_v41 = vcombine.low %v1265_v60, %v1273_v35  ;;  %v1241_v25 = vld [vmem:[%s12155_s21 + $0x9f0] sm:$0xff] }
 0x4a2   : > { %v16020_v32 = vpop.f32.mrf.mxu0  ;;  %v16022_v18 = vpop.f32.mrf.mxu1  ;;  %v18242_v29 = vld [vmem:[#allocation62_spill] sm:$0xff]  ;;  %v10778_v36 = vcombine.high %v1233_v2, %v1241_v25  ;;  %v10777_v35 = vcombine.low %v1233_v2, %v1241_v25 }
 0x4a4   : > { %8742 = vmatpush2.bf16.msra.mxu0 %v11127_v34  ;;  %8813 = vmatpush2.bf16.msra.mxu1 %v11383_v27  ;;  %v16024_v46 = vpop.f32.mrf.mxu0  ;;  %v16026_v49 = vpop.f32.mrf.mxu1  ;;  %v977_v34 = vld [vmem:[%s12155_s21 + $0x1b0] sm:$0xff] }
 0x4a5   : > { %8743 = vmatprep.subr.bf16.mxu0 %v11112_v11  ;;  %8814 = vmatprep.subr.bf16.mxu1 %v11368_v0  ;;  %v18240_v27 = vld [vmem:[#allocation38_spill] sm:$0xff]  ;;  %v18241_v11 = vld [vmem:[#allocation40_spill] sm:$0xff] }
 0x4a6   : > { %v16036_v4 = vpop.f32.mrf.mxu0  ;;  %v16038_v13 = vpop.f32.mrf.mxu1  ;;  %v985_v0 = vld [vmem:[%s12155_s21 + $0x1f0] sm:$0xff] }
 0x4a7   : > { %v10522_v8 = vcombine.high %v977_v34, %v985_v0  ;;  %v10521_v60 = vcombine.low %v977_v34, %v985_v0 }
 0x4a8   : > { %8744 = vmatpush2.bf16.msra.mxu0 %v11111_v10  ;;  %8815 = vmatpush2.bf16.msra.mxu1 %v11367_v56  ;;  %v16040_v24 = vpop.f32.mrf.mxu0  ;;  %v16042_v57 = vpop.f32.mrf.mxu1 }
 0x4a9   : > { %8855 = vmatprep.subr.bf16.mxu0 %v10586_v20  ;;  %8926 = vmatprep.subr.bf16.mxu1 %v10842_v6  ;;  %v10537_v20 = vcombine.low %v993_v44, %v1001_v42  ;;  %v10793_v6 = vcombine.low %v1249_v40, %v1257_v52  ;;  %v945_v44 = vld [vmem:[%s12155_s21 + $0xb0] sm:$0xff]  ;;  %v18244_v42 = vld [vmem:[#allocation64_spill] sm:$0xff]  ;;  %v18245_v40 = vld [vmem:[#allocation65_spill] sm:$0xff] }
 0x4aa   : > { %v953_v52 = vld [vmem:[%s12155_s21 + $0xf0] sm:$0xff] }
 0x4ab   : > { %8746 = vmatmul.mubr.bf16.vlgmr.msra.gmra.mxu0 %v18236_v22  ;;  %8817 = vmatmul.mubr.bf16.vlgmr.msra.gmra.mxu1 %v18237_v5  ;;  %v16048_v61 = vpop.f32.mrf.mxu0  ;;  %v16050_v58 = vpop.f32.mrf.mxu1  ;;  %v1161_v5 = vld [vmem:[%s12155_s21 + $0x770] sm:$0xff] }
 0x4ac   : > { %8755 = vmatprep.mubr.bf16.mxu0 %v18238_v1  ;;  %8826 = vmatprep.mubr.bf16.mxu1 %v18239_v17  ;;  %v1425_v17 = vld [vmem:[%s12155_s21 + $0xfb0] sm:$0xff] }
 0x4ad   : > { %8856 = vmatpush1.bf16.msra.mxu0 %v10585_v50  ;;  %8927 = vmatpush1.bf16.msra.mxu1 %v10841_v54  ;;  %v16052_v31 = vpop.f32.mrf.mxu0  ;;  %v16054_v12 = vpop.f32.mrf.mxu1  ;;  %v961_v50 = vld [vmem:[%s12155_s21 + $0x130] sm:$0xff] }
 0x4ae   : > { %8857 = vmatprep.subr.bf16.mxu0 %v10570_v3  ;;  %8928 = vmatprep.subr.bf16.mxu1 %v10826_v14  ;;  %v969_v54 = vld [vmem:[%s12155_s21 + $0x170] sm:$0xff] }
 0x4af   : > { %v16064_v10 = vpop.f32.mrf.mxu0  ;;  %v16066_v56 = vpop.f32.mrf.mxu1  ;;  %v1217_v3 = vld [vmem:[%s12155_s21 + $0x930] sm:$0xff]  ;;  %v10505_v2 = vcombine.low %v961_v50, %v969_v54 }
 0x4b0   : > { %v1225_v14 = vld [vmem:[%s12155_s21 + $0x970] sm:$0xff] }
 0x4b1   : > { %8858 = vmatpush1.bf16.msra.mxu0 %v10569_v55  ;;  %8929 = vmatpush1.bf16.msra.mxu1 %v10825_v15  ;;  %v16068_v9 = vpop.f32.mrf.mxu0  ;;  %v16070_v37 = vpop.f32.mrf.mxu1  ;;  %v10761_v25 = vcombine.low %v1217_v3, %v1225_v14  ;;  %v1417_v22 = vld [vmem:[%s12155_s21 + $0xf70] sm:$0xff] }
 0x4b2   : > { %8859 = vmatprep.subr.bf16.mxu0 %v10554_v45  ;;  %8930 = vmatprep.subr.bf16.mxu1 %v10810_v19  ;;  %v10506_v45 = vcombine.high %v961_v50, %v969_v54  ;;  %v10762_v19 = vcombine.high %v1217_v3, %v1225_v14  ;;  %v10489_v50 = vcombine.low %v945_v44, %v953_v52 }
 0x4b3   : > { %8756 = vmatmul.mubr.bf16.gmra.mxu0 %v18240_v27  ;;  %8827 = vmatmul.mubr.bf16.gmra.mxu1 %v18241_v11  ;;  %v18252_v11 = vld [vmem:[#allocation66_spill] sm:$0xff] }
 0x4b4   : > { %8765 = vmatprep.mubr.bf16.mxu0 %v18242_v29  ;;  %8836 = vmatprep.mubr.bf16.mxu1 %v18243_v51  ;;  %v16076_v30 = vpop.f32.mrf.mxu0  ;;  %v16078_v53 = vpop.f32.mrf.mxu1  ;;  %v18251_v29 = vld [vmem:[#allocation12_spill] sm:$0xff]  ;;  %v1177_v27 = vld [vmem:[%s12155_s21 + $0x7f0] sm:$0xff] }
 0x4b5   : > { %8860 = vmatpush1.bf16.msra.mxu0 %v10553_v33  ;;  %8931 = vmatpush1.bf16.msra.mxu1 %v10809_v41  ;;  %v1201_v33 = vld [vmem:[%s12155_s21 + $0x8b0] sm:$0xff] }
 0x4b6   : > { %8861 = vmatprep.subr.bf16.mxu0 %v10538_v48  ;;  %8932 = vmatprep.subr.bf16.mxu1 %v10794_v21  ;;  %v16080_v55 = vpop.f32.mrf.mxu0  ;;  %v16082_v15 = vpop.f32.mrf.mxu1  ;;  %v1209_v41 = vld [vmem:[%s12155_s21 + $0x8f0] sm:$0xff]  ;;  %v18246_v48 = vld [vmem:[#allocation13_spill] sm:$0xff]  ;;  %v18247_v21 = vld [vmem:[#allocation15_spill] sm:$0xff] }
 0x4b7   : > { %v10745_v54 = vcombine.low %v1201_v33, %v1209_v41 }
 0x4b8   : > { %v16092_v34 = vpop.f32.mrf.mxu0  ;;  %v16094_v0 = vpop.f32.mrf.mxu1 }
 0x4b9   : > { %8862 = vmatpush1.bf16.msra.mxu0 %v10537_v20  ;;  %8933 = vmatpush1.bf16.msra.mxu1 %v10793_v6 }
 0x4ba   : > { %8863 = vmatprep.subr.bf16.mxu0 %v10522_v8  ;;  %8934 = vmatprep.subr.bf16.mxu1 %v10778_v36  ;;  %v16096_v20 = vpop.f32.mrf.mxu0  ;;  %v16098_v6 = vpop.f32.mrf.mxu1  ;;  %v10490_v8 = vcombine.high %v945_v44, %v953_v52  ;;  %v10746_v36 = vcombine.high %v1201_v33, %v1209_v41  ;;  %v18254_v44 = vld [vmem:[#allocation83_spill] sm:$0xff] }
 0x4bb   : > { %8766 = vmatmul.mubr.bf16.gmra.mxu0 %v18244_v42  ;;  %8837 = vmatmul.mubr.bf16.gmra.mxu1 %v18245_v40  ;;  %18248 = vst [vmem:[#allocation72_spill] sm:$0xff] %v16098_v6  ;;  %v1185_v40 = vld [vmem:[%s12155_s21 + $0x830] sm:$0xff] }
 0x4bc   : > { %8775 = vmatprep.mubr.bf16.mxu0 %v18246_v48  ;;  %8846 = vmatprep.mubr.bf16.mxu1 %v18247_v21  ;;  %v929_v48 = vld [vmem:[%s12155_s21 + $0x30] sm:$0xff] }
 0x4bd   : > { %8864 = vmatpush1.bf16.msra.mxu0 %v10521_v60  ;;  %8935 = vmatpush1.bf16.msra.mxu1 %v10777_v35  ;;  %v937_v21 = vld [vmem:[%s12155_s21 + $0x70] sm:$0xff]  ;;  %v16104_v51 = vpop.f32.mrf.mxu0  ;;  %v16106_v60 = vpop.f32.mrf.mxu1 }
 0x4be   : > { %8865 = vmatprep.subr.bf16.mxu0 %v10506_v45  ;;  %8936 = vmatprep.subr.bf16.mxu1 %v10762_v19  ;;  %v1193_v42 = vld [vmem:[%s12155_s21 + $0x870] sm:$0xff]  ;;  %18249 = vst [vmem:[#allocation73_spill] sm:$0xff] %v16106_v60  ;;  %v10474_v35 = vcombine.high %v929_v48, %v937_v21  ;;  %v10473_v41 = vcombine.low %v929_v48, %v937_v21 }
 0x4bf   : > { %v16108_v3 = vpop.f32.mrf.mxu0  ;;  %v16110_v14 = vpop.f32.mrf.mxu1  ;;  %v10730_v45 = vcombine.high %v1185_v40, %v1193_v42  ;;  %v1169_v19 = vld [vmem:[%s12155_s21 + $0x7b0] sm:$0xff] }
 0x4c0   : > { %18250 = vst [vmem:[#allocation34_spill] sm:$0xff] %v16110_v14  ;;  %v1145_v48 = vld [vmem:[%s12155_s21 + $0x6f0] sm:$0xff] }
 0x4c1   : > { %8866 = vmatpush1.bf16.msra.mxu0 %v10505_v2  ;;  %8937 = vmatpush1.bf16.msra.mxu1 %v10761_v25  ;;  %v1433_v2 = vld [vmem:[%s12155_s21 + $0xff0] sm:$0xff]  ;;  %v8355_v52 = vpop.f32.mrf.mxu0  ;;  %v8426_v33 = vpop.f32.mrf.mxu1 }
 0x4c2   : > { %8867 = vmatprep.subr.bf16.mxu0 %v10490_v8  ;;  %8938 = vmatprep.subr.bf16.mxu1 %v10746_v36  ;;  %v18253_v25 = vld [vmem:[#allocation82_spill] sm:$0xff]  ;;  %v10729_v8 = vcombine.low %v1185_v40, %v1193_v42  ;;  %v10970_v1 = vcombine.high %v1425_v17, %v1433_v2 }
 0x4c3   : > { %8776 = vmatmul.mubr.bf16.gmra.mxu0 %v18251_v29  ;;  %8847 = vmatmul.mubr.bf16.gmra.mxu1 %v18252_v11  ;;  %v8356_v36 = vpop.f32.mrf.mxu0  ;;  %v8427_v11 = vpop.f32.mrf.mxu1  ;;  %v10714_v29 = vcombine.high %v1169_v19, %v1177_v27  ;;  %v1137_v40 = vld [vmem:[%s12155_s21 + $0x6b0] sm:$0xff] }
 0x4c4   : > { %8887 = vmatprep.mubr.bf16.mxu0 %v18253_v25  ;;  %8958 = vmatprep.mubr.bf16.mxu1 %v18254_v44  ;;  %v1153_v25 = vld [vmem:[%s12155_s21 + $0x730] sm:$0xff]  ;;  %v10681_v33 = vcombine.low %v1137_v40, %v1145_v48 }
 0x4c5   : > { %8868 = vmatpush1.bf16.msra.mxu0 %v10489_v50  ;;  %8939 = vmatpush1.bf16.msra.mxu1 %v10745_v54  ;;  %v1409_v44 = vld [vmem:[%s12155_s21 + $0xf30] sm:$0xff]  ;;  %v10713_v50 = vcombine.low %v1169_v19, %v1177_v27  ;;  %v10969_v54 = vcombine.low %v1425_v17, %v1433_v2  ;;  %v10698_v42 = vcombine.high %v1153_v25, %v1161_v5 }
 0x4c6   : > { %8869 = vmatprep.subr.bf16.mxu0 %v10474_v35  ;;  %8940 = vmatprep.subr.bf16.mxu1 %v10730_v45  ;;  %v10954_v11 = vcombine.high %v1409_v44, %v1417_v22  ;;  %v1393_v21 = vld [vmem:[%s12155_s21 + $0xeb0] sm:$0xff]  ;;  %v10697_v45 = vcombine.low %v1153_v25, %v1161_v5  ;;  %v10953_v52 = vcombine.low %v1409_v44, %v1417_v22 }
 0x4c7   : > { %v1401_v35 = vld [vmem:[%s12155_s21 + $0xef0] sm:$0xff]  ;;  %v10682_v17 = vcombine.high %v1137_v40, %v1145_v48 }
 0x4c8   : > { %v1121_v27 = vld [vmem:[%s12155_s21 + $0x630] sm:$0xff] }
 0x4c9   : > { %8870 = vmatpush1.bf16.msra.mxu0 %v10473_v41  ;;  %8941 = vmatpush1.bf16.msra.mxu1 %v10729_v8  ;;  %v1377_v19 = vld [vmem:[%s12155_s21 + $0xe30] sm:$0xff]  ;;  %v10937_v41 = vcombine.low %v1393_v21, %v1401_v35 }
 0x4ca   : > { %8871 = vmatprep.subr.bf16.mxu0 %v10714_v29  ;;  %8942 = vmatprep.subr.bf16.mxu1 %v10970_v1  ;;  %v10938_v1 = vcombine.high %v1393_v21, %v1401_v35  ;;  %v1129_v29 = vld [vmem:[%s12155_s21 + $0x670] sm:$0xff] }
 0x4cb   : > { %v1385_v2 = vld [vmem:[%s12155_s21 + $0xe70] sm:$0xff]  ;;  %v10666_v22 = vcombine.high %v1121_v27, %v1129_v29 }
 0x4cc   : > { %v10922_v5 = vcombine.high %v1377_v19, %v1385_v2  ;;  %v1105_v25 = vld [vmem:[%s12155_s21 + $0x5b0] sm:$0xff] }
 0x4cd   : > { %8872 = vmatpush2.bf16.msra.mxu0 %v10713_v50  ;;  %8943 = vmatpush2.bf16.msra.mxu1 %v10969_v54  ;;  %v1113_v44 = vld [vmem:[%s12155_s21 + $0x5f0] sm:$0xff]  ;;  %v10665_v50 = vcombine.low %v1121_v27, %v1129_v29  ;;  %v10921_v54 = vcombine.low %v1377_v19, %v1385_v2 }
 0x4ce   : > { %8873 = vmatprep.subr.bf16.mxu0 %v10698_v42  ;;  %8944 = vmatprep.subr.bf16.mxu1 %v10954_v11  ;;  %v1361_v8 = vld [vmem:[%s12155_s21 + $0xdb0] sm:$0xff]  ;;  %v10650_v42 = vcombine.high %v1105_v25, %v1113_v44 }
 0x4cf   : > { %v1369_v36 = vld [vmem:[%s12155_s21 + $0xdf0] sm:$0xff] }
 0x4d0   : > { %v10906_v11 = vcombine.high %v1361_v8, %v1369_v36  ;;  %v1089_v40 = vld [vmem:[%s12155_s21 + $0x530] sm:$0xff] }
 0x4d1   : > { %8874 = vmatpush2.bf16.msra.mxu0 %v10697_v45  ;;  %8945 = vmatpush2.bf16.msra.mxu1 %v10953_v52  ;;  %v1097_v48 = vld [vmem:[%s12155_s21 + $0x570] sm:$0xff]  ;;  %v10649_v45 = vcombine.low %v1105_v25, %v1113_v44  ;;  %v10905_v52 = vcombine.low %v1361_v8, %v1369_v36 }
 0x4d2   : > { %8875 = vmatprep.subr.bf16.mxu0 %v10682_v17  ;;  %8946 = vmatprep.subr.bf16.mxu1 %v10938_v1  ;;  %v1345_v21 = vld [vmem:[%s12155_s21 + $0xd30] sm:$0xff]  ;;  %v10634_v17 = vcombine.high %v1089_v40, %v1097_v48 }
 0x4d3   : > { %v1353_v35 = vld [vmem:[%s12155_s21 + $0xd70] sm:$0xff] }
 0x4d4   : > { %v10890_v1 = vcombine.high %v1345_v21, %v1353_v35  ;;  %v1073_v27 = vld [vmem:[%s12155_s21 + $0x4b0] sm:$0xff] }
 0x4d5   : > { %8876 = vmatpush2.bf16.msra.mxu0 %v10681_v33  ;;  %8947 = vmatpush2.bf16.msra.mxu1 %v10937_v41  ;;  %v1081_v29 = vld [vmem:[%s12155_s21 + $0x4f0] sm:$0xff]  ;;  %v1948_v33 = vld [vmem:[%s13921_s15 + $0x8] sm:$0xff]  ;;  %v10633_v41 = vcombine.low %v1089_v40, %v1097_v48 }
 0x4d6   : > { %8877 = vmatprep.subr.bf16.mxu0 %v10666_v22  ;;  %8948 = vmatprep.subr.bf16.mxu1 %v10922_v5  ;;  %v1329_v19 = vld [vmem:[%s12155_s21 + $0xcb0] sm:$0xff]  ;;  %v10889_v22 = vcombine.low %v1345_v21, %v1353_v35  ;;  %v10618_v5 = vcombine.high %v1073_v27, %v1081_v29 }
 0x4d7   : > { %v1337_v2 = vld [vmem:[%s12155_s21 + $0xcf0] sm:$0xff] }
 0x4d8   : > { %v10874_v25 = vcombine.high %v1329_v19, %v1337_v2  ;;  %v1057_v44 = vld [vmem:[%s12155_s21 + $0x430] sm:$0xff]  ;;  %v10873_v40 = vcombine.low %v1329_v19, %v1337_v2 }
 0x4d9   : > { %8878 = vmatpush2.bf16.msra.mxu0 %v10665_v50  ;;  %8949 = vmatpush2.bf16.msra.mxu1 %v10921_v54  ;;  %v1065_v8 = vld [vmem:[%s12155_s21 + $0x470] sm:$0xff]  ;;  %v18255_v54 = vld [vmem:[#allocation52_spill] sm:$0xff] }
 0x4da   : > { %8879 = vmatprep.subr.bf16.mxu0 %v10650_v42  ;;  %8950 = vmatprep.subr.bf16.mxu1 %v10906_v11  ;;  %v1313_v36 = vld [vmem:[%s12155_s21 + $0xc30] sm:$0xff]  ;;  %v16150_v42 = vrot.slane %v1948_v33, %v18255_v54  ;;  %v10617_v11 = vcombine.low %v1073_v27, %v1081_v29  ;;  %v10602_v35 = vcombine.high %v1057_v44, %v1065_v8 }
 0x4db   : > { %v1321_v50 = vld [vmem:[%s12155_s21 + $0xc70] sm:$0xff] }
 0x4dc   : > { %v18256_v48 = vld [vmem:[#allocation50_spill] sm:$0xff]  ;;  %v8322_v27 = vadd.f32 %v16020_v32, %v16150_v42 }
 0x4dd   : > { %8880 = vmatpush2.bf16.msra.mxu0 %v10649_v45  ;;  %8951 = vmatpush2.bf16.msra.mxu1 %v10905_v52  ;;  %v16153_v21 = vrot.slane %v1948_v33, %v18256_v48  ;;  %v10858_v45 = vcombine.high %v1313_v36, %v1321_v50  ;;  %v16156_v52 = vld [vmem:[%s12155_s21 + $0x13b0] sm:$0xff]  ;;  %v10601_v33 = vcombine.low %v1057_v44, %v1065_v8 }
 0x4de   : > { %8881 = vmatprep.subr.bf16.mxu0 %v10634_v17  ;;  %8952 = vmatprep.subr.bf16.mxu1 %v10890_v1  ;;  %v16159_v17 = vld [vmem:[%s12155_s21 + $0x13f0] sm:$0xff] }
 0x4df   : > { %v16162_v1 = vld [vmem:[%s12155_s21 + $0x1bb0] sm:$0xff]  ;;  %v8324_v48 = vadd.f32 %v16024_v46, %v16153_v21  ;;  %v11097_v44 = vcombine.low %v16156_v52, %v16159_v17 }
 0x4e0   : > { %v16170_v29 = vld [vmem:[%s12155_s21 + $0x1330] sm:$0xff] }
 0x4e1   : > { %8882 = vmatpush2.bf16.msra.mxu0 %v10633_v41  ;;  %8953 = vmatpush2.bf16.msra.mxu1 %v10889_v22  ;;  %v16165_v41 = vld [vmem:[%s12155_s21 + $0x1bf0] sm:$0xff]  ;;  %v10857_v22 = vcombine.low %v1313_v36, %v1321_v50 }
 0x4e2   : > { %8883 = vmatprep.subr.bf16.mxu0 %v10618_v5  ;;  %8954 = vmatprep.subr.bf16.mxu1 %v10874_v25  ;;  %v16173_v19 = vld [vmem:[%s12155_s21 + $0x1370] sm:$0xff]  ;;  %v11098_v5 = vcombine.high %v16156_v52, %v16159_v17  ;;  %v11354_v8 = vcombine.high %v16162_v1, %v16165_v41  ;;  %v11353_v46 = vcombine.low %v16162_v1, %v16165_v41 }
 0x4e3   : > { %v16176_v2 = vld [vmem:[%s12155_s21 + $0x1b30] sm:$0xff]  ;;  %v8393_v17 = vadd.f32 %v16022_v18, %v8322_v27  ;;  %v8395_v1 = vadd.f32 %v16026_v49, %v8324_v48  ;;  %v8328_v27 = vadd.f32 %v16040_v24, %v16153_v21 }
 0x4e4   : > { %v16181_v25 = vld [vmem:[%s12155_s21 + $0x1b70] sm:$0xff] }
 0x4e5   : > { %8884 = vmatpush2.bf16.msra.mxu0 %v10617_v11  ;;  %8955 = vmatpush2.bf16.msra.mxu1 %v10873_v40  ;;  %v16184_v32 = vld [vmem:[%s12155_s21 + $0x12b0] sm:$0xff]  ;;  %v8326_v11 = vadd.f32 %v16036_v4, %v16150_v42  ;;  %v11338_v4 = vcombine.high %v16176_v2, %v16181_v25 }
 0x4e6   : > { %v16187_v54 = vld [vmem:[%s12155_s21 + $0x12f0] sm:$0xff]  ;;  %8885 = vmatprep.subr.bf16.mxu0 %v10602_v35  ;;  %8956 = vmatprep.subr.bf16.mxu1 %v10858_v45  ;;  %v11082_v35 = vcombine.high %v16170_v29, %v16173_v19  ;;  %v8463_v39 = vpop.f32.mrf.mxu0  ;;  %v8534_v43 = vpop.f32.mrf.mxu1 }
 0x4e7   : > { %v16196_v36 = vld [vmem:[%s12155_s21 + $0x1ab0] sm:$0xff]  ;;  %v8464_v28 = vadd.f32 %v8463_v39, %v8393_v17  ;;  %v8397_v18 = vadd.f32 %v16038_v13, %v8326_v11  ;;  %v18258_v17 = vld [vmem:[#allocation85_spill] sm:$0xff]  ;;  %v18259_v39 = vld [vmem:[#allocation32_spill] sm:$0xff] }
 0x4e8   : > { %v16199_v50 = vld [vmem:[%s12155_s21 + $0x1af0] sm:$0xff]  ;;  %v8465_v47 = vpop.f32.mrf.mxu0  ;;  %v8536_v60 = vpop.f32.mrf.mxu1 }
 0x4e9   : > { %v16210_v45 = vld [vmem:[%s12155_s21 + $0x1230] sm:$0xff]  ;;  %8886 = vmatpush2.bf16.msra.mxu0 %v10601_v33  ;;  %8957 = vmatpush2.bf16.msra.mxu1 %v10857_v22  ;;  %v16252_v48 = vadd.f32 %v8534_v43, %v8464_v28  ;;  %v8466_v13 = vadd.f32 %v8465_v47, %v8395_v1  ;;  %v8399_v28 = vadd.f32 %v16042_v57, %v8328_v27 }
 0x4ea   : > { %v16213_v52 = vld [vmem:[%s12155_s21 + $0x1270] sm:$0xff]  ;;  %8997 = vmatprep.subr.bf16.mxu0 %v11098_v5  ;;  %9068 = vmatprep.subr.bf16.mxu1 %v11354_v8  ;;  %v8332_v5 = vadd.f32 %v16048_v61, %v16150_v42  ;;  %v18257_v8 = vld [vmem:[#allocation84_spill] sm:$0xff]  ;;  %v8467_v49 = vpop.f32.mrf.mxu0  ;;  %v8538_v6 = vpop.f32.mrf.mxu1  ;;  %v8334_v61 = vadd.f32 %v16052_v31, %v16153_v21  ;;  %v8336_v43 = vadd.f32 %v16064_v10, %v16150_v42 }
 0x4eb   : > { %v16223_v41 = vld [vmem:[%s12155_s21 + $0x1a30] sm:$0xff]  ;;  %v9543_v1 = vmul.f32 0.70710677, %v16252_v48 }
 0x4ec   : > { %v16226_v40 = vld [vmem:[%s12155_s21 + $0x1a70] sm:$0xff]  ;;  %8888 = vmatmul.mubr.bf16.vlgmr.msra.gmra.mxu0 %v18257_v8  ;;  %8959 = vmatmul.mubr.bf16.vlgmr.msra.gmra.mxu1 %v18258_v17  ;;  %v8469_v31 = vpop.f32.mrf.mxu0  ;;  %v8540_v47 = vpop.f32.mrf.mxu1 }
 0x4ed   : > { %v16238_v22 = vld [vmem:[%s12155_s21 + $0x11b0] sm:$0xff]  ;;  %8897 = vmatprep.mubr.bf16.mxu0 %v18259_v39  ;;  %8998 = vmatpush1.bf16.msra.mxu0 %v11097_v44  ;;  %v16273_v39 = vadd.f32 %v8536_v60, %v8466_v13  ;;  %v8403_v60 = vadd.f32 %v16050_v58, %v8332_v5  ;;  %11686 = verf.f32 %v9543_v1  ;;  %v8470_v57 = vadd.f32 %v8469_v31, %v8399_v28 }
 0x4ee   : > { %v16241_v14 = vld [vmem:[%s12155_s21 + $0x11f0] sm:$0xff]  ;;  %9069 = vmatpush1.bf16.msra.mxu1 %v11353_v46  ;;  %8999 = vmatprep.subr.bf16.mxu0 %v11082_v35  ;;  %v8473_v10 = vpop.f32.mrf.mxu0  ;;  %v8544_v27 = vpop.f32.mrf.mxu1  ;;  %v8405_v5 = vadd.f32 %v16054_v12, %v8334_v61  ;;  %v18262_v13 = vcombine.low %v16176_v2, %v16181_v25  ;;  %v8407_v12 = vadd.f32 %v16066_v56, %v8336_v43 }
 0x4ef   : > { %v16257_v24 = vld [vmem:[%s12155_s21 + $0x19b0] sm:$0xff]  ;;  %9070 = vmatprep.subr.bf16.mxu1 %v11338_v4  ;;  %v9544_v46 = vmul.f32 0.70710677, %v16273_v39  ;;  %v8474_v28 = vadd.f32 %v8473_v10, %v8403_v60  ;;  %v8338_v61 = vadd.f32 %v16068_v9, %v16153_v21  ;;  %v18264_v2 = vcombine.high %v16196_v36, %v16199_v50 }
 0x4f0   : > { %v16260_v11 = vld [vmem:[%s12155_s21 + $0x19f0] sm:$0xff]  ;;  %v8475_v25 = vpop.f32.mrf.mxu0  ;;  %v8546_v60 = vpop.f32.mrf.mxu1 }
 0x4f1   : > { %v18260_v33 = vld [vmem:[#allocation46_spill] sm:$0xff]  ;;  %v11289_v44 = vcombine.low %v16257_v24, %v16260_v11  ;;  %v11290_v35 = vcombine.high %v16257_v24, %v16260_v11  ;;  %11688 = verf.f32 %v9544_v46  ;;  %v8342_v46 = vadd.f32 %v16076_v30, %v16150_v42 }
 0x4f2   : > { %8968 = vmatprep.mubr.bf16.mxu1 %v18260_v33  ;;  %v8468_v33 = vadd.f32 %v8467_v49, %v8397_v18  ;;  %v16276_v17 = vld [vmem:[%s12155_s21 + $0x1130] sm:$0xff]  ;;  %9071 = vmatpush1.bf16.msra.mxu1 %v18262_v13  ;;  %v16329_v56 = vadd.f32 %v8544_v27, %v8474_v28  ;;  %v8476_v9 = vadd.f32 %v8475_v25, %v8405_v5  ;;  %v8477_v30 = vpop.f32.mrf.mxu0  ;;  %v8548_v10 = vpop.f32.mrf.mxu1 }
 0x4f3   : > { %v16279_v8 = vld [vmem:[%s12155_s21 + $0x1170] sm:$0xff]  ;;  %9072 = vmatprep.subr.bf16.mxu1 %v18264_v2  ;;  %v18265_v28 = vcombine.low %v16184_v32, %v16187_v54  ;;  %v8478_v25 = vadd.f32 %v8477_v30, %v8407_v12 }
 0x4f4   : > { %v16288_v18 = vadd.f32 %v8538_v6, %v8468_v33  ;;  %v11018_v58 = vcombine.high %v16276_v17, %v16279_v8  ;;  %v16297_v49 = vld [vmem:[%s12155_s21 + $0x1930] sm:$0xff]  ;;  %v18261_v33 = vcombine.low %v16170_v29, %v16173_v19  ;;  %v16319_v29 = vadd.f32 %v8540_v47, %v8470_v57  ;;  %8898 = vmatmul.mubr.bf16.gmra.mxu0 %v18061_v7 }
 0x4f5   : > { %v16308_v1 = vld [vmem:[%s12155_s21 + $0x1970] sm:$0xff]  ;;  %v18263_v19 = vcombine.high %v16184_v32, %v16187_v54  ;;  %8969 = vmatmul.mubr.bf16.gmra.mxu1 %v18062_v23  ;;  %8907 = vmatprep.mubr.bf16.mxu0 %v13400_v62  ;;  %v9575_v13 = vmul.f32 0.70710677, %v16329_v56  ;;  %v16357_v2 = vadd.f32 %v8546_v60, %v8476_v9  ;;  %v18268_v32 = vcombine.high %v16223_v41, %v16226_v40  ;;  %v8479_v54 = vpop.f32.mrf.mxu0 }
 0x4f6   : > { %v9559_v6 = vmul.f32 0.70710677, %v16288_v18  ;;  %9000 = vmatpush1.bf16.msra.mxu0 %v18261_v33  ;;  %v16311_v31 = vld [vmem:[%s12155_s21 + $0x10b0] sm:$0xff]  ;;  %v9560_v57 = vmul.f32 0.70710677, %v16319_v29  ;;  %8978 = vmatprep.mubr.bf16.mxu1 %v13402_v63  ;;  %v8344_v33 = vadd.f32 %v16080_v55, %v16153_v21  ;;  %v18267_v55 = vcombine.high %v16210_v45, %v16213_v52 }
 0x4f7   : > { %v16314_v4 = vld [vmem:[%s12155_s21 + $0x10f0] sm:$0xff]  ;;  %9001 = vmatprep.subr.bf16.mxu0 %v18263_v19  ;;  %v18266_v19 = vcombine.low %v16196_v36, %v16199_v50  ;;  %v8550_v36 = vpop.f32.mrf.mxu1  ;;  %v8413_v60 = vadd.f32 %v16078_v53, %v8342_v46  ;;  %v8346_v9 = vadd.f32 %v16092_v34, %v16150_v42  ;;  %v8483_v30 = vpop.f32.mrf.mxu0  ;;  %v18270_v34 = vcombine.low %v16223_v41, %v16226_v40 }
 0x4f8   : > { %11690 = verf.f32 %v9559_v6  ;;  %v16334_v43 = vld [vmem:[%s12155_s21 + $0x18b0] sm:$0xff]  ;;  %v8409_v6 = vadd.f32 %v16070_v37, %v8338_v61  ;;  %v11001_v50 = vcombine.low %v16311_v31, %v16314_v4  ;;  %v9576_v37 = vmul.f32 0.70710677, %v16357_v2 }
 0x4f9   : > { %v16337_v47 = vld [vmem:[%s12155_s21 + $0x18f0] sm:$0xff]  ;;  %9073 = vmatpush1.bf16.msra.mxu1 %v18266_v19  ;;  %11692 = verf.f32 %v9560_v57  ;;  %v16378_v61 = vadd.f32 %v8548_v10, %v8478_v25  ;;  %v8415_v53 = vadd.f32 %v16082_v15, %v8344_v33  ;;  %v18269_v10 = vcombine.low %v16210_v45, %v16213_v52  ;;  %v8485_v40 = vpop.f32.mrf.mxu0 }
 0x4fa   : > { %9002 = vmatpush1.bf16.msra.mxu0 %v18265_v28  ;;  %v16360_v27 = vld [vmem:[%s12155_s21 + $0x1030] sm:$0xff]  ;;  %9074 = vmatprep.subr.bf16.mxu1 %v18268_v32  ;;  %v11257_v12 = vcombine.low %v16334_v43, %v16337_v47  ;;  %11694 = verf.f32 %v9575_v13  ;;  %v8480_v57 = vadd.f32 %v8479_v54, %v8409_v6  ;;  %v8554_v28 = vpop.f32.mrf.mxu1  ;;  %v11258_v19 = vcombine.high %v16334_v43, %v16337_v47 }
 0x4fb   : > { %v16363_v5 = vld [vmem:[%s12155_s21 + $0x1070] sm:$0xff]  ;;  %9003 = vmatprep.subr.bf16.mxu0 %v18267_v55  ;;  %11696 = verf.f32 %v9576_v37  ;;  %v9591_v46 = vmul.f32 0.70710677, %v16378_v61  ;;  %v8484_v6 = vadd.f32 %v8483_v30, %v8413_v60  ;;  %v8348_v32 = vadd.f32 %v16096_v20, %v16153_v21  ;;  %v8487_v60 = vpop.f32.mrf.mxu0 }
 0x4fc   : > { %v10986_v55 = vcombine.high %v16360_v27, %v16363_v5  ;;  %v16395_v13 = vld [vmem:[%s12155_s21 + $0x1830] sm:$0xff]  ;;  %v8352_v15 = vadd.f32 %v16104_v51, %v16150_v42  ;;  %v16404_v33 = vadd.f32 %v8550_v36, %v8480_v57  ;;  %v18271_v45 = vcombine.high %v16238_v22, %v16241_v14  ;;  %v8556_v52 = vpop.f32.mrf.mxu1  ;;  %8908 = vmatmul.mubr.bf16.gmra.mxu0 %v13404_v16  ;;  %v11687_v42 = vpop.eup %11686 }
 0x4fd   : > { %9075 = vmatpush1.bf16.msra.mxu1 %v18270_v34  ;;  %v16398_v25 = vld [vmem:[%s12155_s21 + $0x1870] sm:$0xff]  ;;  %11698 = verf.f32 %v9591_v46  ;;  %v16412_v41 = vadd.f32 %v8554_v28, %v8484_v6  ;;  %v8486_v51 = vadd.f32 %v8485_v40, %v8415_v53  ;;  %v10985_v20 = vcombine.low %v16360_v27, %v16363_v5  ;;  %8917 = vmatprep.mubr.bf16.mxu0 %v18128_v38 }
 0x4fe   : > { %9004 = vmatpush1.bf16.msra.mxu0 %v18269_v10  ;;  %9076 = vmatprep.subr.bf16.mxu1 %v11290_v35  ;;  %v8417_v54 = vadd.f32 %v16094_v0, %v8346_v9  ;;  %v8354_v36 = vadd.f32 %v16108_v3, %v16153_v21  ;;  %v9592_v35 = vmul.f32 0.70710677, %v16404_v33  ;;  %v8558_v37 = vpop.f32.mrf.mxu1  ;;  %v11241_v57 = vcombine.low %v16395_v13, %v16398_v25  ;;  %v11689_v21 = vpop.eup %11688  ;;  %v18273_v9 = vld [vmem:[#allocation72_spill] sm:$0xff]  ;;  %v18274_v10 = vld [vmem:[#allocation73_spill] sm:$0xff]  ;;  %v1665_v47 = vld [vmem:[%s12155_s21 + $0x1730] sm:$0xff] }
 0x4ff   : > { %9005 = vmatprep.subr.bf16.mxu0 %v18271_v45  ;;  %8979 = vmatmul.mubr.bf16.gmra.mxu1 %v13407_v26  ;;  %v9431_v30 = vmul.f32 0.5, %v16252_v48  ;;  %v9767_v28 = vadd.f32 1.0, %v11687_v42  ;;  %v9607_v53 = vmul.f32 0.70710677, %v16412_v41  ;;  %v18272_v0 = vcombine.low %v16238_v22, %v16241_v14  ;;  %v8489_v22 = vpop.f32.mrf.mxu0  ;;  %v1905_v27 = vld [vmem:[%s12155_s21 + $0x1eb0] sm:$0xff] }
 0x500   : > { %8988 = vmatprep.mubr.bf16.mxu1 %v18176_v59  ;;  %v16434_v3 = vadd.f32 %v8556_v52, %v8486_v51  ;;  %v8419_v46 = vadd.f32 %v18273_v9, %v8348_v32  ;;  %v8423_v34 = vadd.f32 %v18274_v10, %v8352_v15  ;;  %11700 = verf.f32 %v9592_v35  ;;  %v8560_v24 = vpop.f32.mrf.mxu1  ;;  %v18276_v15 = vld [vmem:[#allocation34_spill] sm:$0xff]  ;;  %v18280_v9 = vld [vmem:[#allocation39_spill] sm:$0xff] }
 0x501   : > { %9077 = vmatpush1.bf16.msra.mxu1 %v11289_v44  ;;  %v8488_v48 = vadd.f32 %v8487_v60, %v8417_v54  ;;  %v18275_v14 = vcombine.high %v16297_v49, %v16308_v1  ;;  %v9879_v11 = vmul.f32 %v9767_v28, %v9431_v30  ;;  %v9432_v44 = vmul.f32 0.5, %v16273_v39  ;;  %v1913_v5 = vld [vmem:[%s12155_s21 + $0x1ef0] sm:$0xff] }
 0x502   : > { %9006 = vmatpush1.bf16.msra.mxu0 %v18272_v0  ;;  %v9768_v6 = vadd.f32 1.0, %v11689_v21  ;;  %11702 = verf.f32 %v9607_v53  ;;  %v8425_v45 = vadd.f32 %v18276_v15, %v8354_v36  ;;  %v9608_v40 = vmul.f32 0.70710677, %v16434_v3  ;;  %v8564_v42 = vpop.f32.mrf.mxu1 }
 0x503   : > { %9007 = vmatprep.subr.bf16.mxu0 %v11018_v58  ;;  %9078 = vmatprep.subr.bf16.mxu1 %v18275_v14  ;;  %v16447_v52 = vadd.f32 %v8558_v37, %v8488_v48  ;;  %v8490_v51 = vadd.f32 %v8489_v22, %v8419_v46  ;;  %v8493_v58 = vpop.f32.mrf.mxu0  ;;  %9991 = vst [vmem:[%s14231_s27 + $0x40] sm:$0xff] %v9879_v11  ;;  %v9447_v35 = vmul.f32 0.5, %v16288_v18  ;;  %v18281_v46 = vld [vmem:[#allocation41_spill] sm:$0xff]  ;;  %v16483_v48 = vld [vmem:[%s12155_s21 + $0x1ff0] sm:$0xff]  ;;  %v9448_v22 = vmul.f32 0.5, %v16319_v29 }
 0x504   : > { %v9880_v54 = vmul.f32 %v9768_v6, %v9432_v44  ;;  %v18277_v39 = vcombine.low %v16276_v17, %v16279_v8  ;;  %v18278_v36 = vcombine.low %v16297_v49, %v16308_v1  ;;  %v8494_v37 = vadd.f32 %v8493_v58, %v8423_v34  ;;  %v8566_v17 = vpop.f32.mrf.mxu1  ;;  %v16469_v1 = vld [vmem:[%s12155_s21 + $0x17b0] sm:$0xff]  ;;  %8918 = vmatmul.mubr.bf16.gmra.mxu0 %v18280_v9  ;;  %v18282_v44 = vld [vmem:[#allocation31_spill] sm:$0xff]  ;;  %v18283_v6 = vld [vmem:[#allocation33_spill] sm:$0xff] }
 0x505   : > { %v11691_v32 = vpop.eup %11690  ;;  %11704 = verf.f32 %v9608_v40  ;;  %v9623_v30 = vmul.f32 0.70710677, %v16447_v52  ;;  %v16458_v28 = vadd.f32 %v8560_v24, %v8490_v51  ;;  %v18279_v18 = vcombine.high %v16311_v31, %v16314_v4  ;;  %v8495_v8 = vpop.f32.mrf.mxu0  ;;  %v16477_v34 = vld [vmem:[%s12155_s21 + $0x17f0] sm:$0xff]  ;;  %9029 = vmatprep.mubr.bf16.mxu0 %v18282_v44 }
 0x506   : > { %v9783_v60 = vadd.f32 1.0, %v11691_v32  ;;  %9008 = vmatpush1.bf16.msra.mxu0 %v18277_v39  ;;  %9079 = vmatpush1.bf16.msra.mxu1 %v18278_v36  ;;  %v11242_v49 = vcombine.high %v16395_v13, %v16398_v25  ;;  %v11693_v53 = vpop.eup %11692  ;;  %9992 = vst [vmem:[%s14231_s27 + $0x48] sm:$0xff] %v9880_v54  ;;  %v16472_v21 = vadd.f32 %v8564_v42, %v8494_v37  ;;  %v8568_v15 = vpop.f32.mrf.mxu1  ;;  %v1929_v39 = vld [vmem:[%s12155_s21 + $0x1f70] sm:$0xff]  ;;  %v9480_v13 = vmul.f32 0.5, %v16404_v33 }
 0x507   : > { %9009 = vmatprep.subr.bf16.mxu0 %v18279_v18  ;;  %9080 = vmatprep.subr.bf16.mxu1 %v11258_v19  ;;  %v8496_v10 = vadd.f32 %v8495_v8, %v8425_v45  ;;  %v16480_v19 = vld [vmem:[%s12155_s21 + $0x1fb0] sm:$0xff]  ;;  %v11695_v14 = vpop.eup %11694  ;;  %v9784_v24 = vadd.f32 1.0, %v11693_v53  ;;  %11706 = verf.f32 %v9623_v30  ;;  %v9624_v11 = vmul.f32 0.70710677, %v16458_v28  ;;  %v8497_v32 = vpop.f32.mrf.mxu0 }
 0x508   : > { %v9895_v0 = vmul.f32 %v9783_v60, %v9447_v35  ;;  %8989 = vmatmul.mubr.bf16.gmra.mxu1 %v18281_v46  ;;  %v9463_v45 = vmul.f32 0.5, %v16329_v56  ;;  %v9799_v40 = vadd.f32 1.0, %v11695_v14  ;;  %v9639_v51 = vmul.f32 0.70710677, %v16472_v21  ;;  %v11697_v58 = vpop.eup %11696  ;;  %v8569_v31 = vpop.f32.mrf.mxu1  ;;  %v1673_v35 = vld [vmem:[%s12155_s21 + $0x1770] sm:$0xff] }
 0x509   : > { %9100 = vmatprep.mubr.bf16.mxu1 %v18283_v6  ;;  %v16498_v29 = vadd.f32 %v8566_v17, %v8496_v10  ;;  %v9896_v42 = vmul.f32 %v9784_v24, %v9448_v22  ;;  %11708 = verf.f32 %v9624_v11  ;;  %v8498_v4 = vpop.f32.mrf.mxu0  ;;  %v11226_v56 = vcombine.high %v16469_v1, %v16477_v34  ;;  %v1921_v60 = vld [vmem:[%s12155_s21 + $0x1f30] sm:$0xff] }
 0x50a   : > { %10007 = vst [vmem:[%s14231_s27 + $0xc0] sm:$0xff] %v9895_v0  ;;  %9010 = vmatpush1.bf16.msra.mxu0 %v11001_v50  ;;  %9081 = vmatpush1.bf16.msra.mxu1 %v11257_v12  ;;  %v11482_v43 = vcombine.high %v16480_v19, %v16483_v48  ;;  %v9911_v50 = vmul.f32 %v9799_v40, %v9463_v45  ;;  %v9464_v12 = vmul.f32 0.5, %v16357_v2  ;;  %v9800_v54 = vadd.f32 1.0, %v11697_v58  ;;  %v1657_v0 = vld [vmem:[%s12155_s21 + $0x16f0] sm:$0xff] }
 0x50b   : > { %9011 = vmatprep.subr.bf16.mxu0 %v10986_v55  ;;  %9082 = vmatprep.subr.bf16.mxu1 %v11242_v49  ;;  %11710 = verf.f32 %v9639_v51  ;;  %v11699_v55 = vpop.eup %11698  ;;  %10008 = vst [vmem:[%s14231_s27 + $0xc8] sm:$0xff] %v9896_v42  ;;  %v9640_v36 = vmul.f32 0.70710677, %v16498_v29  ;;  %v11225_v37 = vcombine.low %v16469_v1, %v16477_v34  ;;  %v9479_v2 = vmul.f32 0.5, %v16378_v61  ;;  %v1649_v61 = vld [vmem:[%s12155_s21 + $0x16b0] sm:$0xff] }
 0x50c   : > { %10023 = vst [vmem:[%s14231_s27 + $0x140] sm:$0xff] %v9911_v50  ;;  %v9912_v30 = vmul.f32 %v9800_v54, %v9464_v12  ;;  %v9815_v18 = vadd.f32 1.0, %v11699_v55  ;;  %v11481_v8 = vcombine.low %v16480_v19, %v16483_v48  ;;  %v11210_v17 = vcombine.high %v1665_v47, %v1673_v35  ;;  %v1633_v24 = vld [vmem:[%s12155_s21 + $0x1630] sm:$0xff] }
 0x50d   : > { %11712 = verf.f32 %v9640_v36  ;;  %v11466_v49 = vcombine.high %v1921_v60, %v1929_v39  ;;  %v11701_v1 = vpop.eup %11700  ;;  %v11209_v34 = vcombine.low %v1665_v47, %v1673_v35  ;;  %v11465_v19 = vcombine.low %v1921_v60, %v1929_v39  ;;  %v1641_v33 = vld [vmem:[%s12155_s21 + $0x1670] sm:$0xff] }
 0x50e   : > { %9012 = vmatpush1.bf16.msra.mxu0 %v10985_v20  ;;  %9083 = vmatpush1.bf16.msra.mxu1 %v11241_v57  ;;  %10024 = vst [vmem:[%s14231_s27 + $0x148] sm:$0xff] %v9912_v30  ;;  %v9927_v53 = vmul.f32 %v9815_v18, %v9479_v2  ;;  %v9816_v25 = vadd.f32 1.0, %v11701_v1  ;;  %v9495_v57 = vmul.f32 0.5, %v16412_v41  ;;  %v11194_v14 = vcombine.high %v1649_v61, %v1657_v0  ;;  %v1889_v15 = vld [vmem:[%s12155_s21 + $0x1e30] sm:$0xff] }
 0x50f   : > { %9013 = vmatprep.subr.bf16.mxu0 %v11226_v56  ;;  %9084 = vmatprep.subr.bf16.mxu1 %v11482_v43  ;;  %v11703_v20 = vpop.eup %11702  ;;  %v11450_v22 = vcombine.high %v1905_v27, %v1913_v5  ;;  %v1897_v45 = vld [vmem:[%s12155_s21 + $0x1e70] sm:$0xff]  ;;  %v9496_v41 = vmul.f32 0.5, %v16434_v3  ;;  %v11193_v58 = vcombine.low %v1649_v61, %v1657_v0  ;;  %v11449_v42 = vcombine.low %v1905_v27, %v1913_v5 }
 0x510   : > { %10039 = vst [vmem:[%s14231_s27 + $0x1c0] sm:$0xff] %v9927_v53  ;;  %v9831_v10 = vadd.f32 1.0, %v11703_v20  ;;  %v9928_v48 = vmul.f32 %v9816_v25, %v9480_v13  ;;  %v11178_v4 = vcombine.high %v1633_v24, %v1641_v33  ;;  %v9511_v56 = vmul.f32 0.5, %v16447_v52  ;;  %v1617_v3 = vld [vmem:[%s12155_s21 + $0x15b0] sm:$0xff] }
 0x511   : > { %v11434_v47 = vcombine.high %v1889_v15, %v1897_v45  ;;  %v1625_v12 = vld [vmem:[%s12155_s21 + $0x15f0] sm:$0xff]  ;;  %v9512_v55 = vmul.f32 0.5, %v16458_v28  ;;  %v9527_v52 = vmul.f32 0.5, %v16472_v21  ;;  %v11177_v30 = vcombine.low %v1633_v24, %v1641_v33 }
 0x512   : > { %9014 = vmatpush2.bf16.msra.mxu0 %v11225_v37  ;;  %9085 = vmatpush2.bf16.msra.mxu1 %v11481_v8  ;;  %v11705_v11 = vpop.eup %11704  ;;  %v9943_v32 = vmul.f32 %v9831_v10, %v9495_v57  ;;  %10040 = vst [vmem:[%s14231_s27 + $0x1c8] sm:$0xff] %v9928_v48  ;;  %v1873_v54 = vld [vmem:[%s12155_s21 + $0x1db0] sm:$0xff]  ;;  %v11433_v2 = vcombine.low %v1889_v15, %v1897_v45  ;;  %v9528_v0 = vmul.f32 0.5, %v16498_v29 }
 0x513   : > { %9015 = vmatprep.subr.bf16.mxu0 %v11210_v17  ;;  %9086 = vmatprep.subr.bf16.mxu1 %v11466_v49  ;;  %v9832_v40 = vadd.f32 1.0, %v11705_v11  ;;  %v1881_v35 = vld [vmem:[%s12155_s21 + $0x1df0] sm:$0xff]  ;;  %v11162_v8 = vcombine.high %v1617_v3, %v1625_v12  ;;  %v11161_v5 = vcombine.low %v1617_v3, %v1625_v12  ;;  %v1034_v12 = vld [vmem:[%s12155_s21 + $0x378] sm:$0xff] }
 0x514   : > { %v11707_v51 = vpop.eup %11706  ;;  %10055 = vst [vmem:[%s14231_s27 + $0x240] sm:$0xff] %v9943_v32  ;;  %v11418_v17 = vcombine.high %v1873_v54, %v1881_v35  ;;  %v1601_v28 = vld [vmem:[%s12155_s21 + $0x1530] sm:$0xff]  ;;  %v11417_v20 = vcombine.low %v1873_v54, %v1881_v35  ;;  %v1282_v54 = vld [vmem:[%s12155_s21 + $0xb38] sm:$0xff] }
 0x515   : > { %v9944_v31 = vmul.f32 %v9832_v40, %v9496_v41  ;;  %v9847_v43 = vadd.f32 1.0, %v11707_v51  ;;  %v1609_v1 = vld [vmem:[%s12155_s21 + $0x1570] sm:$0xff]  ;;  %v1290_v35 = vld [vmem:[%s12155_s21 + $0xb78] sm:$0xff] }
 0x516   : > { %9016 = vmatpush2.bf16.msra.mxu0 %v11209_v34  ;;  %9087 = vmatpush2.bf16.msra.mxu1 %v11465_v19  ;;  %v11709_v50 = vpop.eup %11708  ;;  %v1857_v21 = vld [vmem:[%s12155_s21 + $0x1d30] sm:$0xff]  ;;  %v11146_v25 = vcombine.high %v1601_v28, %v1609_v1  ;;  %v11145_v48 = vcombine.low %v1601_v28, %v1609_v1  ;;  %v1018_v28 = vld [vmem:[%s12155_s21 + $0x2f8] sm:$0xff] }
 0x517   : > { %9017 = vmatprep.subr.bf16.mxu0 %v11194_v14  ;;  %9088 = vmatprep.subr.bf16.mxu1 %v11450_v22  ;;  %10056 = vst [vmem:[%s14231_s27 + $0x248] sm:$0xff] %v9944_v31  ;;  %v9959_v39 = vmul.f32 %v9847_v43, %v9511_v56  ;;  %v9848_v36 = vadd.f32 1.0, %v11709_v50  ;;  %v1865_v53 = vld [vmem:[%s12155_s21 + $0x1d70] sm:$0xff]  ;;  %v1306_v31 = vld [vmem:[%s12155_s21 + $0xbf8] sm:$0xff] }
 0x518   : > { %v11711_v60 = vpop.eup %11710  ;;  %v11402_v57 = vcombine.high %v1857_v21, %v1865_v53  ;;  %v1585_v10 = vld [vmem:[%s12155_s21 + $0x14b0] sm:$0xff]  ;;  %v11401_v14 = vcombine.low %v1857_v21, %v1865_v53  ;;  %v1026_v50 = vld [vmem:[%s12155_s21 + $0x338] sm:$0xff]  ;;  %v18287_v21 = vld [vmem:[#allocation56_spill] sm:$0xff] }
 0x519   : > { %v9863_v37 = vadd.f32 1.0, %v11711_v60  ;;  %10071 = vst [vmem:[%s14231_s27 + $0x2c0] sm:$0xff] %v9959_v39  ;;  %v9960_v18 = vmul.f32 %v9848_v36, %v9512_v55  ;;  %v1593_v34 = vld [vmem:[%s12155_s21 + $0x14f0] sm:$0xff] }
 0x51a   : > { %9018 = vmatpush2.bf16.msra.mxu0 %v11193_v58  ;;  %9089 = vmatpush2.bf16.msra.mxu1 %v11449_v42  ;;  %v11713_v49 = vpop.eup %11712  ;;  %v1841_v19 = vld [vmem:[%s12155_s21 + $0x1cb0] sm:$0xff]  ;;  %v11130_v22 = vcombine.high %v1585_v10, %v1593_v34  ;;  %v11129_v45 = vcombine.low %v1585_v10, %v1593_v34  ;;  %v1042_v58 = vld [vmem:[%s12155_s21 + $0x3b8] sm:$0xff] }
 0x51b   : > { %9019 = vmatprep.subr.bf16.mxu0 %v11178_v4  ;;  %9090 = vmatprep.subr.bf16.mxu1 %v11434_v47  ;;  %v9975_v61 = vmul.f32 %v9863_v37, %v9527_v52  ;;  %10072 = vst [vmem:[%s14231_s27 + $0x2c8] sm:$0xff] %v9960_v18  ;;  %v9864_v27 = vadd.f32 1.0, %v11713_v49  ;;  %v1849_v29 = vld [vmem:[%s12155_s21 + $0x1cf0] sm:$0xff]  ;;  %v1050_v42 = vld [vmem:[%s12155_s21 + $0x3f8] sm:$0xff] }
 0x51c   : > { %v11386_v24 = vcombine.high %v1841_v19, %v1849_v29  ;;  %v1569_v33 = vld [vmem:[%s12155_s21 + $0x1430] sm:$0xff]  ;;  %v11385_v41 = vcombine.low %v1841_v19, %v1849_v29  ;;  %v1298_v4 = vld [vmem:[%s12155_s21 + $0xbb8] sm:$0xff]  ;;  %v10588_v47 = vcombine.high %v1042_v58, %v1050_v42  ;;  %v10587_v55 = vcombine.low %v1042_v58, %v1050_v42 }
 0x51d   : > { %10087 = vst [vmem:[%s14231_s27 + $0x340] sm:$0x1] %v9975_v61  ;;  %v9976_v13 = vmul.f32 %v9864_v27, %v9528_v0  ;;  %v1577_v11 = vld [vmem:[%s12155_s21 + $0x1470] sm:$0xff]  ;;  %v10844_v3 = vcombine.high %v1298_v4, %v1306_v31  ;;  %v10843_v36 = vcombine.low %v1298_v4, %v1306_v31  ;;  %v1010_v18 = vld [vmem:[%s12155_s21 + $0x2b8] sm:$0xff]  ;;  %v10571_v27 = vcombine.low %v1026_v50, %v1034_v12 }
 0x51e   : > { %9020 = vmatpush2.bf16.msra.mxu0 %v11177_v30  ;;  %9091 = vmatpush2.bf16.msra.mxu1 %v11433_v2  ;;  %v1825_v32 = vld [vmem:[%s12155_s21 + $0x1c30] sm:$0xff]  ;;  %v11114_v40 = vcombine.high %v1569_v33, %v1577_v11  ;;  %v11113_v56 = vcombine.low %v1569_v33, %v1577_v11  ;;  %v10572_v30 = vcombine.high %v1026_v50, %v1034_v12  ;;  %v1266_v49 = vld [vmem:[%s12155_s21 + $0xab8] sm:$0xff] }
 0x51f   : > { %9021 = vmatprep.subr.bf16.mxu0 %v11162_v8  ;;  %9092 = vmatprep.subr.bf16.mxu1 %v11418_v17  ;;  %10088 = vst [vmem:[%s14231_s27 + $0x348] sm:$0x1] %v9976_v13  ;;  %v1833_v15 = vld [vmem:[%s12155_s21 + $0x1c70] sm:$0xff]  ;;  %v10828_v2 = vcombine.high %v1282_v54, %v1290_v35  ;;  %v18285_v17 = vld [vmem:[#allocation49_spill] sm:$0xff]  ;;  %v1274_v61 = vld [vmem:[%s12155_s21 + $0xaf8] sm:$0xff] }
 0x520   : > { %v11370_v51 = vcombine.high %v1825_v32, %v1833_v15  ;;  %v11369_v43 = vcombine.low %v1825_v32, %v1833_v15  ;;  %v18284_v8 = vld [vmem:[#allocation30_spill] sm:$0xff]  ;;  %v994_v10 = vld [vmem:[%s12155_s21 + $0x238] sm:$0xff] }
 0x521   : > { %v18286_v1 = vld [vmem:[#allocation54_spill] sm:$0xff]  ;;  %v1002_v34 = vld [vmem:[%s12155_s21 + $0x278] sm:$0xff] }
 0x522   : > { %9022 = vmatpush2.bf16.msra.mxu0 %v11161_v5  ;;  %9093 = vmatpush2.bf16.msra.mxu1 %v11417_v20  ;;  %v10827_v5 = vcombine.low %v1282_v54, %v1290_v35  ;;  %v1250_v19 = vld [vmem:[%s12155_s21 + $0xa38] sm:$0xff]  ;;  %v10540_v32 = vcombine.high %v994_v10, %v1002_v34  ;;  %v18290_v4 = vld [vmem:[#allocation62_spill] sm:$0xff] }
 0x523   : > { %9023 = vmatprep.subr.bf16.mxu0 %v11146_v25  ;;  %9094 = vmatprep.subr.bf16.mxu1 %v11402_v57  ;;  %v10556_v25 = vcombine.high %v1010_v18, %v1018_v28  ;;  %v10812_v57 = vcombine.high %v1266_v49, %v1274_v61  ;;  %v1258_v29 = vld [vmem:[%s12155_s21 + $0xa78] sm:$0xff] }
 0x524   : > { %v10796_v15 = vcombine.high %v1250_v19, %v1258_v29  ;;  %v1234_v58 = vld [vmem:[%s12155_s21 + $0x9b8] sm:$0xff] }
 0x525   : > { %v1242_v42 = vld [vmem:[%s12155_s21 + $0x9f8] sm:$0xff] }
 0x526   : > { %9024 = vmatpush2.bf16.msra.mxu0 %v11145_v48  ;;  %9095 = vmatpush2.bf16.msra.mxu1 %v11401_v14  ;;  %v18291_v31 = vld [vmem:[#allocation63_spill] sm:$0xff]  ;;  %v10780_v35 = vcombine.high %v1234_v58, %v1242_v42 }
 0x527   : > { %9025 = vmatprep.subr.bf16.mxu0 %v11130_v22  ;;  %9096 = vmatprep.subr.bf16.mxu1 %v11386_v24  ;;  %v16574_v60 = vpop.f32.mrf.mxu0  ;;  %v10555_v22 = vcombine.low %v1010_v18, %v1018_v28  ;;  %v10811_v24 = vcombine.low %v1266_v49, %v1274_v61  ;;  %v10779_v61 = vcombine.low %v1234_v58, %v1242_v42 }
 0x529   : > { %v16576_v39 = vpop.f32.mrf.mxu1  ;;  %v16578_v52 = vpop.f32.mrf.mxu0 }
 0x52a   : > { %9026 = vmatpush2.bf16.msra.mxu0 %v11129_v45  ;;  %9097 = vmatpush2.bf16.msra.mxu1 %v11385_v41  ;;  %v978_v45 = vld [vmem:[%s12155_s21 + $0x1b8] sm:$0xff]  ;;  %v18288_v41 = vld [vmem:[#allocation38_spill] sm:$0xff] }
 0x52b   : > { %9027 = vmatprep.subr.bf16.mxu0 %v11114_v40  ;;  %9098 = vmatprep.subr.bf16.mxu1 %v11370_v51  ;;  %v16580_v37 = vpop.f32.mrf.mxu1  ;;  %v16590_v53 = vpop.f32.mrf.mxu0  ;;  %v18289_v40 = vld [vmem:[#allocation40_spill] sm:$0xff]  ;;  %v986_v51 = vld [vmem:[%s12155_s21 + $0x1f8] sm:$0xff] }
 0x52c   : > { %v10524_v54 = vcombine.high %v978_v45, %v986_v51  ;;  %v10523_v49 = vcombine.low %v978_v45, %v986_v51 }
 0x52d   : > { %v16592_v0 = vpop.f32.mrf.mxu1  ;;  %v16594_v20 = vpop.f32.mrf.mxu0 }
 0x52e   : > { %9028 = vmatpush2.bf16.msra.mxu0 %v11113_v56  ;;  %9099 = vmatpush2.bf16.msra.mxu1 %v11369_v43 }
 0x52f   : > { %9139 = vmatprep.subr.bf16.mxu0 %v10588_v47  ;;  %9210 = vmatprep.subr.bf16.mxu1 %v10844_v3  ;;  %v16596_v13 = vpop.f32.mrf.mxu1  ;;  %v10539_v47 = vcombine.low %v994_v10, %v1002_v34  ;;  %v10795_v3 = vcombine.low %v1250_v19, %v1258_v29  ;;  %v946_v10 = vld [vmem:[%s12155_s21 + $0xb8] sm:$0xff]  ;;  %v18292_v34 = vld [vmem:[#allocation64_spill] sm:$0xff]  ;;  %v18293_v19 = vld [vmem:[#allocation65_spill] sm:$0xff] }
 0x530   : > { %v16602_v48 = vpop.f32.mrf.mxu0  ;;  %v954_v29 = vld [vmem:[%s12155_s21 + $0xf8] sm:$0xff] }
 0x531   : > { %9030 = vmatmul.mubr.bf16.vlgmr.msra.gmra.mxu0 %v18284_v8  ;;  %9101 = vmatmul.mubr.bf16.vlgmr.msra.gmra.mxu1 %v18285_v17  ;;  %v16604_v14 = vpop.f32.mrf.mxu1  ;;  %v1162_v17 = vld [vmem:[%s12155_s21 + $0x778] sm:$0xff] }
 0x532   : > { %9039 = vmatprep.mubr.bf16.mxu0 %v18286_v1  ;;  %9110 = vmatprep.mubr.bf16.mxu1 %v18287_v21  ;;  %v16606_v33 = vpop.f32.mrf.mxu0  ;;  %v1426_v21 = vld [vmem:[%s12155_s21 + $0xfb8] sm:$0xff] }
 0x533   : > { %9140 = vmatpush1.bf16.msra.mxu0 %v10587_v55  ;;  %9211 = vmatpush1.bf16.msra.mxu1 %v10843_v36  ;;  %v16608_v11 = vpop.f32.mrf.mxu1  ;;  %v962_v55 = vld [vmem:[%s12155_s21 + $0x138] sm:$0xff] }
 0x534   : > { %9141 = vmatprep.subr.bf16.mxu0 %v10572_v30  ;;  %9212 = vmatprep.subr.bf16.mxu1 %v10828_v2  ;;  %v16618_v56 = vpop.f32.mrf.mxu0  ;;  %v970_v36 = vld [vmem:[%s12155_s21 + $0x178] sm:$0xff] }
 0x535   : > { %v16620_v43 = vpop.f32.mrf.mxu1  ;;  %v1218_v30 = vld [vmem:[%s12155_s21 + $0x938] sm:$0xff]  ;;  %v10507_v58 = vcombine.low %v962_v55, %v970_v36 }
 0x536   : > { %v16622_v50 = vpop.f32.mrf.mxu0  ;;  %v1226_v2 = vld [vmem:[%s12155_s21 + $0x978] sm:$0xff] }
 0x537   : > { %9142 = vmatpush1.bf16.msra.mxu0 %v10571_v27  ;;  %9213 = vmatpush1.bf16.msra.mxu1 %v10827_v5  ;;  %v16624_v12 = vpop.f32.mrf.mxu1  ;;  %v10763_v42 = vcombine.low %v1218_v30, %v1226_v2  ;;  %v1418_v8 = vld [vmem:[%s12155_s21 + $0xf78] sm:$0xff] }
 0x538   : > { %9143 = vmatprep.subr.bf16.mxu0 %v10556_v25  ;;  %9214 = vmatprep.subr.bf16.mxu1 %v10812_v57  ;;  %v10508_v25 = vcombine.high %v962_v55, %v970_v36  ;;  %v10764_v57 = vcombine.high %v1218_v30, %v1226_v2  ;;  %v10491_v55 = vcombine.low %v946_v10, %v954_v29 }
 0x539   : > { %9040 = vmatmul.mubr.bf16.gmra.mxu0 %v18288_v41  ;;  %9111 = vmatmul.mubr.bf16.gmra.mxu1 %v18289_v40  ;;  %v16630_v18 = vpop.f32.mrf.mxu0  ;;  %v16632_v28 = vpop.f32.mrf.mxu1  ;;  %v18300_v40 = vld [vmem:[#allocation66_spill] sm:$0xff]  ;;  %v1178_v41 = vld [vmem:[%s12155_s21 + $0x7f8] sm:$0xff] }
 0x53a   : > { %9049 = vmatprep.mubr.bf16.mxu0 %v18290_v4  ;;  %9120 = vmatprep.mubr.bf16.mxu1 %v18291_v31  ;;  %v18299_v4 = vld [vmem:[#allocation12_spill] sm:$0xff] }
 0x53b   : > { %9144 = vmatpush1.bf16.msra.mxu0 %v10555_v22  ;;  %9215 = vmatpush1.bf16.msra.mxu1 %v10811_v24  ;;  %v16634_v27 = vpop.f32.mrf.mxu0  ;;  %v16636_v5 = vpop.f32.mrf.mxu1  ;;  %v1202_v22 = vld [vmem:[%s12155_s21 + $0x8b8] sm:$0xff] }
 0x53c   : > { %9145 = vmatprep.subr.bf16.mxu0 %v10540_v32  ;;  %9216 = vmatprep.subr.bf16.mxu1 %v10796_v15  ;;  %v1210_v24 = vld [vmem:[%s12155_s21 + $0x8f8] sm:$0xff]  ;;  %v18294_v32 = vld [vmem:[#allocation13_spill] sm:$0xff] }
 0x53d   : > { %v18295_v15 = vld [vmem:[#allocation15_spill] sm:$0xff]  ;;  %v16646_v45 = vpop.f32.mrf.mxu0  ;;  %v16648_v51 = vpop.f32.mrf.mxu1  ;;  %v10747_v36 = vcombine.low %v1202_v22, %v1210_v24 }
 0x53f   : > { %9146 = vmatpush1.bf16.msra.mxu0 %v10539_v47  ;;  %9217 = vmatpush1.bf16.msra.mxu1 %v10795_v3  ;;  %v16650_v47 = vpop.f32.mrf.mxu0  ;;  %v16652_v3 = vpop.f32.mrf.mxu1 }
 0x540   : > { %9147 = vmatprep.subr.bf16.mxu0 %v10524_v54  ;;  %9218 = vmatprep.subr.bf16.mxu1 %v10780_v35  ;;  %18296 = vst [vmem:[#allocation29_spill] sm:$0xff] %v16652_v3  ;;  %v10492_v54 = vcombine.high %v946_v10, %v954_v29  ;;  %v10748_v35 = vcombine.high %v1202_v22, %v1210_v24  ;;  %v18302_v10 = vld [vmem:[#allocation83_spill] sm:$0xff] }
 0x541   : > { %9050 = vmatmul.mubr.bf16.gmra.mxu0 %v18292_v34  ;;  %9121 = vmatmul.mubr.bf16.gmra.mxu1 %v18293_v19  ;;  %v1186_v19 = vld [vmem:[%s12155_s21 + $0x838] sm:$0xff] }
 0x542   : > { %9059 = vmatprep.mubr.bf16.mxu0 %v18294_v32  ;;  %9130 = vmatprep.mubr.bf16.mxu1 %v18295_v15  ;;  %v930_v32 = vld [vmem:[%s12155_s21 + $0x38] sm:$0xff]  ;;  %v16658_v31 = vpop.f32.mrf.mxu0 }
 0x543   : > { %9148 = vmatpush1.bf16.msra.mxu0 %v10523_v49  ;;  %9219 = vmatpush1.bf16.msra.mxu1 %v10779_v61  ;;  %v938_v15 = vld [vmem:[%s12155_s21 + $0x78] sm:$0xff]  ;;  %v16660_v49 = vpop.f32.mrf.mxu1 }
 0x544   : > { %9149 = vmatprep.subr.bf16.mxu0 %v10508_v25  ;;  %9220 = vmatprep.subr.bf16.mxu1 %v10764_v57  ;;  %v1194_v34 = vld [vmem:[%s12155_s21 + $0x878] sm:$0xff]  ;;  %18297 = vst [vmem:[#allocation36_spill] sm:$0xff] %v16660_v49  ;;  %v16662_v30 = vpop.f32.mrf.mxu0  ;;  %v10476_v61 = vcombine.high %v930_v32, %v938_v15  ;;  %v10475_v24 = vcombine.low %v930_v32, %v938_v15 }
 0x545   : > { %v16664_v2 = vpop.f32.mrf.mxu1  ;;  %v10732_v25 = vcombine.high %v1186_v19, %v1194_v34  ;;  %v1170_v57 = vld [vmem:[%s12155_s21 + $0x7b8] sm:$0xff] }
 0x546   : > { %18298 = vst [vmem:[#allocation43_spill] sm:$0xff] %v16664_v2  ;;  %v8639_v29 = vpop.f32.mrf.mxu0  ;;  %v1146_v32 = vld [vmem:[%s12155_s21 + $0x6f8] sm:$0xff] }
 0x547   : > { %9150 = vmatpush1.bf16.msra.mxu0 %v10507_v58  ;;  %9221 = vmatpush1.bf16.msra.mxu1 %v10763_v42  ;;  %v1434_v58 = vld [vmem:[%s12155_s21 + $0xff8] sm:$0xff]  ;;  %v18301_v42 = vld [vmem:[#allocation82_spill] sm:$0xff]  ;;  %v8710_v22 = vpop.f32.mrf.mxu1 }
 0x548   : > { %9151 = vmatprep.subr.bf16.mxu0 %v10492_v54  ;;  %9222 = vmatprep.subr.bf16.mxu1 %v10748_v35  ;;  %v10731_v54 = vcombine.low %v1186_v19, %v1194_v34  ;;  %v8640_v35 = vpop.f32.mrf.mxu0  ;;  %v10972_v1 = vcombine.high %v1426_v21, %v1434_v58  ;;  %v1138_v19 = vld [vmem:[%s12155_s21 + $0x6b8] sm:$0xff] }
 0x549   : > { %9060 = vmatmul.mubr.bf16.gmra.mxu0 %v18299_v4  ;;  %9131 = vmatmul.mubr.bf16.gmra.mxu1 %v18300_v40  ;;  %v8711_v40 = vpop.f32.mrf.mxu1  ;;  %v10716_v4 = vcombine.high %v1170_v57, %v1178_v41  ;;  %v1394_v15 = vld [vmem:[%s12155_s21 + $0xeb8] sm:$0xff]  ;;  %v10683_v22 = vcombine.low %v1138_v19, %v1146_v32 }
 0x54a   : > { %9171 = vmatprep.mubr.bf16.mxu0 %v18301_v42  ;;  %9242 = vmatprep.mubr.bf16.mxu1 %v18302_v10  ;;  %v1154_v42 = vld [vmem:[%s12155_s21 + $0x738] sm:$0xff] }
 0x54b   : > { %9152 = vmatpush1.bf16.msra.mxu0 %v10491_v55  ;;  %9223 = vmatpush1.bf16.msra.mxu1 %v10747_v36  ;;  %v1410_v10 = vld [vmem:[%s12155_s21 + $0xf38] sm:$0xff]  ;;  %v10715_v55 = vcombine.low %v1170_v57, %v1178_v41  ;;  %v10971_v36 = vcombine.low %v1426_v21, %v1434_v58  ;;  %v10700_v34 = vcombine.high %v1154_v42, %v1162_v17 }
 0x54c   : > { %9153 = vmatprep.subr.bf16.mxu0 %v10476_v61  ;;  %9224 = vmatprep.subr.bf16.mxu1 %v10732_v25  ;;  %v10956_v40 = vcombine.high %v1410_v10, %v1418_v8  ;;  %v1402_v61 = vld [vmem:[%s12155_s21 + $0xef8] sm:$0xff]  ;;  %v10699_v25 = vcombine.low %v1154_v42, %v1162_v17  ;;  %v10955_v29 = vcombine.low %v1410_v10, %v1418_v8 }
 0x54d   : > { %v10684_v21 = vcombine.high %v1138_v19, %v1146_v32  ;;  %v1122_v41 = vld [vmem:[%s12155_s21 + $0x638] sm:$0xff] }
 0x54e   : > { %v1378_v57 = vld [vmem:[%s12155_s21 + $0xe38] sm:$0xff] }
 0x54f   : > { %9154 = vmatpush1.bf16.msra.mxu0 %v10475_v24  ;;  %9225 = vmatpush1.bf16.msra.mxu1 %v10731_v54  ;;  %v1386_v58 = vld [vmem:[%s12155_s21 + $0xe78] sm:$0xff]  ;;  %v10939_v24 = vcombine.low %v1394_v15, %v1402_v61 }
 0x550   : > { %9155 = vmatprep.subr.bf16.mxu0 %v10716_v4  ;;  %9226 = vmatprep.subr.bf16.mxu1 %v10972_v1  ;;  %v10940_v1 = vcombine.high %v1394_v15, %v1402_v61  ;;  %v1130_v4 = vld [vmem:[%s12155_s21 + $0x678] sm:$0xff]  ;;  %v10924_v17 = vcombine.high %v1378_v57, %v1386_v58 }
 0x551   : > { %v10668_v8 = vcombine.high %v1122_v41, %v1130_v4  ;;  %v1106_v54 = vld [vmem:[%s12155_s21 + $0x5b8] sm:$0xff] }
 0x552   : > { %v1114_v35 = vld [vmem:[%s12155_s21 + $0x5f8] sm:$0xff] }
 0x553   : > { %9156 = vmatpush2.bf16.msra.mxu0 %v10715_v55  ;;  %9227 = vmatpush2.bf16.msra.mxu1 %v10971_v36  ;;  %v1362_v42 = vld [vmem:[%s12155_s21 + $0xdb8] sm:$0xff]  ;;  %v10667_v55 = vcombine.low %v1122_v41, %v1130_v4  ;;  %v10923_v36 = vcombine.low %v1378_v57, %v1386_v58 }
 0x554   : > { %9157 = vmatprep.subr.bf16.mxu0 %v10700_v34  ;;  %9228 = vmatprep.subr.bf16.mxu1 %v10956_v40  ;;  %v1370_v10 = vld [vmem:[%s12155_s21 + $0xdf8] sm:$0xff]  ;;  %v10652_v34 = vcombine.high %v1106_v54, %v1114_v35 }
 0x555   : > { %v10908_v40 = vcombine.high %v1362_v42, %v1370_v10  ;;  %v1090_v19 = vld [vmem:[%s12155_s21 + $0x538] sm:$0xff] }
 0x556   : > { %v1098_v32 = vld [vmem:[%s12155_s21 + $0x578] sm:$0xff] }
 0x557   : > { %9158 = vmatpush2.bf16.msra.mxu0 %v10699_v25  ;;  %9229 = vmatpush2.bf16.msra.mxu1 %v10955_v29  ;;  %v1346_v15 = vld [vmem:[%s12155_s21 + $0xd38] sm:$0xff]  ;;  %v10651_v25 = vcombine.low %v1106_v54, %v1114_v35  ;;  %v10907_v29 = vcombine.low %v1362_v42, %v1370_v10 }
 0x558   : > { %9159 = vmatprep.subr.bf16.mxu0 %v10684_v21  ;;  %9230 = vmatprep.subr.bf16.mxu1 %v10940_v1  ;;  %v1354_v61 = vld [vmem:[%s12155_s21 + $0xd78] sm:$0xff]  ;;  %v10636_v21 = vcombine.high %v1090_v19, %v1098_v32 }
 0x559   : > { %v10892_v1 = vcombine.high %v1346_v15, %v1354_v61  ;;  %v1074_v41 = vld [vmem:[%s12155_s21 + $0x4b8] sm:$0xff] }
 0x55a   : > { %v1082_v4 = vld [vmem:[%s12155_s21 + $0x4f8] sm:$0xff] }
 0x55b   : > { %9160 = vmatpush2.bf16.msra.mxu0 %v10683_v22  ;;  %9231 = vmatpush2.bf16.msra.mxu1 %v10939_v24  ;;  %v1330_v57 = vld [vmem:[%s12155_s21 + $0xcb8] sm:$0xff]  ;;  %v10635_v22 = vcombine.low %v1090_v19, %v1098_v32  ;;  %v10891_v24 = vcombine.low %v1346_v15, %v1354_v61 }
 0x55c   : > { %9161 = vmatprep.subr.bf16.mxu0 %v10668_v8  ;;  %9232 = vmatprep.subr.bf16.mxu1 %v10924_v17  ;;  %v1338_v58 = vld [vmem:[%s12155_s21 + $0xcf8] sm:$0xff]  ;;  %v10620_v8 = vcombine.high %v1074_v41, %v1082_v4 }
 0x55d   : > { %v10876_v17 = vcombine.high %v1330_v57, %v1338_v58  ;;  %v1058_v54 = vld [vmem:[%s12155_s21 + $0x438] sm:$0xff]  ;;  %v10875_v19 = vcombine.low %v1330_v57, %v1338_v58 }
 0x55e   : > { %v1066_v35 = vld [vmem:[%s12155_s21 + $0x478] sm:$0xff] }
 0x55f   : > { %9162 = vmatpush2.bf16.msra.mxu0 %v10667_v55  ;;  %9233 = vmatpush2.bf16.msra.mxu1 %v10923_v36  ;;  %v1314_v42 = vld [vmem:[%s12155_s21 + $0xc38] sm:$0xff]  ;;  %v18304_v36 = vld [vmem:[#allocation53_spill] sm:$0xff]  ;;  %v10604_v61 = vcombine.high %v1058_v54, %v1066_v35 }
 0x560   : > { %9163 = vmatprep.subr.bf16.mxu0 %v10652_v34  ;;  %9234 = vmatprep.subr.bf16.mxu1 %v10908_v40  ;;  %v1322_v10 = vld [vmem:[%s12155_s21 + $0xc78] sm:$0xff]  ;;  %v10619_v40 = vcombine.low %v1074_v41, %v1082_v4 }
 0x561   : > { %v16703_v55 = vld [vmem:[%s13921_s15 + $0x8] sm:$0xff] }
 0x562   : > { %18303 = vst [vmem:[#allocation74_spill] sm:$0xff] %v16703_v55  ;;  %v16707_v34 = vrot.slane %v16703_v55, %v18304_v36  ;;  %v18305_v32 = vld [vmem:[#allocation51_spill] sm:$0xff] }
 0x563   : > { %9164 = vmatpush2.bf16.msra.mxu0 %v10651_v25  ;;  %9235 = vmatpush2.bf16.msra.mxu1 %v10907_v29  ;;  %v16711_v15 = vrot.slane %v16703_v55, %v18305_v32  ;;  %v10860_v25 = vcombine.high %v1314_v42, %v1322_v10  ;;  %v16714_v29 = vld [vmem:[%s12155_s21 + $0x13b8] sm:$0xff] }
 0x564   : > { %9165 = vmatprep.subr.bf16.mxu0 %v10636_v21  ;;  %9236 = vmatprep.subr.bf16.mxu1 %v10892_v1  ;;  %v16717_v21 = vld [vmem:[%s12155_s21 + $0x13f8] sm:$0xff]  ;;  %v8606_v41 = vadd.f32 %v16574_v60, %v16707_v34 }
 0x565   : > { %v16720_v1 = vld [vmem:[%s12155_s21 + $0x1bb8] sm:$0xff]  ;;  %v8608_v55 = vadd.f32 %v16578_v52, %v16711_v15 }
 0x566   : > { %v16728_v4 = vld [vmem:[%s12155_s21 + $0x1338] sm:$0xff] }
 0x567   : > { %9166 = vmatpush2.bf16.msra.mxu0 %v10635_v22  ;;  %9237 = vmatpush2.bf16.msra.mxu1 %v10891_v24  ;;  %v16723_v22 = vld [vmem:[%s12155_s21 + $0x1bf8] sm:$0xff]  ;;  %v10603_v24 = vcombine.low %v1058_v54, %v1066_v35  ;;  %v11099_v54 = vcombine.low %v16714_v29, %v16717_v21 }
 0x568   : > { %9167 = vmatprep.subr.bf16.mxu0 %v10620_v8  ;;  %9238 = vmatprep.subr.bf16.mxu1 %v10876_v17  ;;  %v16731_v57 = vld [vmem:[%s12155_s21 + $0x1378] sm:$0xff]  ;;  %v10859_v8 = vcombine.low %v1314_v42, %v1322_v10  ;;  %v11100_v17 = vcombine.high %v16714_v29, %v16717_v21  ;;  %v11356_v35 = vcombine.high %v16720_v1, %v16723_v22 }
 0x569   : > { %v16734_v58 = vld [vmem:[%s12155_s21 + $0x1b38] sm:$0xff]  ;;  %v11355_v52 = vcombine.low %v16720_v1, %v16723_v22  ;;  %v8677_v21 = vadd.f32 %v16576_v39, %v8606_v41  ;;  %v8679_v1 = vadd.f32 %v16580_v37, %v8608_v55  ;;  %v8612_v41 = vadd.f32 %v16594_v20, %v16711_v15 }
 0x56a   : > { %v16739_v36 = vld [vmem:[%s12155_s21 + $0x1b78] sm:$0xff]  ;;  %v8616_v55 = vadd.f32 %v16602_v48, %v16707_v34  ;;  %v8618_v48 = vadd.f32 %v16606_v33, %v16711_v15 }
 0x56b   : > { %9168 = vmatpush2.bf16.msra.mxu0 %v10619_v40  ;;  %9239 = vmatpush2.bf16.msra.mxu1 %v10875_v19  ;;  %v16742_v60 = vld [vmem:[%s12155_s21 + $0x12b8] sm:$0xff]  ;;  %v8610_v40 = vadd.f32 %v16590_v53, %v16707_v34  ;;  %v11340_v53 = vcombine.high %v16734_v58, %v16739_v36  ;;  %v8747_v44 = vpop.f32.mrf.mxu0  ;;  %v8818_v46 = vpop.f32.mrf.mxu1 }
 0x56c   : > { %v16745_v32 = vld [vmem:[%s12155_s21 + $0x12f8] sm:$0xff]  ;;  %9169 = vmatprep.subr.bf16.mxu0 %v10604_v61  ;;  %9240 = vmatprep.subr.bf16.mxu1 %v10860_v25  ;;  %v11084_v61 = vcombine.high %v16728_v4, %v16731_v57  ;;  %v8748_v9 = vadd.f32 %v8747_v44, %v8677_v21  ;;  %v18307_v21 = vld [vmem:[#allocation85_spill] sm:$0xff]  ;;  %v18308_v44 = vld [vmem:[#allocation32_spill] sm:$0xff] }
 0x56d   : > { %v16754_v42 = vld [vmem:[%s12155_s21 + $0x1ab8] sm:$0xff]  ;;  %v8681_v39 = vadd.f32 %v16592_v0, %v8610_v40  ;;  %v8749_v6 = vpop.f32.mrf.mxu0  ;;  %v8820_v49 = vpop.f32.mrf.mxu1 }
 0x56e   : > { %v16757_v10 = vld [vmem:[%s12155_s21 + $0x1af8] sm:$0xff]  ;;  %v8750_v0 = vadd.f32 %v8749_v6, %v8679_v1 }
 0x56f   : > { %v16768_v25 = vld [vmem:[%s12155_s21 + $0x1238] sm:$0xff]  ;;  %9170 = vmatpush2.bf16.msra.mxu0 %v10603_v24  ;;  %9241 = vmatpush2.bf16.msra.mxu1 %v10859_v8  ;;  %v18309_v24 = vld [vmem:[#allocation46_spill] sm:$0xff]  ;;  %v8751_v37 = vpop.f32.mrf.mxu0  ;;  %v8822_v3 = vpop.f32.mrf.mxu1 }
 0x570   : > { %v16771_v29 = vld [vmem:[%s12155_s21 + $0x1278] sm:$0xff]  ;;  %9281 = vmatprep.subr.bf16.mxu0 %v11100_v17  ;;  %9352 = vmatprep.subr.bf16.mxu1 %v11356_v35  ;;  %v16810_v17 = vadd.f32 %v8818_v46, %v8748_v9  ;;  %v18306_v35 = vld [vmem:[#allocation84_spill] sm:$0xff]  ;;  %v8683_v9 = vadd.f32 %v16596_v13, %v8612_v41  ;;  %v8620_v46 = vadd.f32 %v16618_v56, %v16707_v34 }
 0x571   : > { %v16781_v22 = vld [vmem:[%s12155_s21 + $0x1a38] sm:$0xff]  ;;  %v8753_v33 = vpop.f32.mrf.mxu0  ;;  %v8824_v6 = vpop.f32.mrf.mxu1 }
 0x572   : > { %v16784_v19 = vld [vmem:[%s12155_s21 + $0x1a78] sm:$0xff]  ;;  %9172 = vmatmul.mubr.bf16.vlgmr.msra.gmra.mxu0 %v18306_v35  ;;  %9243 = vmatmul.mubr.bf16.vlgmr.msra.gmra.mxu1 %v18307_v21  ;;  %v9545_v1 = vmul.f32 0.70710677, %v16810_v17  ;;  %v8754_v13 = vadd.f32 %v8753_v33, %v8683_v9  ;;  %v18311_v9 = vcombine.low %v16734_v58, %v16739_v36  ;;  %v18313_v58 = vcombine.high %v16754_v42, %v16757_v10 }
 0x573   : > { %v16796_v8 = vld [vmem:[%s12155_s21 + $0x11b8] sm:$0xff]  ;;  %9181 = vmatprep.mubr.bf16.mxu0 %v18308_v44  ;;  %9252 = vmatprep.mubr.bf16.mxu1 %v18309_v24  ;;  %v16831_v44 = vadd.f32 %v8820_v49, %v8750_v0  ;;  %v8752_v24 = vadd.f32 %v8751_v37, %v8681_v39  ;;  %v8687_v49 = vadd.f32 %v16604_v14, %v8616_v55  ;;  %v8757_v56 = vpop.f32.mrf.mxu0  ;;  %v8828_v41 = vpop.f32.mrf.mxu1 }
 0x574   : > { %v16799_v2 = vld [vmem:[%s12155_s21 + $0x11f8] sm:$0xff]  ;;  %9282 = vmatpush1.bf16.msra.mxu0 %v11099_v54  ;;  %9353 = vmatpush1.bf16.msra.mxu1 %v11355_v52  ;;  %11714 = verf.f32 %v9545_v1  ;;  %v8689_v55 = vadd.f32 %v16608_v11, %v8618_v48  ;;  %v18310_v0 = vcombine.low %v16728_v4, %v16731_v57  ;;  %v8691_v11 = vadd.f32 %v16620_v43, %v8620_v46 }
 0x575   : > { %v16815_v20 = vld [vmem:[%s12155_s21 + $0x19b8] sm:$0xff]  ;;  %9283 = vmatprep.subr.bf16.mxu0 %v11084_v61  ;;  %9354 = vmatprep.subr.bf16.mxu1 %v11340_v53  ;;  %v9546_v52 = vmul.f32 0.70710677, %v16831_v44  ;;  %v16846_v39 = vadd.f32 %v8822_v3, %v8752_v24  ;;  %v8758_v1 = vadd.f32 %v8757_v56, %v8687_v49  ;;  %v8622_v48 = vadd.f32 %v16622_v50, %v16711_v15  ;;  %v8759_v36 = vpop.f32.mrf.mxu0  ;;  %v8830_v49 = vpop.f32.mrf.mxu1 }
 0x576   : > { %v16818_v40 = vld [vmem:[%s12155_s21 + $0x19f8] sm:$0xff]  ;;  %v16877_v4 = vadd.f32 %v8824_v6, %v8754_v13  ;;  %v18312_v57 = vcombine.high %v16742_v60, %v16745_v32  ;;  %v8760_v50 = vadd.f32 %v8759_v36, %v8689_v55  ;;  %v8628_v55 = vadd.f32 %v16634_v27, %v16711_v15 }
 0x577   : > { %v16834_v35 = vld [vmem:[%s12155_s21 + $0x1138] sm:$0xff]  ;;  %v11291_v54 = vcombine.low %v16815_v20, %v16818_v40  ;;  %v11292_v61 = vcombine.high %v16815_v20, %v16818_v40  ;;  %11716 = verf.f32 %v9546_v52  ;;  %v9561_v3 = vmul.f32 0.70710677, %v16846_v39  ;;  %v8832_v56 = vpop.f32.mrf.mxu1 }
 0x578   : > { %v16837_v21 = vld [vmem:[%s12155_s21 + $0x1178] sm:$0xff]  ;;  %9284 = vmatpush1.bf16.msra.mxu0 %v18310_v0  ;;  %9355 = vmatpush1.bf16.msra.mxu1 %v18311_v9  ;;  %v8626_v52 = vadd.f32 %v16630_v18, %v16707_v34  ;;  %v16887_v43 = vadd.f32 %v8828_v41, %v8758_v1  ;;  %v9562_v13 = vmul.f32 0.70710677, %v16877_v4  ;;  %v8761_v18 = vpop.f32.mrf.mxu0  ;;  %v16915_v0 = vadd.f32 %v8830_v49, %v8760_v50 }
 0x579   : > { %v11020_v14 = vcombine.high %v16834_v35, %v16837_v21  ;;  %v16855_v37 = vld [vmem:[%s12155_s21 + $0x1938] sm:$0xff]  ;;  %9285 = vmatprep.subr.bf16.mxu0 %v18312_v57  ;;  %9356 = vmatprep.subr.bf16.mxu1 %v18313_v58  ;;  %11718 = verf.f32 %v9561_v3  ;;  %v8762_v9 = vadd.f32 %v8761_v18, %v8691_v11  ;;  %v8693_v58 = vadd.f32 %v16624_v12, %v8622_v48 }
 0x57a   : > { %v16866_v24 = vld [vmem:[%s12155_s21 + $0x1978] sm:$0xff]  ;;  %9182 = vmatmul.mubr.bf16.gmra.mxu0 %v18061_v7  ;;  %9253 = vmatmul.mubr.bf16.gmra.mxu1 %v18062_v23  ;;  %v9577_v3 = vmul.f32 0.70710677, %v16887_v43  ;;  %11720 = verf.f32 %v9562_v13  ;;  %v18316_v27 = vcombine.high %v16768_v25, %v16771_v29  ;;  %v8697_v36 = vadd.f32 %v16632_v28, %v8626_v52 }
 0x57b   : > { %v16869_v33 = vld [vmem:[%s12155_s21 + $0x10b8] sm:$0xff]  ;;  %9191 = vmatprep.mubr.bf16.mxu0 %v13400_v62  ;;  %9262 = vmatprep.mubr.bf16.mxu1 %v13402_v63  ;;  %v11275_v7 = vcombine.low %v16855_v37, %v16866_v24  ;;  %v11276_v23 = vcombine.high %v16855_v37, %v16866_v24  ;;  %v18314_v62 = vcombine.low %v16742_v60, %v16745_v32  ;;  %v8763_v32 = vpop.f32.mrf.mxu0  ;;  %v9578_v12 = vmul.f32 0.70710677, %v16915_v0 }
 0x57c   : > { %v16872_v53 = vld [vmem:[%s12155_s21 + $0x10f8] sm:$0xff]  ;;  %v18315_v63 = vcombine.low %v16754_v42, %v16757_v10  ;;  %v18317_v60 = vcombine.high %v16781_v22, %v16784_v19  ;;  %v8834_v42 = vpop.f32.mrf.mxu1  ;;  %11722 = verf.f32 %v9577_v3  ;;  %v16936_v48 = vadd.f32 %v8832_v56, %v8762_v9 }
 0x57d   : > { %v16892_v46 = vld [vmem:[%s12155_s21 + $0x18b8] sm:$0xff]  ;;  %v11004_v41 = vcombine.high %v16869_v33, %v16872_v53  ;;  %9286 = vmatpush1.bf16.msra.mxu0 %v18314_v62  ;;  %v11003_v10 = vcombine.low %v16869_v33, %v16872_v53  ;;  %v8630_v49 = vadd.f32 %v16646_v45, %v16707_v34  ;;  %v8764_v50 = vadd.f32 %v8763_v32, %v8693_v58  ;;  %v8767_v13 = vpop.f32.mrf.mxu0 }
 0x57e   : > { %v16895_v6 = vld [vmem:[%s12155_s21 + $0x18f8] sm:$0xff]  ;;  %9357 = vmatpush1.bf16.msra.mxu1 %v18315_v63  ;;  %9287 = vmatprep.subr.bf16.mxu0 %v18316_v27  ;;  %v8838_v18 = vpop.f32.mrf.mxu1  ;;  %v8699_v28 = vadd.f32 %v16636_v5, %v8628_v55  ;;  %11724 = verf.f32 %v9578_v12  ;;  %v9593_v52 = vmul.f32 0.70710677, %v16936_v48  ;;  %v18318_v56 = vcombine.low %v16768_v25, %v16771_v29 }
 0x57f   : > { %v16918_v1 = vld [vmem:[%s12155_s21 + $0x1038] sm:$0xff]  ;;  %9358 = vmatprep.subr.bf16.mxu1 %v18317_v60  ;;  %v11259_v11 = vcombine.low %v16892_v46, %v16895_v6  ;;  %v11260_v62 = vcombine.high %v16892_v46, %v16895_v6  ;;  %v18319_v45 = vcombine.low %v16781_v22, %v16784_v19  ;;  %v8768_v3 = vadd.f32 %v8767_v13, %v8697_v36  ;;  %v8769_v19 = vpop.f32.mrf.mxu0 }
 0x580   : > { %v16921_v57 = vld [vmem:[%s12155_s21 + $0x1078] sm:$0xff]  ;;  %v8632_v27 = vadd.f32 %v16650_v47, %v16711_v15  ;;  %v8636_v5 = vadd.f32 %v16658_v31, %v16707_v34  ;;  %v16962_v55 = vadd.f32 %v8834_v42, %v8764_v50  ;;  %v18320_v25 = vcombine.high %v16796_v8, %v16799_v2  ;;  %v8840_v29 = vpop.f32.mrf.mxu1 }
 0x581   : > { %v10988_v63 = vcombine.high %v16918_v1, %v16921_v57  ;;  %9288 = vmatpush1.bf16.msra.mxu0 %v18318_v56  ;;  %v16953_v9 = vld [vmem:[%s12155_s21 + $0x1838] sm:$0xff]  ;;  %11726 = verf.f32 %v9593_v52  ;;  %v16970_v22 = vadd.f32 %v8838_v18, %v8768_v3  ;;  %v8770_v31 = vadd.f32 %v8769_v19, %v8699_v28  ;;  %v11715_v34 = vpop.eup %11714  ;;  %v8771_v42 = vpop.f32.mrf.mxu0 }
 0x582   : > { %9359 = vmatpush1.bf16.msra.mxu1 %v18319_v45  ;;  %v16956_v58 = vld [vmem:[%s12155_s21 + $0x1878] sm:$0xff]  ;;  %9289 = vmatprep.subr.bf16.mxu0 %v18320_v25  ;;  %v10987_v47 = vcombine.low %v16918_v1, %v16921_v57  ;;  %v8701_v60 = vadd.f32 %v16648_v51, %v8630_v49  ;;  %v8638_v32 = vadd.f32 %v16662_v30, %v16711_v15  ;;  %v9433_v36 = vmul.f32 0.5, %v16810_v17  ;;  %v18322_v30 = vld [vmem:[#allocation29_spill] sm:$0xff]  ;;  %v18323_v49 = vld [vmem:[#allocation36_spill] sm:$0xff] }
 0x583   : > { %9360 = vmatprep.subr.bf16.mxu1 %v11292_v61  ;;  %9192 = vmatmul.mubr.bf16.gmra.mxu0 %v13404_v16  ;;  %v9594_v61 = vmul.f32 0.70710677, %v16962_v55  ;;  %v8842_v16 = vpop.f32.mrf.mxu1  ;;  %v9769_v12 = vadd.f32 1.0, %v11715_v34  ;;  %v9609_v50 = vmul.f32 0.70710677, %v16970_v22  ;;  %v18321_v51 = vcombine.low %v16796_v8, %v16799_v2  ;;  %v8773_v2 = vpop.f32.mrf.mxu0  ;;  %v18324_v28 = vld [vmem:[#allocation43_spill] sm:$0xff] }
 0x584   : > { %9263 = vmatmul.mubr.bf16.gmra.mxu1 %v13407_v26  ;;  %9201 = vmatprep.mubr.bf16.mxu0 %v18128_v38  ;;  %v11243_v26 = vcombine.low %v16953_v9, %v16956_v58  ;;  %v16992_v38 = vadd.f32 %v8840_v29, %v8770_v31  ;;  %v8703_v15 = vadd.f32 %v18322_v30, %v8632_v27  ;;  %v9434_v40 = vmul.f32 0.5, %v16831_v44  ;;  %v17027_v37 = vld [vmem:[%s12155_s21 + $0x17b8] sm:$0xff] }
 0x585   : > { %9272 = vmatprep.mubr.bf16.mxu1 %v18176_v59  ;;  %9290 = vmatpush1.bf16.msra.mxu0 %v18321_v51  ;;  %v11717_v59 = vpop.eup %11716  ;;  %v8707_v13 = vadd.f32 %v18323_v49, %v8636_v5  ;;  %11728 = verf.f32 %v9594_v61  ;;  %v8772_v17 = vadd.f32 %v8771_v42, %v8701_v60  ;;  %v8844_v8 = vpop.f32.mrf.mxu1  ;;  %v9881_v20 = vmul.f32 %v9769_v12, %v9433_v36  ;;  %v18326_v60 = vld [vmem:[#allocation39_spill] sm:$0xff] }
 0x586   : > { %9361 = vmatpush1.bf16.msra.mxu1 %v11291_v54  ;;  %9291 = vmatprep.subr.bf16.mxu0 %v11020_v14  ;;  %v9770_v54 = vadd.f32 1.0, %v11717_v59  ;;  %11730 = verf.f32 %v9609_v50  ;;  %v11719_v18 = vpop.eup %11718  ;;  %v8709_v52 = vadd.f32 %v18324_v28, %v8638_v32  ;;  %v9610_v56 = vmul.f32 0.70710677, %v16992_v38  ;;  %v8777_v14 = vpop.f32.mrf.mxu0  ;;  %v17035_v61 = vld [vmem:[%s12155_s21 + $0x17f8] sm:$0xff]  ;;  %v18329_v59 = vld [vmem:[#allocation33_spill] sm:$0xff] }
 0x587   : > { %9362 = vmatprep.subr.bf16.mxu1 %v11276_v23  ;;  %v17005_v45 = vadd.f32 %v8842_v16, %v8772_v17  ;;  %v8774_v3 = vadd.f32 %v8773_v2, %v8703_v15  ;;  %v8848_v27 = vpop.f32.mrf.mxu1  ;;  %9993 = vst [vmem:[%s14231_s27 + $0x50] sm:$0xff] %v9881_v20  ;;  %v9449_v5 = vmul.f32 0.5, %v16846_v39  ;;  %v9785_v25 = vadd.f32 1.0, %v11719_v18  ;;  %v11721_v24 = vpop.eup %11720  ;;  %v17041_v42 = vld [vmem:[%s12155_s21 + $0x1ff8] sm:$0xff] }
 0x588   : > { %v9882_v23 = vmul.f32 %v9770_v54, %v9434_v40  ;;  %v18325_v44 = vcombine.low %v16834_v35, %v16837_v21  ;;  %v8778_v19 = vadd.f32 %v8777_v14, %v8707_v13  ;;  %11732 = verf.f32 %v9610_v56  ;;  %v8779_v35 = vpop.f32.mrf.mxu0  ;;  %v18328_v51 = vld [vmem:[#allocation31_spill] sm:$0xff] }
 0x589   : > { %v9625_v29 = vmul.f32 0.70710677, %v17005_v45  ;;  %v17016_v31 = vadd.f32 %v8844_v8, %v8774_v3  ;;  %v8850_v21 = vpop.f32.mrf.mxu1  ;;  %v11244_v39 = vcombine.high %v16953_v9, %v16956_v58  ;;  %v8780_v32 = vadd.f32 %v8779_v35, %v8709_v52  ;;  %v11723_v16 = vpop.eup %11722  ;;  %v1666_v6 = vld [vmem:[%s12155_s21 + $0x1738] sm:$0xff] }
 0x58a   : > { %9292 = vmatpush1.bf16.msra.mxu0 %v18325_v44  ;;  %9363 = vmatpush1.bf16.msra.mxu1 %v11275_v7  ;;  %9994 = vst [vmem:[%s14231_s27 + $0x58] sm:$0xff] %v9882_v23  ;;  %v9897_v7 = vmul.f32 %v9785_v25, %v9449_v5  ;;  %v17030_v34 = vadd.f32 %v8848_v27, %v8778_v19  ;;  %v9450_v36 = vmul.f32 0.5, %v16877_v4  ;;  %v9786_v12 = vadd.f32 1.0, %v11721_v24  ;;  %v8781_v30 = vpop.f32.mrf.mxu0  ;;  %v1674_v40 = vld [vmem:[%s12155_s21 + $0x1778] sm:$0xff] }
 0x58b   : > { %9293 = vmatprep.subr.bf16.mxu0 %v11004_v41  ;;  %9364 = vmatprep.subr.bf16.mxu1 %v11260_v62  ;;  %v18327_v41 = vld [vmem:[#allocation41_spill] sm:$0xff]  ;;  %v17038_v62 = vld [vmem:[%s12155_s21 + $0x1fb8] sm:$0xff]  ;;  %11734 = verf.f32 %v9625_v29  ;;  %v9626_v50 = vmul.f32 0.70710677, %v17016_v31  ;;  %v8852_v15 = vpop.f32.mrf.mxu1  ;;  %v9465_v49 = vmul.f32 0.5, %v16887_v43  ;;  %v9801_v13 = vadd.f32 1.0, %v11723_v16  ;;  %v11725_v2 = vpop.eup %11724 }
 0x58c   : > { %9202 = vmatmul.mubr.bf16.gmra.mxu0 %v18326_v60  ;;  %9273 = vmatmul.mubr.bf16.gmra.mxu1 %v18327_v41  ;;  %10009 = vst [vmem:[%s14231_s27 + $0xd0] sm:$0xff] %v9897_v7  ;;  %v9641_v17 = vmul.f32 0.70710677, %v17030_v34  ;;  %v17056_v4 = vadd.f32 %v8850_v21, %v8780_v32  ;;  %v9898_v8 = vmul.f32 %v9786_v12, %v9450_v36  ;;  %v8782_v53 = vpop.f32.mrf.mxu0  ;;  %v9802_v20 = vadd.f32 1.0, %v11725_v2  ;;  %v1922_v54 = vld [vmem:[%s12155_s21 + $0x1f38] sm:$0xff] }
 0x58d   : > { %9313 = vmatprep.mubr.bf16.mxu0 %v18328_v51  ;;  %9384 = vmatprep.mubr.bf16.mxu1 %v18329_v59  ;;  %11736 = verf.f32 %v9626_v50  ;;  %v8853_v33 = vpop.f32.mrf.mxu1  ;;  %v11228_v43 = vcombine.high %v17027_v37, %v17035_v61  ;;  %v11484_v46 = vcombine.high %v17038_v62, %v17041_v42  ;;  %v1930_v18 = vld [vmem:[%s12155_s21 + $0x1f78] sm:$0xff]  ;;  %v11227_v52 = vcombine.low %v17027_v37, %v17035_v61 }
 0x58e   : > { %9294 = vmatpush1.bf16.msra.mxu0 %v11003_v10  ;;  %9365 = vmatpush1.bf16.msra.mxu1 %v11259_v11  ;;  %v9913_v10 = vmul.f32 %v9801_v13, %v9465_v49  ;;  %v9466_v11 = vmul.f32 0.5, %v16915_v0  ;;  %11738 = verf.f32 %v9641_v17  ;;  %10010 = vst [vmem:[%s14231_s27 + $0xd8] sm:$0xff] %v9898_v8  ;;  %v9642_v28 = vmul.f32 0.70710677, %v17056_v4  ;;  %v1658_v44 = vld [vmem:[%s12155_s21 + $0x16f8] sm:$0xff] }
 0x58f   : > { %9295 = vmatprep.subr.bf16.mxu0 %v10988_v63  ;;  %9366 = vmatprep.subr.bf16.mxu1 %v11244_v39  ;;  %v11727_v63 = vpop.eup %11726  ;;  %v9481_v0 = vmul.f32 0.5, %v16936_v48  ;;  %v11483_v14 = vcombine.low %v17038_v62, %v17041_v42  ;;  %v11212_v27 = vcombine.high %v1666_v6, %v1674_v40  ;;  %v11468_v23 = vcombine.high %v1922_v54, %v1930_v18  ;;  %v1650_v48 = vld [vmem:[%s12155_s21 + $0x16b8] sm:$0xff] }
 0x590   : > { %10025 = vst [vmem:[%s14231_s27 + $0x150] sm:$0xff] %v9913_v10  ;;  %v9914_v56 = vmul.f32 %v9802_v20, %v9466_v11  ;;  %v9817_v3 = vadd.f32 1.0, %v11727_v63  ;;  %11740 = verf.f32 %v9642_v28  ;;  %v1906_v1 = vld [vmem:[%s12155_s21 + $0x1eb8] sm:$0xff]  ;;  %v9482_v9 = vmul.f32 0.5, %v16962_v55 }
 0x591   : > { %v1914_v57 = vld [vmem:[%s12155_s21 + $0x1ef8] sm:$0xff]  ;;  %v11211_v29 = vcombine.low %v1666_v6, %v1674_v40  ;;  %v11467_v35 = vcombine.low %v1922_v54, %v1930_v18  ;;  %v11196_v39 = vcombine.high %v1650_v48, %v1658_v44  ;;  %v11195_v42 = vcombine.low %v1650_v48, %v1658_v44 }
 0x592   : > { %9296 = vmatpush1.bf16.msra.mxu0 %v10987_v47  ;;  %9367 = vmatpush1.bf16.msra.mxu1 %v11243_v26  ;;  %v11729_v5 = vpop.eup %11728  ;;  %10026 = vst [vmem:[%s14231_s27 + $0x158] sm:$0xff] %v9914_v56  ;;  %v9929_v25 = vmul.f32 %v9817_v3, %v9481_v0  ;;  %v9497_v26 = vmul.f32 0.5, %v16970_v22  ;;  %v11452_v37 = vcombine.high %v1906_v1, %v1914_v57  ;;  %v1634_v24 = vld [vmem:[%s12155_s21 + $0x1638] sm:$0xff]  ;;  %v9498_v22 = vmul.f32 0.5, %v16992_v38 }
 0x593   : > { %9297 = vmatprep.subr.bf16.mxu0 %v11228_v43  ;;  %9368 = vmatprep.subr.bf16.mxu1 %v11484_v46  ;;  %v11731_v47 = vpop.eup %11730  ;;  %v9818_v58 = vadd.f32 1.0, %v11729_v5  ;;  %v1642_v55 = vld [vmem:[%s12155_s21 + $0x1678] sm:$0xff]  ;;  %v11451_v16 = vcombine.low %v1906_v1, %v1914_v57  ;;  %v9513_v50 = vmul.f32 0.5, %v17005_v45  ;;  %v9514_v8 = vmul.f32 0.5, %v17016_v31 }
 0x594   : > { %10041 = vst [vmem:[%s14231_s27 + $0x1d0] sm:$0xff] %v9929_v25  ;;  %v9833_v19 = vadd.f32 1.0, %v11731_v47  ;;  %v1890_v41 = vld [vmem:[%s12155_s21 + $0x1e38] sm:$0xff]  ;;  %v11180_v36 = vcombine.high %v1634_v24, %v1642_v55  ;;  %v9529_v45 = vmul.f32 0.5, %v17030_v34  ;;  %v11179_v43 = vcombine.low %v1634_v24, %v1642_v55 }
 0x595   : > { %v9930_v21 = vmul.f32 %v9818_v58, %v9482_v9  ;;  %v11733_v7 = vpop.eup %11732  ;;  %v1898_v32 = vld [vmem:[%s12155_s21 + $0x1e78] sm:$0xff]  ;;  %v9530_v63 = vmul.f32 0.5, %v17056_v4 }
 0x596   : > { %9298 = vmatpush2.bf16.msra.mxu0 %v11227_v52  ;;  %9369 = vmatpush2.bf16.msra.mxu1 %v11483_v14  ;;  %v9945_v60 = vmul.f32 %v9833_v19, %v9497_v26  ;;  %v9834_v61 = vadd.f32 1.0, %v11733_v7  ;;  %v11436_v59 = vcombine.high %v1890_v41, %v1898_v32  ;;  %v1618_v38 = vld [vmem:[%s12155_s21 + $0x15b8] sm:$0xff]  ;;  %v11435_v46 = vcombine.low %v1890_v41, %v1898_v32  ;;  %v18331_v41 = vld [vmem:[#allocation49_spill] sm:$0xff]  ;;  %v18332_v32 = vld [vmem:[#allocation54_spill] sm:$0xff] }
 0x597   : > { %9299 = vmatprep.subr.bf16.mxu0 %v11212_v27  ;;  %9370 = vmatprep.subr.bf16.mxu1 %v11468_v23  ;;  %10042 = vst [vmem:[%s14231_s27 + $0x1d8] sm:$0xff] %v9930_v21  ;;  %v1626_v15 = vld [vmem:[%s12155_s21 + $0x15f8] sm:$0xff] }
 0x598   : > { %v11735_v62 = vpop.eup %11734  ;;  %10057 = vst [vmem:[%s14231_s27 + $0x250] sm:$0xff] %v9945_v60  ;;  %v9946_v12 = vmul.f32 %v9834_v61, %v9498_v22  ;;  %v1874_v49 = vld [vmem:[%s12155_s21 + $0x1db8] sm:$0xff]  ;;  %v11164_v10 = vcombine.high %v1618_v38, %v1626_v15  ;;  %v11163_v52 = vcombine.low %v1618_v38, %v1626_v15  ;;  %v18330_v60 = vld [vmem:[#allocation30_spill] sm:$0xff]  ;;  %v18333_v22 = vld [vmem:[#allocation56_spill] sm:$0xff] }
 0x599   : > { %v9849_v51 = vadd.f32 1.0, %v11735_v62  ;;  %v1882_v13 = vld [vmem:[%s12155_s21 + $0x1df8] sm:$0xff]  ;;  %v18335_v38 = vld [vmem:[#allocation40_spill] sm:$0xff] }
 0x59a   : > { %9300 = vmatpush2.bf16.msra.mxu0 %v11211_v29  ;;  %9371 = vmatpush2.bf16.msra.mxu1 %v11467_v35  ;;  %v11737_v30 = vpop.eup %11736  ;;  %10058 = vst [vmem:[%s14231_s27 + $0x258] sm:$0xff] %v9946_v12  ;;  %v11420_v11 = vcombine.high %v1874_v49, %v1882_v13  ;;  %v1602_v31 = vld [vmem:[%s12155_s21 + $0x1538] sm:$0xff]  ;;  %v11419_v56 = vcombine.low %v1874_v49, %v1882_v13 }
 0x59b   : > { %9301 = vmatprep.subr.bf16.mxu0 %v11196_v39  ;;  %9372 = vmatprep.subr.bf16.mxu1 %v11452_v37  ;;  %v11739_v17 = vpop.eup %11738  ;;  %v9961_v2 = vmul.f32 %v9849_v51, %v9513_v50  ;;  %v9850_v53 = vadd.f32 1.0, %v11737_v30  ;;  %v1610_v54 = vld [vmem:[%s12155_s21 + $0x1578] sm:$0xff]  ;;  %v18336_v30 = vld [vmem:[#allocation62_spill] sm:$0xff] }
 0x59c   : > { %v9865_v33 = vadd.f32 1.0, %v11739_v17  ;;  %v1858_v34 = vld [vmem:[%s12155_s21 + $0x1d38] sm:$0xff]  ;;  %v11148_v3 = vcombine.high %v1602_v31, %v1610_v54  ;;  %v11147_v5 = vcombine.low %v1602_v31, %v1610_v54 }
 0x59d   : > { %10073 = vst [vmem:[%s14231_s27 + $0x2d0] sm:$0xff] %v9961_v2  ;;  %v9962_v6 = vmul.f32 %v9850_v53, %v9514_v8  ;;  %v11741_v20 = vpop.eup %11740  ;;  %v1866_v18 = vld [vmem:[%s12155_s21 + $0x1d78] sm:$0xff] }
 0x59e   : > { %9302 = vmatpush2.bf16.msra.mxu0 %v11195_v42  ;;  %9373 = vmatpush2.bf16.msra.mxu1 %v11451_v16  ;;  %v9977_v40 = vmul.f32 %v9865_v33, %v9529_v45  ;;  %v9866_v28 = vadd.f32 1.0, %v11741_v20  ;;  %v11404_v14 = vcombine.high %v1858_v34, %v1866_v18  ;;  %v1586_v27 = vld [vmem:[%s12155_s21 + $0x14b8] sm:$0xff]  ;;  %v11403_v25 = vcombine.low %v1858_v34, %v1866_v18 }
 0x59f   : > { %9303 = vmatprep.subr.bf16.mxu0 %v11180_v36  ;;  %9374 = vmatprep.subr.bf16.mxu1 %v11436_v59  ;;  %10074 = vst [vmem:[%s14231_s27 + $0x2d8] sm:$0xff] %v9962_v6  ;;  %v1594_v23 = vld [vmem:[%s12155_s21 + $0x14f8] sm:$0xff]  ;;  %v18334_v59 = vld [vmem:[#allocation38_spill] sm:$0xff]  ;;  %v18340_v6 = vld [vmem:[#allocation13_spill] sm:$0xff] }
 0x5a0   : > { %10089 = vst [vmem:[%s14231_s27 + $0x350] sm:$0x1] %v9977_v40  ;;  %v9978_v0 = vmul.f32 %v9866_v28, %v9530_v63  ;;  %v1842_v48 = vld [vmem:[%s12155_s21 + $0x1cb8] sm:$0xff]  ;;  %v11132_v44 = vcombine.high %v1586_v27, %v1594_v23  ;;  %v11131_v26 = vcombine.low %v1586_v27, %v1594_v23  ;;  %v18342_v28 = vld [vmem:[#allocation12_spill] sm:$0xff]  ;;  %v18345_v23 = vld [vmem:[#allocation74_spill] sm:$0xff] }
 0x5a1   : > { %v1850_v4 = vld [vmem:[%s12155_s21 + $0x1cf8] sm:$0xff]  ;;  %v18344_v27 = vld [vmem:[#allocation60_spill] sm:$0xff] }
 0x5a2   : > { %9304 = vmatpush2.bf16.msra.mxu0 %v11179_v43  ;;  %9375 = vmatpush2.bf16.msra.mxu1 %v11435_v46  ;;  %10090 = vst [vmem:[%s14231_s27 + $0x358] sm:$0x1] %v9978_v0  ;;  %v11388_v1 = vcombine.high %v1842_v48, %v1850_v4  ;;  %v1570_v57 = vld [vmem:[%s12155_s21 + $0x1438] sm:$0xff]  ;;  %v11387_v19 = vcombine.low %v1842_v48, %v1850_v4  ;;  %v18338_v43 = vld [vmem:[#allocation64_spill] sm:$0xff]  ;;  %v18339_v46 = vld [vmem:[#allocation65_spill] sm:$0xff] }
 0x5a3   : > { %9305 = vmatprep.subr.bf16.mxu0 %v11164_v10  ;;  %9376 = vmatprep.subr.bf16.mxu1 %v11420_v11  ;;  %v1578_v47 = vld [vmem:[%s12155_s21 + $0x1478] sm:$0xff]  ;;  %v17172_v48 = vrot.slane %v18345_v23, %v18344_v27 }
 0x5a4   : > { %v1826_v9 = vld [vmem:[%s12155_s21 + $0x1c38] sm:$0xff]  ;;  %v11116_v29 = vcombine.high %v1570_v57, %v1578_v47  ;;  %v11115_v21 = vcombine.low %v1570_v57, %v1578_v47 }
 0x5a5   : > { %v1834_v58 = vld [vmem:[%s12155_s21 + $0x1c78] sm:$0xff] }
 0x5a6   : > { %9306 = vmatpush2.bf16.msra.mxu0 %v11163_v52  ;;  %9377 = vmatpush2.bf16.msra.mxu1 %v11419_v56  ;;  %v11372_v35 = vcombine.high %v1826_v9, %v1834_v58  ;;  %v11371_v39 = vcombine.low %v1826_v9, %v1834_v58  ;;  %v18337_v15 = vld [vmem:[#allocation63_spill] sm:$0xff]  ;;  %v18343_v52 = vld [vmem:[#allocation66_spill] sm:$0xff] }
 0x5a7   : > { %9307 = vmatprep.subr.bf16.mxu0 %v11148_v3  ;;  %9378 = vmatprep.subr.bf16.mxu1 %v11404_v14  ;;  %v18341_v10 = vld [vmem:[#allocation15_spill] sm:$0xff] }
 0x5a8   : > { %v18346_v4 = vld [vmem:[#allocation55_spill] sm:$0xff] }
 0x5aa   : > { %9308 = vmatpush2.bf16.msra.mxu0 %v11147_v5  ;;  %9379 = vmatpush2.bf16.msra.mxu1 %v11403_v25  ;;  %v17176_v5 = vrot.slane %v18345_v23, %v18346_v4 }
 0x5ab   : > { %9309 = vmatprep.subr.bf16.mxu0 %v11132_v44  ;;  %9380 = vmatprep.subr.bf16.mxu1 %v11388_v1 }
 0x5ac   : > { %v8889_v37 = vpop.f32.mrf.mxu0  ;;  %v8960_v24 = vpop.f32.mrf.mxu1 }
 0x5ad   : > { %v8890_v25 = vadd.f32 %v8889_v37, %v17172_v48 }
 0x5ae   : > { %9310 = vmatpush2.bf16.msra.mxu0 %v11131_v26  ;;  %9381 = vmatpush2.bf16.msra.mxu1 %v11387_v19  ;;  %v8891_v55 = vpop.f32.mrf.mxu0  ;;  %v8962_v7 = vpop.f32.mrf.mxu1 }
 0x5af   : > { %9311 = vmatprep.subr.bf16.mxu0 %v11116_v29  ;;  %9382 = vmatprep.subr.bf16.mxu1 %v11372_v35  ;;  %v8892_v44 = vadd.f32 %v8891_v55, %v17176_v5  ;;  %v8961_v1 = vadd.f32 %v8960_v24, %v8890_v25 }
 0x5b0   : > { %v8893_v61 = vpop.f32.mrf.mxu0  ;;  %v8964_v62 = vpop.f32.mrf.mxu1 }
 0x5b1   : > { %v8894_v57 = vadd.f32 %v8893_v61, %v17172_v48  ;;  %v8963_v58 = vadd.f32 %v8962_v7, %v8892_v44 }
 0x5b2   : > { %9312 = vmatpush2.bf16.msra.mxu0 %v11115_v21  ;;  %9383 = vmatpush2.bf16.msra.mxu1 %v11371_v39  ;;  %v8895_v42 = vpop.f32.mrf.mxu0  ;;  %v8966_v16 = vpop.f32.mrf.mxu1 }
 0x5b3   : > { %v8896_v19 = vadd.f32 %v8895_v42, %v17176_v5  ;;  %v8965_v21 = vadd.f32 %v8964_v62, %v8894_v57 }
 0x5b4   : > { %v8899_v36 = vpop.f32.mrf.mxu0 }
 0x5b5   : > { %9314 = vmatmul.mubr.bf16.vlgmr.msra.gmra.mxu0 %v18330_v60  ;;  %9385 = vmatmul.mubr.bf16.vlgmr.msra.gmra.mxu1 %v18331_v41  ;;  %v8970_v12 = vpop.f32.mrf.mxu1  ;;  %v8900_v39 = vadd.f32 %v8899_v36, %v17172_v48  ;;  %v8967_v61 = vadd.f32 %v8966_v16, %v8896_v19 }
 0x5b6   : > { %9323 = vmatprep.mubr.bf16.mxu0 %v18332_v32  ;;  %9394 = vmatprep.mubr.bf16.mxu1 %v18333_v22  ;;  %v8901_v50 = vpop.f32.mrf.mxu0 }
 0x5b7   : > { %v17128_v51 = vpop.f32.mrf.mxu1  ;;  %v8902_v24 = vadd.f32 %v8901_v50, %v17176_v5  ;;  %v8971_v62 = vadd.f32 %v8970_v12, %v8900_v39 }
 0x5b8   : > { %v8903_v49 = vpop.f32.mrf.mxu0 }
 0x5b9   : > { %v17134_v13 = vpop.f32.mrf.mxu1  ;;  %v8904_v42 = vadd.f32 %v8903_v49, %v17172_v48  ;;  %v8973_v50 = vadd.f32 %v17128_v51, %v8902_v24 }
 0x5ba   : > { %v17136_v17 = vpop.f32.mrf.mxu0 }
 0x5bb   : > { %v17138_v2 = vpop.f32.mrf.mxu1  ;;  %v8975_v16 = vadd.f32 %v17134_v13, %v8904_v42  ;;  %v8906_v49 = vadd.f32 %v17136_v17, %v17176_v5 }
 0x5bc   : > { %v17140_v8 = vpop.f32.mrf.mxu0 }
 0x5bd   : > { %9324 = vmatmul.mubr.bf16.gmra.mxu0 %v18334_v59  ;;  %9395 = vmatmul.mubr.bf16.gmra.mxu1 %v18335_v38  ;;  %v8977_v25 = vadd.f32 %v17138_v2, %v8906_v49 }
 0x5be   : > { %9333 = vmatprep.mubr.bf16.mxu0 %v18336_v30  ;;  %9404 = vmatprep.mubr.bf16.mxu1 %v18337_v15  ;;  %v17144_v45 = vpop.f32.mrf.mxu0 }
 0x5bf   : > { %v17142_v53 = vpop.f32.mrf.mxu1  ;;  %v8912_v13 = vadd.f32 %v17144_v45, %v17176_v5 }
 0x5c0   : > { %v17152_v11 = vpop.f32.mrf.mxu0 }
 0x5c1   : > { %v17146_v33 = vpop.f32.mrf.mxu1  ;;  %v8914_v45 = vadd.f32 %v17152_v11, %v17172_v48 }
 0x5c2   : > { %v17156_v20 = vpop.f32.mrf.mxu0  ;;  %v8983_v19 = vadd.f32 %v17146_v33, %v8912_v13 }
 0x5c3   : > { %v17154_v31 = vpop.f32.mrf.mxu1 }
 0x5c4   : > { %v17160_v54 = vpop.f32.mrf.mxu0  ;;  %v8985_v33 = vadd.f32 %v17154_v31, %v8914_v45 }
 0x5c5   : > { %9334 = vmatmul.mubr.bf16.gmra.mxu0 %v18338_v43  ;;  %9405 = vmatmul.mubr.bf16.gmra.mxu1 %v18339_v46  ;;  %v17158_v40 = vpop.f32.mrf.mxu1 }
 0x5c6   : > { %9343 = vmatprep.mubr.bf16.mxu0 %v18340_v6  ;;  %9414 = vmatprep.mubr.bf16.mxu1 %v18341_v10  ;;  %v17164_v18 = vpop.f32.mrf.mxu0 }
 0x5c7   : > { %v8922_v24 = vadd.f32 %v17164_v18, %v17176_v5 }
 0x5c8   : > { %v17162_v34 = vpop.f32.mrf.mxu1  ;;  %v8923_v56 = vpop.f32.mrf.mxu0 }
 0x5c9   : > { %v8910_v56 = vadd.f32 %v17140_v8, %v17172_v48 }
 0x5ca   : > { %v17166_v63 = vpop.f32.mrf.mxu1  ;;  %v8924_v3 = vpop.f32.mrf.mxu0 }
 0x5cc   : > { %v8994_v0 = vpop.f32.mrf.mxu1 }
 0x5cd   : > { %9344 = vmatmul.mubr.bf16.gmra.mxu0 %v18342_v28  ;;  %9415 = vmatmul.mubr.bf16.gmra.mxu1 %v18343_v52 }
 0x5ce   : > { %v8995_v14 = vpop.f32.mrf.mxu1 }
 0x5f1   : > { %v9031_v47 = vpop.f32.mrf.mxu0  ;;  %v9102_v9 = vpop.f32.mrf.mxu1 }
 0x5f2   : > { %v9032_v26 = vadd.f32 %v9031_v47, %v8961_v1  ;;  %v8981_v1 = vadd.f32 %v17142_v53, %v8910_v56  ;;  %v8916_v53 = vadd.f32 %v17156_v20, %v17176_v5 }
 0x5f3   : > { %v9033_v29 = vpop.f32.mrf.mxu0  ;;  %v9104_v35 = vpop.f32.mrf.mxu1 }
 0x5f4   : > { %v17183_v60 = vadd.f32 %v9102_v9, %v9032_v26  ;;  %v9034_v41 = vadd.f32 %v9033_v29, %v8963_v58 }
 0x5f5   : > { %v9035_v37 = vpop.f32.mrf.mxu0  ;;  %v9106_v32 = vpop.f32.mrf.mxu1 }
 0x5f6   : > { %v9547_v55 = vmul.f32 0.70710677, %v17183_v60  ;;  %v17187_v22 = vadd.f32 %v9104_v35, %v9034_v41  ;;  %v9036_v7 = vadd.f32 %v9035_v37, %v8965_v21  ;;  %v8920_v35 = vadd.f32 %v17160_v54, %v17172_v48 }
 0x5f7   : > { %v9037_v59 = vpop.f32.mrf.mxu0  ;;  %v9108_v38 = vpop.f32.mrf.mxu1  ;;  %v9435_v54 = vmul.f32 0.5, %v17183_v60 }
 0x5f8   : > { %11742 = verf.f32 %v9547_v55  ;;  %v9548_v36 = vmul.f32 0.70710677, %v17187_v22  ;;  %v17191_v30 = vadd.f32 %v9106_v32, %v9036_v7  ;;  %v9038_v15 = vadd.f32 %v9037_v59, %v8967_v61 }
 0x5f9   : > { %v9041_v43 = vpop.f32.mrf.mxu0  ;;  %v9112_v46 = vpop.f32.mrf.mxu1 }
 0x5fa   : > { %11744 = verf.f32 %v9548_v36  ;;  %v9563_v6 = vmul.f32 0.70710677, %v17191_v30  ;;  %v9042_v10 = vadd.f32 %v9041_v43, %v8971_v62  ;;  %v17198_v12 = vadd.f32 %v9108_v38, %v9038_v15 }
 0x5fb   : > { %v9043_v28 = vpop.f32.mrf.mxu0  ;;  %v9114_v52 = vpop.f32.mrf.mxu1  ;;  %v8987_v38 = vadd.f32 %v17158_v40, %v8916_v53  ;;  %v8991_v62 = vadd.f32 %v17162_v34, %v8920_v35  ;;  %v9436_v15 = vmul.f32 0.5, %v17187_v22  ;;  %v9451_v49 = vmul.f32 0.5, %v17191_v30 }
 0x5fc   : > { %11746 = verf.f32 %v9563_v6  ;;  %v17202_v0 = vadd.f32 %v9112_v46, %v9042_v10  ;;  %v9044_v51 = vadd.f32 %v9043_v28, %v8973_v50  ;;  %v9564_v3 = vmul.f32 0.70710677, %v17198_v12 }
 0x5fd   : > { %v9045_v14 = vpop.f32.mrf.mxu0  ;;  %v9116_v27 = vpop.f32.mrf.mxu1  ;;  %v8993_v46 = vadd.f32 %v17166_v63, %v8922_v24 }
 0x5fe   : > { %v9579_v17 = vmul.f32 0.70710677, %v17202_v0  ;;  %v17208_v23 = vadd.f32 %v9114_v52, %v9044_v51  ;;  %v9046_v4 = vadd.f32 %v9045_v14, %v8975_v16  ;;  %11748 = verf.f32 %v9564_v3 }
 0x5ff   : > { %v9047_v8 = vpop.f32.mrf.mxu0  ;;  %v9118_v44 = vpop.f32.mrf.mxu1 }
 0x600   : > { %11750 = verf.f32 %v9579_v17  ;;  %v9580_v57 = vmul.f32 0.70710677, %v17208_v23  ;;  %v17213_v47 = vadd.f32 %v9116_v27, %v9046_v4  ;;  %v9048_v9 = vadd.f32 %v9047_v8, %v8977_v25 }
 0x601   : > { %v9051_v58 = vpop.f32.mrf.mxu0  ;;  %v9122_v26 = vpop.f32.mrf.mxu1  ;;  %v9452_v4 = vmul.f32 0.5, %v17198_v12 }
 0x602   : > { %11752 = verf.f32 %v9580_v57  ;;  %v9595_v2 = vmul.f32 0.70710677, %v17213_v47  ;;  %v9052_v29 = vadd.f32 %v9051_v58, %v8981_v1  ;;  %v17223_v21 = vadd.f32 %v9118_v44, %v9048_v9 }
 0x603   : > { %v9053_v39 = vpop.f32.mrf.mxu0  ;;  %v9124_v41 = vpop.f32.mrf.mxu1  ;;  %v9467_v1 = vmul.f32 0.5, %v17202_v0 }
 0x604   : > { %11754 = verf.f32 %v9595_v2  ;;  %v17225_v11 = vadd.f32 %v9122_v26, %v9052_v29  ;;  %v9054_v37 = vadd.f32 %v9053_v39, %v8983_v19  ;;  %v9596_v55 = vmul.f32 0.70710677, %v17223_v21 }
 0x605   : > { %v11743_v32 = vpop.eup %11742  ;;  %v9055_v20 = vpop.f32.mrf.mxu0  ;;  %v9468_v29 = vmul.f32 0.5, %v17208_v23  ;;  %v9484_v23 = vmul.f32 0.5, %v17223_v21 }
 0x606   : > { %v9126_v7 = vpop.f32.mrf.mxu1  ;;  %v9771_v48 = vadd.f32 1.0, %v11743_v32  ;;  %v9611_v61 = vmul.f32 0.70710677, %v17225_v11  ;;  %v17233_v42 = vadd.f32 %v9124_v41, %v9054_v37  ;;  %11756 = verf.f32 %v9596_v55 }
 0x607   : > { %v11745_v59 = vpop.eup %11744  ;;  %v9056_v31 = vadd.f32 %v9055_v20, %v8985_v33  ;;  %v9057_v18 = vpop.f32.mrf.mxu0  ;;  %v9483_v41 = vmul.f32 0.5, %v17213_v47  ;;  %v9499_v20 = vmul.f32 0.5, %v17225_v11 }
 0x608   : > { %v9128_v5 = vpop.f32.mrf.mxu1  ;;  %v9883_v36 = vmul.f32 %v9771_v48, %v9435_v54  ;;  %v9772_v43 = vadd.f32 1.0, %v11745_v59  ;;  %11758 = verf.f32 %v9611_v61  ;;  %v9612_v50 = vmul.f32 0.70710677, %v17233_v42 }
 0x609   : > { %v11747_v60 = vpop.eup %11746  ;;  %v17240_v6 = vadd.f32 %v9126_v7, %v9056_v31  ;;  %v9058_v40 = vadd.f32 %v9057_v18, %v8987_v38  ;;  %v9061_v34 = vpop.f32.mrf.mxu0  ;;  %v9500_v47 = vmul.f32 0.5, %v17233_v42 }
 0x60a   : > { %v9132_v10 = vpop.f32.mrf.mxu1  ;;  %9995 = vst [vmem:[%s14231_s27 + $0x60] sm:$0xff] %v9883_v36  ;;  %v9884_v16 = vmul.f32 %v9772_v43, %v9436_v15  ;;  %v9787_v28 = vadd.f32 1.0, %v11747_v60  ;;  %v9062_v52 = vadd.f32 %v9061_v34, %v8991_v62  ;;  %11760 = verf.f32 %v9612_v50 }
 0x60b   : > { %v9627_v22 = vmul.f32 0.70710677, %v17240_v6  ;;  %v9129_v56 = vadd.f32 %v9128_v5, %v9058_v40  ;;  %v9063_v63 = vpop.f32.mrf.mxu0  ;;  %v11749_v3 = vpop.eup %11748  ;;  %v9515_v21 = vmul.f32 0.5, %v17240_v6 }
 0x60c   : > { %v9134_v51 = vpop.f32.mrf.mxu1  ;;  %9996 = vst [vmem:[%s14231_s27 + $0x68] sm:$0xff] %v9884_v16  ;;  %v9899_v14 = vmul.f32 %v9787_v28, %v9451_v49  ;;  %v9133_v27 = vadd.f32 %v9132_v10, %v9062_v52  ;;  %v9064_v13 = vadd.f32 %v9063_v63, %v8993_v46  ;;  %v9788_v25 = vadd.f32 1.0, %v11749_v3 }
 0x60d   : > { %v11751_v17 = vpop.eup %11750  ;;  %11762 = verf.f32 %v9627_v22  ;;  %v9628_v30 = vmul.f32 0.70710677, %v9129_v56  ;;  %v9065_v8 = vpop.f32.mrf.mxu0  ;;  %v9516_v36 = vmul.f32 0.5, %v9129_v56 }
 0x60e   : > { %v9136_v44 = vpop.f32.mrf.mxu1  ;;  %10011 = vst [vmem:[%s14231_s27 + $0xe0] sm:$0xff] %v9899_v14  ;;  %v9803_v57 = vadd.f32 1.0, %v11751_v17  ;;  %v9643_v45 = vmul.f32 0.70710677, %v9133_v27  ;;  %v9135_v9 = vadd.f32 %v9134_v51, %v9064_v13  ;;  %v9900_v26 = vmul.f32 %v9788_v25, %v9452_v4 }
 0x60f   : > { %v11753_v58 = vpop.eup %11752  ;;  %11764 = verf.f32 %v9628_v30  ;;  %v9066_v19 = vpop.f32.mrf.mxu0  ;;  %v9531_v43 = vmul.f32 0.5, %v9133_v27 }
 0x610   : > { %v9137_v2 = vpop.f32.mrf.mxu1  ;;  %v9915_v12 = vmul.f32 %v9803_v57, %v9467_v1  ;;  %v9804_v53 = vadd.f32 1.0, %v11753_v58  ;;  %11766 = verf.f32 %v9643_v45  ;;  %10012 = vst [vmem:[%s14231_s27 + $0xe8] sm:$0xff] %v9900_v26  ;;  %v9644_v39 = vmul.f32 0.70710677, %v9135_v9 }
 0x611   : > { %v11755_v35 = vpop.eup %11754  ;;  %v9532_v40 = vmul.f32 0.5, %v9135_v9 }
 0x612   : > { %10027 = vst [vmem:[%s14231_s27 + $0x160] sm:$0xff] %v9915_v12  ;;  %v9916_v0 = vmul.f32 %v9804_v53, %v9468_v29  ;;  %v9819_v37 = vadd.f32 1.0, %v11755_v35  ;;  %11768 = verf.f32 %v9644_v39 }
 0x613   : > { %v11757_v32 = vpop.eup %11756 }
 0x614   : > { %10028 = vst [vmem:[%s14231_s27 + $0x168] sm:$0xff] %v9916_v0  ;;  %v9931_v33 = vmul.f32 %v9819_v37, %v9483_v41  ;;  %v9820_v55 = vadd.f32 1.0, %v11757_v32  ;;  %v11802_v0 = vld [vmem:[%s13921_s15 + $0x8] sm:$0xff] }
 0x615   : > { %v11759_v24 = vpop.eup %11758  ;;  %v18347_v41 = vld [vmem:[#allocation61_spill] sm:$0xff]  ;;  %v18348_v32 = vld [vmem:[#allocation59_spill] sm:$0xff] }
 0x616   : > { %10043 = vst [vmem:[%s14231_s27 + $0x1e0] sm:$0xff] %v9931_v33  ;;  %v9835_v7 = vadd.f32 1.0, %v11759_v24  ;;  %v9932_v54 = vmul.f32 %v9820_v55, %v9484_v23  ;;  %v17292_v37 = vrot.slane %v11802_v0, %v18347_v41  ;;  %v17295_v33 = vrot.slane %v11802_v0, %v18348_v32 }
 0x617   : > { %v11761_v48 = vpop.eup %11760 }
 0x618   : > { %v9947_v61 = vmul.f32 %v9835_v7, %v9499_v20  ;;  %10044 = vst [vmem:[%s14231_s27 + $0x1e8] sm:$0xff] %v9932_v54  ;;  %v9836_v59 = vadd.f32 1.0, %v11761_v48 }
 0x61a   : > { %v11763_v38 = vpop.eup %11762  ;;  %10059 = vst [vmem:[%s14231_s27 + $0x260] sm:$0xff] %v9947_v61  ;;  %v9948_v62 = vmul.f32 %v9836_v59, %v9500_v47 }
 0x61b   : > { %v9851_v31 = vadd.f32 1.0, %v11763_v38 }
 0x61c   : > { %v11765_v18 = vpop.eup %11764  ;;  %10060 = vst [vmem:[%s14231_s27 + $0x268] sm:$0xff] %v9948_v62 }
 0x61d   : > { %v11767_v5 = vpop.eup %11766  ;;  %v9963_v11 = vmul.f32 %v9851_v31, %v9515_v21  ;;  %v9852_v15 = vadd.f32 1.0, %v11765_v18 }
 0x61e   : > { %v9867_v60 = vadd.f32 1.0, %v11767_v5 }
 0x61f   : > { %10075 = vst [vmem:[%s14231_s27 + $0x2e0] sm:$0xff] %v9963_v11  ;;  %v9964_v42 = vmul.f32 %v9852_v15, %v9516_v36  ;;  %v11769_v46 = vpop.eup %11768 }
 0x620   : > { %v9979_v50 = vmul.f32 %v9867_v60, %v9531_v43  ;;  %v9868_v34 = vadd.f32 1.0, %v11769_v46 }
 0x621   : > { %10076 = vst [vmem:[%s14231_s27 + $0x2e8] sm:$0xff] %v9964_v42 }
 0x622   : > { %10091 = vst [vmem:[%s14231_s27 + $0x360] sm:$0x1] %v9979_v50  ;;  %v9980_v6 = vmul.f32 %v9868_v34, %v9532_v40 }
 0x624   : > { %10092 = vst [vmem:[%s14231_s27 + $0x368] sm:$0x1] %v9980_v6 }
 0x632   : > { %v9173_v10 = vpop.f32.mrf.mxu0  ;;  %v9244_v16 = vpop.f32.mrf.mxu1 }
 0x633   : > { %v9174_v24 = vadd.f32 %v9173_v10, %v17292_v37 }
 0x634   : > { %v9175_v49 = vpop.f32.mrf.mxu0  ;;  %v9246_v28 = vpop.f32.mrf.mxu1 }
 0x635   : > { %v9176_v23 = vadd.f32 %v9175_v49, %v17295_v33  ;;  %v9245_v55 = vadd.f32 %v9244_v16, %v9174_v24 }
 0x636   : > { %v9177_v52 = vpop.f32.mrf.mxu0  ;;  %v9248_v22 = vpop.f32.mrf.mxu1 }
 0x637   : > { %v9178_v20 = vadd.f32 %v9177_v52, %v17292_v37  ;;  %v9247_v48 = vadd.f32 %v9246_v28, %v9176_v23 }
 0x638   : > { %v9179_v56 = vpop.f32.mrf.mxu0  ;;  %v9250_v63 = vpop.f32.mrf.mxu1 }
 0x639   : > { %v9180_v47 = vadd.f32 %v9179_v56, %v17295_v33  ;;  %v9249_v62 = vadd.f32 %v9248_v22, %v9178_v20 }
 0x63a   : > { %v9183_v51 = vpop.f32.mrf.mxu0  ;;  %v9254_v3 = vpop.f32.mrf.mxu1 }
 0x63b   : > { %v9184_v21 = vadd.f32 %v9183_v51, %v17292_v37  ;;  %v9251_v42 = vadd.f32 %v9250_v63, %v9180_v47 }
 0x63c   : > { %v9185_v14 = vpop.f32.mrf.mxu0  ;;  %v9256_v27 = vpop.f32.mrf.mxu1 }
 0x63d   : > { %v9186_v36 = vadd.f32 %v9185_v14, %v17295_v33  ;;  %v9255_v34 = vadd.f32 %v9254_v3, %v9184_v21 }
 0x63e   : > { %v9187_v13 = vpop.f32.mrf.mxu0  ;;  %v9258_v17 = vpop.f32.mrf.mxu1 }
 0x63f   : > { %v9188_v46 = vadd.f32 %v9187_v13, %v17292_v37  ;;  %v9257_v52 = vadd.f32 %v9256_v27, %v9186_v36 }
 0x640   : > { %v9189_v4 = vpop.f32.mrf.mxu0  ;;  %v17266_v25 = vpop.f32.mrf.mxu1 }
 0x641   : > { %v9259_v51 = vadd.f32 %v9258_v17, %v9188_v46  ;;  %v9190_v63 = vadd.f32 %v9189_v4, %v17295_v33 }
 0x643   : > { %v9193_v30 = vpop.f32.mrf.mxu0  ;;  %v9261_v24 = vadd.f32 %v17266_v25, %v9190_v63 }
 0x644   : > { %v17268_v8 = vpop.f32.mrf.mxu1 }
 0x645   : > { %v17270_v44 = vpop.f32.mrf.mxu0 }
 0x646   : > { %v17272_v1 = vpop.f32.mrf.mxu1  ;;  %v9196_v41 = vadd.f32 %v17270_v44, %v17295_v33 }
 0x647   : > { %v17274_v57 = vpop.f32.mrf.mxu0 }
 0x648   : > { %v17276_v45 = vpop.f32.mrf.mxu1  ;;  %v9198_v44 = vadd.f32 %v17274_v57, %v17292_v37  ;;  %v9267_v47 = vadd.f32 %v17272_v1, %v9196_v41 }
 0x649   : > { %v17278_v9 = vpop.f32.mrf.mxu0 }
 0x64a   : > { %v17280_v58 = vpop.f32.mrf.mxu1  ;;  %v9269_v1 = vadd.f32 %v17276_v45, %v9198_v44 }
 0x64c   : > { %v17282_v26 = vpop.f32.mrf.mxu0  ;;  %v17284_v19 = vpop.f32.mrf.mxu1 }
 0x64e   : > { %v17286_v2 = vpop.f32.mrf.mxu0  ;;  %v17288_v12 = vpop.f32.mrf.mxu1 }
 0x64f   : > { %v9206_v36 = vadd.f32 %v17286_v2, %v17295_v33 }
 0x650   : > { %v9207_v29 = vpop.f32.mrf.mxu0  ;;  %v9278_v53 = vpop.f32.mrf.mxu1 }
 0x651   : > { %v9194_v29 = vadd.f32 %v9193_v30, %v17292_v37 }
 0x652   : > { %v9208_v35 = vpop.f32.mrf.mxu0  ;;  %v9279_v39 = vpop.f32.mrf.mxu1 }
 0x675   : > { %v9315_v7 = vpop.f32.mrf.mxu0  ;;  %v9386_v54 = vpop.f32.mrf.mxu1 }
 0x676   : > { %v9316_v61 = vadd.f32 %v9315_v7, %v9245_v55  ;;  %v9265_v55 = vadd.f32 %v17268_v8, %v9194_v29  ;;  %v9200_v8 = vadd.f32 %v17278_v9, %v17295_v33 }
 0x677   : > { %v9317_v59 = vpop.f32.mrf.mxu0  ;;  %v9388_v38 = vpop.f32.mrf.mxu1 }
 0x678   : > { %v17302_v31 = vadd.f32 %v9386_v54, %v9316_v61  ;;  %v9318_v18 = vadd.f32 %v9317_v59, %v9247_v48 }
 0x679   : > { %v9319_v5 = vpop.f32.mrf.mxu0  ;;  %v9390_v11 = vpop.f32.mrf.mxu1 }
 0x67a   : > { %v9549_v15 = vmul.f32 0.70710677, %v17302_v31  ;;  %v17306_v43 = vadd.f32 %v9388_v38, %v9318_v18  ;;  %v9320_v60 = vadd.f32 %v9319_v5, %v9249_v62  ;;  %v9204_v38 = vadd.f32 %v17282_v26, %v17292_v37 }
 0x67b   : > { %v9321_v50 = vpop.f32.mrf.mxu0  ;;  %v9392_v40 = vpop.f32.mrf.mxu1  ;;  %v9437_v26 = vmul.f32 0.5, %v17302_v31 }
 0x67c   : > { %11770 = verf.f32 %v9549_v15  ;;  %v9550_v6 = vmul.f32 0.70710677, %v17306_v43  ;;  %v17310_v10 = vadd.f32 %v9390_v11, %v9320_v60  ;;  %v9322_v16 = vadd.f32 %v9321_v50, %v9251_v42 }
 0x67d   : > { %v9325_v49 = vpop.f32.mrf.mxu0  ;;  %v9396_v28 = vpop.f32.mrf.mxu1 }
 0x67e   : > { %11772 = verf.f32 %v9550_v6  ;;  %v9565_v22 = vmul.f32 0.70710677, %v17310_v10  ;;  %v9326_v56 = vadd.f32 %v9325_v49, %v9255_v34  ;;  %v17314_v14 = vadd.f32 %v9392_v40, %v9322_v16 }
 0x67f   : > { %v9327_v13 = vpop.f32.mrf.mxu0  ;;  %v9398_v3 = vpop.f32.mrf.mxu1  ;;  %v9271_v40 = vadd.f32 %v17280_v58, %v9200_v8  ;;  %v9275_v34 = vadd.f32 %v17284_v19, %v9204_v38  ;;  %v9438_v16 = vmul.f32 0.5, %v17306_v43  ;;  %v9453_v63 = vmul.f32 0.5, %v17310_v10 }
 0x680   : > { %11774 = verf.f32 %v9565_v22  ;;  %v17317_v53 = vadd.f32 %v9396_v28, %v9326_v56  ;;  %v9328_v35 = vadd.f32 %v9327_v13, %v9257_v52  ;;  %v9566_v39 = vmul.f32 0.70710677, %v17314_v14 }
 0x681   : > { %v9329_v27 = vpop.f32.mrf.mxu0  ;;  %v9400_v0 = vpop.f32.mrf.mxu1  ;;  %v9277_v28 = vadd.f32 %v17288_v12, %v9206_v36 }
 0x682   : > { %v9581_v17 = vmul.f32 0.70710677, %v17317_v53  ;;  %v17323_v4 = vadd.f32 %v9398_v3, %v9328_v35  ;;  %v9330_v32 = vadd.f32 %v9329_v27, %v9259_v51  ;;  %11776 = verf.f32 %v9566_v39 }
 0x683   : > { %v9331_v30 = vpop.f32.mrf.mxu0  ;;  %v9402_v23 = vpop.f32.mrf.mxu1 }
 0x684   : > { %11778 = verf.f32 %v9581_v17  ;;  %v9582_v20 = vmul.f32 0.70710677, %v17323_v4  ;;  %v17328_v7 = vadd.f32 %v9400_v0, %v9330_v32  ;;  %v9332_v54 = vadd.f32 %v9331_v30, %v9261_v24 }
 0x685   : > { %v9335_v48 = vpop.f32.mrf.mxu0  ;;  %v9406_v61 = vpop.f32.mrf.mxu1  ;;  %v9454_v32 = vmul.f32 0.5, %v17314_v14 }
 0x686   : > { %11780 = verf.f32 %v9582_v20  ;;  %v9597_v25 = vmul.f32 0.70710677, %v17328_v7  ;;  %v9336_v59 = vadd.f32 %v9335_v48, %v9265_v55  ;;  %v17338_v62 = vadd.f32 %v9402_v23, %v9332_v54 }
 0x687   : > { %v9337_v21 = vpop.f32.mrf.mxu0  ;;  %v9408_v18 = vpop.f32.mrf.mxu1  ;;  %v9469_v55 = vmul.f32 0.5, %v17317_v53 }
 0x688   : > { %11782 = verf.f32 %v9597_v25  ;;  %v17340_v57 = vadd.f32 %v9406_v61, %v9336_v59  ;;  %v9338_v5 = vadd.f32 %v9337_v21, %v9267_v47  ;;  %v9598_v15 = vmul.f32 0.70710677, %v17338_v62 }
 0x689   : > { %v11771_v11 = vpop.eup %11770  ;;  %v9339_v9 = vpop.f32.mrf.mxu0  ;;  %v9470_v59 = vmul.f32 0.5, %v17323_v4  ;;  %v9486_v4 = vmul.f32 0.5, %v17338_v62 }
 0x68a   : > { %v9410_v60 = vpop.f32.mrf.mxu1  ;;  %v9773_v37 = vadd.f32 1.0, %v11771_v11  ;;  %v9613_v42 = vmul.f32 0.70710677, %v17340_v57  ;;  %v17348_v46 = vadd.f32 %v9408_v18, %v9338_v5  ;;  %11784 = verf.f32 %v9598_v15 }
 0x68b   : > { %v11773_v50 = vpop.eup %11772  ;;  %v9340_v45 = vadd.f32 %v9339_v9, %v9269_v1  ;;  %v9341_v2 = vpop.f32.mrf.mxu0  ;;  %v9485_v18 = vmul.f32 0.5, %v17328_v7  ;;  %v9501_v9 = vmul.f32 0.5, %v17340_v57 }
 0x68c   : > { %v9412_v33 = vpop.f32.mrf.mxu1  ;;  %v9885_v6 = vmul.f32 %v9773_v37, %v9437_v26  ;;  %v9774_v49 = vadd.f32 1.0, %v11773_v50  ;;  %11786 = verf.f32 %v9613_v42  ;;  %v9614_v52 = vmul.f32 0.70710677, %v17348_v46 }
 0x68d   : > { %v11775_v31 = vpop.eup %11774  ;;  %v17355_v22 = vadd.f32 %v9410_v60, %v9340_v45  ;;  %v9342_v58 = vadd.f32 %v9341_v2, %v9271_v40  ;;  %v9345_v19 = vpop.f32.mrf.mxu0  ;;  %v9502_v7 = vmul.f32 0.5, %v17348_v46 }
 0x68e   : > { %v9416_v56 = vpop.f32.mrf.mxu1  ;;  %9997 = vst [vmem:[%s14231_s27 + $0x70] sm:$0xff] %v9885_v6  ;;  %v9886_v51 = vmul.f32 %v9774_v49, %v9438_v16  ;;  %v9789_v13 = vadd.f32 1.0, %v11775_v31  ;;  %v9346_v3 = vadd.f32 %v9345_v19, %v9275_v34  ;;  %11788 = verf.f32 %v9614_v52 }
 0x68f   : > { %v9629_v43 = vmul.f32 0.70710677, %v17355_v22  ;;  %v9413_v29 = vadd.f32 %v9412_v33, %v9342_v58  ;;  %v9347_v12 = vpop.f32.mrf.mxu0  ;;  %v11777_v39 = vpop.eup %11776  ;;  %v9517_v62 = vmul.f32 0.5, %v17355_v22 }
 0x690   : > { %v9418_v35 = vpop.f32.mrf.mxu1  ;;  %9998 = vst [vmem:[%s14231_s27 + $0x78] sm:$0xff] %v9886_v51  ;;  %v9901_v27 = vmul.f32 %v9789_v13, %v9453_v63  ;;  %v9417_v0 = vadd.f32 %v9416_v56, %v9346_v3  ;;  %v9348_v41 = vadd.f32 %v9347_v12, %v9277_v28  ;;  %v9790_v24 = vadd.f32 1.0, %v11777_v39  ;;  %v10117_v56 = vld [vmem:[%s14231_s27] sm:$0xff] (%p18349_p2)  ;;  %v10119_v51 = vld [vmem:[%s14231_s27 + $0x8] sm:$0xff] (%p18349_p2)  ;;  %v10121_v63 = vld [vmem:[%s14231_s27 + $0x10] sm:$0xff] (%p18349_p2) }
 0x691   : > { %v11779_v17 = vpop.eup %11778  ;;  %11790 = verf.f32 %v9629_v43  ;;  %v9630_v10 = vmul.f32 0.70710677, %v9413_v29  ;;  %v9349_v30 = vpop.f32.mrf.mxu0  ;;  %v9518_v6 = vmul.f32 0.5, %v9413_v29  ;;  %v10123_v13 = vld [vmem:[%s14231_s27 + $0x18] sm:$0xff] (%p18349_p2)  ;;  %v10125_v3 = vld [vmem:[%s14231_s27 + $0x20] sm:$0xff] (%p18349_p2)  ;;  %v10127_v43 = vld [vmem:[%s14231_s27 + $0x28] sm:$0xff] (%p18349_p2)  ;;  %10118 = vst [vmem:[%s17390_s30] sm:$0xff] (%p18349_p2), %v10117_v56 }
 0x692   : > { %v9420_v23 = vpop.f32.mrf.mxu1  ;;  %10013 = vst [vmem:[%s14231_s27 + $0xf0] sm:$0xff] %v9901_v27  ;;  %v9805_v20 = vadd.f32 1.0, %v11779_v17  ;;  %v9645_v44 = vmul.f32 0.70710677, %v9417_v0  ;;  %v9419_v54 = vadd.f32 %v9418_v35, %v9348_v41  ;;  %v9902_v61 = vmul.f32 %v9790_v24, %v9454_v32  ;;  %10120 = vst [vmem:[%s17390_s30 + $0x8] sm:$0xff] (%p18349_p2), %v10119_v51  ;;  %v10129_v29 = vld [vmem:[%s14231_s27 + $0x30] sm:$0xff] (%p18349_p2) }
 0x693   : > { %v11781_v48 = vpop.eup %11780  ;;  %11792 = verf.f32 %v9630_v10  ;;  %v9350_v47 = vpop.f32.mrf.mxu0  ;;  %v9533_v49 = vmul.f32 0.5, %v9417_v0  ;;  %10122 = vst [vmem:[%s17390_s30 + $0x10] sm:$0xff] (%p18349_p2), %v10121_v63  ;;  %10124 = vst [vmem:[%s17390_s30 + $0x18] sm:$0xff] (%p18349_p2), %v10123_v13  ;;  %v10131_v12 = vld [vmem:[%s14231_s27 + $0x38] sm:$0xff] (%p18349_p2)  ;;  %v10133_v35 = vld [vmem:[%s14231_s27 + $0x40] sm:$0xff] (%p18349_p2) }
 0x694   : > { %v9421_v25 = vpop.f32.mrf.mxu1  ;;  %v9917_v14 = vmul.f32 %v9805_v20, %v9469_v55  ;;  %v9806_v8 = vadd.f32 1.0, %v11781_v48  ;;  %11794 = verf.f32 %v9645_v44  ;;  %10014 = vst [vmem:[%s14231_s27 + $0xf8] sm:$0xff] %v9902_v61  ;;  %v9646_v21 = vmul.f32 0.70710677, %v9419_v54  ;;  %10126 = vst [vmem:[%s17390_s30 + $0x20] sm:$0xff] (%p18349_p2), %v10125_v3  ;;  %v10135_v39 = vld [vmem:[%s14231_s27 + $0x48] sm:$0xff] (%p18349_p2) }
 0x695   : > { %v11783_v38 = vpop.eup %11782  ;;  %v9534_v58 = vmul.f32 0.5, %v9419_v54  ;;  %10128 = vst [vmem:[%s17390_s30 + $0x28] sm:$0xff] (%p18349_p2), %v10127_v43  ;;  %10130 = vst [vmem:[%s17390_s30 + $0x30] sm:$0xff] (%p18349_p2), %v10129_v29  ;;  %v10137_v27 = vld [vmem:[%s14231_s27 + $0x50] sm:$0xff] (%p18349_p2)  ;;  %v10139_v0 = vld [vmem:[%s14231_s27 + $0x58] sm:$0xff] (%p18349_p2) }
 0x696   : > { %10029 = vst [vmem:[%s14231_s27 + $0x170] sm:$0xff] %v9917_v14  ;;  %v9918_v53 = vmul.f32 %v9806_v8, %v9470_v59  ;;  %v9821_v5 = vadd.f32 1.0, %v11783_v38  ;;  %11796 = verf.f32 %v9646_v21  ;;  %10132 = vst [vmem:[%s17390_s30 + $0x38] sm:$0xff] (%p18349_p2), %v10131_v12  ;;  %v10141_v41 = vld [vmem:[%s14231_s27 + $0x60] sm:$0xff] (%p18349_p2)  ;;  %v10143_v17 = vld [vmem:[%s14231_s27 + $0x68] sm:$0xff] (%p18349_p2) }
 0x697   : > { %v11785_v11 = vpop.eup %11784  ;;  %10134 = vst [vmem:[%s17390_s30 + $0x40] sm:$0xff] (%p18349_p2), %v10133_v35  ;;  %10136 = vst [vmem:[%s17390_s30 + $0x48] sm:$0xff] (%p18349_p2), %v10135_v39  ;;  %v10145_v32 = vld [vmem:[%s14231_s27 + $0x70] sm:$0xff] (%p18349_p2)  ;;  %v10147_v24 = vld [vmem:[%s14231_s27 + $0x78] sm:$0xff] (%p18349_p2) }
 0x698   : > { %10030 = vst [vmem:[%s14231_s27 + $0x178] sm:$0xff] %v9918_v53  ;;  %v9933_v1 = vmul.f32 %v9821_v5, %v9485_v18  ;;  %v9822_v15 = vadd.f32 1.0, %v11785_v11  ;;  %10138 = vst [vmem:[%s17390_s30 + $0x50] sm:$0xff] (%p18349_p2), %v10137_v27  ;;  %v10149_v10 = vld [vmem:[%s14231_s27 + $0x80] sm:$0xff] (%p18349_p2)  ;;  %v10151_v30 = vld [vmem:[%s14231_s27 + $0x88] sm:$0xff] (%p18349_p2) }
 0x699   : > { %v11787_v36 = vpop.eup %11786  ;;  %10140 = vst [vmem:[%s17390_s30 + $0x58] sm:$0xff] (%p18349_p2), %v10139_v0  ;;  %10142 = vst [vmem:[%s17390_s30 + $0x60] sm:$0xff] (%p18349_p2), %v10141_v41  ;;  %v10153_v23 = vld [vmem:[%s14231_s27 + $0x90] sm:$0xff] (%p18349_p2)  ;;  %v10155_v55 = vld [vmem:[%s14231_s27 + $0x98] sm:$0xff] (%p18349_p2) }
 0x69a   : > { %10045 = vst [vmem:[%s14231_s27 + $0x1f0] sm:$0xff] %v9933_v1  ;;  %v9837_v60 = vadd.f32 1.0, %v11787_v36  ;;  %v9934_v26 = vmul.f32 %v9822_v15, %v9486_v4  ;;  %10144 = vst [vmem:[%s17390_s30 + $0x68] sm:$0xff] (%p18349_p2), %v10143_v17  ;;  %v10157_v20 = vld [vmem:[%s14231_s27 + $0xa0] sm:$0xff] (%p18349_p2)  ;;  %v10159_v44 = vld [vmem:[%s14231_s27 + $0xa8] sm:$0xff] (%p18349_p2) }
 0x69b   : > { %v11789_v37 = vpop.eup %11788  ;;  %10146 = vst [vmem:[%s17390_s30 + $0x70] sm:$0xff] (%p18349_p2), %v10145_v32  ;;  %10148 = vst [vmem:[%s17390_s30 + $0x78] sm:$0xff] (%p18349_p2), %v10147_v24  ;;  %v10161_v54 = vld [vmem:[%s14231_s27 + $0xb0] sm:$0xff] (%p18349_p2)  ;;  %v10163_v48 = vld [vmem:[%s14231_s27 + $0xb8] sm:$0xff] (%p18349_p2) }
 0x69c   : > { %v9949_v42 = vmul.f32 %v9837_v60, %v9501_v9  ;;  %10046 = vst [vmem:[%s14231_s27 + $0x1f8] sm:$0xff] %v9934_v26  ;;  %v9838_v50 = vadd.f32 1.0, %v11789_v37  ;;  %10150 = vst [vmem:[%s17390_s30 + $0x100] sm:$0xff] (%p18349_p2), %v10149_v10  ;;  %v10165_v61 = vld [vmem:[%s14231_s27 + $0xc0] sm:$0xff] (%p18349_p2)  ;;  %v10167_v47 = vld [vmem:[%s14231_s27 + $0xc8] sm:$0xff] (%p18349_p2) }
 0x69d   : > { %10152 = vst [vmem:[%s17390_s30 + $0x108] sm:$0xff] (%p18349_p2), %v10151_v30  ;;  %10154 = vst [vmem:[%s17390_s30 + $0x110] sm:$0xff] (%p18349_p2), %v10153_v23  ;;  %v10169_v25 = vld [vmem:[%s14231_s27 + $0xd0] sm:$0xff] (%p18349_p2)  ;;  %v10171_v14 = vld [vmem:[%s14231_s27 + $0xd8] sm:$0xff] (%p18349_p2) }
 0x69e   : > { %v11791_v40 = vpop.eup %11790  ;;  %10061 = vst [vmem:[%s14231_s27 + $0x270] sm:$0xff] %v9949_v42  ;;  %v9950_v34 = vmul.f32 %v9838_v50, %v9502_v7  ;;  %10156 = vst [vmem:[%s17390_s30 + $0x118] sm:$0xff] (%p18349_p2), %v10155_v55  ;;  %v10173_v59 = vld [vmem:[%s14231_s27 + $0xe0] sm:$0xff] (%p18349_p2)  ;;  %v10175_v8 = vld [vmem:[%s14231_s27 + $0xe8] sm:$0xff] (%p18349_p2) }
 0x69f   : > { %v9853_v45 = vadd.f32 1.0, %v11791_v40  ;;  %10158 = vst [vmem:[%s17390_s30 + $0x120] sm:$0xff] (%p18349_p2), %v10157_v20  ;;  %10160 = vst [vmem:[%s17390_s30 + $0x128] sm:$0xff] (%p18349_p2), %v10159_v44  ;;  %v10177_v38 = vld [vmem:[%s14231_s27 + $0xf0] sm:$0xff] (%p18349_p2)  ;;  %v10179_v21 = vld [vmem:[%s14231_s27 + $0xf8] sm:$0xff] (%p18349_p2) }
 0x6a0   : > { %v11793_v2 = vpop.eup %11792  ;;  %10062 = vst [vmem:[%s14231_s27 + $0x278] sm:$0xff] %v9950_v34  ;;  %10162 = vst [vmem:[%s17390_s30 + $0x130] sm:$0xff] (%p18349_p2), %v10161_v54  ;;  %v10181_v53 = vld [vmem:[%s14231_s27 + $0x100] sm:$0xff] (%p18349_p2)  ;;  %v10183_v18 = vld [vmem:[%s14231_s27 + $0x108] sm:$0xff] (%p18349_p2) }
 0x6a1   : > { %v11795_v33 = vpop.eup %11794  ;;  %v9965_v57 = vmul.f32 %v9853_v45, %v9517_v62  ;;  %v9854_v16 = vadd.f32 1.0, %v11793_v2  ;;  %10164 = vst [vmem:[%s17390_s30 + $0x138] sm:$0xff] (%p18349_p2), %v10163_v48  ;;  %10166 = vst [vmem:[%s17390_s30 + $0x140] sm:$0xff] (%p18349_p2), %v10165_v61  ;;  %v10185_v5 = vld [vmem:[%s14231_s27 + $0x110] sm:$0xff] (%p18349_p2)  ;;  %v10187_v11 = vld [vmem:[%s14231_s27 + $0x118] sm:$0xff] (%p18349_p2) }
 0x6a2   : > { %v9869_v31 = vadd.f32 1.0, %v11795_v33  ;;  %10168 = vst [vmem:[%s17390_s30 + $0x148] sm:$0xff] (%p18349_p2), %v10167_v47  ;;  %10170 = vst [vmem:[%s17390_s30 + $0x150] sm:$0xff] (%p18349_p2), %v10169_v25  ;;  %v10189_v1 = vld [vmem:[%s14231_s27 + $0x120] sm:$0xff] (%p18349_p2)  ;;  %v10191_v36 = vld [vmem:[%s14231_s27 + $0x128] sm:$0xff] (%p18349_p2) }
 0x6a3   : > { %10077 = vst [vmem:[%s14231_s27 + $0x2f0] sm:$0xff] %v9965_v57  ;;  %v9966_v46 = vmul.f32 %v9854_v16, %v9518_v6  ;;  %v11797_v28 = vpop.eup %11796  ;;  %10172 = vst [vmem:[%s17390_s30 + $0x158] sm:$0xff] (%p18349_p2), %v10171_v14  ;;  %v10193_v4 = vld [vmem:[%s14231_s27 + $0x130] sm:$0xff] (%p18349_p2)  ;;  %v10195_v15 = vld [vmem:[%s14231_s27 + $0x138] sm:$0xff] (%p18349_p2) }
 0x6a4   : > { %v9981_v52 = vmul.f32 %v9869_v31, %v9533_v49  ;;  %v9870_v19 = vadd.f32 1.0, %v11797_v28  ;;  %10101 = sbr.rel (!%p18349_p2) target bundleno = 1744 (0x6d0), region = 60  ;;  %10174 = vst [vmem:[%s17390_s30 + $0x160] sm:$0xff] (%p18349_p2), %v10173_v59  ;;  %10176 = vst [vmem:[%s17390_s30 + $0x168] sm:$0xff] (%p18349_p2), %v10175_v8  ;;  %v10197_v9 = vld [vmem:[%s14231_s27 + $0x140] sm:$0xff] (%p18349_p2)  ;;  %v10199_v60 = vld [vmem:[%s14231_s27 + $0x148] sm:$0xff] (%p18349_p2) }
 0x6a5   : > { %10078 = vst [vmem:[%s14231_s27 + $0x2f8] sm:$0xff] %v9966_v46  ;;  %10178 = vst [vmem:[%s17390_s30 + $0x170] sm:$0xff] (%p18349_p2), %v10177_v38  ;;  %v10201_v26 = vld [vmem:[%s14231_s27 + $0x150] sm:$0xff] (%p18349_p2)  ;;  %v10203_v37 = vld [vmem:[%s14231_s27 + $0x158] sm:$0xff] (%p18349_p2) }
 0x6a6   : > { %10093 = vst [vmem:[%s14231_s27 + $0x370] sm:$0x1] %v9981_v52  ;;  %v9982_v22 = vmul.f32 %v9870_v19, %v9534_v58  ;;  %10180 = vst [vmem:[%s17390_s30 + $0x178] sm:$0xff] (%p18349_p2), %v10179_v21  ;;  %v10205_v42 = vld [vmem:[%s14231_s27 + $0x160] sm:$0xff] (%p18349_p2)  ;;  %v10207_v7 = vld [vmem:[%s14231_s27 + $0x168] sm:$0xff] (%p18349_p2) }
 0x6a7   : > { %10182 = vst [vmem:[%s17390_s30 + $0x200] sm:$0xff] (%p18349_p2), %v10181_v53  ;;  %10184 = vst [vmem:[%s17390_s30 + $0x208] sm:$0xff] (%p18349_p2), %v10183_v18  ;;  %v10209_v50 = vld [vmem:[%s14231_s27 + $0x170] sm:$0xff] (%p18349_p2)  ;;  %v10211_v40 = vld [vmem:[%s14231_s27 + $0x178] sm:$0xff] (%p18349_p2) }
 0x6a8   : > { %10094 = vst [vmem:[%s14231_s27 + $0x378] sm:$0x1] %v9982_v22  ;;  %10186 = vst [vmem:[%s17390_s30 + $0x210] sm:$0xff] (%p18349_p2), %v10185_v5  ;;  %v10213_v34 = vld [vmem:[%s14231_s27 + $0x180] sm:$0xff] (%p18349_p2)  ;;  %v10215_v62 = vld [vmem:[%s14231_s27 + $0x188] sm:$0xff] (%p18349_p2) }
 0x6a9   : > { %10188 = vst [vmem:[%s17390_s30 + $0x218] sm:$0xff] %v10187_v11  ;;  %10190 = vst [vmem:[%s17390_s30 + $0x220] sm:$0xff] %v10189_v1  ;;  %v10217_v45 = vld [vmem:[%s14231_s27 + $0x190] sm:$0xff]  ;;  %v10219_v2 = vld [vmem:[%s14231_s27 + $0x198] sm:$0xff] }
 0x6aa   : > { %10192 = vst [vmem:[%s17390_s30 + $0x228] sm:$0xff] %v10191_v36  ;;  %10194 = vst [vmem:[%s17390_s30 + $0x230] sm:$0xff] %v10193_v4  ;;  %v10221_v33 = vld [vmem:[%s14231_s27 + $0x1a0] sm:$0xff]  ;;  %v10223_v57 = vld [vmem:[%s14231_s27 + $0x1a8] sm:$0xff] }
 0x6ab   : > { %10196 = vst [vmem:[%s17390_s30 + $0x238] sm:$0xff] %v10195_v15  ;;  %10198 = vst [vmem:[%s17390_s30 + $0x240] sm:$0xff] %v10197_v9  ;;  %v10225_v6 = vld [vmem:[%s14231_s27 + $0x1b0] sm:$0xff]  ;;  %v10227_v16 = vld [vmem:[%s14231_s27 + $0x1b8] sm:$0xff] }
 0x6ac   : > { %10200 = vst [vmem:[%s17390_s30 + $0x248] sm:$0xff] %v10199_v60  ;;  %10202 = vst [vmem:[%s17390_s30 + $0x250] sm:$0xff] %v10201_v26  ;;  %v10229_v49 = vld [vmem:[%s14231_s27 + $0x1c0] sm:$0xff]  ;;  %v10231_v31 = vld [vmem:[%s14231_s27 + $0x1c8] sm:$0xff] }
 0x6ad   : > { %10204 = vst [vmem:[%s17390_s30 + $0x258] sm:$0xff] %v10203_v37  ;;  %10206 = vst [vmem:[%s17390_s30 + $0x260] sm:$0xff] %v10205_v42  ;;  %v10233_v46 = vld [vmem:[%s14231_s27 + $0x1d0] sm:$0xff]  ;;  %v10235_v28 = vld [vmem:[%s14231_s27 + $0x1d8] sm:$0xff] }
 0x6ae   : > { %10208 = vst [vmem:[%s17390_s30 + $0x268] sm:$0xff] %v10207_v7  ;;  %10210 = vst [vmem:[%s17390_s30 + $0x270] sm:$0xff] %v10209_v50  ;;  %v10237_v52 = vld [vmem:[%s14231_s27 + $0x1e0] sm:$0xff]  ;;  %v10239_v58 = vld [vmem:[%s14231_s27 + $0x1e8] sm:$0xff] }
 0x6af   : > { %10212 = vst [vmem:[%s17390_s30 + $0x278] sm:$0xff] %v10211_v40  ;;  %10214 = vst [vmem:[%s17390_s30 + $0x300] sm:$0xff] %v10213_v34  ;;  %v10241_v19 = vld [vmem:[%s14231_s27 + $0x1f0] sm:$0xff]  ;;  %v10243_v22 = vld [vmem:[%s14231_s27 + $0x1f8] sm:$0xff] }
 0x6b0   : > { %10216 = vst [vmem:[%s17390_s30 + $0x308] sm:$0xff] %v10215_v62  ;;  %10218 = vst [vmem:[%s17390_s30 + $0x310] sm:$0xff] %v10217_v45  ;;  %v10245_v56 = vld [vmem:[%s14231_s27 + $0x200] sm:$0xff]  ;;  %v10247_v51 = vld [vmem:[%s14231_s27 + $0x208] sm:$0xff] }
 0x6b1   : > { %10220 = vst [vmem:[%s17390_s30 + $0x318] sm:$0xff] %v10219_v2  ;;  %10222 = vst [vmem:[%s17390_s30 + $0x320] sm:$0xff] %v10221_v33  ;;  %v10249_v63 = vld [vmem:[%s14231_s27 + $0x210] sm:$0xff]  ;;  %v10251_v13 = vld [vmem:[%s14231_s27 + $0x218] sm:$0xff] }
 0x6b2   : > { %10224 = vst [vmem:[%s17390_s30 + $0x328] sm:$0xff] %v10223_v57  ;;  %10226 = vst [vmem:[%s17390_s30 + $0x330] sm:$0xff] %v10225_v6  ;;  %v10253_v3 = vld [vmem:[%s14231_s27 + $0x220] sm:$0xff]  ;;  %v10255_v43 = vld [vmem:[%s14231_s27 + $0x228] sm:$0xff] }
 0x6b3   : > { %10228 = vst [vmem:[%s17390_s30 + $0x338] sm:$0xff] %v10227_v16  ;;  %10230 = vst [vmem:[%s17390_s30 + $0x340] sm:$0xff] %v10229_v49  ;;  %v10257_v29 = vld [vmem:[%s14231_s27 + $0x230] sm:$0xff]  ;;  %v10259_v12 = vld [vmem:[%s14231_s27 + $0x238] sm:$0xff] }
 0x6b4   : > { %10232 = vst [vmem:[%s17390_s30 + $0x348] sm:$0xff] %v10231_v31  ;;  %10234 = vst [vmem:[%s17390_s30 + $0x350] sm:$0xff] %v10233_v46  ;;  %v10261_v35 = vld [vmem:[%s14231_s27 + $0x240] sm:$0xff]  ;;  %v10263_v39 = vld [vmem:[%s14231_s27 + $0x248] sm:$0xff] }
 0x6b5   : > { %10236 = vst [vmem:[%s17390_s30 + $0x358] sm:$0xff] %v10235_v28  ;;  %10238 = vst [vmem:[%s17390_s30 + $0x360] sm:$0xff] %v10237_v52  ;;  %v10265_v27 = vld [vmem:[%s14231_s27 + $0x250] sm:$0xff]  ;;  %v10267_v0 = vld [vmem:[%s14231_s27 + $0x258] sm:$0xff] }
 0x6b6   : > { %10240 = vst [vmem:[%s17390_s30 + $0x368] sm:$0xff] %v10239_v58  ;;  %10242 = vst [vmem:[%s17390_s30 + $0x370] sm:$0xff] %v10241_v19  ;;  %v10269_v41 = vld [vmem:[%s14231_s27 + $0x260] sm:$0xff]  ;;  %v10271_v17 = vld [vmem:[%s14231_s27 + $0x268] sm:$0xff] }
 0x6b7   : > { %10244 = vst [vmem:[%s17390_s30 + $0x378] sm:$0xff] %v10243_v22  ;;  %10246 = vst [vmem:[%s17390_s30 + $0x400] sm:$0xff] %v10245_v56  ;;  %v10273_v32 = vld [vmem:[%s14231_s27 + $0x270] sm:$0xff]  ;;  %v10275_v24 = vld [vmem:[%s14231_s27 + $0x278] sm:$0xff] }
 0x6b8   : > { %10248 = vst [vmem:[%s17390_s30 + $0x408] sm:$0xff] %v10247_v51  ;;  %10250 = vst [vmem:[%s17390_s30 + $0x410] sm:$0xff] %v10249_v63  ;;  %v10277_v10 = vld [vmem:[%s14231_s27 + $0x280] sm:$0xff]  ;;  %v10279_v30 = vld [vmem:[%s14231_s27 + $0x288] sm:$0xff] }
 0x6b9   : > { %10252 = vst [vmem:[%s17390_s30 + $0x418] sm:$0xff] %v10251_v13  ;;  %10254 = vst [vmem:[%s17390_s30 + $0x420] sm:$0xff] %v10253_v3  ;;  %v10281_v23 = vld [vmem:[%s14231_s27 + $0x290] sm:$0xff]  ;;  %v10283_v55 = vld [vmem:[%s14231_s27 + $0x298] sm:$0xff] }
 0x6ba   : > { %10256 = vst [vmem:[%s17390_s30 + $0x428] sm:$0xff] %v10255_v43  ;;  %10258 = vst [vmem:[%s17390_s30 + $0x430] sm:$0xff] %v10257_v29  ;;  %v10285_v20 = vld [vmem:[%s14231_s27 + $0x2a0] sm:$0xff]  ;;  %v10287_v44 = vld [vmem:[%s14231_s27 + $0x2a8] sm:$0xff] }
 0x6bb   : > { %10260 = vst [vmem:[%s17390_s30 + $0x438] sm:$0xff] %v10259_v12  ;;  %10262 = vst [vmem:[%s17390_s30 + $0x440] sm:$0xff] %v10261_v35  ;;  %v10289_v54 = vld [vmem:[%s14231_s27 + $0x2b0] sm:$0xff]  ;;  %v10291_v48 = vld [vmem:[%s14231_s27 + $0x2b8] sm:$0xff] }
 0x6bc   : > { %10264 = vst [vmem:[%s17390_s30 + $0x448] sm:$0xff] %v10263_v39  ;;  %10266 = vst [vmem:[%s17390_s30 + $0x450] sm:$0xff] %v10265_v27  ;;  %v10293_v61 = vld [vmem:[%s14231_s27 + $0x2c0] sm:$0xff]  ;;  %v10295_v47 = vld [vmem:[%s14231_s27 + $0x2c8] sm:$0xff] }
 0x6bd   : > { %10268 = vst [vmem:[%s17390_s30 + $0x458] sm:$0xff] %v10267_v0  ;;  %10270 = vst [vmem:[%s17390_s30 + $0x460] sm:$0xff] %v10269_v41  ;;  %v10297_v25 = vld [vmem:[%s14231_s27 + $0x2d0] sm:$0xff]  ;;  %v10299_v14 = vld [vmem:[%s14231_s27 + $0x2d8] sm:$0xff] }
 0x6be   : > { %10272 = vst [vmem:[%s17390_s30 + $0x468] sm:$0xff] %v10271_v17  ;;  %10274 = vst [vmem:[%s17390_s30 + $0x470] sm:$0xff] %v10273_v32  ;;  %v10301_v59 = vld [vmem:[%s14231_s27 + $0x2e0] sm:$0xff]  ;;  %v10303_v8 = vld [vmem:[%s14231_s27 + $0x2e8] sm:$0xff] }
 0x6bf   : > { %10276 = vst [vmem:[%s17390_s30 + $0x478] sm:$0xff] %v10275_v24  ;;  %10278 = vst [vmem:[%s17390_s30 + $0x500] sm:$0xff] %v10277_v10  ;;  %v10305_v38 = vld [vmem:[%s14231_s27 + $0x2f0] sm:$0xff]  ;;  %v10307_v21 = vld [vmem:[%s14231_s27 + $0x2f8] sm:$0xff] }
 0x6c0   : > { %10280 = vst [vmem:[%s17390_s30 + $0x508] sm:$0xff] %v10279_v30  ;;  %10282 = vst [vmem:[%s17390_s30 + $0x510] sm:$0xff] %v10281_v23  ;;  %v10309_v53 = vld [vmem:[%s14231_s27 + $0x300] sm:$0xff]  ;;  %v10311_v18 = vld [vmem:[%s14231_s27 + $0x308] sm:$0xff] }
 0x6c1   : > { %10284 = vst [vmem:[%s17390_s30 + $0x518] sm:$0xff] %v10283_v55  ;;  %10286 = vst [vmem:[%s17390_s30 + $0x520] sm:$0xff] %v10285_v20  ;;  %v10313_v5 = vld [vmem:[%s14231_s27 + $0x310] sm:$0xff]  ;;  %v10315_v11 = vld [vmem:[%s14231_s27 + $0x318] sm:$0xff] }
 0x6c2   : > { %10288 = vst [vmem:[%s17390_s30 + $0x528] sm:$0xff] %v10287_v44  ;;  %10290 = vst [vmem:[%s17390_s30 + $0x530] sm:$0xff] %v10289_v54  ;;  %v10317_v1 = vld [vmem:[%s14231_s27 + $0x320] sm:$0xff]  ;;  %v10319_v36 = vld [vmem:[%s14231_s27 + $0x328] sm:$0xff] }
 0x6c3   : > { %10292 = vst [vmem:[%s17390_s30 + $0x538] sm:$0xff] %v10291_v48  ;;  %10294 = vst [vmem:[%s17390_s30 + $0x540] sm:$0xff] %v10293_v61  ;;  %v10321_v4 = vld [vmem:[%s14231_s27 + $0x330] sm:$0xff]  ;;  %v10323_v15 = vld [vmem:[%s14231_s27 + $0x338] sm:$0xff] }
 0x6c4   : > { %10296 = vst [vmem:[%s17390_s30 + $0x548] sm:$0xff] %v10295_v47  ;;  %10298 = vst [vmem:[%s17390_s30 + $0x550] sm:$0xff] %v10297_v25  ;;  %v10325_v9 = vld [vmem:[%s14231_s27 + $0x340] sm:$0xff]  ;;  %v10327_v60 = vld [vmem:[%s14231_s27 + $0x348] sm:$0xff] }
 0x6c5   : > { %10300 = vst [vmem:[%s17390_s30 + $0x558] sm:$0xff] %v10299_v14  ;;  %10302 = vst [vmem:[%s17390_s30 + $0x560] sm:$0xff] %v10301_v59  ;;  %v10329_v26 = vld [vmem:[%s14231_s27 + $0x350] sm:$0xff]  ;;  %v10331_v37 = vld [vmem:[%s14231_s27 + $0x358] sm:$0xff] }
 0x6c6   : > { %10304 = vst [vmem:[%s17390_s30 + $0x568] sm:$0xff] %v10303_v8  ;;  %10306 = vst [vmem:[%s17390_s30 + $0x570] sm:$0xff] %v10305_v38  ;;  %v10333_v42 = vld [vmem:[%s14231_s27 + $0x360] sm:$0xff]  ;;  %v10335_v7 = vld [vmem:[%s14231_s27 + $0x368] sm:$0xff] }
 0x6c7   : > { %10308 = vst [vmem:[%s17390_s30 + $0x578] sm:$0xff] %v10307_v21  ;;  %10310 = vst [vmem:[%s17390_s30 + $0x600] sm:$0xff] %v10309_v53  ;;  %v10337_v50 = vld [vmem:[%s14231_s27 + $0x370] sm:$0xff]  ;;  %v10339_v40 = vld [vmem:[%s14231_s27 + $0x378] sm:$0xff] }
 0x6c8   : > { %10312 = vst [vmem:[%s17390_s30 + $0x608] sm:$0xff] %v10311_v18  ;;  %10314 = vst [vmem:[%s17390_s30 + $0x610] sm:$0xff] %v10313_v5 }
 0x6c9   : > { %10316 = vst [vmem:[%s17390_s30 + $0x618] sm:$0xff] %v10315_v11  ;;  %10318 = vst [vmem:[%s17390_s30 + $0x620] sm:$0xff] %v10317_v1 }
 0x6ca   : > { %10320 = vst [vmem:[%s17390_s30 + $0x628] sm:$0xff] %v10319_v36  ;;  %10322 = vst [vmem:[%s17390_s30 + $0x630] sm:$0xff] %v10321_v4 }
 0x6cb   : > { %10324 = vst [vmem:[%s17390_s30 + $0x638] sm:$0xff] %v10323_v15  ;;  %10326 = vst [vmem:[%s17390_s30 + $0x640] sm:$0xff] %v10325_v9 }
 0x6cc   : > { %10328 = vst [vmem:[%s17390_s30 + $0x648] sm:$0xff] %v10327_v60  ;;  %10330 = vst [vmem:[%s17390_s30 + $0x650] sm:$0xff] %v10329_v26 }
 0x6cd   : > { %10332 = vst [vmem:[%s17390_s30 + $0x658] sm:$0xff] %v10331_v37  ;;  %10334 = vst [vmem:[%s17390_s30 + $0x660] sm:$0xff] %v10333_v42 }
 0x6ce   : > { %10336 = vst [vmem:[%s17390_s30 + $0x668] sm:$0xff] %v10335_v7  ;;  %10338 = vst [vmem:[%s17390_s30 + $0x670] sm:$0xff] %v10337_v50 }
 0x6cf   : > { %10340 = vst [vmem:[%s17390_s30 + $0x678] sm:$0xff] %v10339_v40 }
 0x6d0 PF: > { %p14_p13 = scmp.ge.s32.totalorder %s12013_s23, 4   ;;  %s18350_s18 = smov %s11945_s19 }
 0x6d1   : > { %s18351_s19 = smov %s11949_s20  ;;  %s18352_s20 = smov %s12023_s26 }
 0x6d2   : > { %s18353_s21 = smov %s12013_s23  ;;  %16 = sbr.rel (!%p14_p13) target bundleno = 3 (0x3), region = 121 }
 0x6d7   :  { %10356 = vsyncpa [#allocation3], 1 }
 0x6d8   :  { %10358 = vsyncpa [#allocation3 + $0x1], 1 }
 0x6d9   :  { %10359 = vsyncpa [#allocation5], 1 }

</bundles_post_ra>
